<compile_context>
chip_gen: v5e
topology: v5e:2x2
jax: 0.10.0
libtpu: 0.0.40
codegen_flags: <defaults>
</compile_context>

<pallas_src>
import functools
import math

import jax
import jax.numpy as jnp
from jax.experimental import pallas as pl
from jax.experimental.pallas import tpu as pltpu

NUM_CLASSES = 4
NUM_ANCHORS = 6


def _round_up(x, m):
    return (x + m - 1) // m * m


def _device_kind():
    try:
        return jax.devices()[0].device_kind.lower()
    except Exception:
        return ""


_KIND = _device_kind()
# v7x has only 64 MiB physical VMEM -> keep a conservative 48 MiB scoped cap
# there (also the safe default); v5e/v6e have 128 MiB -> allow more headroom.
_VMEM_LIMIT = (100 * 1024 * 1024 if ("v5" in _KIND or "v6" in _KIND)
               else 48 * 1024 * 1024)
# Per-layer working-set target used by tile selection (fits every generation).
_VMEM_BUDGET = 40 * 1024 * 1024


# -----------------------------------------------------------------------------
# Pallas kernels
# -----------------------------------------------------------------------------
def _mm_kernel_wres(a_ref, b_ref, bias_ref, o_ref, *, relu):
    """Weight-resident GEMM: full-K / full-N weight block lives in VMEM, a
    single dot per M tile, bias + optional ReLU fused, bf16 store."""
    y = jnp.dot(a_ref[...], b_ref[...], preferred_element_type=jnp.float32)
    y = y + bias_ref[...]                      # bias broadcast per column (f32)
    if relu:
        y = jnp.maximum(y, 0.0)
    o_ref[...] = y.astype(o_ref.dtype)


def _mm_kernel_ktiled(a_ref, b_ref, bias_ref, o_ref, acc_ref, *, relu):
    """Fallback for weights too large to keep VMEM resident: K-tiled
    accumulation in an f32 scratch, bf16 store at the last k step."""
    k = pl.program_id(2)
    prod = jnp.dot(a_ref[...], b_ref[...], preferred_element_type=jnp.float32)

    @pl.when(k == 0)
    def _():
        acc_ref[...] = prod                    # no separate zero-init store

    @pl.when(k > 0)
    def _():
        acc_ref[...] += prod

    @pl.when(k == pl.num_programs(2) - 1)
    def _():
        y = acc_ref[...] + bias_ref[...]
        if relu:
            y = jnp.maximum(y, 0.0)
        o_ref[...] = y.astype(o_ref.dtype)


# -----------------------------------------------------------------------------
# Tile selection (weight-resident preferred)
# -----------------------------------------------------------------------------
def _wres_bytes(tm, K, Np):
    return (2 * K * Np * 2        # double-buffered bf16 weight block (resident)
            + 2 * tm * K * 2      # double-buffered bf16 A tiles
            + 2 * tm * Np * 2     # double-buffered bf16 output tiles
            + tm * Np * 4         # f32 epilogue temporary
            + 2 * Np * 4)         # bias


def _pick_tm(M, K, Np):
    """Largest tm (<=512) whose weight-resident working set fits VMEM, keeping
    >=2 M blocks for megacore whenever M allows; None -> K-tiled fallback."""
    for tm in (512, 256, 128):
        if M >= 2 * tm and _wres_bytes(tm, K, Np) <= _VMEM_BUDGET:
            return tm
    if _wres_bytes(128, K, Np) <= _VMEM_BUDGET:
        return 128
    return None


def matmul_bias_act(a, wp, bp, n_out, relu):
    """act((a @ wp) + bp)[:, :n_out] in bf16.
    a:  (M, K)  bf16 im2col columns (no padding required),
    wp: (K, Np) bf16 packed weight (BN folded, N zero-padded to 128 multiple),
    bp: (1, Np) f32 bias."""
    M, K = a.shape
    Kw, Np = wp.shape
    assert Kw == K, (Kw, K)

    cost = pl.CostEstimate(
        flops=2 * M * K * Np,
        transcendentals=0,
        bytes_accessed=M * K * 2 + K * Np * 2 + Np * 4 + M * Np * 2)

    tm = _pick_tm(M, K, Np)
    if tm is not None:
        # Weight-resident path: 1-D grid over M only; the B / bias BlockSpec
        # indices are constant so they are DMA'd to VMEM exactly once per layer.
        grid_m = pl.cdiv(M, tm)
        out = pl.pallas_call(
            functools.partial(_mm_kernel_wres, relu=relu),
            out_shape=jax.ShapeDtypeStruct((M, Np), jnp.bfloat16),
            grid_spec=pltpu.PrefetchScalarGridSpec(
                num_scalar_prefetch=0,
                grid=(grid_m,),
                in_specs=[
                    pl.BlockSpec((tm, K), lambda i: (i, 0)),
                    pl.BlockSpec((K, Np), lambda i: (0, 0)),
                    pl.BlockSpec((1, Np), lambda i: (0, 0)),
                ],
                out_specs=pl.BlockSpec((tm, Np), lambda i: (i, 0)),
            ),
            compiler_params=pltpu.CompilerParams(
                dimension_semantics=("parallel",),
                vmem_limit_bytes=_VMEM_LIMIT),
            cost_estimate=cost,
        )(a, wp, bp)
        return out if n_out == Np else out[:, :n_out]

    # Fallback (not used by this architecture): tile N and K, f32 scratch acc.
    tm = 256
    tn = 512 if Np % 512 == 0 else (256 if Np % 256 == 0 else 128)
    if K % 128 == 0:
        tk = next((c for c in range(2048, 0, -128) if K % c == 0), K)
    else:
        tk = K
    out = pl.pallas_call(
        functools.partial(_mm_kernel_ktiled, relu=relu),
        out_shape=jax.ShapeDtypeStruct((M, Np), jnp.bfloat16),
        grid_spec=pltpu.PrefetchScalarGridSpec(
            num_scalar_prefetch=0,
            grid=(pl.cdiv(M, tm), Np // tn, K // tk),
            in_specs=[
                pl.BlockSpec((tm, tk), lambda i, j, k: (i, k)),
                pl.BlockSpec((tk, tn), lambda i, j, k: (k, j)),
                pl.BlockSpec((1, tn), lambda i, j, k: (0, j)),
            ],
            out_specs=pl.BlockSpec((tm, tn), lambda i, j, k: (i, j)),
            scratch_shapes=[pltpu.VMEM((tm, tn), jnp.float32)],
        ),
        compiler_params=pltpu.CompilerParams(
            dimension_semantics=("parallel", "parallel", "arbitrary"),
            vmem_limit_bytes=_VMEM_LIMIT),
        cost_estimate=cost,
    )(a, wp, bp)
    return out if n_out == Np else out[:, :n_out]


# -----------------------------------------------------------------------------
# Convolution = bf16 im2col (glue) + Pallas GEMM; tiny convs -> XLA native conv
# -----------------------------------------------------------------------------
def _im2col(x, kh, kw, stride, padding, dilation):
    B, H, W, C = x.shape
    sh, sw = stride
    ph, pw = padding
    dh, dw = dilation
    oh = (H + 2 * ph - dh * (kh - 1) - 1) // sh + 1
    ow = (W + 2 * pw - dw * (kw - 1) - 1) // sw + 1
    xp = jnp.pad(x, ((0, 0), (ph, ph), (pw, pw), (0, 0)))
    cols = []
    for i in range(kh):
        for j in range(kw):
            cols.append(xp[:, i * dh: i * dh + (oh - 1) * sh + 1: sh,
                            j * dw: j * dw + (ow - 1) * sw + 1: sw, :])
    cols = cols[0] if len(cols) == 1 else jnp.concatenate(cols, axis=-1)
    return cols.reshape(B * oh * ow, kh * kw * C), oh, ow


def conv2d(x, prm, stride=(1, 1), padding=(0, 0), dilation=(1, 1), relu=True):
    wf = prm["wf"]                                # HWIO bf16, BN scale folded
    kh, kw, cin, cout = wf.shape
    if x.dtype != jnp.bfloat16:                   # no-op for the bf16 pipeline
        x = x.astype(jnp.bfloat16)
    B, H, W, _ = x.shape
    sh, sw = stride
    ph, pw = padding
    dh, dw = dilation
    oh = (H + 2 * ph - dh * (kh - 1) - 1) // sh + 1
    ow = (W + 2 * pw - dw * (kw - 1) - 1) // sw + 1
    M, K = B * oh * ow, kh * kw * cin

    if M >= 256 and K >= 128:
        cols, _, _ = _im2col(x, kh, kw, stride, padding, dilation)
        y = matmul_bias_act(cols, prm["wp"], prm["bp"], cout, relu)
        return y.reshape(B, oh, ow, cout)

    # Tiny GEMM (small M or K): a padded Pallas launch wastes the MXU; use
    # XLA's native conv (first conv, heads/extras on small maps, 1x1 on 2x2).
    y = jax.lax.conv_general_dilated(
        x, wf, window_strides=stride, padding=((ph, ph), (pw, pw)),
        rhs_dilation=dilation, dimension_numbers=("NHWC", "HWIO", "NHWC"),
        preferred_element_type=jnp.float32)
    y = y + prm["bp"][0, :cout]
    if relu:
        y = jnp.maximum(y, 0.0)
    return y.astype(jnp.bfloat16)


# -----------------------------------------------------------------------------
# Plain-JAX glue: pooling and bilinear resize (align_corners=True), all bf16
# -----------------------------------------------------------------------------
def maxpool2d(x, k, s, pad=0, ceil=False):
    B, H, W, C = x.shape

    def osz(n):
        num = n + 2 * pad - k
        return (-(-num // s) if ceil else num // s) + 1

    oh, ow = osz(H), osz(W)
    eh = max(0, (oh - 1) * s + k - (H + 2 * pad))
    ew = max(0, (ow - 1) * s + k - (W + 2 * pad))
    xp = jnp.pad(x, ((0, 0), (pad, pad + eh), (pad, pad + ew), (0, 0)),
                 constant_values=float("-inf"))
    return jax.lax.reduce_window(xp, jnp.asarray(float("-inf"), xp.dtype),
                                 jax.lax.max, (1, k, k, 1), (1, s, s, 1),
                                 "VALID")


def _bilinear_align_corners(x, oh, ow):
    B, H, W, C = x.shape
    if oh == H and ow == W:
        return x

    def coords(n_in, n_out):
        if n_out == 1 or n_in == 1:
            return jnp.zeros((n_out,), jnp.float32)
        return jnp.linspace(0.0, n_in - 1.0, n_out)

    ys, xs = coords(H, oh), coords(W, ow)
    y0 = jnp.floor(ys).astype(jnp.int32)
    y1 = jnp.minimum(y0 + 1, H - 1)
    wy = ys - y0.astype(jnp.float32)
    x0 = jnp.floor(xs).astype(jnp.int32)
    x1 = jnp.minimum(x0 + 1, W - 1)
    wx = xs - x0.astype(jnp.float32)

    r0, r1 = x[:, y0, :, :], x[:, y1, :, :]
    row = r0 * (1.0 - wy)[None, :, None, None] + r1 * wy[None, :, None, None]
    c0, c1 = row[:, :, x0, :], row[:, :, x1, :]
    out = c0 * (1.0 - wx)[None, None, :, None] + c1 * wx[None, None, :, None]
    return out.astype(x.dtype)


# -----------------------------------------------------------------------------
# Deterministic parameter construction + one-time packing (outside jit)
# -----------------------------------------------------------------------------
class KeyGen:
    def __init__(self, seed):
        self._key = jax.random.PRNGKey(seed)

    def __call__(self):
        self._key, sub = jax.random.split(self._key)
        return sub


def make_conv(kg, cin, cout, kh, kw, *, bias=True, bn=False):
    fan_in = kh * kw * cin
    w = jax.random.normal(kg(), (kh, kw, cin, cout), jnp.float32) * math.sqrt(2.0 / fan_in)
    if bn:
        gamma = 1.0 + 0.1 * jax.random.normal(kg(), (cout,), jnp.float32)
        beta = 0.1 * jax.random.normal(kg(), (cout,), jnp.float32)
        scale = gamma / jnp.sqrt(1.0 + 1e-5)     # running_mean=0, running_var=1
        shift = beta
    else:
        scale = jnp.ones((cout,), jnp.float32)
        shift = (0.05 * jax.random.normal(kg(), (cout,), jnp.float32)
                 if bias else jnp.zeros((cout,), jnp.float32))
    return {"w": w, "scale": scale, "shift": shift}


def build_params(seed=0):
    kg = KeyGen(seed)
    P = {}
    vgg_cfg = [(3, 64), (64, 64), (64, 128), (128, 128), (128, 256), (256, 256),
               (256, 256), (256, 512), (512, 512), (512, 512), (512, 512),
               (512, 512), (512, 512)]
    P["base"] = [make_conv(kg, ci, co, 3, 3, bias=True) for ci, co in vgg_cfg]
    P["conv6"] = make_conv(kg, 512, 1024, 3, 3, bias=True)     # dilation 6
    P["conv7"] = make_conv(kg, 1024, 1024, 1, 1, bias=True)
    # CCE (BasicConv: conv bias=False + BN + ReLU)
    P["cce0"] = make_conv(kg, 1024, 512, 1, 1, bias=False, bn=True)
    P["cce1"] = make_conv(kg, 512, 512, 3, 3, bias=False, bn=True)
    P["cce2"] = make_conv(kg, 512, 512, 1, 1, bias=False, bn=True)
    P["cce3"] = make_conv(kg, 512, 512, 3, 3, bias=False, bn=True)
    # Norm = FEMs(512, 512, change=True); downsample=None so conv4 is unused.
    s = 512 // 4
    P["norm"] = {
        "conv1x1": make_conv(kg, 512, s, 1, 1, bias=False, bn=True),
        "conv_a": make_conv(kg, s, s, 1, 3, bias=False, bn=True),
        "conv_b": make_conv(kg, s, s, 3, 1, bias=False, bn=True),
        "convs1": make_conv(kg, s, s, 3, 1, bias=False, bn=True),
        "convs2": make_conv(kg, s, s, 1, 3, bias=False, bn=True),
        "convs3": make_conv(kg, s, s, 1, 3, bias=False, bn=True),
        "convs4": make_conv(kg, s, s, 3, 1, bias=False, bn=True),
        "convchange": make_conv(kg, 5 * s, 512, 1, 1, bias=False, bn=True),
        "conv3": make_conv(kg, 512, 512, 1, 1, bias=False, bn=True),
    }
    # extras (builder not in reference; SSD-style 1x1 reduce + 3x3 stride-2)
    P["extras"] = [
        make_conv(kg, 512, 256, 1, 1, bias=False, bn=True),
        make_conv(kg, 256, 512, 3, 3, bias=False, bn=True),
        make_conv(kg, 512, 128, 1, 1, bias=False, bn=True),
        make_conv(kg, 128, 256, 3, 3, bias=False, bn=True),
    ]
    src_ch = [512, 512, 256]
    P["loc"] = [make_conv(kg, c, NUM_ANCHORS * 4, 3, 3, bias=True) for c in src_ch]
    P["conf"] = [make_conv(kg, c, NUM_ANCHORS * NUM_CLASSES, 3, 3, bias=True)
                 for c in src_ch]
    return P


def _pack_conv(prm):
    """Fold BN scale into the weight, reshape to (K, Np) and bf16-cast once.
    No K padding (the GEMM uses full-K blocks); N is zero-padded to a 128
    multiple for lane-dense stores."""
    w, scale, shift = prm["w"], prm["scale"], prm["shift"]
    kh, kw, cin, cout = w.shape
    wf = (w * scale[None, None, None, :]).astype(jnp.bfloat16)   # HWIO bf16
    K, N = kh * kw * cin, cout
    Np = _round_up(N, 128)
    wp = jnp.pad(wf.reshape(K, N), ((0, 0), (0, Np - N)))        # (K, Np) bf16
    bp = jnp.pad(shift.reshape(1, N).astype(jnp.float32),
                 ((0, 0), (0, Np - N)))                          # (1, Np) f32
    return {"wf": wf, "wp": wp, "bp": bp}


def pack_params(P):
    Q = {"base": [_pack_conv(p) for p in P["base"]]}
    for k in ["conv6", "conv7", "cce0", "cce1", "cce2", "cce3"]:
        Q[k] = _pack_conv(P[k])
    Q["norm"] = {k: _pack_conv(v) for k, v in P["norm"].items()}
    Q["extras"] = [_pack_conv(p) for p in P["extras"]]
    # Fuse each (loc, conf) head pair into one conv along cout (24 + 24 = 48).
    Q["head"] = []
    for lp, cp in zip(P["loc"], P["conf"]):
        fused = {"w": jnp.concatenate([lp["w"], cp["w"]], axis=3),
                 "scale": jnp.concatenate([lp["scale"], cp["scale"]]),
                 "shift": jnp.concatenate([lp["shift"], cp["shift"]])}
        Q["head"].append(_pack_conv(fused))
    return Q


# -----------------------------------------------------------------------------
# FEMs ("Norm") block and AFSSD forward
# -----------------------------------------------------------------------------
def fems_forward(P, x):
    identity = x
    x = conv2d(x, P["conv1x1"])                                   # 512 -> 128
    x0 = conv2d(x, P["conv_a"], padding=(0, 1))                   # (1,3)
    x0 = conv2d(x0, P["conv_b"], padding=(1, 0))                  # (3,1)
    y0 = x0
    y1 = conv2d(x0 + y0, P["convs1"], padding=(1, 0))             # xs[0]+ys[0]
    y2 = conv2d(x + y1, P["convs2"], padding=(0, 1))              # (1,3)
    y3 = conv2d(x + y2, P["convs3"], padding=(0, 7), dilation=(1, 7))
    y4 = conv2d(x + y3, P["convs4"], padding=(3, 0), dilation=(3, 1))
    out = jnp.concatenate([y0, y1, y2, y3, y4], axis=-1)          # 640 ch
    out = conv2d(out, P["convchange"])                            # 640 -> 512
    out = jnp.maximum(out + identity, 0.0).astype(jnp.bfloat16)
    out = conv2d(out, P["conv3"])                                 # change=True
    return out


def afssd_forward(P, x_nchw):
    x = jnp.transpose(x_nchw, (0, 2, 3, 1)).astype(jnp.bfloat16)  # NCHW -> NHWC
    base = P["base"]
    # ---- base[0:23]: conv1_1 .. relu(conv4_3) ----
    x = conv2d(x, base[0], padding=(1, 1))
    x = conv2d(x, base[1], padding=(1, 1))
    x = maxpool2d(x, 2, 2)                                        # 'M'
    x = conv2d(x, base[2], padding=(1, 1))
    x = conv2d(x, base[3], padding=(1, 1))
    x = maxpool2d(x, 2, 2)                                        # 'M'
    x = conv2d(x, base[4], padding=(1, 1))
    x = conv2d(x, base[5], padding=(1, 1))
    x = conv2d(x, base[6], padding=(1, 1))
    x = maxpool2d(x, 2, 2, ceil=True)                             # 'C'
    x = conv2d(x, base[7], padding=(1, 1))
    x = conv2d(x, base[8], padding=(1, 1))
    x = conv2d(x, base[9], padding=(1, 1))
    p = x
    # ---- base[23:]: pool4 .. relu(conv7) ----
    x = maxpool2d(x, 2, 2)                                        # 'M'
    x = conv2d(x, base[10], padding=(1, 1))
    x = conv2d(x, base[11], padding=(1, 1))
    x = conv2d(x, base[12], padding=(1, 1))
    x = maxpool2d(x, 3, 1, pad=1)                                 # pool5
    x = conv2d(x, P["conv6"], padding=(6, 6), dilation=(6, 6))
    x = conv2d(x, P["conv7"])
    # ---- CCE context enhancement ----
    ppp = conv2d(x, P["cce0"])
    ppp = conv2d(ppp, P["cce1"], padding=(1, 1))
    pp = jnp.max(ppp, axis=(1, 2), keepdims=True)                 # AdaptiveMaxPool2d(1)
    ppp = _bilinear_align_corners(ppp, p.shape[1], p.shape[2])    # align_corners=True
    pppp = conv2d(pp, P["cce2"])
    x = p + ppp + pppp
    x = conv2d(x, P["cce3"], padding=(1, 1))
    x = fems_forward(P["norm"], x + p)
    sources = [x]
    # ---- extras: source after every odd index ----
    ex = P["extras"]
    x = conv2d(x, ex[0])
    x = conv2d(x, ex[1], stride=(2, 2), padding=(1, 1))
    sources.append(x)
    x = conv2d(x, ex[2])
    x = conv2d(x, ex[3], stride=(2, 2), padding=(1, 1))
    sources.append(x)
    # ---- fused loc/conf heads (one conv per source, cout = 24 + 24) ----
    nl = NUM_ANCHORS * 4
    locs, confs = [], []
    for src, hp in zip(sources, P["head"]):
        y = conv2d(src, hp, padding=(1, 1), relu=False)
        # NHWC channel-last flatten == PyTorch permute(0,2,3,1).contiguous().view(B,-1)
        locs.append(y[..., :nl].reshape(y.shape[0], -1))
        confs.append(y[..., nl:].reshape(y.shape[0], -1))
    loc = jnp.concatenate(locs, axis=1)
    conf = jnp.concatenate(confs, axis=1)
    B = loc.shape[0]
    # phase='train' output (f32 like the PyTorch module)
    return (loc.reshape(B, -1, 4).astype(jnp.float32),
            conf.reshape(B, -1, NUM_CLASSES).astype(jnp.float32))


if __name__ == "__main__":
    raw = build_params(seed=0)
    params = pack_params(raw)     # one-time: fold BN scale, reshape + bf16-cast
    # Small fully-convolutional test input (the net supports any multiple of 32).
    x = jax.random.normal(jax.random.PRNGKey(0), (2, 3, 32, 32), jnp.float32)
    fwd = jax.jit(afssd_forward)
    loc, conf = fwd(params, x)
    jax.block_until_ready((loc, conf))
    assert loc.shape == (2, 126, 4), loc.shape
    assert conf.shape == (2, 126, NUM_CLASSES), conf.shape
    assert bool(jnp.all(jnp.isfinite(loc))) and bool(jnp.all(jnp.isfinite(conf)))
    print("KERNEL_OK")
</pallas_src>

<mosaic_0001>
module attributes {stable_mosaic.version = 11 : i64} {
  func.func @_mm_kernel_wres(%arg0: i32, %arg1: memref<512x576xbf16, #tpu.memory_space<vmem>>, %arg2: memref<576x128xbf16, #tpu.memory_space<vmem>>, %arg3: memref<1x128xf32, #tpu.memory_space<vmem>>, %arg4: memref<512x128xbf16, #tpu.memory_space<vmem>>) attributes {dimension_semantics = [#tpu.dimension_semantics<parallel>], iteration_bounds = array<i64: 4>, scalar_prefetch = 0 : i64, scratch_operands = 0 : i64, tpu.core_type = #tpu.core_type<tc>, window_params = [{transform_indices = @transform_0, window_bounds = array<i64: 512, 576>}, {pipeline_mode = #tpu.pipeline_mode<synchronous>, transform_indices = @transform_1, window_bounds = array<i64: 576, 128>}, {pipeline_mode = #tpu.pipeline_mode<synchronous>, transform_indices = @transform_2, window_bounds = array<i64: 1, 128>}, {transform_indices = @transform_3, window_bounds = array<i64: 512, 128>}]} {
    %c0 = arith.constant 0 : index
    %c0_0 = arith.constant 0 : index
    %0 = vector.load %arg1[%c0, %c0_0] : memref<512x576xbf16, #tpu.memory_space<vmem>>, vector<512x576xbf16>
    %c0_1 = arith.constant 0 : index
    %c0_2 = arith.constant 0 : index
    %1 = vector.load %arg2[%c0_1, %c0_2] : memref<576x128xbf16, #tpu.memory_space<vmem>>, vector<576x128xbf16>
    %cst = arith.constant dense<0.000000e+00> : vector<512x128xf32>
    %2 = tpu.matmul %0, %1, %cst {dimension_numbers = #tpu.dot_dimension_numbers<[1], [0], [0], [1], [0, 0, 1, 1], [], []>} : vector<512x576xbf16>, vector<576x128xbf16>, vector<512x128xf32> -> vector<512x128xf32>
    %c0_3 = arith.constant 0 : index
    %c0_4 = arith.constant 0 : index
    %3 = vector.load %arg3[%c0_3, %c0_4] : memref<1x128xf32, #tpu.memory_space<vmem>>, vector<1x128xf32>
    %4 = vector.broadcast %3 : vector<1x128xf32> to vector<512x128xf32>
    %5 = arith.addf %2, %4 : vector<512x128xf32>
    %cst_5 = arith.constant 0.000000e+00 : f32
    %6 = vector.broadcast %cst_5 : f32 to vector<512x128xf32>
    %7 = arith.maximumf %5, %6 : vector<512x128xf32>
    %8 = arith.truncf %7 : vector<512x128xf32> to vector<512x128xbf16>
    %c0_6 = arith.constant 0 : index
    %c0_7 = arith.constant 0 : index
    %9 = vector.load %arg4[%c0_6, %c0_7] : memref<512x128xbf16, #tpu.memory_space<vmem>>, vector<512x128xbf16>
    tpu.vector_store %arg4[%c0_6, %c0_7], %8 {strides = array<i32>} : memref<512x128xbf16, #tpu.memory_space<vmem>>, vector<512x128xbf16>,
    return
  }
  func.func @transform_0(%arg0: i32) -> (i32, i32) {
    %c0_i32 = arith.constant 0 : i32
    %c0_i32_0 = arith.constant 0 : i32
    return %arg0, %c0_i32 : i32, i32
  }
  func.func @transform_1(%arg0: i32) -> (i32, i32) {
    %c0_i32 = arith.constant 0 : i32
    %c0_i32_0 = arith.constant 0 : i32
    %c0_i32_1 = arith.constant 0 : i32
    return %c0_i32, %c0_i32_0 : i32, i32
  }
  func.func @transform_2(%arg0: i32) -> (i32, i32) {
    %c0_i32 = arith.constant 0 : i32
    %c0_i32_0 = arith.constant 0 : i32
    %c0_i32_1 = arith.constant 0 : i32
    return %c0_i32, %c0_i32_0 : i32, i32
  }
  func.func @transform_3(%arg0: i32) -> (i32, i32) {
    %c0_i32 = arith.constant 0 : i32
    %c0_i32_0 = arith.constant 0 : i32
    return %arg0, %c0_i32 : i32, i32
  }
}

module attributes {stable_mosaic.version = 11 : i64} {
  func.func @_mm_kernel_wres(%arg0: i32, %arg1: memref<256x576xbf16, #tpu.memory_space<vmem>>, %arg2: memref<576x128xbf16, #tpu.memory_space<vmem>>, %arg3: memref<1x128xf32, #tpu.memory_space<vmem>>, %arg4: memref<256x128xbf16, #tpu.memory_space<vmem>>) attributes {dimension_semantics = [#tpu.dimension_semantics<parallel>], iteration_bounds = array<i64: 2>, scalar_prefetch = 0 : i64, scratch_operands = 0 : i64, tpu.core_type = #tpu.core_type<tc>, window_params = [{transform_indices = @transform_0, window_bounds = array<i64: 256, 576>}, {pipeline_mode = #tpu.pipeline_mode<synchronous>, transform_indices = @transform_1, window_bounds = array<i64: 576, 128>}, {pipeline_mode = #tpu.pipeline_mode<synchronous>, transform_indices = @transform_2, window_bounds = array<i64: 1, 128>}, {transform_indices = @transform_3, window_bounds = array<i64: 256, 128>}]} {
    %c0 = arith.constant 0 : index
    %c0_0 = arith.constant 0 : index
    %0 = vector.load %arg1[%c0, %c0_0] : memref<256x576xbf16, #tpu.memory_space<vmem>>, vector<256x576xbf16>
    %c0_1 = arith.constant 0 : index
    %c0_2 = arith.constant 0 : index
    %1 = vector.load %arg2[%c0_1, %c0_2] : memref<576x128xbf16, #tpu.memory_space<vmem>>, vector<576x128xbf16>
    %cst = arith.constant dense<0.000000e+00> : vector<256x128xf32>
    %2 = tpu.matmul %0, %1, %cst {dimension_numbers = #tpu.dot_dimension_numbers<[1], [0], [0], [1], [0, 0, 1, 1], [], []>} : vector<256x576xbf16>, vector<576x128xbf16>, vector<256x128xf32> -> vector<256x128xf32>
    %c0_3 = arith.constant 0 : index
    %c0_4 = arith.constant 0 : index
    %3 = vector.load %arg3[%c0_3, %c0_4] : memref<1x128xf32, #tpu.memory_space<vmem>>, vector<1x128xf32>
    %4 = vector.broadcast %3 : vector<1x128xf32> to vector<256x128xf32>
    %5 = arith.addf %2, %4 : vector<256x128xf32>
    %cst_5 = arith.constant 0.000000e+00 : f32
    %6 = vector.broadcast %cst_5 : f32 to vector<256x128xf32>
    %7 = arith.maximumf %5, %6 : vector<256x128xf32>
    %8 = arith.truncf %7 : vector<256x128xf32> to vector<256x128xbf16>
    %c0_6 = arith.constant 0 : index
    %c0_7 = arith.constant 0 : index
    %9 = vector.load %arg4[%c0_6, %c0_7] : memref<256x128xbf16, #tpu.memory_space<vmem>>, vector<256x128xbf16>
    tpu.vector_store %arg4[%c0_6, %c0_7], %8 {strides = array<i32>} : memref<256x128xbf16, #tpu.memory_space<vmem>>, vector<256x128xbf16>,
    return
  }
  func.func @transform_0(%arg0: i32) -> (i32, i32) {
    %c0_i32 = arith.constant 0 : i32
    %c0_i32_0 = arith.constant 0 : i32
    return %arg0, %c0_i32 : i32, i32
  }
  func.func @transform_1(%arg0: i32) -> (i32, i32) {
    %c0_i32 = arith.constant 0 : i32
    %c0_i32_0 = arith.constant 0 : i32
    %c0_i32_1 = arith.constant 0 : i32
    return %c0_i32, %c0_i32_0 : i32, i32
  }
  func.func @transform_2(%arg0: i32) -> (i32, i32) {
    %c0_i32 = arith.constant 0 : i32
    %c0_i32_0 = arith.constant 0 : i32
    %c0_i32_1 = arith.constant 0 : i32
    return %c0_i32, %c0_i32_0 : i32, i32
  }
  func.func @transform_3(%arg0: i32) -> (i32, i32) {
    %c0_i32 = arith.constant 0 : i32
    %c0_i32_0 = arith.constant 0 : i32
    return %arg0, %c0_i32 : i32, i32
  }
}

module attributes {stable_mosaic.version = 11 : i64} {
  func.func @_mm_kernel_wres(%arg0: i32, %arg1: memref<256x1152xbf16, #tpu.memory_space<vmem>>, %arg2: memref<1152x128xbf16, #tpu.memory_space<vmem>>, %arg3: memref<1x128xf32, #tpu.memory_space<vmem>>, %arg4: memref<256x128xbf16, #tpu.memory_space<vmem>>) attributes {dimension_semantics = [#tpu.dimension_semantics<parallel>], iteration_bounds = array<i64: 2>, scalar_prefetch = 0 : i64, scratch_operands = 0 : i64, tpu.core_type = #tpu.core_type<tc>, window_params = [{transform_indices = @transform_0, window_bounds = array<i64: 256, 1152>}, {pipeline_mode = #tpu.pipeline_mode<synchronous>, transform_indices = @transform_1, window_bounds = array<i64: 1152, 128>}, {pipeline_mode = #tpu.pipeline_mode<synchronous>, transform_indices = @transform_2, window_bounds = array<i64: 1, 128>}, {transform_indices = @transform_3, window_bounds = array<i64: 256, 128>}]} {
    %c0 = arith.constant 0 : index
    %c0_0 = arith.constant 0 : index
    %0 = vector.load %arg1[%c0, %c0_0] : memref<256x1152xbf16, #tpu.memory_space<vmem>>, vector<256x1152xbf16>
    %c0_1 = arith.constant 0 : index
    %c0_2 = arith.constant 0 : index
    %1 = vector.load %arg2[%c0_1, %c0_2] : memref<1152x128xbf16, #tpu.memory_space<vmem>>, vector<1152x128xbf16>
    %cst = arith.constant dense<0.000000e+00> : vector<256x128xf32>
    %2 = tpu.matmul %0, %1, %cst {dimension_numbers = #tpu.dot_dimension_numbers<[1], [0], [0], [1], [0, 0, 1, 1], [], []>} : vector<256x1152xbf16>, vector<1152x128xbf16>, vector<256x128xf32> -> vector<256x128xf32>
    %c0_3 = arith.constant 0 : index
    %c0_4 = arith.constant 0 : index
    %3 = vector.load %arg3[%c0_3, %c0_4] : memref<1x128xf32, #tpu.memory_space<vmem>>, vector<1x128xf32>
    %4 = vector.broadcast %3 : vector<1x128xf32> to vector<256x128xf32>
    %5 = arith.addf %2, %4 : vector<256x128xf32>
    %cst_5 = arith.constant 0.000000e+00 : f32
    %6 = vector.broadcast %cst_5 : f32 to vector<256x128xf32>
    %7 = arith.maximumf %5, %6 : vector<256x128xf32>
    %8 = arith.truncf %7 : vector<256x128xf32> to vector<256x128xbf16>
    %c0_6 = arith.constant 0 : index
    %c0_7 = arith.constant 0 : index
    %9 = vector.load %arg4[%c0_6, %c0_7] : memref<256x128xbf16, #tpu.memory_space<vmem>>, vector<256x128xbf16>
    tpu.vector_store %arg4[%c0_6, %c0_7], %8 {strides = array<i32>} : memref<256x128xbf16, #tpu.memory_space<vmem>>, vector<256x128xbf16>,
    return
  }
  func.func @transform_0(%arg0: i32) -> (i32, i32) {
    %c0_i32 = arith.constant 0 : i32
    %c0_i32_0 = arith.constant 0 : i32
    return %arg0, %c0_i32 : i32, i32
  }
  func.func @transform_1(%arg0: i32) -> (i32, i32) {
    %c0_i32 = arith.constant 0 : i32
    %c0_i32_0 = arith.constant 0 : i32
    %c0_i32_1 = arith.constant 0 : i32
    return %c0_i32, %c0_i32_0 : i32, i32
  }
  func.func @transform_2(%arg0: i32) -> (i32, i32) {
    %c0_i32 = arith.constant 0 : i32
    %c0_i32_0 = arith.constant 0 : i32
    %c0_i32_1 = arith.constant 0 : i32
    return %c0_i32, %c0_i32_0 : i32, i32
  }
  func.func @transform_3(%arg0: i32) -> (i32, i32) {
    %c0_i32 = arith.constant 0 : i32
    %c0_i32_0 = arith.constant 0 : i32
    return %arg0, %c0_i32 : i32, i32
  }
}

</mosaic_0001>

<bundles_post_ra>
// kernel: afssd_forward.3
= control target key start
LH: loop header
LB: loop body
LE: loop exit
PB: predicated region body
PF: predicated region fallthrough
CT: control target
= control target key end

     0   :  { %s3930_s12 = smov 0   ;;  %s4714_s0 = inlined_call_operand.vmem [shape: bf16[2048,576], index: 0, kind: input, shape index: {}]   ;;  %s4715_s1 = inlined_call_operand.vmem [shape: bf16[576,128], index: 1, kind: input, shape index: {}]   ;;  %s4716_s2 = inlined_call_operand.vmem [shape: f32[1,128], index: 2, kind: input, shape index: {}]   ;;  %s4717_s3 = inlined_call_operand.vmem [shape: bf16[2048,128], index: 3, kind: output, shape index: {}]  }
   0x1 LB: > { %s2652_s13 = sadd.s32 4294967295, %s3908_s12   ;;  %p2656_p0 = scmp.ge.s32.totalorder %s3908_s12, 1  ;;  %s3908_s12 = sphi %s3930_s12, %s13_s12  }
   0x2   : > { %p139_p1 = scmp.lt.s32.totalorder %s3908_s12, 5 }
   0x4   : > { %p140_p2 = pnand %p2656_p0, %p139_p1 }
   0x6   : > { %143 = sbr.rel (%p140_p2) target bundleno = 818 (0x332), region = 32 }
   0xb   : > { %v3646_v0 = vld [vmem:[%s4715_s1 + $0x38] sm:$0xff]  ;;  %v3645_v1 = vld [vmem:[%s4715_s1 + $0x30] sm:$0xff]  ;;  %v3644_v2 = vld [vmem:[%s4715_s1 + $0x28] sm:$0xff]  ;;  %s2657_s20 = sshll.u32 %s2652_s13, 6  ;;  %vm1462_vm0 = vcmask 523264  }
   0xc   : > { %3866 = vmatpush.bf16.msra.mxu1 %v3646_v0  ;;  %3867 = vmatpush.bf16.msra.mxu2 %v3646_v0  ;;  %v3643_v3 = vld [vmem:[%s4715_s1 + $0x20] sm:$0xff]  ;;  %p165_p3 = scmp.lt.s32.totalorder %s2657_s20, 255  ;;  %v3642_v4 = vld [vmem:[%s4715_s1 + $0x18] sm:$0xff]  ;;  %v3641_v5 = vld [vmem:[%s4715_s1 + $0x10] sm:$0xff] }
   0xd   : > { %3868 = vmatpush.bf16.msra.mxu3 %v3646_v0  ;;  %1559 = vmatpush.bf16.msra.mxu0 %v3646_v0  ;;  %v3640_v6 = vld [vmem:[%s4715_s1 + $0x8] sm:$0xff]  ;;  %v3639_v7 = vld [vmem:[%s4715_s1] sm:$0xff]  ;;  %v3662_v16 = vld [vmem:[%s4715_s1 + $0xb8] sm:$0xff] }
   0xe   : > { %s4773_s20 = smov (!%p165_p3, %s2657_s20), 255  ;;  %v3670_v17 = vld [vmem:[%s4715_s1 + $0xf8] sm:$0xff]  ;;  %v3661_v24 = vld [vmem:[%s4715_s1 + $0xb0] sm:$0xff]  ;;  %v3660_v28 = vld [vmem:[%s4715_s1 + $0xa8] sm:$0xff] }
   0xf   : > { %s3890_s27 = smul.u32 20, %s4773_s20  ;;  %v3654_v22 = vld [vmem:[%s4715_s1 + $0x78] sm:$0xff]  ;;  %v3669_v25 = vld [vmem:[%s4715_s1 + $0xf0] sm:$0xff]  ;;  %v3668_v29 = vld [vmem:[%s4715_s1 + $0xe8] sm:$0xff]  ;;  %s2660_s19 = sshll.u32 %s4773_s20, 2 }
  0x10   : > { %3869 = vmatpush.bf16.msra.mxu1 %v3645_v1  ;;  %3870 = vmatpush.bf16.msra.mxu2 %v3645_v1  ;;  %v3674_v23 = vld [vmem:[%s4715_s1 + $0x118] sm:$0xff]  ;;  %v3653_v26 = vld [vmem:[%s4715_s1 + $0x70] sm:$0xff]  ;;  %v3652_v30 = vld [vmem:[%s4715_s1 + $0x68] sm:$0xff]  ;;  %s4351_s20 = scalar_lea.vmem %s4717_s3, %s2660_s19 }
  0x11   : > { %3871 = vmatpush.bf16.msra.mxu3 %v3645_v1  ;;  %1560 = vmatpush.bf16.msra.mxu0 %v3645_v1  ;;  %s3965_s5 = scalar_lea.vmem %s4714_s0, %s3890_s27  ;;  %v3673_v27 = vld [vmem:[%s4715_s1 + $0x110] sm:$0xff]  ;;  %v3659_v43 = vld [vmem:[%s4715_s1 + $0xa0] sm:$0xff]  ;;  %v3658_v58 = vld [vmem:[%s4715_s1 + $0x98] sm:$0xff] }
  0x12   : > { %v2823_v8 = vld [vmem:[%s3965_s5 + $0x140] sm:$0xf]  ;;  %v3521_v9 = vld [vmem:[%s3965_s5 + $0x150] sm:$0xf0]  ;;  %v2843_v31 = vld [vmem:[%s3965_s5 + $0x168] sm:$0xf] }
  0x13   : > { %v2983_v10 = vld [vmem:[%s3965_s5 + $0x280] sm:$0xf]  ;;  %v3561_v11 = vld [vmem:[%s3965_s5 + $0x290] sm:$0xf0]  ;;  %v2824_v18 = vor.u32 %v3521_v9, %v2823_v8  ;;  %v3526_v32 = vld [vmem:[%s3965_s5 + $0x178] sm:$0xf0] }
  0x14   : > { %3872 = vmatpush.bf16.msra.mxu1 %v3644_v2  ;;  %3873 = vmatpush.bf16.msra.mxu2 %v3644_v2  ;;  %v3143_v12 = vld [vmem:[%s3965_s5 + $0x3c0] sm:$0xf]  ;;  %v3601_v13 = vld [vmem:[%s3965_s5 + $0x3d0] sm:$0xf0]  ;;  %v2984_v19 = vor.u32 %v3561_v11, %v2983_v10  ;;  %v3003_v33 = vld [vmem:[%s3965_s5 + $0x2a8] sm:$0xf]  ;;  %v2844_v39 = vor.u32 %v3526_v32, %v2843_v31 }
  0x15   : > { %3874 = vmatpush.bf16.msra.mxu3 %v3644_v2  ;;  %1561 = vmatpush.bf16.msra.mxu0 %v3644_v2  ;;  %v2663_v14 = vld [vmem:[%s3965_s5] sm:$0xf]  ;;  %v3481_v15 = vld [vmem:[%s3965_s5 + $0x10] sm:$0xf0]  ;;  %v3144_v20 = vor.u32 %v3601_v13, %v3143_v12  ;;  %v3566_v34 = vld [vmem:[%s3965_s5 + $0x2b8] sm:$0xf0] }
  0x16   : > { %v2664_v21 = vor.u32 %v3481_v15, %v2663_v14  ;;  %v3163_v35 = vld [vmem:[%s3965_s5 + $0x3e8] sm:$0xf]  ;;  %v3606_v36 = vld [vmem:[%s3965_s5 + $0x3f8] sm:$0xf0]  ;;  %v3004_v40 = vor.u32 %v3566_v34, %v3003_v33  ;;  %v3667_v44 = vld [vmem:[%s4715_s1 + $0xe0] sm:$0xff] }
  0x17   : > { %v2683_v37 = vld [vmem:[%s3965_s5 + $0x28] sm:$0xf]  ;;  %v3486_v38 = vld [vmem:[%s3965_s5 + $0x38] sm:$0xf0]  ;;  %v3164_v41 = vor.u32 %v3606_v36, %v3163_v35  ;;  %v3651_v45 = vld [vmem:[%s4715_s1 + $0x60] sm:$0xff] }
  0x18   : > { %3875 = vmatpush.bf16.msra.mxu1 %v3643_v3  ;;  %3876 = vmatpush.bf16.msra.mxu2 %v3643_v3  ;;  %v2684_v42 = vor.u32 %v3486_v38, %v2683_v37  ;;  %v2863_v46 = vld [vmem:[%s3965_s5 + $0x190] sm:$0xf]  ;;  %v3531_v47 = vld [vmem:[%s3965_s5 + $0x1a0] sm:$0xf0]  ;;  %v3666_v59 = vld [vmem:[%s4715_s1 + $0xd8] sm:$0xff] }
  0x19   : > { %3877 = vmatpush.bf16.msra.mxu3 %v3643_v3  ;;  %1562 = vmatpush.bf16.msra.mxu0 %v3643_v3  ;;  %v3023_v48 = vld [vmem:[%s3965_s5 + $0x2d0] sm:$0xf]  ;;  %v3571_v49 = vld [vmem:[%s3965_s5 + $0x2e0] sm:$0xf0]  ;;  %v2864_v54 = vor.u32 %v3531_v47, %v2863_v46  ;;  %v3650_v60 = vld [vmem:[%s4715_s1 + $0x58] sm:$0xff] }
  0x1a   : > { %v3183_v50 = vld [vmem:[%s3965_s5 + $0x410] sm:$0xf]  ;;  %v3611_v51 = vld [vmem:[%s3965_s5 + $0x420] sm:$0xf0]  ;;  %v3024_v55 = vor.u32 %v3571_v49, %v3023_v48  ;;  %v3672_v61 = vld [vmem:[%s4715_s1 + $0x108] sm:$0xff] }
  0x1b   : > { %v2703_v52 = vld [vmem:[%s3965_s5 + $0x50] sm:$0xf]  ;;  %v3491_v53 = vld [vmem:[%s3965_s5 + $0x60] sm:$0xf0]  ;;  %v3184_v56 = vor.u32 %v3611_v51, %v3183_v50  ;;  %v2883_v62 = vld [vmem:[%s3965_s5 + $0x1b8] sm:$0xf] }
  0x1c   : > { %3878 = vmatpush.bf16.msra.mxu1 %v3642_v4  ;;  %3879 = vmatpush.bf16.msra.mxu2 %v3642_v4  ;;  %v2704_v57 = vor.u32 %v3491_v53, %v2703_v52  ;;  %v3536_v63 = vld [vmem:[%s3965_s5 + $0x1c8] sm:$0xf0]  ;;  %v3043_v0 = vld [vmem:[%s3965_s5 + $0x2f8] sm:$0xf]  ;;  %v3657_v10 = vld [vmem:[%s4715_s1 + $0x90] sm:$0xff] }
  0x1d   : > { %3880 = vmatpush.bf16.msra.mxu3 %v3642_v4  ;;  %1563 = vmatpush.bf16.msra.mxu0 %v3642_v4  ;;  %v3576_v1 = vld [vmem:[%s3965_s5 + $0x308] sm:$0xf0]  ;;  %v3203_v2 = vld [vmem:[%s3965_s5 + $0x438] sm:$0xf]  ;;  %v3665_v11 = vld [vmem:[%s4715_s1 + $0xd0] sm:$0xff] }
  0x1e   : > { %v3616_v3 = vld [vmem:[%s3965_s5 + $0x448] sm:$0xf0]  ;;  %v2723_v4 = vld [vmem:[%s3965_s5 + $0x78] sm:$0xf]  ;;  %v3649_v12 = vld [vmem:[%s4715_s1 + $0x50] sm:$0xff] }
  0x1f   : > { %v3204_v8 = vor.u32 %v3616_v3, %v3203_v2  ;;  %v2903_v13 = vld [vmem:[%s3965_s5 + $0x1e0] sm:$0xf]  ;;  %v3541_v14 = vld [vmem:[%s3965_s5 + $0x1f0] sm:$0xf0]  ;;  %v3083_v31 = vld [vmem:[%s3965_s5 + $0x348] sm:$0xf] }
  0x20   : > { %3881 = vmatpush.bf16.msra.mxu1 %v3641_v5  ;;  %3882 = vmatpush.bf16.msra.mxu2 %v3641_v5  ;;  %v3063_v15 = vld [vmem:[%s3965_s5 + $0x320] sm:$0xf]  ;;  %v3586_v32 = vld [vmem:[%s3965_s5 + $0x358] sm:$0xf0]  ;;  %v3243_v33 = vld [vmem:[%s3965_s5 + $0x488] sm:$0xf] }
  0x21   : > { %3883 = vmatpush.bf16.msra.mxu3 %v3641_v5  ;;  %1564 = vmatpush.bf16.msra.mxu0 %v3641_v5  ;;  %v3496_v5 = vld [vmem:[%s3965_s5 + $0x88] sm:$0xf0]  ;;  %v3626_v34 = vld [vmem:[%s3965_s5 + $0x498] sm:$0xf0]  ;;  %v2763_v35 = vld [vmem:[%s3965_s5 + $0xc8] sm:$0xf]  ;;  %v3084_v38 = vor.u32 %v3586_v32, %v3083_v31 }
  0x22   : > { %v2724_v9 = vor.u32 %v3496_v5, %v2723_v4  ;;  %v3506_v36 = vld [vmem:[%s3965_s5 + $0xd8] sm:$0xf0]  ;;  %v3103_v46 = vld [vmem:[%s3965_s5 + $0x370] sm:$0xf]  ;;  %v3591_v47 = vld [vmem:[%s3965_s5 + $0x380] sm:$0xf0] }
  0x23   : > { %v3263_v48 = vld [vmem:[%s3965_s5 + $0x4b0] sm:$0xf]  ;;  %v3631_v49 = vld [vmem:[%s3965_s5 + $0x4c0] sm:$0xf0]  ;;  %v3104_v53 = vor.u32 %v3591_v47, %v3103_v46  ;;  %v2665_v5 = vld [vmem:[%s3965_s5 + $0x14] sm:$0xf0] }
  0x24   : > { %3884 = vmatpush.bf16.msra.mxu1 %v3640_v6  ;;  %3885 = vmatpush.bf16.msra.mxu2 %v3640_v6  ;;  %v2783_v50 = vld [vmem:[%s3965_s5 + $0xf0] sm:$0xf]  ;;  %v3511_v51 = vld [vmem:[%s3965_s5 + $0x100] sm:$0xf0]  ;;  %v3490_v46 = vld [vmem:[%s3965_s5 + $0x5c] sm:$0xf] }
  0x25   : > { %3886 = vmatpush.bf16.msra.mxu3 %v3640_v6  ;;  %1565 = vmatpush.bf16.msra.mxu0 %v3640_v6  ;;  %v2884_v6 = vor.u32 %v3536_v63, %v2883_v62  ;;  %v2803_v62 = vld [vmem:[%s3965_s5 + $0x118] sm:$0xf]  ;;  %v3516_v63 = vld [vmem:[%s3965_s5 + $0x128] sm:$0xf0]  ;;  %v3479_v4 = vld [vmem:[%s3965_s5 + $0x4] sm:$0xf] }
  0x26   : > { %v2804_v3 = vor.u32 %v3516_v63, %v2803_v62  ;;  %v2713_v47 = vld [vmem:[%s3965_s5 + $0x6c] sm:$0xf0]  ;;  %v3494_v62 = vld [vmem:[%s3965_s5 + $0x7c] sm:$0xf] }
  0x27   : > { %v2725_v63 = vld [vmem:[%s3965_s5 + $0x8c] sm:$0xf0] }
  0x28   : > { %3887 = vmatpush.bf16.msra.mxu1 %v3639_v7  ;;  %3888 = vmatpush.bf16.msra.mxu2 %v3639_v7 }
  0x29   : > { %3889 = vmatpush.bf16.msra.mxu3 %v3639_v7  ;;  %1566 = vmatpush.bf16.msra.mxu0 %v3639_v7  ;;  %v3044_v7 = vor.u32 %v3576_v1, %v3043_v0 }
  0x2b   : > { %1607 = vmatmul.bf16.vlgmr.msra.gmra.mxu1 %v2824_v18  ;;  %1647 = vmatmul.bf16.vlgmr.msra.gmra.mxu2 %v2984_v19  ;;  %v3621_v18 = vld [vmem:[%s3965_s5 + $0x470] sm:$0xf0]  ;;  %v2743_v19 = vld [vmem:[%s3965_s5 + $0xa0] sm:$0xf] }
  0x2c   : > { %1897 = vmatpush.bf16.msrb.mxu2 %v3662_v16  ;;  %1687 = vmatmul.bf16.vlgmr.msra.gmra.mxu3 %v3144_v20  ;;  %v3581_v16 = vld [vmem:[%s3965_s5 + $0x330] sm:$0xf0] }
  0x2d   : > { %2066 = vmatpush.bf16.msrb.mxu3 %v3670_v17  ;;  %1567 = vmatmul.bf16.vlgmr.msra.gmra.mxu0 %v2664_v21  ;;  %v3223_v17 = vld [vmem:[%s3965_s5 + $0x460] sm:$0xf]  ;;  %v3501_v20 = vld [vmem:[%s3965_s5 + $0xb0] sm:$0xf0]  ;;  %v2904_v21 = vor.u32 %v3541_v14, %v2903_v13 }
  0x2e   : > { %1728 = vmatpush.bf16.msrb.mxu1 %v3654_v22  ;;  %2239 = vmatpush.bf16.msrb.mxu0 %v3674_v23  ;;  %v3064_v22 = vor.u32 %v3581_v16, %v3063_v15  ;;  %v3224_v23 = vor.u32 %v3621_v18, %v3223_v17 }
  0x30   : > { %1898 = vmatpush.bf16.msrb.mxu2 %v3661_v24  ;;  %v2744_v24 = vor.u32 %v3501_v20, %v2743_v19 }
  0x31   : > { %2067 = vmatpush.bf16.msrb.mxu3 %v3669_v25  ;;  %v3656_v25 = vld [vmem:[%s4715_s1 + $0x88] sm:$0xff] }
  0x32   : > { %1729 = vmatpush.bf16.msrb.mxu1 %v3653_v26  ;;  %2240 = vmatpush.bf16.msrb.mxu0 %v3673_v27  ;;  %v3664_v26 = vld [vmem:[%s4715_s1 + $0xc8] sm:$0xff] }
  0x33   : > { %v3648_v27 = vld [vmem:[%s4715_s1 + $0x48] sm:$0xff] }
  0x34   : > { %1899 = vmatpush.bf16.msrb.mxu2 %v3660_v28  ;;  %v3671_v28 = vld [vmem:[%s4715_s1 + $0x100] sm:$0xff] }
  0x35   : > { %2068 = vmatpush.bf16.msrb.mxu3 %v3668_v29  ;;  %v2923_v29 = vld [vmem:[%s3965_s5 + $0x208] sm:$0xf] }
  0x36   : > { %1730 = vmatpush.bf16.msrb.mxu1 %v3652_v30  ;;  %2241 = vmatpush.bf16.msrb.mxu0 %v3672_v61  ;;  %v3546_v30 = vld [vmem:[%s3965_s5 + $0x218] sm:$0xf0]  ;;  %v3636_v61 = vld [vmem:[%s3965_s5 + $0x4e8] sm:$0xf0] }
  0x37   : > { %v2924_v37 = vor.u32 %v3546_v30, %v2923_v29  ;;  %v3488_v29 = vld [vmem:[%s3965_s5 + $0x48] sm:$0xf0] }
  0x38   : > { %1900 = vmatpush.bf16.msrb.mxu2 %v3659_v43  ;;  %v3647_v43 = vld [vmem:[%s4715_s1 + $0x40] sm:$0xff] }
  0x39   : > { %2069 = vmatpush.bf16.msrb.mxu3 %v3667_v44  ;;  %v2943_v44 = vld [vmem:[%s3965_s5 + $0x230] sm:$0xf] }
  0x3a   : > { %1731 = vmatpush.bf16.msrb.mxu1 %v3651_v45  ;;  %2242 = vmatpush.bf16.msrb.mxu0 %v3671_v28  ;;  %v3551_v45 = vld [vmem:[%s3965_s5 + $0x240] sm:$0xf0]  ;;  %v2699_v28 = vld [vmem:[%s3965_s5 + $0x38] sm:$0xf] }
  0x3b   : > { %1612 = vmatmul.bf16.gmra.mxu1 %v2844_v39  ;;  %1652 = vmatmul.bf16.gmra.mxu2 %v3004_v40  ;;  %v3244_v39 = vor.u32 %v3626_v34, %v3243_v33  ;;  %v2764_v40 = vor.u32 %v3506_v36, %v2763_v35  ;;  %v2944_v52 = vor.u32 %v3551_v45, %v2943_v44  ;;  %v2711_v44 = vld [vmem:[%s3965_s5 + $0x58] sm:$0xf]  ;;  %v3492_v45 = vld [vmem:[%s3965_s5 + $0x68] sm:$0xf0] }
  0x3c   : > { %1692 = vmatmul.bf16.gmra.mxu3 %v3164_v41  ;;  %1901 = vmatpush.bf16.msrb.mxu2 %v3658_v58  ;;  %v3655_v41 = vld [vmem:[%s4715_s1 + $0x80] sm:$0xff]  ;;  %v3123_v58 = vld [vmem:[%s3965_s5 + $0x398] sm:$0xf]  ;;  %v2700_v36 = vor.u32 %v3488_v29, %v2699_v28  ;;  %v3500_v28 = vld [vmem:[%s3965_s5 + $0xac] sm:$0xf] }
  0x3d   : > { %1572 = vmatmul.bf16.gmra.mxu0 %v2684_v42  ;;  %2070 = vmatpush.bf16.msrb.mxu3 %v3666_v59  ;;  %v3663_v42 = vld [vmem:[%s4715_s1 + $0xc0] sm:$0xff]  ;;  %v3596_v59 = vld [vmem:[%s3965_s5 + $0x3a8] sm:$0xf0] }
  0x3e   : > { %1732 = vmatpush.bf16.msrb.mxu1 %v3650_v60  ;;  %v3283_v60 = vld [vmem:[%s3965_s5 + $0x4d8] sm:$0xf]  ;;  %v3124_v1 = vor.u32 %v3596_v59, %v3123_v58  ;;  %v2753_v29 = vld [vmem:[%s3965_s5 + $0xbc] sm:$0xf0] }
  0x3f   : > { %v3284_v2 = vor.u32 %v3636_v61, %v3283_v60 }
  0x40   : > { %1902 = vmatpush.bf16.msrb.mxu2 %v3657_v10  ;;  %v2679_v10 = vld [vmem:[%s3965_s5 + $0x10] sm:$0xf] }
  0x41   : > { %2071 = vmatpush.bf16.msrb.mxu3 %v3665_v11  ;;  %v3483_v11 = vld [vmem:[%s3965_s5 + $0x20] sm:$0xf0] }
  0x42   : > { %1733 = vmatpush.bf16.msrb.mxu1 %v3649_v12  ;;  %v2668_v12 = vor.u32 %v3479_v4, %v2665_v5  ;;  %v2680_v16 = vor.u32 %v3483_v11, %v2679_v10  ;;  %v2739_v4 = vld [vmem:[%s3965_s5 + $0x88] sm:$0xf]  ;;  %v3498_v5 = vld [vmem:[%s3965_s5 + $0x98] sm:$0xf0] }
  0x44   : > { %1903 = vmatpush.bf16.msrb.mxu2 %v3656_v25  ;;  %v3487_v25 = vld [vmem:[%s3965_s5 + $0x40] sm:$0xf0] }
  0x45   : > { %2072 = vmatpush.bf16.msrb.mxu3 %v3664_v26  ;;  %v3485_v26 = vld [vmem:[%s3965_s5 + $0x34] sm:$0xf] }
  0x46   : > { %1734 = vmatpush.bf16.msrb.mxu1 %v3648_v27  ;;  %v2693_v27 = vld [vmem:[%s3965_s5 + $0x44] sm:$0xf0] }
  0x47   : > { %v2696_v35 = vor.u32 %v3485_v26, %v2693_v27  ;;  %v2751_v26 = vld [vmem:[%s3965_s5 + $0xa8] sm:$0xf]  ;;  %v3502_v27 = vld [vmem:[%s3965_s5 + $0xb8] sm:$0xf0] }
  0x48   : > { %1904 = vmatpush.bf16.msrb.mxu2 %v3655_v41 }
  0x49   : > { %2073 = vmatpush.bf16.msrb.mxu3 %v3663_v42  ;;  %v3489_v42 = vld [vmem:[%s3965_s5 + $0x54] sm:$0xf] }
  0x4a   : > { %1735 = vmatpush.bf16.msrb.mxu1 %v3647_v43  ;;  %v2705_v43 = vld [vmem:[%s3965_s5 + $0x64] sm:$0xf0] }
  0x4b   : > { %1617 = vmatmul.bf16.gmra.mxu1 %v2864_v54  ;;  %1657 = vmatmul.bf16.gmra.mxu2 %v3024_v55  ;;  %v3264_v54 = vor.u32 %v3631_v49, %v3263_v48  ;;  %v2784_v55 = vor.u32 %v3511_v51, %v2783_v50  ;;  %v2719_v48 = vld [vmem:[%s3965_s5 + $0x60] sm:$0xf]  ;;  %v3493_v49 = vld [vmem:[%s3965_s5 + $0x70] sm:$0xf0] }
  0x4c   : > { %1697 = vmatmul.bf16.gmra.mxu3 %v3184_v56  ;;  %v2963_v56 = vld [vmem:[%s3965_s5 + $0x258] sm:$0xf] }
  0x4d   : > { %1577 = vmatmul.bf16.gmra.mxu0 %v2704_v57  ;;  %v3556_v57 = vld [vmem:[%s3965_s5 + $0x268] sm:$0xf0] }
  0x4e   : > { %v2964_v0 = vor.u32 %v3556_v57, %v2963_v56  ;;  %v2720_v56 = vor.u32 %v3493_v49, %v2719_v48 }
  0x5b   : > { %1622 = vmatmul.bf16.gmra.mxu1 %v2884_v6  ;;  %1662 = vmatmul.bf16.gmra.mxu2 %v3044_v7  ;;  %v2671_v6 = vld [vmem:[%s3965_s5 + $0x8] sm:$0xf]  ;;  %v3482_v7 = vld [vmem:[%s3965_s5 + $0x18] sm:$0xf0] }
  0x5c   : > { %1702 = vmatmul.bf16.gmra.mxu3 %v3204_v8  ;;  %v3480_v8 = vld [vmem:[%s3965_s5 + $0xc] sm:$0xf]  ;;  %v2672_v13 = vor.u32 %v3482_v7, %v2671_v6 }
  0x5d   : > { %1582 = vmatmul.bf16.gmra.mxu0 %v2724_v9  ;;  %v2673_v9 = vld [vmem:[%s3965_s5 + $0x1c] sm:$0xf0] }
  0x5e   : > { %v2676_v15 = vor.u32 %v3480_v8, %v2673_v9  ;;  %v2728_v8 = vor.u32 %v3494_v62, %v2725_v63  ;;  %v2771_v62 = vld [vmem:[%s3965_s5 + $0xd0] sm:$0xf]  ;;  %v3507_v63 = vld [vmem:[%s3965_s5 + $0xe0] sm:$0xf0] }
  0x6b   : > { %1627 = vmatmul.bf16.gmra.mxu1 %v2904_v21  ;;  %1667 = vmatmul.bf16.gmra.mxu2 %v3064_v22  ;;  %v3484_v22 = vld [vmem:[%s3965_s5 + $0x2c] sm:$0xf] }
  0x6c   : > { %1707 = vmatmul.bf16.gmra.mxu3 %v3224_v23  ;;  %v2685_v23 = vld [vmem:[%s3965_s5 + $0x3c] sm:$0xf0] }
  0x6d   : > { %1587 = vmatmul.bf16.gmra.mxu0 %v2744_v24  ;;  %v2691_v24 = vld [vmem:[%s3965_s5 + $0x30] sm:$0xf]  ;;  %v2688_v32 = vor.u32 %v3484_v22, %v2685_v23 }
  0x6e   : > { %v2692_v33 = vor.u32 %v3487_v25, %v2691_v24  ;;  %v3499_v24 = vld [vmem:[%s3965_s5 + $0xa4] sm:$0xf]  ;;  %v2745_v25 = vld [vmem:[%s3965_s5 + $0xb4] sm:$0xf0] }
  0x7b   : > { %1632 = vmatmul.bf16.gmra.mxu1 %v2924_v37  ;;  %1672 = vmatmul.bf16.gmra.mxu2 %v3084_v38 }
  0x7c   : > { %1712 = vmatmul.bf16.gmra.mxu3 %v3244_v39 }
  0x7d   : > { %1592 = vmatmul.bf16.gmra.mxu0 %v2764_v40 }
  0x8b   : > { %1637 = vmatmul.bf16.gmra.mxu1 %v2944_v52  ;;  %1677 = vmatmul.bf16.gmra.mxu2 %v3104_v53  ;;  %v2708_v52 = vor.u32 %v3489_v42, %v2705_v43  ;;  %v2712_v53 = vor.u32 %v3492_v45, %v2711_v44  ;;  %v2748_v42 = vor.u32 %v3499_v24, %v2745_v25 }
  0x8c   : > { %1717 = vmatmul.bf16.gmra.mxu3 %v3264_v54  ;;  %v2752_v43 = vor.u32 %v3502_v27, %v2751_v26  ;;  %v2756_v45 = vor.u32 %v3500_v28, %v2753_v29 }
  0x8d   : > { %1597 = vmatmul.bf16.gmra.mxu0 %v2784_v55  ;;  %v2716_v55 = vor.u32 %v3490_v46, %v2713_v47 }
  0x9b   : > { %1642 = vmatmul.bf16.gmra.mxu1 %v2964_v0  ;;  %1682 = vmatmul.bf16.gmra.mxu2 %v3124_v1  ;;  %v2731_v0 = vld [vmem:[%s3965_s5 + $0x80] sm:$0xf]  ;;  %v3497_v1 = vld [vmem:[%s3965_s5 + $0x90] sm:$0xf0] }
  0x9c   : > { %1722 = vmatmul.bf16.gmra.mxu3 %v3284_v2  ;;  %v3495_v2 = vld [vmem:[%s3965_s5 + $0x84] sm:$0xf]  ;;  %v2732_v9 = vor.u32 %v3497_v1, %v2731_v0  ;;  %v3505_v0 = vld [vmem:[%s3965_s5 + $0xd4] sm:$0xf]  ;;  %v2773_v1 = vld [vmem:[%s3965_s5 + $0xe4] sm:$0xf0] }
  0x9d   : > { %1602 = vmatmul.bf16.gmra.mxu0 %v2804_v3  ;;  %v2733_v3 = vld [vmem:[%s3965_s5 + $0x94] sm:$0xf0] }
  0x9e   : > { %v2736_v11 = vor.u32 %v3495_v2, %v2733_v3  ;;  %v2779_v2 = vld [vmem:[%s3965_s5 + $0xd8] sm:$0xf]  ;;  %v3508_v3 = vld [vmem:[%s3965_s5 + $0xe8] sm:$0xf0] }
  0x9f   : > { %v2780_v24 = vor.u32 %v3508_v3, %v2779_v2 }
  0xa8   : > { %v4126_v14 = vpop.f32.mrf.mxu1 }
  0xaa   : > { %v4128_v17 = vpop.f32.mrf.mxu0 }
  0xab   : > { %1736 = vmatmul.bf16.vlgmr.msrb.gmra.mxu1 %v2668_v12  ;;  %1905 = vmatmul.bf16.vlgmr.msrb.gmra.mxu2 %v2672_v13  ;;  %v2740_v12 = vor.u32 %v3498_v5, %v2739_v4 }
  0xac   : > { %2074 = vmatmul.bf16.vlgmr.msrb.gmra.mxu3 %v2676_v15 }
  0xad   : > { %3445 = vmatmul.msk.bf16.vlgmr.msrb.gmra.mxu0 %vm1462_vm0, %v2680_v16 }
  0xae   : > { %v4131_v18 = vpop.f32.mrf.mxu2 }
  0xaf   : > { %v4133_v19 = vpop.f32.mrf.mxu3 }
  0xb0   : > { %4718 = vst [vmem:[#allocation2_spill] sm:$0xff] %v4133_v19  ;;  %v4135_v20 = vpop.f32.mrf.mxu1  ;;  %v4329_v19 = vld [vmem:[%s4716_s2] ss:$0 sm:$0xff] }
  0xb2   : > { %v4137_v21 = vpop.f32.mrf.mxu0 }
  0xb6   : > { %v4147_v30 = vpop.f32.mrf.mxu2 }
  0xb7   : > { %v4149_v31 = vpop.f32.mrf.mxu3 }
  0xb8   : > { %4719 = vst [vmem:[#allocation3_spill] sm:$0xff] %v4149_v31  ;;  %v4151_v34 = vpop.f32.mrf.mxu1 }
  0xba   : > { %v4153_v37 = vpop.f32.mrf.mxu0 }
  0xbb   : > { %1741 = vmatmul.bf16.gmra.mxu1 %v2688_v32  ;;  %1910 = vmatmul.bf16.gmra.mxu2 %v2692_v33  ;;  %v2759_v32 = vld [vmem:[%s3965_s5 + $0xb0] sm:$0xf]  ;;  %v3503_v33 = vld [vmem:[%s3965_s5 + $0xc0] sm:$0xf0] }
  0xbc   : > { %2079 = vmatmul.bf16.gmra.mxu3 %v2696_v35  ;;  %v2760_v46 = vor.u32 %v3503_v33, %v2759_v32  ;;  %v3509_v32 = vld [vmem:[%s3965_s5 + $0xf4] sm:$0xf]  ;;  %v2785_v33 = vld [vmem:[%s3965_s5 + $0x104] sm:$0xf0] }
  0xbd   : > { %3446 = vmatmul.msk.bf16.gmra.mxu0 %vm1462_vm0, %v2700_v36 }
  0xbe   : > { %v4156_v38 = vpop.f32.mrf.mxu2 }
  0xbf   : > { %v4158_v39 = vpop.f32.mrf.mxu3 }
  0xc0   : > { %4720 = vst [vmem:[#allocation4_spill] sm:$0xff] %v4158_v39  ;;  %v4160_v40 = vpop.f32.mrf.mxu1 }
  0xc2   : > { %v4162_v41 = vpop.f32.mrf.mxu0 }
  0xc6   : > { %v4172_v50 = vpop.f32.mrf.mxu2 }
  0xc7   : > { %v4174_v51 = vpop.f32.mrf.mxu3 }
  0xc8   : > { %4721 = vst [vmem:[#allocation5_spill] sm:$0xff] %v4174_v51  ;;  %v4176_v54 = vpop.f32.mrf.mxu1 }
  0xca   : > { %v4178_v57 = vpop.f32.mrf.mxu0 }
  0xcb   : > { %1746 = vmatmul.bf16.gmra.mxu1 %v2708_v52  ;;  %1915 = vmatmul.bf16.gmra.mxu2 %v2712_v53 }
  0xcc   : > { %2084 = vmatmul.bf16.gmra.mxu3 %v2716_v55  ;;  %v3504_v55 = vld [vmem:[%s3965_s5 + $0xcc] sm:$0xf] }
  0xcd   : > { %3447 = vmatmul.msk.bf16.gmra.mxu0 %vm1462_vm0, %v2720_v56  ;;  %v2765_v56 = vld [vmem:[%s3965_s5 + $0xdc] sm:$0xf0] }
  0xce   : > { %v4181_v58 = vpop.f32.mrf.mxu2 }
  0xcf   : > { %v4183_v59 = vpop.f32.mrf.mxu3 }
  0xd0   : > { %4722 = vst [vmem:[#allocation6_spill] sm:$0xff] %v4183_v59  ;;  %v4185_v60 = vpop.f32.mrf.mxu1 }
  0xd2   : > { %v4187_v61 = vpop.f32.mrf.mxu0 }
  0xd6   : > { %v4197_v6 = vpop.f32.mrf.mxu2 }
  0xd7   : > { %4723 = vst [vmem:[#allocation7_spill] sm:$0xff] %v4197_v6  ;;  %v4199_v7 = vpop.f32.mrf.mxu3 }
  0xd8   : > { %4724 = vst [vmem:[#allocation8_spill] sm:$0xff] %v4199_v7  ;;  %v4201_v10 = vpop.f32.mrf.mxu1  ;;  %v2839_v7 = vld [vmem:[%s3965_s5 + $0x150] sm:$0xf] }
  0xda   : > { %v4203_v13 = vpop.f32.mrf.mxu0 }
  0xdb   : > { %1751 = vmatmul.bf16.gmra.mxu1 %v2728_v8  ;;  %1920 = vmatmul.bf16.gmra.mxu2 %v2732_v9  ;;  %v2768_v8 = vor.u32 %v3504_v55, %v2765_v56  ;;  %v2772_v9 = vor.u32 %v3507_v63, %v2771_v62  ;;  %v2799_v55 = vld [vmem:[%s3965_s5 + $0x100] sm:$0xf]  ;;  %v3513_v56 = vld [vmem:[%s3965_s5 + $0x110] sm:$0xf0] }
  0xdc   : > { %2089 = vmatmul.bf16.gmra.mxu3 %v2736_v11 }
  0xdd   : > { %3448 = vmatmul.msk.bf16.gmra.mxu0 %vm1462_vm0, %v2740_v12  ;;  %v2776_v12 = vor.u32 %v3505_v0, %v2773_v1  ;;  %v2788_v0 = vor.u32 %v3509_v32, %v2785_v33 }
  0xde   : > { %v4206_v15 = vpop.f32.mrf.mxu2 }
  0xdf   : > { %4725 = vst [vmem:[#allocation9_spill] sm:$0xff] %v4206_v15  ;;  %v4208_v16 = vpop.f32.mrf.mxu3 }
  0xe0   : > { %4726 = vst [vmem:[#allocation10_spill] sm:$0xff] %v4208_v16  ;;  %v4210_v22 = vpop.f32.mrf.mxu1  ;;  %v2833_v16 = vld [vmem:[%s3965_s5 + $0x15c] sm:$0xf0] }
  0xe2   : > { %v4212_v23 = vpop.f32.mrf.mxu0 }
  0xe6   : > { %v4222_v35 = vpop.f32.mrf.mxu2 }
  0xe7   : > { %4727 = vst [vmem:[#allocation11_spill] sm:$0xff] %v4222_v35  ;;  %v4224_v36 = vpop.f32.mrf.mxu3 }
  0xe8   : > { %4728 = vst [vmem:[#allocation12_spill] sm:$0xff] %v4224_v36  ;;  %v4226_v44 = vpop.f32.mrf.mxu1 }
  0xea   : > { %v4228_v47 = vpop.f32.mrf.mxu0 }
  0xeb   : > { %1756 = vmatmul.bf16.gmra.mxu1 %v2748_v42  ;;  %1925 = vmatmul.bf16.gmra.mxu2 %v2752_v43  ;;  %v2791_v42 = vld [vmem:[%s3965_s5 + $0xf8] sm:$0xf]  ;;  %v3512_v43 = vld [vmem:[%s3965_s5 + $0x108] sm:$0xf0] }
  0xec   : > { %2094 = vmatmul.bf16.gmra.mxu3 %v2756_v45  ;;  %v3510_v45 = vld [vmem:[%s3965_s5 + $0xfc] sm:$0xf]  ;;  %v2792_v1 = vor.u32 %v3512_v43, %v2791_v42  ;;  %v2805_v43 = vld [vmem:[%s3965_s5 + $0x12c] sm:$0xf0] }
  0xed   : > { %3449 = vmatmul.msk.bf16.gmra.mxu0 %vm1462_vm0, %v2760_v46  ;;  %v2793_v46 = vld [vmem:[%s3965_s5 + $0x10c] sm:$0xf0]  ;;  %v3514_v42 = vld [vmem:[%s3965_s5 + $0x11c] sm:$0xf] }
  0xee   : > { %v4231_v48 = vpop.f32.mrf.mxu2  ;;  %v2796_v3 = vor.u32 %v3510_v45, %v2793_v46  ;;  %v2811_v45 = vld [vmem:[%s3965_s5 + $0x120] sm:$0xf]  ;;  %v3517_v46 = vld [vmem:[%s3965_s5 + $0x130] sm:$0xf0] }
  0xef   : > { %4729 = vst [vmem:[#allocation13_spill] sm:$0xff] %v4231_v48  ;;  %v4233_v49 = vpop.f32.mrf.mxu3 }
  0xf0   : > { %4730 = vst [vmem:[#allocation14_spill] sm:$0xff] %v4233_v49  ;;  %v4235_v52 = vpop.f32.mrf.mxu1 }
  0xf2   : > { %v4237_v53 = vpop.f32.mrf.mxu0 }
  0xf6   : > { %v4247_v4 = vpop.f32.mrf.mxu2 }
  0xf7   : > { %4731 = vst [vmem:[#allocation15_spill] sm:$0xff] %v4247_v4  ;;  %v4249_v5 = vpop.f32.mrf.mxu3 }
  0xf8   : > { %4732 = vst [vmem:[#allocation16_spill] sm:$0xff] %v4249_v5  ;;  %v4251_v11 = vpop.f32.mrf.mxu1 }
  0xfa   : > { %v4253_v25 = vpop.f32.mrf.mxu0 }
  0xfb   : > { %1761 = vmatmul.bf16.gmra.mxu1 %v2768_v8  ;;  %1930 = vmatmul.bf16.gmra.mxu2 %v2772_v9  ;;  %v2800_v8 = vor.u32 %v3513_v56, %v2799_v55  ;;  %v3515_v55 = vld [vmem:[%s3965_s5 + $0x124] sm:$0xf]  ;;  %v2813_v56 = vld [vmem:[%s3965_s5 + $0x134] sm:$0xf0] }
  0xfc   : > { %2099 = vmatmul.bf16.gmra.mxu3 %v2776_v12  ;;  %v2816_v5 = vor.u32 %v3515_v55, %v2813_v56  ;;  %v2825_v55 = vld [vmem:[%s3965_s5 + $0x154] sm:$0xf0]  ;;  %v3522_v56 = vld [vmem:[%s3965_s5 + $0x158] sm:$0xf0] }
  0xfd   : > { %3450 = vmatmul.msk.bf16.gmra.mxu0 %vm1462_vm0, %v2780_v24 }
  0xfe   : > { %v4256_v26 = vpop.f32.mrf.mxu2 }
  0xff   : > { %4733 = vst [vmem:[#allocation17_spill] sm:$0xff] %v4256_v26  ;;  %v4258_v27 = vpop.f32.mrf.mxu3 }
 0x100   : > { %4734 = vst [vmem:[#allocation18_spill] sm:$0xff] %v4258_v27  ;;  %v4260_v28 = vpop.f32.mrf.mxu1 }
 0x102   : > { %v4262_v29 = vpop.f32.mrf.mxu0 }
 0x106   : > { %v4272_v62 = vpop.f32.mrf.mxu2 }
 0x107   : > { %4735 = vst [vmem:[#allocation19_spill] sm:$0xff] %v4272_v62  ;;  %v4274_v63 = vpop.f32.mrf.mxu3 }
 0x108   : > { %4736 = vst [vmem:[#allocation20_spill] sm:$0xff] %v4274_v63  ;;  %v4276_v2 = vpop.f32.mrf.mxu1  ;;  %v2819_v63 = vld [vmem:[%s3965_s5 + $0x128] sm:$0xf] }
 0x10a   : > { %v4278_v9 = vpop.f32.mrf.mxu0 }
 0x10b   : > { %1766 = vmatmul.bf16.gmra.mxu1 %v2788_v0  ;;  %1935 = vmatmul.bf16.gmra.mxu2 %v2792_v1  ;;  %v3518_v0 = vld [vmem:[%s3965_s5 + $0x138] sm:$0xf0] }
 0x10c   : > { %2104 = vmatmul.bf16.gmra.mxu3 %v2796_v3  ;;  %v2820_v49 = vor.u32 %v3518_v0, %v2819_v63  ;;  %v2831_v63 = vld [vmem:[%s3965_s5 + $0x148] sm:$0xf]  ;;  %v3520_v0 = vld [vmem:[%s3965_s5 + $0x14c] sm:$0xf] }
 0x10d   : > { %3451 = vmatmul.msk.bf16.gmra.mxu0 %vm1462_vm0, %v2800_v8  ;;  %v2808_v8 = vor.u32 %v3514_v42, %v2805_v43  ;;  %v2832_v59 = vor.u32 %v3522_v56, %v2831_v63 }
 0x10e   : > { %v4281_v12 = vpop.f32.mrf.mxu2 }
 0x10f   : > { %4737 = vst [vmem:[#allocation21_spill] sm:$0xff] %v4281_v12  ;;  %v4283_v24 = vpop.f32.mrf.mxu3  ;;  %v3528_v12 = vld [vmem:[%s3965_s5 + $0x188] sm:$0xf0] }
 0x110   : > { %4738 = vst [vmem:[#allocation22_spill] sm:$0xff] %v4283_v24  ;;  %v4285_v32 = vpop.f32.mrf.mxu1  ;;  %v2812_v24 = vor.u32 %v3517_v46, %v2811_v45  ;;  %v3519_v46 = vld [vmem:[%s3965_s5 + $0x144] sm:$0xf] }
 0x112   : > { %v4287_v33 = vpop.f32.mrf.mxu0 }
 0x116   : > { %v4297_v1 = vpop.f32.mrf.mxu2 }
 0x117   : > { %4739 = vst [vmem:[#allocation23_spill] sm:$0xff] %v4297_v1  ;;  %v4299_v3 = vpop.f32.mrf.mxu3  ;;  %v2859_v1 = vld [vmem:[%s3965_s5 + $0x178] sm:$0xf] }
 0x118   : > { %4740 = vst [vmem:[#allocation24_spill] sm:$0xff] %v4299_v3  ;;  %v4301_v27 = vpop.f32.mrf.mxu1  ;;  %v2860_v48 = vor.u32 %v3528_v12, %v2859_v1 }
 0x11a   : > { %v4303_v36 = vpop.f32.mrf.mxu0 }
 0x11b   : > { %1771 = vmatmul.bf16.gmra.mxu1 %v2808_v8  ;;  %1940 = vmatmul.bf16.gmra.mxu2 %v2812_v24  ;;  %v3523_v8 = vld [vmem:[%s3965_s5 + $0x160] sm:$0xf0] }
 0x11c   : > { %2109 = vmatmul.bf16.gmra.mxu3 %v2816_v5  ;;  %v2840_v39 = vor.u32 %v3523_v8, %v2839_v7  ;;  %v1571_v8 = vadd.f32 %v4329_v19, %v4137_v21 }
 0x11d   : > { %3452 = vmatmul.msk.bf16.gmra.mxu0 %vm1462_vm0, %v2820_v49  ;;  %v2828_v49 = vor.u32 %v3519_v46, %v2825_v55 }
 0x11e   : > { %v4306_v3 = vpop.f32.mrf.mxu2 }
 0x11f   : > { %4741 = vst [vmem:[#allocation25_spill] sm:$0xff] %v4306_v3  ;;  %v4308_v42 = vpop.f32.mrf.mxu3 }
 0x120   : > { %4742 = vst [vmem:[#allocation26_spill] sm:$0xff] %v4308_v42  ;;  %v4310_v43 = vpop.f32.mrf.mxu1  ;;  %v2836_v42 = vor.u32 %v3520_v0, %v2833_v16  ;;  %v1569_v16 = vadd.f32 %v4329_v19, %v4128_v17  ;;  %v2853_v17 = vld [vmem:[%s3965_s5 + $0x184] sm:$0xf0] }
 0x122   : > { %v4312_v45 = vpop.f32.mrf.mxu0 }
 0x126   : > { %v4322_v24 = vpop.f32.mrf.mxu2 }
 0x127   : > { %4743 = vst [vmem:[#allocation27_spill] sm:$0xff] %v4322_v24  ;;  %v4324_v5 = vpop.f32.mrf.mxu3 }
 0x128   : > { %4744 = vst [vmem:[#allocation28_spill] sm:$0xff] %v4324_v5  ;;  %v1737_v51 = vpop.f32.mrf.mxu1  ;;  %v3527_v5 = vld [vmem:[%s3965_s5 + $0x180] sm:$0xf0] }
 0x129   : > { %v1738_v46 = vadd.f32 %v1737_v51, %v1569_v16 }
 0x12a   : > { %v2244_v31 = vpop.f32.mrf.mxu0 }
 0x12b   : > { %1776 = vmatmul.bf16.gmra.mxu1 %v2828_v49  ;;  %1945 = vmatmul.bf16.gmra.mxu2 %v2832_v59  ;;  %v3524_v49 = vld [vmem:[%s3965_s5 + $0x16c] sm:$0xf]  ;;  %v2845_v59 = vld [vmem:[%s3965_s5 + $0x17c] sm:$0xf0] }
 0x12c   : > { %2114 = vmatmul.bf16.gmra.mxu3 %v2836_v42  ;;  %v2851_v42 = vld [vmem:[%s3965_s5 + $0x170] sm:$0xf]  ;;  %v2848_v26 = vor.u32 %v3524_v49, %v2845_v59  ;;  %v2879_v59 = vld [vmem:[%s3965_s5 + $0x1a0] sm:$0xf] }
 0x12d   : > { %3453 = vmatmul.msk.bf16.gmra.mxu0 %vm1462_vm0, %v2840_v39  ;;  %v3525_v39 = vld [vmem:[%s3965_s5 + $0x174] sm:$0xf]  ;;  %v2873_v49 = vld [vmem:[%s3965_s5 + $0x1ac] sm:$0xf0] }
 0x12e   : > { %v1906_v7 = vpop.f32.mrf.mxu2  ;;  %v2856_v4 = vor.u32 %v3525_v39, %v2853_v17 }
 0x12f   : > { %v2075_v55 = vpop.f32.mrf.mxu3  ;;  %v1907_v56 = vadd.f32 %v1906_v7, %v1738_v46  ;;  %v2852_v7 = vor.u32 %v3527_v5, %v2851_v42  ;;  %v2865_v5 = vld [vmem:[%s3965_s5 + $0x1a4] sm:$0xf0]  ;;  %v3533_v42 = vld [vmem:[%s3965_s5 + $0x1b0] sm:$0xf0] }
 0x130   : > { %v1739_v63 = vpop.f32.mrf.mxu1 }
 0x131   : > { %v2076_v24 = vadd.f32 %v2075_v55, %v1907_v56  ;;  %v1740_v3 = vadd.f32 %v1739_v63, %v1571_v8  ;;  %v2871_v55 = vld [vmem:[%s3965_s5 + $0x198] sm:$0xf]  ;;  %v3532_v63 = vld [vmem:[%s3965_s5 + $0x1a8] sm:$0xf0]  ;;  %v3530_v56 = vld [vmem:[%s3965_s5 + $0x19c] sm:$0xf] }
 0x132   : > { %v2246_v0 = vpop.f32.mrf.mxu0 }
 0x133   : > { %v2245_v21 = vadd.f32 %v2244_v31, %v2076_v24  ;;  %v3529_v24 = vld [vmem:[%s3965_s5 + $0x194] sm:$0xf] }
 0x136   : > { %v1908_v62 = vpop.f32.mrf.mxu2 }
 0x137   : > { %v1909_v51 = vadd.f32 %v1908_v62, %v1740_v3  ;;  %v2077_v16 = vpop.f32.mrf.mxu3  ;;  %v1574_v62 = vadd.f32 %v4329_v19, %v4153_v37  ;;  %v2404_v3 = vmax.f32 %v2245_v21, 0.0  ;;  %v2876_v21 = vor.u32 %v3530_v56, %v2873_v49  ;;  %v2885_v56 = vld [vmem:[%s3965_s5 + $0x1cc] sm:$0xf0] }
 0x138   : > { %v1742_v46 = vpop.f32.mrf.mxu1 }
 0x139   : > { %v2078_v35 = vadd.f32 %v2077_v16, %v1909_v51  ;;  %v2868_v16 = vor.u32 %v3529_v24, %v2865_v5 }
 0x13a   : > { %v2249_v15 = vpop.f32.mrf.mxu0 }
 0x13b   : > { %v2247_v6 = vadd.f32 %v2246_v0, %v2078_v35  ;;  %1781 = vmatmul.bf16.gmra.mxu1 %v2848_v26  ;;  %1950 = vmatmul.bf16.gmra.mxu2 %v2852_v7  ;;  %v2872_v7 = vor.u32 %v3532_v63, %v2871_v55  ;;  %v1581_v55 = vadd.f32 %v4329_v19, %v4187_v61  ;;  %v3534_v63 = vld [vmem:[%s3965_s5 + $0x1bc] sm:$0xf] }
 0x13c   : > { %2119 = vmatmul.bf16.gmra.mxu3 %v2856_v4  ;;  %v1743_v4 = vadd.f32 %v1742_v46, %v1574_v62  ;;  %v2880_v62 = vor.u32 %v3533_v42, %v2879_v59  ;;  %v2893_v42 = vld [vmem:[%s3965_s5 + $0x1d4] sm:$0xf0] }
 0x13d   : > { %3454 = vmatmul.msk.bf16.gmra.mxu0 %vm1462_vm0, %v2860_v48  ;;  %v2405_v12 = vmax.f32 %v2247_v6, 0.0  ;;  %v1576_v6 = vadd.f32 %v4329_v19, %v4162_v41 }
 0x13e   : > { %v1911_v31 = vpop.f32.mrf.mxu2 }
 0x13f   : > { %v3678_v35 = vpack.c.bf16 %v2405_v12, %v2404_v3  ;;  %v2080_v48 = vpop.f32.mrf.mxu3  ;;  %v1912_v37 = vadd.f32 %v1911_v31, %v1743_v4 }
 0x140   : > { %v1744_v26 = vpop.f32.mrf.mxu1 }
 0x141   : > { %3679 = vst [vmem:[%s4351_s20] sm:$0xff] %v3678_v35   ;;  %v2081_v0 = vadd.f32 %v2080_v48, %v1912_v37  ;;  %v1745_v8 = vadd.f32 %v1744_v26, %v1576_v6  ;;  %v1579_v35 = vadd.f32 %v4329_v19, %v4178_v57  ;;  %v2891_v57 = vld [vmem:[%s3965_s5 + $0x1c0] sm:$0xf] }
 0x142   : > { %v2251_v1 = vpop.f32.mrf.mxu0 }
 0x143   : > { %v2250_v3 = vadd.f32 %v2249_v15, %v2081_v0  ;;  %v3537_v0 = vld [vmem:[%s3965_s5 + $0x1d0] sm:$0xf0] }
 0x145   : > { %v2406_v4 = vmax.f32 %v2250_v3, 0.0 }
 0x146   : > { %v1913_v39 = vpop.f32.mrf.mxu2 }
 0x147   : > { %v1914_v17 = vadd.f32 %v1913_v39, %v1745_v8  ;;  %v2082_v51 = vpop.f32.mrf.mxu3  ;;  %v3535_v8 = vld [vmem:[%s3965_s5 + $0x1c4] sm:$0xf]  ;;  %v2899_v39 = vld [vmem:[%s3965_s5 + $0x1c8] sm:$0xf] }
 0x148   : > { %v1747_v46 = vpop.f32.mrf.mxu1  ;;  %v2896_v3 = vor.u32 %v3535_v8, %v2893_v42  ;;  %v3540_v8 = vld [vmem:[%s3965_s5 + $0x1ec] sm:$0xf]  ;;  %v2913_v42 = vld [vmem:[%s3965_s5 + $0x1fc] sm:$0xf0] }
 0x149   : > { %v2083_v41 = vadd.f32 %v2082_v51, %v1914_v17  ;;  %v1748_v37 = vadd.f32 %v1747_v46, %v1579_v35  ;;  %v3538_v17 = vld [vmem:[%s3965_s5 + $0x1d8] sm:$0xf0]  ;;  %v2888_v46 = vor.u32 %v3534_v63, %v2885_v56  ;;  %v1586_v63 = vadd.f32 %v4329_v19, %v4212_v23  ;;  %v3539_v56 = vld [vmem:[%s3965_s5 + $0x1e4] sm:$0xf] }
 0x14a   : > { %v2254_v12 = vpop.f32.mrf.mxu0 }
 0x14b   : > { %v2252_v31 = vadd.f32 %v2251_v1, %v2083_v41  ;;  %1786 = vmatmul.bf16.gmra.mxu1 %v2868_v16  ;;  %1955 = vmatmul.bf16.gmra.mxu2 %v2872_v7  ;;  %v2900_v41 = vor.u32 %v3538_v17, %v2899_v39  ;;  %v2919_v39 = vld [vmem:[%s3965_s5 + $0x1f0] sm:$0xf]  ;;  %v3543_v17 = vld [vmem:[%s3965_s5 + $0x200] sm:$0xf0] }
 0x14c   : > { %2124 = vmatmul.bf16.gmra.mxu3 %v2876_v21  ;;  %v2892_v21 = vor.u32 %v3537_v0, %v2891_v57  ;;  %v2905_v57 = vld [vmem:[%s3965_s5 + $0x1f4] sm:$0xf0]  ;;  %v3542_v0 = vld [vmem:[%s3965_s5 + $0x1f8] sm:$0xf0] }
 0x14d   : > { %3455 = vmatmul.msk.bf16.gmra.mxu0 %vm1462_vm0, %v2880_v62  ;;  %v2407_v48 = vmax.f32 %v2252_v31, 0.0 }
 0x14e   : > { %v1916_v15 = vpop.f32.mrf.mxu2 }
 0x14f   : > { %v3683_v26 = vpack.c.bf16 %v2407_v48, %v2406_v4  ;;  %v2085_v1 = vpop.f32.mrf.mxu3  ;;  %v1917_v24 = vadd.f32 %v1916_v15, %v1748_v37  ;;  %v1584_v48 = vadd.f32 %v4329_v19, %v4203_v13  ;;  %v2911_v13 = vld [vmem:[%s3965_s5 + $0x1e8] sm:$0xf] }
 0x150   : > { %v1749_v6 = vpop.f32.mrf.mxu1 }
 0x151   : > { %3835 = vst [vmem:[%s4351_s20 + $0x8] sm:$0xff] %v3683_v26   ;;  %v2086_v49 = vadd.f32 %v2085_v1, %v1917_v24  ;;  %v1750_v59 = vadd.f32 %v1749_v6, %v1581_v55 }
 0x152   : > { %v2256_v5 = vpop.f32.mrf.mxu0 }
 0x153   : > { %v2255_v31 = vadd.f32 %v2254_v12, %v2086_v49 }
 0x155   : > { %v2408_v15 = vmax.f32 %v2255_v31, 0.0 }
 0x156   : > { %v1918_v51 = vpop.f32.mrf.mxu2 }
 0x157   : > { %v1919_v16 = vadd.f32 %v1918_v51, %v1750_v59  ;;  %v2087_v7 = vpop.f32.mrf.mxu3 }
 0x158   : > { %v1752_v62 = vpop.f32.mrf.mxu1 }
 0x159   : > { %v2088_v61 = vadd.f32 %v2087_v7, %v1919_v16  ;;  %v1753_v1 = vadd.f32 %v1752_v62, %v1584_v48  ;;  %v1589_v48 = vadd.f32 %v4329_v19, %v4228_v47  ;;  %v2931_v47 = vld [vmem:[%s3965_s5 + $0x210] sm:$0xf] }
 0x15a   : > { %v2259_v35 = vpop.f32.mrf.mxu0 }
 0x15b   : > { %v2257_v4 = vadd.f32 %v2256_v5, %v2088_v61  ;;  %1791 = vmatmul.bf16.gmra.mxu1 %v2888_v46  ;;  %1960 = vmatmul.bf16.gmra.mxu2 %v2892_v21  ;;  %v2908_v46 = vor.u32 %v3539_v56, %v2905_v57  ;;  %v2912_v21 = vor.u32 %v3542_v0, %v2911_v13  ;;  %v2925_v56 = vld [vmem:[%s3965_s5 + $0x21c] sm:$0xf0]  ;;  %v3547_v57 = vld [vmem:[%s3965_s5 + $0x220] sm:$0xf0]  ;;  %v3545_v13 = vld [vmem:[%s3965_s5 + $0x214] sm:$0xf] }
 0x15c   : > { %2129 = vmatmul.bf16.gmra.mxu3 %v2896_v3  ;;  %v2916_v3 = vor.u32 %v3540_v8, %v2913_v42  ;;  %v3548_v42 = vld [vmem:[%s3965_s5 + $0x228] sm:$0xf0] }
 0x15d   : > { %3456 = vmatmul.msk.bf16.gmra.mxu0 %vm1462_vm0, %v2900_v41  ;;  %v2409_v26 = vmax.f32 %v2257_v4, 0.0  ;;  %v2920_v41 = vor.u32 %v3543_v17, %v2919_v39 }
 0x15e   : > { %v1921_v12 = vpop.f32.mrf.mxu2 }
 0x15f   : > { %v3688_v37 = vpack.c.bf16 %v2409_v26, %v2408_v15  ;;  %v2090_v6 = vpop.f32.mrf.mxu3  ;;  %v1922_v5 = vadd.f32 %v1921_v12, %v1753_v1 }
 0x160   : > { %v1754_v24 = vpop.f32.mrf.mxu1 }
 0x161   : > { %3836 = vst [vmem:[%s4351_s20 + $0x10] sm:$0xff] %v3688_v37   ;;  %v2091_v49 = vadd.f32 %v2090_v6, %v1922_v5  ;;  %v1755_v59 = vadd.f32 %v1754_v24, %v1586_v63  ;;  %v3544_v63 = vld [vmem:[%s3965_s5 + $0x20c] sm:$0xf] }
 0x162   : > { %v2261_v55 = vpop.f32.mrf.mxu0 }
 0x163   : > { %v2260_v31 = vadd.f32 %v2259_v35, %v2091_v49  ;;  %v2933_v49 = vld [vmem:[%s3965_s5 + $0x224] sm:$0xf0] }
 0x165   : > { %v2410_v15 = vmax.f32 %v2260_v31, 0.0 }
 0x166   : > { %v1923_v51 = vpop.f32.mrf.mxu2 }
 0x167   : > { %v1924_v16 = vadd.f32 %v1923_v51, %v1755_v59  ;;  %v2092_v7 = vpop.f32.mrf.mxu3  ;;  %v2939_v59 = vld [vmem:[%s3965_s5 + $0x218] sm:$0xf] }
 0x168   : > { %v1757_v62 = vpop.f32.mrf.mxu1 }
 0x169   : > { %v2093_v23 = vadd.f32 %v2092_v7, %v1924_v16  ;;  %v1758_v37 = vadd.f32 %v1757_v62, %v1589_v48  ;;  %v2928_v16 = vor.u32 %v3544_v63, %v2925_v56  ;;  %v2932_v7 = vor.u32 %v3547_v57, %v2931_v47  ;;  %v3550_v63 = vld [vmem:[%s3965_s5 + $0x23c] sm:$0xf]  ;;  %v2953_v57 = vld [vmem:[%s3965_s5 + $0x24c] sm:$0xf0] }
 0x16a   : > { %v2264_v61 = vpop.f32.mrf.mxu0  ;;  %v2940_v62 = vor.u32 %v3548_v42, %v2939_v59 }
 0x16b   : > { %v2262_v4 = vadd.f32 %v2261_v55, %v2093_v23  ;;  %1796 = vmatmul.bf16.gmra.mxu1 %v2908_v46  ;;  %1965 = vmatmul.bf16.gmra.mxu2 %v2912_v21  ;;  %v1591_v55 = vadd.f32 %v4329_v19, %v4237_v53  ;;  %v2936_v21 = vor.u32 %v3545_v13, %v2933_v49  ;;  %v2959_v13 = vld [vmem:[%s3965_s5 + $0x240] sm:$0xf] }
 0x16c   : > { %2134 = vmatmul.bf16.gmra.mxu3 %v2916_v3  ;;  %v1594_v23 = vadd.f32 %v4329_v19, %v4253_v25  ;;  %v2951_v25 = vld [vmem:[%s3965_s5 + $0x238] sm:$0xf] }
 0x16d   : > { %3457 = vmatmul.msk.bf16.gmra.mxu0 %vm1462_vm0, %v2920_v41  ;;  %v2411_v26 = vmax.f32 %v2262_v4, 0.0 }
 0x16e   : > { %v1926_v35 = vpop.f32.mrf.mxu2 }
 0x16f   : > { %v3693_v12 = vpack.c.bf16 %v2411_v26, %v2410_v15  ;;  %v2095_v1 = vpop.f32.mrf.mxu3  ;;  %v1927_v24 = vadd.f32 %v1926_v35, %v1758_v37 }
 0x170   : > { %v1759_v6 = vpop.f32.mrf.mxu1 }
 0x171   : > { %3837 = vst [vmem:[%s4351_s20 + $0x18] sm:$0xff] %v3693_v12   ;;  %v2096_v0 = vadd.f32 %v2095_v1, %v1927_v24  ;;  %v1760_v8 = vadd.f32 %v1759_v6, %v1591_v55  ;;  %v1596_v6 = vadd.f32 %v4329_v19, %v4262_v29  ;;  %v3549_v24 = vld [vmem:[%s3965_s5 + $0x234] sm:$0xf]  ;;  %v3552_v55 = vld [vmem:[%s3965_s5 + $0x248] sm:$0xf0] }
 0x172   : > { %v2266_v5 = vpop.f32.mrf.mxu0 }
 0x173   : > { %v2265_v3 = vadd.f32 %v2264_v61, %v2096_v0  ;;  %v3553_v0 = vld [vmem:[%s3965_s5 + $0x250] sm:$0xf0] }
 0x175   : > { %v2412_v4 = vmax.f32 %v2265_v3, 0.0 }
 0x176   : > { %v1928_v39 = vpop.f32.mrf.mxu2 }
 0x177   : > { %v1929_v17 = vadd.f32 %v1928_v39, %v1760_v8  ;;  %v2097_v51 = vpop.f32.mrf.mxu3  ;;  %v2952_v39 = vor.u32 %v3552_v55, %v2951_v25  ;;  %v2979_v25 = vld [vmem:[%s3965_s5 + $0x268] sm:$0xf]  ;;  %v3558_v55 = vld [vmem:[%s3965_s5 + $0x278] sm:$0xf0] }
 0x178   : > { %v1762_v46 = vpop.f32.mrf.mxu1 }
 0x179   : > { %v2098_v53 = vadd.f32 %v2097_v51, %v1929_v17  ;;  %v1763_v26 = vadd.f32 %v1762_v46, %v1594_v23  ;;  %v2956_v51 = vor.u32 %v3550_v63, %v2953_v57 }
 0x17a   : > { %v2269_v41 = vpop.f32.mrf.mxu0 }
 0x17b   : > { %v2267_v31 = vadd.f32 %v2266_v5, %v2098_v53  ;;  %1801 = vmatmul.bf16.gmra.mxu1 %v2928_v16  ;;  %1970 = vmatmul.bf16.gmra.mxu2 %v2932_v7  ;;  %v2945_v5 = vld [vmem:[%s3965_s5 + $0x244] sm:$0xf0]  ;;  %v2960_v16 = vor.u32 %v3553_v0, %v2959_v13 }
 0x17c   : > { %2139 = vmatmul.bf16.gmra.mxu3 %v2936_v21  ;;  %v2948_v42 = vor.u32 %v3549_v24, %v2945_v5  ;;  %v2973_v5 = vld [vmem:[%s3965_s5 + $0x274] sm:$0xf0] }
 0x17d   : > { %3458 = vmatmul.msk.bf16.gmra.mxu0 %vm1462_vm0, %v2940_v62  ;;  %v2413_v48 = vmax.f32 %v2267_v31, 0.0  ;;  %v1599_v62 = vadd.f32 %v4329_v19, %v4278_v9  ;;  %v2971_v9 = vld [vmem:[%s3965_s5 + $0x260] sm:$0xf] }
 0x17e   : > { %v1931_v61 = vpop.f32.mrf.mxu2 }
 0x17f   : > { %v3698_v15 = vpack.c.bf16 %v2413_v48, %v2412_v4  ;;  %v2100_v35 = vpop.f32.mrf.mxu3  ;;  %v1932_v37 = vadd.f32 %v1931_v61, %v1763_v26  ;;  %v1601_v26 = vadd.f32 %v4329_v19, %v4287_v33 }
 0x180   : > { %v1764_v12 = vpop.f32.mrf.mxu1 }
 0x181   : > { %3838 = vst [vmem:[%s4351_s20 + $0x20] sm:$0xff] %v3698_v15   ;;  %v2101_v56 = vadd.f32 %v2100_v35, %v1932_v37  ;;  %v1765_v47 = vadd.f32 %v1764_v12, %v1596_v6  ;;  %v3554_v35 = vld [vmem:[%s3965_s5 + $0x25c] sm:$0xf]  ;;  %v2965_v12 = vld [vmem:[%s3965_s5 + $0x26c] sm:$0xf0] }
 0x182   : > { %v2271_v1 = vpop.f32.mrf.mxu0  ;;  %v3557_v37 = vld [vmem:[%s3965_s5 + $0x270] sm:$0xf0]  ;;  %v2968_v57 = vor.u32 %v3554_v35, %v2965_v12  ;;  %v2999_v35 = vld [vmem:[%s3965_s5 + $0x290] sm:$0xf]  ;;  %v3563_v12 = vld [vmem:[%s3965_s5 + $0x2a0] sm:$0xf0] }
 0x183   : > { %v2270_v7 = vadd.f32 %v2269_v41, %v2101_v56  ;;  %v2972_v13 = vor.u32 %v3557_v37, %v2971_v9 }
 0x185   : > { %v2414_v3 = vmax.f32 %v2270_v7, 0.0 }
 0x186   : > { %v1933_v8 = vpop.f32.mrf.mxu2 }
 0x187   : > { %v1934_v49 = vadd.f32 %v1933_v8, %v1765_v47  ;;  %v2102_v59 = vpop.f32.mrf.mxu3 }
 0x188   : > { %v1767_v17 = vpop.f32.mrf.mxu1 }
 0x189   : > { %v2103_v29 = vadd.f32 %v2102_v59, %v1934_v49  ;;  %v1768_v23 = vadd.f32 %v1767_v17, %v1599_v62  ;;  %v2980_v49 = vor.u32 %v3558_v55, %v2979_v25  ;;  %v1604_v17 = vadd.f32 %v4329_v19, %v4303_v36  ;;  %v2991_v36 = vld [vmem:[%s3965_s5 + $0x288] sm:$0xf] }
 0x18a   : > { %v2274_v46 = vpop.f32.mrf.mxu0  ;;  %v3000_v55 = vor.u32 %v3563_v12, %v2999_v35 }
 0x18b   : > { %v2272_v21 = vadd.f32 %v2271_v1, %v2103_v29  ;;  %1806 = vmatmul.bf16.gmra.mxu1 %v2948_v42  ;;  %1975 = vmatmul.bf16.gmra.mxu2 %v2952_v39  ;;  %v3555_v1 = vld [vmem:[%s3965_s5 + $0x264] sm:$0xf] }
 0x18c   : > { %2144 = vmatmul.bf16.gmra.mxu3 %v2956_v51  ;;  %v2976_v8 = vor.u32 %v3555_v1, %v2973_v5 }
 0x18d   : > { %3459 = vmatmul.msk.bf16.gmra.mxu0 %vm1462_vm0, %v2960_v16  ;;  %v2415_v53 = vmax.f32 %v2272_v21, 0.0 }
 0x18e   : > { %v1936_v41 = vpop.f32.mrf.mxu2 }
 0x18f   : > { %v3703_v31 = vpack.c.bf16 %v2415_v53, %v2414_v3  ;;  %v2105_v4 = vpop.f32.mrf.mxu3  ;;  %v1937_v61 = vadd.f32 %v1936_v41, %v1768_v23  ;;  %v1606_v41 = vadd.f32 %v4329_v19, %v4312_v45  ;;  %v2985_v23 = vld [vmem:[%s3965_s5 + $0x294] sm:$0xf0] }
 0x190   : > { %v1769_v48 = vpop.f32.mrf.mxu1 }
 0x191   : > { %3839 = vst [vmem:[%s4351_s20 + $0x28] sm:$0xff] %v3703_v31   ;;  %v2106_v6 = vadd.f32 %v2105_v4, %v1937_v61  ;;  %v1770_v24 = vadd.f32 %v1769_v48, %v1601_v26  ;;  %v3559_v31 = vld [vmem:[%s3965_s5 + $0x284] sm:$0xf]  ;;  %v3562_v4 = vld [vmem:[%s3965_s5 + $0x298] sm:$0xf0] }
 0x192   : > { %v2276_v15 = vpop.f32.mrf.mxu0  ;;  %v3560_v48 = vld [vmem:[%s3965_s5 + $0x28c] sm:$0xf]  ;;  %v2993_v26 = vld [vmem:[%s3965_s5 + $0x29c] sm:$0xf0] }
 0x193   : > { %v2275_v59 = vadd.f32 %v2274_v46, %v2106_v6  ;;  %v2988_v6 = vor.u32 %v3559_v31, %v2985_v23  ;;  %v2996_v25 = vor.u32 %v3560_v48, %v2993_v26 }
 0x195   : > { %v2416_v51 = vmax.f32 %v2275_v59, 0.0 }
 0x196   : > { %v1938_v63 = vpop.f32.mrf.mxu2 }
 0x197   : > { %v1939_v56 = vadd.f32 %v1938_v63, %v1770_v24  ;;  %v2107_v47 = vpop.f32.mrf.mxu3  ;;  %v2992_v24 = vor.u32 %v3562_v4, %v2991_v36 }
 0x198   : > { %v1772_v0 = vpop.f32.mrf.mxu1 }
 0x199   : > { %v2108_v33 = vadd.f32 %v2107_v47, %v1939_v56  ;;  %v1773_v46 = vadd.f32 %v1772_v0, %v1604_v17 }
 0x19a   : > { %v2279_v42 = vpop.f32.mrf.mxu0 }
 0x19b   : > { %v2277_v39 = vadd.f32 %v2276_v15, %v2108_v33  ;;  %1811 = vmatmul.bf16.gmra.mxu1 %v2968_v57  ;;  %1980 = vmatmul.bf16.gmra.mxu2 %v2972_v13  ;;  %v1609_v57 = vadd.f32 %v4329_v19, %v4126_v14  ;;  %v3011_v14 = vld [vmem:[%s3965_s5 + $0x2b0] sm:$0xf] }
 0x19c   : > { %2149 = vmatmul.bf16.gmra.mxu3 %v2976_v8 }
 0x19d   : > { %3460 = vmatmul.msk.bf16.gmra.mxu0 %vm1462_vm0, %v2980_v49  ;;  %v2417_v16 = vmax.f32 %v2277_v39, 0.0 }
 0x19e   : > { %v1941_v7 = vpop.f32.mrf.mxu2 }
 0x19f   : > { %v3708_v29 = vpack.c.bf16 %v2417_v16, %v2416_v51  ;;  %v2110_v21 = vpop.f32.mrf.mxu3  ;;  %v1942_v3 = vadd.f32 %v1941_v7, %v1773_v46  ;;  %v1611_v51 = vadd.f32 %v4329_v19, %v4135_v20  ;;  %v3564_v16 = vld [vmem:[%s3965_s5 + $0x2ac] sm:$0xf]  ;;  %v3005_v7 = vld [vmem:[%s3965_s5 + $0x2bc] sm:$0xf0]  ;;  %v3565_v46 = vld [vmem:[%s3965_s5 + $0x2b4] sm:$0xf] }
 0x1a0   : > { %v1774_v62 = vpop.f32.mrf.mxu1  ;;  %v3008_v4 = vor.u32 %v3564_v16, %v3005_v7 }
 0x1a1   : > { %3840 = vst [vmem:[%s4351_s20 + $0x30] sm:$0xff] %v3708_v29   ;;  %v2111_v61 = vadd.f32 %v2110_v21, %v1942_v3  ;;  %v1775_v15 = vadd.f32 %v1774_v62, %v1606_v41  ;;  %v3567_v29 = vld [vmem:[%s3965_s5 + $0x2c0] sm:$0xf0]  ;;  %v3013_v3 = vld [vmem:[%s3965_s5 + $0x2c4] sm:$0xf0] }
 0x1a2   : > { %v2281_v53 = vpop.f32.mrf.mxu0  ;;  %v3568_v41 = vld [vmem:[%s3965_s5 + $0x2c8] sm:$0xf0]  ;;  %v3012_v48 = vor.u32 %v3567_v29, %v3011_v14 }
 0x1a3   : > { %v2280_v63 = vadd.f32 %v2279_v42, %v2111_v61 }
 0x1a5   : > { %v2418_v13 = vmax.f32 %v2280_v63, 0.0 }
 0x1a6   : > { %v1943_v9 = vpop.f32.mrf.mxu2 }
 0x1a7   : > { %v1944_v37 = vadd.f32 %v1943_v9, %v1775_v15  ;;  %v2112_v1 = vpop.f32.mrf.mxu3  ;;  %v3016_v15 = vor.u32 %v3565_v46, %v3013_v3 }
 0x1a8   : > { %v1777_v5 = vpop.f32.mrf.mxu1 }
 0x1a9   : > { %v2113_v45 = vadd.f32 %v2112_v1, %v1944_v37  ;;  %v1778_v59 = vadd.f32 %v1777_v5, %v1609_v57  ;;  %v1614_v37 = vadd.f32 %v4329_v19, %v4151_v34  ;;  %v3569_v57 = vld [vmem:[%s3965_s5 + $0x2d4] sm:$0xf]  ;;  %v3031_v34 = vld [vmem:[%s3965_s5 + $0x2d8] sm:$0xf] }
 0x1aa   : > { %v2284_v56 = vpop.f32.mrf.mxu0 }
 0x1ab   : > { %v2282_v47 = vadd.f32 %v2281_v53, %v2113_v45  ;;  %1816 = vmatmul.bf16.gmra.mxu1 %v2988_v6  ;;  %1985 = vmatmul.bf16.gmra.mxu2 %v2992_v24  ;;  %v3019_v53 = vld [vmem:[%s3965_s5 + $0x2b8] sm:$0xf] }
 0x1ac   : > { %2154 = vmatmul.bf16.gmra.mxu3 %v2996_v25  ;;  %v3020_v26 = vor.u32 %v3568_v41, %v3019_v53  ;;  %v1619_v41 = vadd.f32 %v4329_v19, %v4176_v54  ;;  %v3051_v54 = vld [vmem:[%s3965_s5 + $0x300] sm:$0xf] }
 0x1ad   : > { %3461 = vmatmul.msk.bf16.gmra.mxu0 %vm1462_vm0, %v3000_v55  ;;  %v2419_v0 = vmax.f32 %v2282_v47, 0.0  ;;  %v1616_v47 = vadd.f32 %v4329_v19, %v4160_v40 }
 0x1ae   : > { %v1946_v8 = vpop.f32.mrf.mxu2 }
 0x1af   : > { %v3713_v49 = vpack.c.bf16 %v2419_v0, %v2418_v13  ;;  %v2115_v33 = vpop.f32.mrf.mxu3  ;;  %v1947_v39 = vadd.f32 %v1946_v8, %v1778_v59  ;;  %v3025_v13 = vld [vmem:[%s3965_s5 + $0x2e4] sm:$0xf0]  ;;  %v3572_v0 = vld [vmem:[%s3965_s5 + $0x2e8] sm:$0xf0]  ;;  %v3570_v8 = vld [vmem:[%s3965_s5 + $0x2dc] sm:$0xf] }
 0x1b0   : > { %v1779_v42 = vpop.f32.mrf.mxu1  ;;  %v3028_v7 = vor.u32 %v3569_v57, %v3025_v13  ;;  %v3032_v14 = vor.u32 %v3572_v0, %v3031_v34 }
 0x1b1   : > { %3841 = vst [vmem:[%s4351_s20 + $0x38] sm:$0xff] %v3713_v49   ;;  %v2116_v21 = vadd.f32 %v2115_v33, %v1947_v39  ;;  %v1780_v62 = vadd.f32 %v1779_v42, %v1611_v51  ;;  %v3033_v33 = vld [vmem:[%s3965_s5 + $0x2ec] sm:$0xf0]  ;;  %v3039_v42 = vld [vmem:[%s3965_s5 + $0x2e0] sm:$0xf] }
 0x1b2   : > { %v2286_v17 = vpop.f32.mrf.mxu0  ;;  %v3573_v39 = vld [vmem:[%s3965_s5 + $0x2f0] sm:$0xf0]  ;;  %v3036_v46 = vor.u32 %v3570_v8, %v3033_v33  ;;  %v1624_v33 = vadd.f32 %v4329_v19, %v4201_v10  ;;  %v3071_v10 = vld [vmem:[%s3965_s5 + $0x328] sm:$0xf] }
 0x1b3   : > { %v2285_v35 = vadd.f32 %v2284_v56, %v2116_v21  ;;  %v3040_v21 = vor.u32 %v3573_v39, %v3039_v42 }
 0x1b5   : > { %v2420_v1 = vmax.f32 %v2285_v35, 0.0 }
 0x1b6   : > { %v1948_v31 = vpop.f32.mrf.mxu2 }
 0x1b7   : > { %v1949_v23 = vadd.f32 %v1948_v31, %v1780_v62  ;;  %v2117_v36 = vpop.f32.mrf.mxu3 }
 0x1b8   : > { %v1782_v61 = vpop.f32.mrf.mxu1 }
 0x1b9   : > { %v2118_v20 = vadd.f32 %v2117_v36, %v1949_v23  ;;  %v1783_v25 = vadd.f32 %v1782_v61, %v1614_v37  ;;  %v3577_v37 = vld [vmem:[%s3965_s5 + $0x310] sm:$0xf0] }
 0x1ba   : > { %v2289_v12 = vpop.f32.mrf.mxu0  ;;  %v3052_v57 = vor.u32 %v3577_v37, %v3051_v54 }
 0x1bb   : > { %v2287_v9 = vadd.f32 %v2286_v17, %v2118_v20  ;;  %1821 = vmatmul.bf16.gmra.mxu1 %v3008_v4  ;;  %1990 = vmatmul.bf16.gmra.mxu2 %v3012_v48  ;;  %v1621_v20 = vadd.f32 %v4329_v19, %v4185_v60 }
 0x1bc   : > { %2159 = vmatmul.bf16.gmra.mxu3 %v3016_v15 }
 0x1bd   : > { %3462 = vmatmul.msk.bf16.gmra.mxu0 %vm1462_vm0, %v3020_v26  ;;  %v2421_v6 = vmax.f32 %v2287_v9, 0.0  ;;  %v3045_v9 = vld [vmem:[%s3965_s5 + $0x30c] sm:$0xf0] }
 0x1be   : > { %v1951_v24 = vpop.f32.mrf.mxu2 }
 0x1bf   : > { %v3718_v5 = vpack.c.bf16 %v2421_v6, %v2420_v1  ;;  %v2120_v55 = vpop.f32.mrf.mxu3  ;;  %v1952_v45 = vadd.f32 %v1951_v24, %v1783_v25  ;;  %v3575_v1 = vld [vmem:[%s3965_s5 + $0x304] sm:$0xf]  ;;  %v3059_v25 = vld [vmem:[%s3965_s5 + $0x308] sm:$0xf] }
 0x1c0   : > { %v1784_v63 = vpop.f32.mrf.mxu1 }
 0x1c1   : > { %3842 = vst [vmem:[%s4351_s20 + $0x40] sm:$0xff] %v3718_v5   ;;  %v2121_v49 = vadd.f32 %v2120_v55, %v1952_v45  ;;  %v1785_v59 = vadd.f32 %v1784_v63, %v1616_v47  ;;  %v3053_v5 = vld [vmem:[%s3965_s5 + $0x314] sm:$0xf0]  ;;  %v3578_v55 = vld [vmem:[%s3965_s5 + $0x318] sm:$0xf0] }
 0x1c2   : > { %v2291_v56 = vpop.f32.mrf.mxu0  ;;  %v3056_v34 = vor.u32 %v3575_v1, %v3053_v5  ;;  %v3060_v0 = vor.u32 %v3578_v55, %v3059_v25 }
 0x1c3   : > { %v2290_v62 = vadd.f32 %v2289_v12, %v2121_v49  ;;  %v3574_v12 = vld [vmem:[%s3965_s5 + $0x2fc] sm:$0xf] }
 0x1c4   : > { %v3048_v47 = vor.u32 %v3574_v12, %v3045_v9 }
 0x1c5   : > { %v2422_v31 = vmax.f32 %v2290_v62, 0.0  ;;  %v3579_v62 = vld [vmem:[%s3965_s5 + $0x324] sm:$0xf] }
 0x1c6   : > { %v1953_v17 = vpop.f32.mrf.mxu2 }
 0x1c7   : > { %v1954_v51 = vadd.f32 %v1953_v17, %v1785_v59  ;;  %v2122_v16 = vpop.f32.mrf.mxu3 }
 0x1c8   : > { %v1787_v29 = vpop.f32.mrf.mxu1 }
 0x1c9   : > { %v2123_v40 = vadd.f32 %v2122_v16, %v1954_v51  ;;  %v1788_v48 = vadd.f32 %v1787_v29, %v1619_v41 }
 0x1ca   : > { %v2294_v3 = vpop.f32.mrf.mxu0 }
 0x1cb   : > { %v2292_v53 = vadd.f32 %v2291_v56, %v2123_v40  ;;  %1826 = vmatmul.bf16.gmra.mxu1 %v3028_v7  ;;  %1995 = vmatmul.bf16.gmra.mxu2 %v3032_v14  ;;  %v3065_v40 = vld [vmem:[%s3965_s5 + $0x334] sm:$0xf0] }
 0x1cc   : > { %2164 = vmatmul.bf16.gmra.mxu3 %v3036_v46 }
 0x1cd   : > { %3463 = vmatmul.msk.bf16.gmra.mxu0 %vm1462_vm0, %v3040_v21  ;;  %v2423_v23 = vmax.f32 %v2292_v53, 0.0  ;;  %v1626_v21 = vadd.f32 %v4329_v19, %v4210_v22  ;;  %v3580_v53 = vld [vmem:[%s3965_s5 + $0x32c] sm:$0xf] }
 0x1ce   : > { %v1956_v36 = vpop.f32.mrf.mxu2 }
 0x1cf   : > { %v3723_v4 = vpack.c.bf16 %v2423_v23, %v2422_v31  ;;  %v2125_v61 = vpop.f32.mrf.mxu3  ;;  %v1957_v26 = vadd.f32 %v1956_v36, %v1788_v48  ;;  %v3073_v23 = vld [vmem:[%s3965_s5 + $0x33c] sm:$0xf0]  ;;  %v3079_v36 = vld [vmem:[%s3965_s5 + $0x330] sm:$0xf] }
 0x1d0   : > { %v1789_v15 = vpop.f32.mrf.mxu1  ;;  %v3076_v12 = vor.u32 %v3580_v53, %v3073_v23 }
 0x1d1   : > { %3843 = vst [vmem:[%s4351_s20 + $0x48] sm:$0xff] %v3723_v4   ;;  %v2126_v6 = vadd.f32 %v2125_v61, %v1957_v26  ;;  %v1790_v24 = vadd.f32 %v1789_v15, %v1621_v20  ;;  %v3583_v4 = vld [vmem:[%s3965_s5 + $0x340] sm:$0xf0]  ;;  %v3068_v26 = vor.u32 %v3579_v62, %v3065_v40 }
 0x1d2   : > { %v2296_v35 = vpop.f32.mrf.mxu0  ;;  %v3080_v9 = vor.u32 %v3583_v4, %v3079_v36 }
 0x1d3   : > { %v2295_v8 = vadd.f32 %v2294_v3, %v2126_v6  ;;  %v3582_v3 = vld [vmem:[%s3965_s5 + $0x338] sm:$0xf0]  ;;  %v1629_v6 = vadd.f32 %v4329_v19, %v4226_v44  ;;  %v3091_v44 = vld [vmem:[%s3965_s5 + $0x350] sm:$0xf] }
 0x1d5   : > { %v2424_v42 = vmax.f32 %v2295_v8, 0.0  ;;  %v3587_v8 = vld [vmem:[%s3965_s5 + $0x360] sm:$0xf0] }
 0x1d6   : > { %v1958_v63 = vpop.f32.mrf.mxu2 }
 0x1d7   : > { %v1959_v45 = vadd.f32 %v1958_v63, %v1790_v24  ;;  %v2127_v56 = vpop.f32.mrf.mxu3 }
 0x1d8   : > { %v1792_v13 = vpop.f32.mrf.mxu1 }
 0x1d9   : > { %v2128_v60 = vadd.f32 %v2127_v56, %v1959_v45  ;;  %v1793_v16 = vadd.f32 %v1792_v13, %v1624_v33  ;;  %v1631_v13 = vadd.f32 %v4329_v19, %v4235_v52  ;;  %v3093_v33 = vld [vmem:[%s3965_s5 + $0x364] sm:$0xf0] }
 0x1da   : > { %v2299_v49 = vpop.f32.mrf.mxu0 }
 0x1db   : > { %v2297_v59 = vadd.f32 %v2296_v35, %v2128_v60  ;;  %1831 = vmatmul.bf16.gmra.mxu1 %v3048_v47  ;;  %2000 = vmatmul.bf16.gmra.mxu2 %v3052_v57  ;;  %v3072_v35 = vor.u32 %v3582_v3, %v3071_v10  ;;  %v3585_v60 = vld [vmem:[%s3965_s5 + $0x354] sm:$0xf]  ;;  %v1634_v3 = vadd.f32 %v4329_v19, %v4251_v11  ;;  %v3111_v11 = vld [vmem:[%s3965_s5 + $0x378] sm:$0xf] }
 0x1dc   : > { %2169 = vmatmul.bf16.gmra.mxu3 %v3056_v34  ;;  %v3584_v34 = vld [vmem:[%s3965_s5 + $0x34c] sm:$0xf] }
 0x1dd   : > { %3464 = vmatmul.msk.bf16.gmra.mxu0 %vm1462_vm0, %v3060_v0  ;;  %v2425_v39 = vmax.f32 %v2297_v59, 0.0  ;;  %v3085_v0 = vld [vmem:[%s3965_s5 + $0x35c] sm:$0xf0] }
 0x1de   : > { %v1961_v17 = vpop.f32.mrf.mxu2 }
 0x1df   : > { %v3728_v51 = vpack.c.bf16 %v2425_v39, %v2424_v42  ;;  %v2130_v7 = vpop.f32.mrf.mxu3  ;;  %v1962_v29 = vadd.f32 %v1961_v17, %v1793_v16  ;;  %v3099_v42 = vld [vmem:[%s3965_s5 + $0x358] sm:$0xf]  ;;  %v3588_v39 = vld [vmem:[%s3965_s5 + $0x368] sm:$0xf0] }
 0x1e0   : > { %v1794_v14 = vpop.f32.mrf.mxu1 }
 0x1e1   : > { %3844 = vst [vmem:[%s4351_s20 + $0x50] sm:$0xff] %v3728_v51   ;;  %v2131_v41 = vadd.f32 %v2130_v7, %v1962_v29  ;;  %v1795_v31 = vadd.f32 %v1794_v14, %v1626_v21  ;;  %v3088_v7 = vor.u32 %v3584_v34, %v3085_v0  ;;  %v3092_v14 = vor.u32 %v3587_v8, %v3091_v44  ;;  %v4536_v34 = vld [vmem:[%s4716_s2] ss:$0 sm:$0xff] }
 0x1e2   : > { %v2301_v46 = vpop.f32.mrf.mxu0  ;;  %v3100_v21 = vor.u32 %v3588_v39, %v3099_v42  ;;  %v1639_v0 = vadd.f32 %v4536_v34, %v4276_v2  ;;  %v3131_v2 = vld [vmem:[%s3965_s5 + $0x3a0] sm:$0xf] }
 0x1e3   : > { %v2300_v54 = vadd.f32 %v2299_v49, %v2131_v41 }
 0x1e5   : > { %v2426_v24 = vmax.f32 %v2300_v54, 0.0 }
 0x1e6   : > { %v1963_v48 = vpop.f32.mrf.mxu2 }
 0x1e7   : > { %v1964_v61 = vadd.f32 %v1963_v48, %v1795_v31  ;;  %v2132_v15 = vpop.f32.mrf.mxu3 }
 0x1e8   : > { %v1797_v20 = vpop.f32.mrf.mxu1 }
 0x1e9   : > { %v2133_v22 = vadd.f32 %v2132_v15, %v1964_v61  ;;  %v1798_v63 = vadd.f32 %v1797_v20, %v1629_v6  ;;  %v3105_v20 = vld [vmem:[%s3965_s5 + $0x384] sm:$0xf0]  ;;  %v3593_v6 = vld [vmem:[%s3965_s5 + $0x390] sm:$0xf0] }
 0x1ea   : > { %v2304_v37 = vpop.f32.mrf.mxu0 }
 0x1eb   : > { %v2302_v1 = vadd.f32 %v2301_v46, %v2133_v22  ;;  %1836 = vmatmul.bf16.gmra.mxu1 %v3068_v26  ;;  %2005 = vmatmul.bf16.gmra.mxu2 %v3072_v35  ;;  %v3096_v46 = vor.u32 %v3585_v60, %v3093_v33  ;;  %v1636_v26 = vadd.f32 %v4329_v19, %v4260_v28  ;;  %v3589_v35 = vld [vmem:[%s3965_s5 + $0x374] sm:$0xf] }
 0x1ec   : > { %2174 = vmatmul.bf16.gmra.mxu3 %v3076_v12  ;;  %v3592_v12 = vld [vmem:[%s3965_s5 + $0x388] sm:$0xf0] }
 0x1ed   : > { %3465 = vmatmul.msk.bf16.gmra.mxu0 %vm1462_vm0, %v3080_v9  ;;  %v2427_v5 = vmax.f32 %v2302_v1, 0.0  ;;  %v3590_v9 = vld [vmem:[%s3965_s5 + $0x37c] sm:$0xf]  ;;  %v3119_v1 = vld [vmem:[%s3965_s5 + $0x380] sm:$0xf] }
 0x1ee   : > { %v1966_v25 = vpop.f32.mrf.mxu2 }
 0x1ef   : > { %v3733_v55 = vpack.c.bf16 %v2427_v5, %v2426_v24  ;;  %v2135_v45 = vpop.f32.mrf.mxu3  ;;  %v1967_v47 = vadd.f32 %v1966_v25, %v1798_v63  ;;  %v3112_v63 = vor.u32 %v3592_v12, %v3111_v11 }
 0x1f0   : > { %v1799_v56 = vpop.f32.mrf.mxu1 }
 0x1f1   : > { %3845 = vst [vmem:[%s4351_s20 + $0x58] sm:$0xff] %v3733_v55   ;;  %v2136_v49 = vadd.f32 %v2135_v45, %v1967_v47  ;;  %v1800_v59 = vadd.f32 %v1799_v56, %v1631_v13  ;;  %v3108_v55 = vor.u32 %v3589_v35, %v3105_v20  ;;  %v3120_v47 = vor.u32 %v3593_v6, %v3119_v1 }
 0x1f2   : > { %v2306_v57 = vpop.f32.mrf.mxu0  ;;  %v1646_v6 = vadd.f32 %v4536_v34, %v4310_v43 }
 0x1f3   : > { %v2305_v62 = vadd.f32 %v2304_v37, %v2136_v49  ;;  %v3113_v37 = vld [vmem:[%s3965_s5 + $0x38c] sm:$0xf0] }
 0x1f4   : > { %v3116_v56 = vor.u32 %v3590_v9, %v3113_v37 }
 0x1f5   : > { %v2428_v53 = vmax.f32 %v2305_v62, 0.0  ;;  %v3133_v62 = vld [vmem:[%s3965_s5 + $0x3b4] sm:$0xf0] }
 0x1f6   : > { %v1968_v17 = vpop.f32.mrf.mxu2 }
 0x1f7   : > { %v1969_v51 = vadd.f32 %v1968_v17, %v1800_v59  ;;  %v2137_v16 = vpop.f32.mrf.mxu3 }
 0x1f8   : > { %v1802_v29 = vpop.f32.mrf.mxu1 }
 0x1f9   : > { %v2138_v52 = vadd.f32 %v2137_v16, %v1969_v51  ;;  %v1803_v36 = vadd.f32 %v1802_v29, %v1634_v3  ;;  %v1641_v51 = vadd.f32 %v4536_v34, %v4285_v32  ;;  %v3594_v16 = vld [vmem:[%s3965_s5 + $0x39c] sm:$0xf]  ;;  %v3595_v29 = vld [vmem:[%s3965_s5 + $0x3a4] sm:$0xf] }
 0x1fa   : > { %v2309_v40 = vpop.f32.mrf.mxu0 }
 0x1fb   : > { %v2307_v10 = vadd.f32 %v2306_v57, %v2138_v52  ;;  %1841 = vmatmul.bf16.gmra.mxu1 %v3088_v7  ;;  %2010 = vmatmul.bf16.gmra.mxu2 %v3092_v14  ;;  %v3125_v7 = vld [vmem:[%s3965_s5 + $0x3ac] sm:$0xf0]  ;;  %v3597_v14 = vld [vmem:[%s3965_s5 + $0x3b0] sm:$0xf0]  ;;  %v3139_v52 = vld [vmem:[%s3965_s5 + $0x3a8] sm:$0xf] }
 0x1fc   : > { %2179 = vmatmul.bf16.gmra.mxu3 %v3096_v46 }
 0x1fd   : > { %3466 = vmatmul.msk.bf16.gmra.mxu0 %vm1462_vm0, %v3100_v21  ;;  %v2429_v41 = vmax.f32 %v2307_v10, 0.0 }
 0x1fe   : > { %v1971_v31 = vpop.f32.mrf.mxu2 }
 0x1ff   : > { %v3738_v23 = vpack.c.bf16 %v2429_v41, %v2428_v53  ;;  %v2140_v4 = vpop.f32.mrf.mxu3  ;;  %v1972_v61 = vadd.f32 %v1971_v31, %v1803_v36  ;;  %v3128_v41 = vor.u32 %v3594_v16, %v3125_v7  ;;  %v3132_v31 = vor.u32 %v3597_v14, %v3131_v2 }
 0x200   : > { %v1804_v48 = vpop.f32.mrf.mxu1  ;;  %v3136_v36 = vor.u32 %v3595_v29, %v3133_v62  ;;  %v1651_v62 = vadd.f32 %v4536_v34, %v4147_v30 }
 0x201   : > { %3846 = vst [vmem:[%s4351_s20 + $0x60] sm:$0xff] %v3738_v23   ;;  %v2141_v54 = vadd.f32 %v2140_v4, %v1972_v61  ;;  %v1805_v22 = vadd.f32 %v1804_v48, %v1636_v26  ;;  %v1644_v26 = vadd.f32 %v4536_v34, %v4301_v27  ;;  %v3151_v27 = vld [vmem:[%s3965_s5 + $0x3c8] sm:$0xf] }
 0x202   : > { %v2311_v15 = vpop.f32.mrf.mxu0 }
 0x203   : > { %v2310_v57 = vadd.f32 %v2309_v40, %v2141_v54  ;;  %v3598_v40 = vld [vmem:[%s3965_s5 + $0x3b8] sm:$0xf0] }
 0x204   : > { %v3140_v4 = vor.u32 %v3598_v40, %v3139_v52  ;;  %v3604_v52 = vld [vmem:[%s3965_s5 + $0x3ec] sm:$0xf]  ;;  %v3165_v40 = vld [vmem:[%s3965_s5 + $0x3fc] sm:$0xf0] }
 0x205   : > { %v2430_v44 = vmax.f32 %v2310_v57, 0.0  ;;  %v3603_v57 = vld [vmem:[%s3965_s5 + $0x3e0] sm:$0xf0] }
 0x206   : > { %v1973_v24 = vpop.f32.mrf.mxu2 }
 0x207   : > { %v1974_v5 = vadd.f32 %v1973_v24, %v1805_v22  ;;  %v2142_v25 = vpop.f32.mrf.mxu3  ;;  %v3599_v24 = vld [vmem:[%s3965_s5 + $0x3c4] sm:$0xf] }
 0x208   : > { %v1807_v45 = vpop.f32.mrf.mxu1 }
 0x209   : > { %v2143_v19 = vadd.f32 %v2142_v25, %v1974_v5  ;;  %v1808_v59 = vadd.f32 %v1807_v45, %v1639_v0  ;;  %v3145_v5 = vld [vmem:[%s3965_s5 + $0x3d4] sm:$0xf0]  ;;  %v3602_v25 = vld [vmem:[%s3965_s5 + $0x3d8] sm:$0xf0] }
 0x20a   : > { %v2314_v28 = vpop.f32.mrf.mxu0  ;;  %v3148_v0 = vor.u32 %v3599_v24, %v3145_v5 }
 0x20b   : > { %v2312_v13 = vadd.f32 %v2311_v15, %v2143_v19  ;;  %1846 = vmatmul.bf16.gmra.mxu1 %v3108_v55  ;;  %2015 = vmatmul.bf16.gmra.mxu2 %v3112_v63  ;;  %v3600_v55 = vld [vmem:[%s3965_s5 + $0x3cc] sm:$0xf] }
 0x20c   : > { %2184 = vmatmul.bf16.gmra.mxu3 %v3116_v56  ;;  %v3153_v56 = vld [vmem:[%s3965_s5 + $0x3dc] sm:$0xf0] }
 0x20d   : > { %3467 = vmatmul.msk.bf16.gmra.mxu0 %vm1462_vm0, %v3120_v47  ;;  %v2431_v8 = vmax.f32 %v2312_v13, 0.0  ;;  %v3159_v47 = vld [vmem:[%s3965_s5 + $0x3d0] sm:$0xf] }
 0x20e   : > { %v1976_v60 = vpop.f32.mrf.mxu2 }
 0x20f   : > { %v3743_v49 = vpack.c.bf16 %v2431_v8, %v2430_v44  ;;  %v2145_v33 = vpop.f32.mrf.mxu3  ;;  %v1977_v39 = vadd.f32 %v1976_v60, %v1808_v59  ;;  %v3152_v44 = vor.u32 %v3602_v25, %v3151_v27  ;;  %v3156_v60 = vor.u32 %v3600_v55, %v3153_v56  ;;  %v3185_v56 = vld [vmem:[%s3965_s5 + $0x424] sm:$0xf0] }
 0x210   : > { %v1809_v42 = vpop.f32.mrf.mxu1 }
 0x211   : > { %3847 = vst [vmem:[%s4351_s20 + $0x68] sm:$0xff] %v3743_v49   ;;  %v2146_v46 = vadd.f32 %v2145_v33, %v1977_v39  ;;  %v1810_v21 = vadd.f32 %v1809_v42, %v1641_v51  ;;  %v3160_v49 = vor.u32 %v3603_v57, %v3159_v47  ;;  %v1649_v39 = vadd.f32 %v4536_v34, %v4131_v18  ;;  %v3171_v18 = vld [vmem:[%s3965_s5 + $0x3f0] sm:$0xf]  ;;  %v3612_v47 = vld [vmem:[%s3965_s5 + $0x428] sm:$0xf0] }
 0x212   : > { %v2316_v17 = vpop.f32.mrf.mxu0  ;;  %v3610_v57 = vld [vmem:[%s3965_s5 + $0x41c] sm:$0xf] }
 0x213   : > { %v2315_v48 = vadd.f32 %v2314_v28, %v2146_v46 }
 0x215   : > { %v2432_v35 = vmax.f32 %v2315_v48, 0.0 }
 0x216   : > { %v1978_v10 = vpop.f32.mrf.mxu2 }
 0x217   : > { %v1979_v3 = vadd.f32 %v1978_v10, %v1810_v21  ;;  %v2147_v53 = vpop.f32.mrf.mxu3  ;;  %v3607_v10 = vld [vmem:[%s3965_s5 + $0x400] sm:$0xf0] }
 0x218   : > { %v1812_v23 = vpop.f32.mrf.mxu1 }
 0x219   : > { %v2148_v32 = vadd.f32 %v2147_v53, %v1979_v3  ;;  %v1813_v9 = vadd.f32 %v1812_v23, %v1644_v26  ;;  %v3605_v3 = vld [vmem:[%s3965_s5 + $0x3f4] sm:$0xf]  ;;  %v3179_v23 = vld [vmem:[%s3965_s5 + $0x3f8] sm:$0xf] }
 0x21a   : > { %v2319_v61 = vpop.f32.mrf.mxu0 }
 0x21b   : > { %v2317_v15 = vadd.f32 %v2316_v17, %v2148_v32  ;;  %1851 = vmatmul.bf16.gmra.mxu1 %v3128_v41  ;;  %2020 = vmatmul.bf16.gmra.mxu2 %v3132_v31  ;;  %v3173_v31 = vld [vmem:[%s3965_s5 + $0x404] sm:$0xf0] }
 0x21c   : > { %2189 = vmatmul.bf16.gmra.mxu3 %v3136_v36  ;;  %v3608_v36 = vld [vmem:[%s3965_s5 + $0x408] sm:$0xf0] }
 0x21d   : > { %3468 = vmatmul.msk.bf16.gmra.mxu0 %vm1462_vm0, %v3140_v4  ;;  %v2433_v20 = vmax.f32 %v2317_v15, 0.0  ;;  %v3172_v15 = vor.u32 %v3607_v10, %v3171_v18  ;;  %v4745_v10 = vld [vmem:[#allocation7_spill] sm:$0xff] }
 0x21e   : > { %v1981_v11 = vpop.f32.mrf.mxu2 }
 0x21f   : > { %v3748_v12 = vpack.c.bf16 %v2433_v20, %v2432_v35  ;;  %v2150_v54 = vpop.f32.mrf.mxu3  ;;  %v1982_v37 = vadd.f32 %v1981_v11, %v1813_v9  ;;  %v3176_v35 = vor.u32 %v3605_v3, %v3173_v31  ;;  %v3180_v20 = vor.u32 %v3608_v36, %v3179_v23  ;;  %v3617_v31 = vld [vmem:[%s3965_s5 + $0x450] sm:$0xf0]  ;;  %v3615_v23 = vld [vmem:[%s3965_s5 + $0x444] sm:$0xf] }
 0x220   : > { %v1814_v22 = vpop.f32.mrf.mxu1  ;;  %v1661_v3 = vadd.f32 %v4536_v34, %v4745_v10 }
 0x221   : > { %3848 = vst [vmem:[%s4351_s20 + $0x70] sm:$0xff] %v3748_v12   ;;  %v2151_v63 = vadd.f32 %v2150_v54, %v1982_v37  ;;  %v1815_v45 = vadd.f32 %v1814_v22, %v1646_v6  ;;  %v1654_v54 = vadd.f32 %v4536_v34, %v4156_v38  ;;  %v3191_v38 = vld [vmem:[%s3965_s5 + $0x418] sm:$0xf] }
 0x222   : > { %v2321_v1 = vpop.f32.mrf.mxu0 }
 0x223   : > { %v2320_v59 = vadd.f32 %v2319_v61, %v2151_v63  ;;  %v3168_v61 = vor.u32 %v3604_v52, %v3165_v40  ;;  %v1656_v63 = vadd.f32 %v4536_v34, %v4172_v50 }
 0x225   : > { %v2434_v17 = vmax.f32 %v2320_v59, 0.0 }
 0x226   : > { %v1983_v19 = vpop.f32.mrf.mxu2 }
 0x227   : > { %v1984_v28 = vadd.f32 %v1983_v19, %v1815_v45  ;;  %v2152_v13 = vpop.f32.mrf.mxu3  ;;  %v3609_v45 = vld [vmem:[%s3965_s5 + $0x414] sm:$0xf] }
 0x228   : > { %v1817_v8 = vpop.f32.mrf.mxu1  ;;  %v3188_v59 = vor.u32 %v3609_v45, %v3185_v56 }
 0x229   : > { %v2153_v43 = vadd.f32 %v2152_v13, %v1984_v28  ;;  %v1818_v2 = vadd.f32 %v1817_v8, %v1649_v39  ;;  %v3193_v13 = vld [vmem:[%s3965_s5 + $0x42c] sm:$0xf0] }
 0x22a   : > { %v2324_v33 = vpop.f32.mrf.mxu0 }
 0x22b   : > { %v2322_v42 = vadd.f32 %v2321_v1, %v2153_v43  ;;  %1856 = vmatmul.bf16.gmra.mxu1 %v3148_v0  ;;  %2025 = vmatmul.bf16.gmra.mxu2 %v3152_v44  ;;  %v3199_v0 = vld [vmem:[%s3965_s5 + $0x420] sm:$0xf]  ;;  %v3613_v44 = vld [vmem:[%s3965_s5 + $0x430] sm:$0xf0]  ;;  %v3192_v43 = vor.u32 %v3612_v47, %v3191_v38 }
 0x22c   : > { %2194 = vmatmul.bf16.gmra.mxu3 %v3156_v60  ;;  %v3200_v39 = vor.u32 %v3613_v44, %v3199_v0  ;;  %v3231_v0 = vld [vmem:[%s3965_s5 + $0x468] sm:$0xf]  ;;  %v3622_v44 = vld [vmem:[%s3965_s5 + $0x478] sm:$0xf0] }
 0x22d   : > { %3469 = vmatmul.msk.bf16.gmra.mxu0 %vm1462_vm0, %v3160_v49  ;;  %v2435_v51 = vmax.f32 %v2322_v42, 0.0  ;;  %v3196_v42 = vor.u32 %v3610_v57, %v3193_v13  ;;  %v4747_v57 = vld [vmem:[#allocation11_spill] sm:$0xff]  ;;  %v3225_v13 = vld [vmem:[%s3965_s5 + $0x474] sm:$0xf0] }
 0x22e   : > { %v1986_v16 = vpop.f32.mrf.mxu2 }
 0x22f   : > { %v3753_v7 = vpack.c.bf16 %v2435_v51, %v2434_v17  ;;  %v2155_v14 = vpop.f32.mrf.mxu3  ;;  %v1987_v46 = vadd.f32 %v1986_v16, %v1818_v2 }
 0x230   : > { %v1819_v29 = vpop.f32.mrf.mxu1 }
 0x231   : > { %3849 = vst [vmem:[%s4351_s20 + $0x78] sm:$0xff] %v3753_v7   ;;  %v2156_v53 = vadd.f32 %v2155_v14, %v1987_v46  ;;  %v1820_v41 = vadd.f32 %v1819_v29, %v1651_v62  ;;  %v1659_v7 = vadd.f32 %v4536_v34, %v4181_v58  ;;  %v3211_v58 = vld [vmem:[%s3965_s5 + $0x440] sm:$0xf] }
 0x232   : > { %v2326_v21 = vpop.f32.mrf.mxu0 }
 0x233   : > { %v2325_v11 = vadd.f32 %v2324_v33, %v2156_v53  ;;  %v3614_v53 = vld [vmem:[%s3965_s5 + $0x43c] sm:$0xf] }
 0x235   : > { %v2436_v22 = vmax.f32 %v2325_v11, 0.0  ;;  %v3212_v11 = vor.u32 %v3617_v31, %v3211_v58 }
 0x236   : > { %v1988_v4 = vpop.f32.mrf.mxu2 }
 0x237   : > { %v1989_v48 = vadd.f32 %v1988_v4, %v1820_v41  ;;  %v2157_v32 = vpop.f32.mrf.mxu3  ;;  %v3205_v41 = vld [vmem:[%s3965_s5 + $0x44c] sm:$0xf0] }
 0x238   : > { %v1822_v26 = vpop.f32.mrf.mxu1 }
 0x239   : > { %v2158_v30 = vadd.f32 %v2157_v32, %v1989_v48  ;;  %v1823_v24 = vadd.f32 %v1822_v26, %v1654_v54  ;;  %v3213_v48 = vld [vmem:[%s3965_s5 + $0x454] sm:$0xf0]  ;;  %v3219_v32 = vld [vmem:[%s3965_s5 + $0x448] sm:$0xf] }
 0x23a   : > { %v2329_v12 = vpop.f32.mrf.mxu0 }
 0x23b   : > { %v2327_v9 = vadd.f32 %v2326_v21, %v2158_v30  ;;  %1861 = vmatmul.bf16.gmra.mxu1 %v3168_v61  ;;  %2030 = vmatmul.bf16.gmra.mxu2 %v3172_v15  ;;  %v3618_v61 = vld [vmem:[%s3965_s5 + $0x458] sm:$0xf0] }
 0x23c   : > { %2199 = vmatmul.bf16.gmra.mxu3 %v3176_v35 }
 0x23d   : > { %3470 = vmatmul.msk.bf16.gmra.mxu0 %vm1462_vm0, %v3180_v20  ;;  %v2437_v37 = vmax.f32 %v2327_v9, 0.0  ;;  %v3208_v20 = vor.u32 %v3614_v53, %v3205_v41  ;;  %v3220_v9 = vor.u32 %v3618_v61, %v3219_v32  ;;  %v3245_v32 = vld [vmem:[%s3965_s5 + $0x49c] sm:$0xf0]  ;;  %v3251_v61 = vld [vmem:[%s3965_s5 + $0x490] sm:$0xf] }
 0x23e   : > { %v1991_v1 = vpop.f32.mrf.mxu2 }
 0x23f   : > { %v3758_v6 = vpack.c.bf16 %v2437_v37, %v2436_v22  ;;  %v2160_v5 = vpop.f32.mrf.mxu3  ;;  %v1992_v25 = vadd.f32 %v1991_v1, %v1823_v24 }
 0x240   : > { %v1824_v27 = vpop.f32.mrf.mxu1 }
 0x241   : > { %3850 = vst [vmem:[%s4351_s20 + $0x80] sm:$0xff] %v3758_v6   ;;  %v2161_v19 = vadd.f32 %v2160_v5, %v1992_v25  ;;  %v1825_v28 = vadd.f32 %v1824_v27, %v1656_v63  ;;  %v4746_v6 = vld [vmem:[#allocation9_spill] sm:$0xff] }
 0x242   : > { %v2331_v55 = vpop.f32.mrf.mxu0  ;;  %v1664_v24 = vadd.f32 %v4536_v34, %v4746_v6 }
 0x243   : > { %v2330_v17 = vadd.f32 %v2329_v12, %v2161_v19  ;;  %v3216_v12 = vor.u32 %v3615_v23, %v3213_v48  ;;  %v1666_v19 = vadd.f32 %v4536_v34, %v4747_v57  ;;  %v3624_v48 = vld [vmem:[%s3965_s5 + $0x48c] sm:$0xf] }
 0x245   : > { %v2438_v2 = vmax.f32 %v2330_v17, 0.0 }
 0x246   : > { %v1993_v8 = vpop.f32.mrf.mxu2 }
 0x247   : > { %v1994_v60 = vadd.f32 %v1993_v8, %v1825_v28  ;;  %v2162_v49 = vpop.f32.mrf.mxu3  ;;  %v3619_v28 = vld [vmem:[%s3965_s5 + $0x464] sm:$0xf]  ;;  %v3620_v8 = vld [vmem:[%s3965_s5 + $0x46c] sm:$0xf] }
 0x248   : > { %v1827_v33 = vpop.f32.mrf.mxu1 }
 0x249   : > { %v2163_v50 = vadd.f32 %v2162_v49, %v1994_v60  ;;  %v1828_v21 = vadd.f32 %v1827_v33, %v1659_v7  ;;  %v3623_v33 = vld [vmem:[%s3965_s5 + $0x480] sm:$0xf0] }
 0x24a   : > { %v2334_v51 = vpop.f32.mrf.mxu0 }
 0x24b   : > { %v2332_v16 = vadd.f32 %v2331_v55, %v2163_v50  ;;  %1866 = vmatmul.bf16.gmra.mxu1 %v3188_v59  ;;  %2035 = vmatmul.bf16.gmra.mxu2 %v3192_v43  ;;  %v3233_v59 = vld [vmem:[%s3965_s5 + $0x47c] sm:$0xf0]  ;;  %v3239_v43 = vld [vmem:[%s3965_s5 + $0x470] sm:$0xf]  ;;  %v3228_v50 = vor.u32 %v3619_v28, %v3225_v13 }
 0x24c   : > { %2204 = vmatmul.bf16.gmra.mxu3 %v3196_v42  ;;  %v3236_v7 = vor.u32 %v3620_v8, %v3233_v59  ;;  %v3629_v59 = vld [vmem:[%s3965_s5 + $0x4b4] sm:$0xf] }
 0x24d   : > { %3471 = vmatmul.msk.bf16.gmra.mxu0 %vm1462_vm0, %v3200_v39  ;;  %v2439_v14 = vmax.f32 %v2332_v16, 0.0 }
 0x24e   : > { %v1996_v29 = vpop.f32.mrf.mxu2 }
 0x24f   : > { %v3763_v46 = vpack.c.bf16 %v2439_v14, %v2438_v2  ;;  %v2165_v62 = vpop.f32.mrf.mxu3  ;;  %v1997_v40 = vadd.f32 %v1996_v29, %v1828_v21  ;;  %v3240_v2 = vor.u32 %v3623_v33, %v3239_v43  ;;  %v3265_v43 = vld [vmem:[%s3965_s5 + $0x4c4] sm:$0xf0]  ;;  %v3271_v33 = vld [vmem:[%s3965_s5 + $0x4b8] sm:$0xf] }
 0x250   : > { %v1829_v52 = vpop.f32.mrf.mxu1 }
 0x251   : > { %3851 = vst [vmem:[%s4351_s20 + $0x88] sm:$0xff] %v3763_v46   ;;  %v2166_v36 = vadd.f32 %v2165_v62, %v1997_v40  ;;  %v1830_v4 = vadd.f32 %v1829_v52, %v1661_v3  ;;  %v4748_v62 = vld [vmem:[#allocation13_spill] sm:$0xff] }
 0x252   : > { %v2336_v18 = vpop.f32.mrf.mxu0  ;;  %v1669_v52 = vadd.f32 %v4536_v34, %v4748_v62 }
 0x253   : > { %v2335_v54 = vadd.f32 %v2334_v51, %v2166_v36  ;;  %v3232_v51 = vor.u32 %v3622_v44, %v3231_v0  ;;  %v4749_v36 = vld [vmem:[#allocation15_spill] sm:$0xff] }
 0x255   : > { %v2440_v5 = vmax.f32 %v2335_v54, 0.0 }
 0x256   : > { %v1998_v15 = vpop.f32.mrf.mxu2 }
 0x257   : > { %v1999_v26 = vadd.f32 %v1998_v15, %v1830_v4  ;;  %v2167_v35 = vpop.f32.mrf.mxu3  ;;  %v1671_v4 = vadd.f32 %v4536_v34, %v4749_v36  ;;  %v3627_v15 = vld [vmem:[%s3965_s5 + $0x4a0] sm:$0xf0] }
 0x258   : > { %v1832_v30 = vpop.f32.mrf.mxu1 }
 0x259   : > { %v2168_v22 = vadd.f32 %v2167_v35, %v1999_v26  ;;  %v1833_v63 = vadd.f32 %v1832_v30, %v1664_v24  ;;  %v3625_v26 = vld [vmem:[%s3965_s5 + $0x494] sm:$0xf]  ;;  %v3259_v30 = vld [vmem:[%s3965_s5 + $0x498] sm:$0xf] }
 0x25a   : > { %v2339_v37 = vpop.f32.mrf.mxu0 }
 0x25b   : > { %v2337_v1 = vadd.f32 %v2336_v18, %v2168_v22  ;;  %1871 = vmatmul.bf16.gmra.mxu1 %v3208_v20  ;;  %2040 = vmatmul.bf16.gmra.mxu2 %v3212_v11  ;;  %v3253_v11 = vld [vmem:[%s3965_s5 + $0x4a4] sm:$0xf0] }
 0x25c   : > { %2209 = vmatmul.bf16.gmra.mxu3 %v3216_v12  ;;  %v3628_v12 = vld [vmem:[%s3965_s5 + $0x4a8] sm:$0xf0]  ;;  %v3256_v24 = vor.u32 %v3625_v26, %v3253_v11  ;;  %v3634_v11 = vld [vmem:[%s3965_s5 + $0x4dc] sm:$0xf] }
 0x25d   : > { %3472 = vmatmul.msk.bf16.gmra.mxu0 %vm1462_vm0, %v3220_v9  ;;  %v2441_v27 = vmax.f32 %v2337_v1, 0.0  ;;  %v3252_v1 = vor.u32 %v3627_v15, %v3251_v61 }
 0x25e   : > { %v2001_v25 = vpop.f32.mrf.mxu2 }
 0x25f   : > { %v3768_v55 = vpack.c.bf16 %v2441_v27, %v2440_v5  ;;  %v2170_v45 = vpop.f32.mrf.mxu3  ;;  %v2002_v38 = vadd.f32 %v2001_v25, %v1833_v63  ;;  %v3260_v5 = vor.u32 %v3628_v12, %v3259_v30  ;;  %v3285_v30 = vld [vmem:[%s3965_s5 + $0x4ec] sm:$0xf0]  ;;  %v3291_v12 = vld [vmem:[%s3965_s5 + $0x4e0] sm:$0xf] }
 0x260   : > { %v1834_v56 = vpop.f32.mrf.mxu1 }
 0x261   : > { %3852 = vst [vmem:[%s4351_s20 + $0x90] sm:$0xff] %v3768_v55   ;;  %v2171_v60 = vadd.f32 %v2170_v45, %v2002_v38  ;;  %v1835_v49 = vadd.f32 %v1834_v56, %v1666_v19  ;;  %v4750_v45 = vld [vmem:[#allocation17_spill] sm:$0xff] }
 0x262   : > { %v2341_v47 = vpop.f32.mrf.mxu0  ;;  %v1674_v56 = vadd.f32 %v4536_v34, %v4750_v45 }
 0x263   : > { %v2340_v14 = vadd.f32 %v2339_v37, %v2171_v60  ;;  %v3248_v37 = vor.u32 %v3624_v48, %v3245_v32  ;;  %v4751_v60 = vld [vmem:[#allocation19_spill] sm:$0xff] }
 0x265   : > { %v2442_v40 = vmax.f32 %v2340_v14, 0.0 }
 0x266   : > { %v2003_v42 = vpop.f32.mrf.mxu2 }
 0x267   : > { %v2004_v39 = vadd.f32 %v2003_v42, %v1835_v49  ;;  %v2172_v17 = vpop.f32.mrf.mxu3  ;;  %v1676_v49 = vadd.f32 %v4536_v34, %v4751_v60  ;;  %v3632_v42 = vld [vmem:[%s3965_s5 + $0x4c8] sm:$0xf0] }
 0x268   : > { %v1837_v16 = vpop.f32.mrf.mxu1 }
 0x269   : > { %v2173_v29 = vadd.f32 %v2172_v17, %v2004_v39  ;;  %v1838_v53 = vadd.f32 %v1837_v16, %v1669_v52  ;;  %v3630_v39 = vld [vmem:[%s3965_s5 + $0x4bc] sm:$0xf]  ;;  %v3279_v16 = vld [vmem:[%s3965_s5 + $0x4c0] sm:$0xf] }
 0x26a   : > { %v2344_v46 = vpop.f32.mrf.mxu0 }
 0x26b   : > { %v2342_v21 = vadd.f32 %v2341_v47, %v2173_v29  ;;  %1876 = vmatmul.bf16.gmra.mxu1 %v3228_v50  ;;  %2045 = vmatmul.bf16.gmra.mxu2 %v3232_v51  ;;  %v3273_v51 = vld [vmem:[%s3965_s5 + $0x4cc] sm:$0xf0] }
 0x26c   : > { %2214 = vmatmul.bf16.gmra.mxu3 %v3236_v7  ;;  %v3633_v7 = vld [vmem:[%s3965_s5 + $0x4d0] sm:$0xf0]  ;;  %v3276_v52 = vor.u32 %v3630_v39, %v3273_v51 }
 0x26d   : > { %3473 = vmatmul.msk.bf16.gmra.mxu0 %vm1462_vm0, %v3240_v2  ;;  %v2443_v18 = vmax.f32 %v2342_v21, 0.0  ;;  %v3272_v21 = vor.u32 %v3632_v42, %v3271_v33 }
 0x26e   : > { %v2006_v10 = vpop.f32.mrf.mxu2 }
 0x26f   : > { %v3773_v3 = vpack.c.bf16 %v2443_v18, %v2442_v40  ;;  %v2175_v41 = vpop.f32.mrf.mxu3  ;;  %v2007_v31 = vadd.f32 %v2006_v10, %v1838_v53  ;;  %v3280_v40 = vor.u32 %v3633_v7, %v3279_v16 }
 0x270   : > { %v1839_v58 = vpop.f32.mrf.mxu1 }
 0x271   : > { %3853 = vst [vmem:[%s4351_s20 + $0x98] sm:$0xff] %v3773_v3   ;;  %v2176_v35 = vadd.f32 %v2175_v41, %v2007_v31  ;;  %v1840_v20 = vadd.f32 %v1839_v58, %v1671_v4  ;;  %v4752_v41 = vld [vmem:[#allocation21_spill] sm:$0xff] }
 0x272   : > { %v2346_v23 = vpop.f32.mrf.mxu0  ;;  %v1679_v58 = vadd.f32 %v4536_v34, %v4752_v41 }
 0x273   : > { %v2345_v27 = vadd.f32 %v2344_v46, %v2176_v35  ;;  %v3268_v46 = vor.u32 %v3629_v59, %v3265_v43  ;;  %v4753_v35 = vld [vmem:[#allocation23_spill] sm:$0xff] }
 0x275   : > { %v2444_v38 = vmax.f32 %v2345_v27, 0.0 }
 0x276   : > { %v2008_v9 = vpop.f32.mrf.mxu2 }
 0x277   : > { %v2009_v54 = vadd.f32 %v2008_v9, %v1840_v20  ;;  %v2177_v22 = vpop.f32.mrf.mxu3  ;;  %v1681_v20 = vadd.f32 %v4536_v34, %v4753_v35  ;;  %v3637_v9 = vld [vmem:[%s3965_s5 + $0x4f0] sm:$0xf0] }
 0x278   : > { %v1842_v6 = vpop.f32.mrf.mxu1 }
 0x279   : > { %v2178_v25 = vadd.f32 %v2177_v22, %v2009_v54  ;;  %v1843_v28 = vadd.f32 %v1842_v6, %v1674_v56  ;;  %v3635_v54 = vld [vmem:[%s3965_s5 + $0x4e4] sm:$0xf]  ;;  %v3299_v6 = vld [vmem:[%s3965_s5 + $0x4e8] sm:$0xf] }
 0x27a   : > { %v2349_v55 = vpop.f32.mrf.mxu0 }
 0x27b   : > { %v2347_v63 = vadd.f32 %v2346_v23, %v2178_v25  ;;  %1881 = vmatmul.bf16.gmra.mxu1 %v3248_v37  ;;  %2050 = vmatmul.bf16.gmra.mxu2 %v3252_v1  ;;  %v3293_v1 = vld [vmem:[%s3965_s5 + $0x4f4] sm:$0xf0] }
 0x27c   : > { %2219 = vmatmul.bf16.gmra.mxu3 %v3256_v24  ;;  %v3638_v24 = vld [vmem:[%s3965_s5 + $0x4f8] sm:$0xf0]  ;;  %v3296_v56 = vor.u32 %v3635_v54, %v3293_v1 }
 0x27d   : > { %3474 = vmatmul.msk.bf16.gmra.mxu0 %vm1462_vm0, %v3260_v5  ;;  %v2445_v47 = vmax.f32 %v2347_v63, 0.0  ;;  %v3292_v63 = vor.u32 %v3637_v9, %v3291_v12 }
 0x27e   : > { %v2011_v57 = vpop.f32.mrf.mxu2 }
 0x27f   : > { %v3778_v19 = vpack.c.bf16 %v2445_v47, %v2444_v38  ;;  %v2180_v13 = vpop.f32.mrf.mxu3  ;;  %v2012_v44 = vadd.f32 %v2011_v57, %v1843_v28  ;;  %v3300_v38 = vor.u32 %v3638_v24, %v3299_v6 }
 0x280   : > { %v1844_v0 = vpop.f32.mrf.mxu1 }
 0x281   : > { %3854 = vst [vmem:[%s4351_s20 + $0xa0] sm:$0xff] %v3778_v19   ;;  %v2181_v17 = vadd.f32 %v2180_v13, %v2012_v44  ;;  %v1845_v50 = vadd.f32 %v1844_v0, %v1676_v49  ;;  %v4754_v13 = vld [vmem:[#allocation25_spill] sm:$0xff] }
 0x282   : > { %v2351_v8 = vpop.f32.mrf.mxu0  ;;  %v1684_v0 = vadd.f32 %v4536_v34, %v4754_v13 }
 0x283   : > { %v2350_v18 = vadd.f32 %v2349_v55, %v2181_v17  ;;  %v3288_v55 = vor.u32 %v3634_v11, %v3285_v30  ;;  %v4755_v17 = vld [vmem:[#allocation27_spill] sm:$0xff] }
 0x285   : > { %v2446_v31 = vmax.f32 %v2350_v18, 0.0 }
 0x286   : > { %v2013_v2 = vpop.f32.mrf.mxu2 }
 0x287   : > { %v2014_v14 = vadd.f32 %v2013_v2, %v1845_v50  ;;  %v2182_v29 = vpop.f32.mrf.mxu3  ;;  %v1686_v50 = vadd.f32 %v4536_v34, %v4755_v17 }
 0x288   : > { %v1847_v62 = vpop.f32.mrf.mxu1 }
 0x289   : > { %v2183_v10 = vadd.f32 %v2182_v29, %v2014_v14  ;;  %v1848_v48 = vadd.f32 %v1847_v62, %v1679_v58 }
 0x28a   : > { %v2354_v3 = vpop.f32.mrf.mxu0 }
 0x28b   : > { %v2352_v53 = vadd.f32 %v2351_v8, %v2183_v10  ;;  %1886 = vmatmul.bf16.gmra.mxu1 %v3268_v46  ;;  %2055 = vmatmul.bf16.gmra.mxu2 %v3272_v21 }
 0x28c   : > { %2224 = vmatmul.bf16.gmra.mxu3 %v3276_v52 }
 0x28d   : > { %3475 = vmatmul.msk.bf16.gmra.mxu0 %vm1462_vm0, %v3280_v40  ;;  %v2447_v23 = vmax.f32 %v2352_v53, 0.0  ;;  %v4756_v40 = vld [vmem:[#allocation2_spill] sm:$0xff] }
 0x28e   : > { %v2016_v36 = vpop.f32.mrf.mxu2  ;;  %v1689_v18 = vadd.f32 %v4536_v34, %v4756_v40 }
 0x28f   : > { %v3783_v4 = vpack.c.bf16 %v2447_v23, %v2446_v31  ;;  %v2185_v32 = vpop.f32.mrf.mxu3  ;;  %v2017_v15 = vadd.f32 %v2016_v36, %v1848_v48  ;;  %v4757_v48 = vld [vmem:[#allocation3_spill] sm:$0xff] }
 0x290   : > { %v1849_v61 = vpop.f32.mrf.mxu1 }
 0x291   : > { %3855 = vst [vmem:[%s4351_s20 + $0xa8] sm:$0xff] %v3783_v4   ;;  %v2186_v22 = vadd.f32 %v2185_v32, %v2017_v15  ;;  %v1850_v37 = vadd.f32 %v1849_v61, %v1681_v20  ;;  %v1691_v32 = vadd.f32 %v4536_v34, %v4757_v48 }
 0x292   : > { %v2356_v26 = vpop.f32.mrf.mxu0 }
 0x293   : > { %v2355_v47 = vadd.f32 %v2354_v3, %v2186_v22  ;;  %v4758_v22 = vld [vmem:[#allocation4_spill] sm:$0xff] }
 0x295   : > { %v2448_v44 = vmax.f32 %v2355_v47, 0.0 }
 0x296   : > { %v2018_v5 = vpop.f32.mrf.mxu2 }
 0x297   : > { %v2019_v27 = vadd.f32 %v2018_v5, %v1850_v37  ;;  %v2187_v25 = vpop.f32.mrf.mxu3  ;;  %v1694_v37 = vadd.f32 %v4536_v34, %v4758_v22 }
 0x298   : > { %v1852_v45 = vpop.f32.mrf.mxu1 }
 0x299   : > { %v2188_v57 = vadd.f32 %v2187_v25, %v2019_v27  ;;  %v1853_v59 = vadd.f32 %v1852_v45, %v1684_v0 }
 0x29a   : > { %v2359_v19 = vpop.f32.mrf.mxu0 }
 0x29b   : > { %v2357_v28 = vadd.f32 %v2356_v26, %v2188_v57  ;;  %1891 = vmatmul.bf16.gmra.mxu1 %v3288_v55  ;;  %2060 = vmatmul.bf16.gmra.mxu2 %v3292_v63 }
 0x29c   : > { %2229 = vmatmul.bf16.gmra.mxu3 %v3296_v56  ;;  %v4759_v56 = vld [vmem:[#allocation5_spill] sm:$0xff] }
 0x29d   : > { %3476 = vmatmul.msk.bf16.gmra.mxu0 %vm1462_vm0, %v3300_v38  ;;  %v2449_v8 = vmax.f32 %v2357_v28, 0.0  ;;  %v1696_v38 = vadd.f32 %v4536_v34, %v4759_v56 }
 0x29e   : > { %v2021_v60 = vpop.f32.mrf.mxu2 }
 0x29f   : > { %v3788_v49 = vpack.c.bf16 %v2449_v8, %v2448_v44  ;;  %v2190_v43 = vpop.f32.mrf.mxu3  ;;  %v2022_v42 = vadd.f32 %v2021_v60, %v1853_v59  ;;  %v4760_v59 = vld [vmem:[#allocation6_spill] sm:$0xff] }
 0x2a0   : > { %v1854_v33 = vpop.f32.mrf.mxu1 }
 0x2a1   : > { %3856 = vst [vmem:[%s4351_s20 + $0xb0] sm:$0xff] %v3788_v49   ;;  %v2191_v51 = vadd.f32 %v2190_v43, %v2022_v42  ;;  %v1855_v16 = vadd.f32 %v1854_v33, %v1686_v50  ;;  %v1699_v43 = vadd.f32 %v4536_v34, %v4760_v59 }
 0x2a2   : > { %v2361_v39 = vpop.f32.mrf.mxu0 }
 0x2a3   : > { %v2360_v46 = vadd.f32 %v2359_v19, %v2191_v51 }
 0x2a5   : > { %v2450_v10 = vmax.f32 %v2360_v46, 0.0 }
 0x2a6   : > { %v2023_v7 = vpop.f32.mrf.mxu2 }
 0x2a7   : > { %v2024_v2 = vadd.f32 %v2023_v7, %v1855_v16  ;;  %v2192_v14 = vpop.f32.mrf.mxu3 }
 0x2a8   : > { %v1857_v29 = vpop.f32.mrf.mxu1 }
 0x2a9   : > { %v2193_v21 = vadd.f32 %v2192_v14, %v2024_v2  ;;  %v1858_v58 = vadd.f32 %v1857_v29, %v1689_v18  ;;  %v4761_v14 = vld [vmem:[#allocation8_spill] sm:$0xff] }
 0x2aa   : > { %v2364_v62 = vpop.f32.mrf.mxu0  ;;  %v1701_v29 = vadd.f32 %v4536_v34, %v4761_v14 }
 0x2ab   : > { %v2362_v52 = vadd.f32 %v2361_v39, %v2193_v21 }
 0x2ad   : > { %v2451_v3 = vmax.f32 %v2362_v52, 0.0 }
 0x2ae   : > { %v2026_v53 = vpop.f32.mrf.mxu2 }
 0x2af   : > { %v3793_v41 = vpack.c.bf16 %v2451_v3, %v2450_v10  ;;  %v2195_v31 = vpop.f32.mrf.mxu3  ;;  %v2027_v36 = vadd.f32 %v2026_v53, %v1858_v58  ;;  %v4762_v58 = vld [vmem:[#allocation10_spill] sm:$0xff] }
 0x2b0   : > { %v1859_v23 = vpop.f32.mrf.mxu1 }
 0x2b1   : > { %3857 = vst [vmem:[%s4351_s20 + $0xb8] sm:$0xff] %v3793_v41   ;;  %v2196_v61 = vadd.f32 %v2195_v31, %v2027_v36  ;;  %v1860_v15 = vadd.f32 %v1859_v23, %v1691_v32  ;;  %v1704_v31 = vadd.f32 %v4536_v34, %v4762_v58 }
 0x2b2   : > { %v2366_v4 = vpop.f32.mrf.mxu0 }
 0x2b3   : > { %v2365_v30 = vadd.f32 %v2364_v62, %v2196_v61 }
 0x2b5   : > { %v2452_v1 = vmax.f32 %v2365_v30, 0.0 }
 0x2b6   : > { %v2028_v26 = vpop.f32.mrf.mxu2 }
 0x2b7   : > { %v2029_v35 = vadd.f32 %v2028_v26, %v1860_v15  ;;  %v2197_v20 = vpop.f32.mrf.mxu3 }
 0x2b8   : > { %v1862_v11 = vpop.f32.mrf.mxu1 }
 0x2b9   : > { %v2198_v12 = vadd.f32 %v2197_v20, %v2029_v35  ;;  %v1863_v27 = vadd.f32 %v1862_v11, %v1694_v37  ;;  %v4763_v20 = vld [vmem:[#allocation12_spill] sm:$0xff] }
 0x2ba   : > { %v2369_v9 = vpop.f32.mrf.mxu0  ;;  %v1706_v11 = vadd.f32 %v4536_v34, %v4763_v20 }
 0x2bb   : > { %v2367_v54 = vadd.f32 %v2366_v4, %v2198_v12 }
 0x2bd   : > { %v2453_v6 = vmax.f32 %v2367_v54, 0.0 }
 0x2be   : > { %v2031_v24 = vpop.f32.mrf.mxu2 }
 0x2bf   : > { %v3798_v5 = vpack.c.bf16 %v2453_v6, %v2452_v1  ;;  %v2200_v25 = vpop.f32.mrf.mxu3  ;;  %v2032_v63 = vadd.f32 %v2031_v24, %v1863_v27  ;;  %v4764_v27 = vld [vmem:[#allocation14_spill] sm:$0xff] }
 0x2c0   : > { %v1864_v55 = vpop.f32.mrf.mxu1 }
 0x2c1   : > { %3858 = vst [vmem:[%s4351_s20 + $0xc0] sm:$0xff] %v3798_v5   ;;  %v2201_v47 = vadd.f32 %v2200_v25, %v2032_v63  ;;  %v1865_v57 = vadd.f32 %v1864_v55, %v1696_v38  ;;  %v1709_v25 = vadd.f32 %v4536_v34, %v4764_v27 }
 0x2c2   : > { %v2371_v45 = vpop.f32.mrf.mxu0 }
 0x2c3   : > { %v2370_v44 = vadd.f32 %v2369_v9, %v2201_v47 }
 0x2c5   : > { %v2454_v33 = vmax.f32 %v2370_v44, 0.0 }
 0x2c6   : > { %v2033_v19 = vpop.f32.mrf.mxu2 }
 0x2c7   : > { %v2034_v28 = vadd.f32 %v2033_v19, %v1865_v57  ;;  %v2202_v13 = vpop.f32.mrf.mxu3 }
 0x2c8   : > { %v1867_v0 = vpop.f32.mrf.mxu1 }
 0x2c9   : > { %v2203_v8 = vadd.f32 %v2202_v13, %v2034_v28  ;;  %v1868_v50 = vadd.f32 %v1867_v0, %v1699_v43  ;;  %v4765_v13 = vld [vmem:[#allocation16_spill] sm:$0xff] }
 0x2ca   : > { %v2374_v60 = vpop.f32.mrf.mxu0  ;;  %v1711_v0 = vadd.f32 %v4536_v34, %v4765_v13 }
 0x2cb   : > { %v2372_v49 = vadd.f32 %v2371_v45, %v2203_v8 }
 0x2cd   : > { %v2455_v42 = vmax.f32 %v2372_v49, 0.0 }
 0x2ce   : > { %v2036_v39 = vpop.f32.mrf.mxu2 }
 0x2cf   : > { %v3803_v17 = vpack.c.bf16 %v2455_v42, %v2454_v33  ;;  %v2205_v51 = vpop.f32.mrf.mxu3  ;;  %v2037_v7 = vadd.f32 %v2036_v39, %v1868_v50  ;;  %v4766_v50 = vld [vmem:[#allocation18_spill] sm:$0xff] }
 0x2d0   : > { %v1869_v16 = vpop.f32.mrf.mxu1 }
 0x2d1   : > { %3859 = vst [vmem:[%s4351_s20 + $0xc8] sm:$0xff] %v3803_v17   ;;  %v2206_v46 = vadd.f32 %v2205_v51, %v2037_v7  ;;  %v1870_v21 = vadd.f32 %v1869_v16, %v1701_v29  ;;  %v1714_v51 = vadd.f32 %v4536_v34, %v4766_v50 }
 0x2d2   : > { %v2376_v2 = vpop.f32.mrf.mxu0 }
 0x2d3   : > { %v2375_v10 = vadd.f32 %v2374_v60, %v2206_v46 }
 0x2d5   : > { %v2456_v23 = vmax.f32 %v2375_v10, 0.0 }
 0x2d6   : > { %v2038_v62 = vpop.f32.mrf.mxu2 }
 0x2d7   : > { %v2039_v52 = vadd.f32 %v2038_v62, %v1870_v21  ;;  %v2207_v40 = vpop.f32.mrf.mxu3 }
 0x2d8   : > { %v1872_v18 = vpop.f32.mrf.mxu1 }
 0x2d9   : > { %v2208_v3 = vadd.f32 %v2207_v40, %v2039_v52  ;;  %v1873_v32 = vadd.f32 %v1872_v18, %v1704_v31  ;;  %v4767_v40 = vld [vmem:[#allocation20_spill] sm:$0xff] }
 0x2da   : > { %v2379_v53 = vpop.f32.mrf.mxu0  ;;  %v1716_v18 = vadd.f32 %v4536_v34, %v4767_v40 }
 0x2db   : > { %v2377_v41 = vadd.f32 %v2376_v2, %v2208_v3 }
 0x2dd   : > { %v2457_v36 = vmax.f32 %v2377_v41, 0.0 }
 0x2de   : > { %v2041_v4 = vpop.f32.mrf.mxu2 }
 0x2df   : > { %v3808_v48 = vpack.c.bf16 %v2457_v36, %v2456_v23  ;;  %v2210_v61 = vpop.f32.mrf.mxu3  ;;  %v2042_v26 = vadd.f32 %v2041_v4, %v1873_v32  ;;  %v4768_v32 = vld [vmem:[#allocation22_spill] sm:$0xff] }
 0x2e0   : > { %v1874_v15 = vpop.f32.mrf.mxu1 }
 0x2e1   : > { %3860 = vst [vmem:[%s4351_s20 + $0xd0] sm:$0xff] %v3808_v48   ;;  %v2211_v30 = vadd.f32 %v2210_v61, %v2042_v26  ;;  %v1875_v12 = vadd.f32 %v1874_v15, %v1706_v11  ;;  %v1719_v61 = vadd.f32 %v4536_v34, %v4768_v32 }
 0x2e2   : > { %v2381_v35 = vpop.f32.mrf.mxu0 }
 0x2e3   : > { %v2380_v1 = vadd.f32 %v2379_v53, %v2211_v30 }
 0x2e5   : > { %v2458_v55 = vmax.f32 %v2380_v1, 0.0 }
 0x2e6   : > { %v2043_v9 = vpop.f32.mrf.mxu2 }
 0x2e7   : > { %v2044_v54 = vadd.f32 %v2043_v9, %v1875_v12  ;;  %v2212_v22 = vpop.f32.mrf.mxu3 }
 0x2e8   : > { %v1877_v37 = vpop.f32.mrf.mxu1 }
 0x2e9   : > { %v2213_v6 = vadd.f32 %v2212_v22, %v2044_v54  ;;  %v1878_v38 = vadd.f32 %v1877_v37, %v1709_v25  ;;  %v4769_v54 = vld [vmem:[#allocation24_spill] sm:$0xff] }
 0x2ea   : > { %v2384_v24 = vpop.f32.mrf.mxu0  ;;  %v1721_v22 = vadd.f32 %v4536_v34, %v4769_v54 }
 0x2eb   : > { %v2382_v5 = vadd.f32 %v2381_v35, %v2213_v6 }
 0x2ed   : > { %v2459_v63 = vmax.f32 %v2382_v5, 0.0 }
 0x2ee   : > { %v2046_v45 = vpop.f32.mrf.mxu2 }
 0x2ef   : > { %v3813_v56 = vpack.c.bf16 %v2459_v63, %v2458_v55  ;;  %v2215_v47 = vpop.f32.mrf.mxu3  ;;  %v2047_v19 = vadd.f32 %v2046_v45, %v1878_v38  ;;  %v4770_v38 = vld [vmem:[#allocation26_spill] sm:$0xff] }
 0x2f0   : > { %v1879_v57 = vpop.f32.mrf.mxu1 }
 0x2f1   : > { %3861 = vst [vmem:[%s4351_s20 + $0xd8] sm:$0xff] %v3813_v56   ;;  %v2216_v44 = vadd.f32 %v2215_v47, %v2047_v19  ;;  %v1880_v8 = vadd.f32 %v1879_v57, %v1711_v0  ;;  %v3901_v56 = vld [vmem:[%s4716_s2] ss:$0 sm:$0xff] }
 0x2f2   : > { %v2386_v28 = vpop.f32.mrf.mxu0  ;;  %v1724_v47 = vadd.f32 %v3901_v56, %v4770_v38 }
 0x2f3   : > { %v2385_v33 = vadd.f32 %v2384_v24, %v2216_v44 }
 0x2f5   : > { %v2460_v16 = vmax.f32 %v2385_v33, 0.0 }
 0x2f6   : > { %v2048_v60 = vpop.f32.mrf.mxu2 }
 0x2f7   : > { %v2049_v49 = vadd.f32 %v2048_v60, %v1880_v8  ;;  %v2217_v59 = vpop.f32.mrf.mxu3 }
 0x2f8   : > { %v1882_v43 = vpop.f32.mrf.mxu1 }
 0x2f9   : > { %v2218_v42 = vadd.f32 %v2217_v59, %v2049_v49  ;;  %v1883_v29 = vadd.f32 %v1882_v43, %v1714_v51  ;;  %v4771_v49 = vld [vmem:[#allocation28_spill] sm:$0xff] }
 0x2fa   : > { %v2389_v39 = vpop.f32.mrf.mxu0  ;;  %v1726_v59 = vadd.f32 %v3901_v56, %v4771_v49 }
 0x2fb   : > { %v2387_v17 = vadd.f32 %v2386_v28, %v2218_v42 }
 0x2fd   : > { %v2461_v7 = vmax.f32 %v2387_v17, 0.0 }
 0x2fe   : > { %v2051_v2 = vpop.f32.mrf.mxu2 }
 0x2ff   : > { %v3818_v14 = vpack.c.bf16 %v2461_v7, %v2460_v16  ;;  %v2220_v46 = vpop.f32.mrf.mxu3  ;;  %v2052_v62 = vadd.f32 %v2051_v2, %v1883_v29 }
 0x300   : > { %v1884_v21 = vpop.f32.mrf.mxu1 }
 0x301   : > { %3862 = vst [vmem:[%s4351_s20 + $0xe0] sm:$0xff] %v3818_v14   ;;  %v2221_v10 = vadd.f32 %v2220_v46, %v2052_v62  ;;  %v1885_v3 = vadd.f32 %v1884_v21, %v1716_v18 }
 0x302   : > { %v2391_v52 = vpop.f32.mrf.mxu0 }
 0x303   : > { %v2390_v23 = vadd.f32 %v2389_v39, %v2221_v10 }
 0x305   : > { %v2462_v15 = vmax.f32 %v2390_v23, 0.0 }
 0x306   : > { %v2053_v53 = vpop.f32.mrf.mxu2 }
 0x307   : > { %v2054_v41 = vadd.f32 %v2053_v53, %v1885_v3  ;;  %v2222_v58 = vpop.f32.mrf.mxu3 }
 0x308   : > { %v1887_v31 = vpop.f32.mrf.mxu1 }
 0x309   : > { %v2223_v36 = vadd.f32 %v2222_v58, %v2054_v41  ;;  %v1888_v11 = vadd.f32 %v1887_v31, %v1719_v61 }
 0x30a   : > { %v2394_v48 = vpop.f32.mrf.mxu0 }
 0x30b   : > { %v2392_v4 = vadd.f32 %v2391_v52, %v2223_v36 }
 0x30d   : > { %v2463_v26 = vmax.f32 %v2392_v4, 0.0 }
 0x30e   : > { %v2056_v35 = vpop.f32.mrf.mxu2 }
 0x30f   : > { %v3823_v20 = vpack.c.bf16 %v2463_v26, %v2462_v15  ;;  %v2225_v30 = vpop.f32.mrf.mxu3  ;;  %v2057_v9 = vadd.f32 %v2056_v35, %v1888_v11 }
 0x310   : > { %v1889_v12 = vpop.f32.mrf.mxu1 }
 0x311   : > { %3863 = vst [vmem:[%s4351_s20 + $0xe8] sm:$0xff] %v3823_v20   ;;  %v2226_v37 = vadd.f32 %v2225_v30, %v2057_v9  ;;  %v1890_v1 = vadd.f32 %v1889_v12, %v1721_v22 }
 0x312   : > { %v2396_v6 = vpop.f32.mrf.mxu0 }
 0x313   : > { %v2395_v55 = vadd.f32 %v2394_v48, %v2226_v37 }
 0x315   : > { %v2464_v57 = vmax.f32 %v2395_v55, 0.0 }
 0x316   : > { %v2058_v24 = vpop.f32.mrf.mxu2 }
 0x317   : > { %v2059_v5 = vadd.f32 %v2058_v24, %v1890_v1  ;;  %v2227_v27 = vpop.f32.mrf.mxu3 }
 0x318   : > { %v1892_v25 = vpop.f32.mrf.mxu1 }
 0x319   : > { %v2228_v63 = vadd.f32 %v2227_v27, %v2059_v5  ;;  %v1893_v13 = vadd.f32 %v1892_v25, %v1724_v47 }
 0x31a   : > { %v2399_v44 = vpop.f32.mrf.mxu0 }
 0x31b   : > { %v2397_v45 = vadd.f32 %v2396_v6, %v2228_v63 }
 0x31d   : > { %v2465_v19 = vmax.f32 %v2397_v45, 0.0 }
 0x31e   : > { %v2061_v34 = vpop.f32.mrf.mxu2 }
 0x31f   : > { %v3828_v28 = vpack.c.bf16 %v2465_v19, %v2464_v57  ;;  %v2230_v0 = vpop.f32.mrf.mxu3  ;;  %v2062_v8 = vadd.f32 %v2061_v34, %v1893_v13 }
 0x320   : > { %v1894_v60 = vpop.f32.mrf.mxu1 }
 0x321   : > { %3864 = vst [vmem:[%s4351_s20 + $0xf0] sm:$0xff] %v3828_v28   ;;  %v2231_v43 = vadd.f32 %v2230_v0, %v2062_v8  ;;  %v1895_v33 = vadd.f32 %v1894_v60, %v1726_v59 }
 0x322   : > { %v2401_v16 = vpop.f32.mrf.mxu0 }
 0x323   : > { %v2400_v50 = vadd.f32 %v2399_v44, %v2231_v43 }
 0x325   : > { %v2466_v2 = vmax.f32 %v2400_v50, 0.0 }
 0x326   : > { %v2063_v42 = vpop.f32.mrf.mxu2 }
 0x327   : > { %v2064_v39 = vadd.f32 %v2063_v42, %v1895_v33  ;;  %v2232_v17 = vpop.f32.mrf.mxu3 }
 0x329   : > { %v2233_v51 = vadd.f32 %v2232_v17, %v2064_v39 }
 0x32b   : > { %v2402_v7 = vadd.f32 %v2401_v16, %v2233_v51 }
 0x32d   : > { %v2467_v14 = vmax.f32 %v2402_v7, 0.0 }
 0x32f   : > { %v3833_v29 = vpack.c.bf16 %v2467_v14, %v2466_v2 }
 0x331   : > { %3865 = vst [vmem:[%s4351_s20 + $0xf8] sm:$0xff] %v3833_v29  }
 0x332 PF: > { %s13_s12 = sadd.s32 1, %s3908_s12  }
 0x333   : > { %p10_p4 = scmp.ge.s32.totalorder %s13_s12, 6  }
 0x335   :  { %12 = sbr.rel (!%p10_p4) target bundleno = 1 (0x1), region = 62 }

// kernel: afssd_forward.4
= control target key start
LH: loop header
LB: loop body
LE: loop exit
PB: predicated region body
PF: predicated region fallthrough
CT: control target
= control target key end

     0   :  { %s2376_s12 = smov 0   ;;  %s2834_s0 = inlined_call_operand.vmem [shape: bf16[512,576], index: 0, kind: input, shape index: {}]   ;;  %s2835_s1 = inlined_call_operand.vmem [shape: bf16[576,128], index: 1, kind: input, shape index: {}]   ;;  %s2836_s2 = inlined_call_operand.vmem [shape: f32[1,128], index: 2, kind: input, shape index: {}]   ;;  %s2837_s3 = inlined_call_operand.vmem [shape: bf16[512,128], index: 3, kind: output, shape index: {}]  }
   0x1 LB: > { %s1612_s13 = sadd.s32 4294967295, %s2354_s12   ;;  %p1616_p0 = scmp.ge.s32.totalorder %s2354_s12, 1  ;;  %s2354_s12 = sphi %s2376_s12, %s13_s12  }
   0x2   : > { %p139_p1 = scmp.lt.s32.totalorder %s2354_s12, 3 }
   0x4   : > { %p140_p2 = pnand %p1616_p0, %p139_p1 }
   0x5   : > { %s1617_s20 = sshll.u32 (!%p140_p2), %s1612_s13, 5 }
   0x6   : > { %143 = sbr.rel (%p140_p2) target bundleno = 498 (0x1f2), region = 32  ;;  %p165_p3 = scmp.lt.s32.totalorder (!%p140_p2), %s1617_s20, 63 }
   0xb   : > { %v2190_v0 = vld [vmem:[%s2835_s1 + $0x38] sm:$0xff]  ;;  %v2189_v1 = vld [vmem:[%s2835_s1 + $0x30] sm:$0xff]  ;;  %v2188_v2 = vld [vmem:[%s2835_s1 + $0x28] sm:$0xff]  ;;  %s2839_s20 = smov (!%p165_p3, %s1617_s20), 63  ;;  %vm966_vm0 = vcmask 523264  }
   0xc   : > { %2314 = vmatpush.bf16.msra.mxu1 %v2190_v0  ;;  %2315 = vmatpush.bf16.msra.mxu2 %v2190_v0  ;;  %v2187_v3 = vld [vmem:[%s2835_s1 + $0x20] sm:$0xff]  ;;  %v2186_v4 = vld [vmem:[%s2835_s1 + $0x18] sm:$0xff]  ;;  %v2185_v5 = vld [vmem:[%s2835_s1 + $0x10] sm:$0xff]  ;;  %s2338_s27 = smul.u32 20, %s2839_s20  ;;  %s1620_s19 = sshll.u32 %s2839_s20, 2 }
   0xd   : > { %2316 = vmatpush.bf16.msra.mxu3 %v2190_v0  ;;  %1015 = vmatpush.bf16.msra.mxu0 %v2190_v0  ;;  %v2184_v6 = vld [vmem:[%s2835_s1 + $0x8] sm:$0xff]  ;;  %v2183_v7 = vld [vmem:[%s2835_s1] sm:$0xff]  ;;  %v2206_v16 = vld [vmem:[%s2835_s1 + $0xb8] sm:$0xff]  ;;  %s2725_s20 = scalar_lea.vmem %s2837_s3, %s1620_s19 }
   0xe   : > { %s2411_s5 = scalar_lea.vmem %s2834_s0, %s2338_s27  ;;  %v2214_v17 = vld [vmem:[%s2835_s1 + $0xf8] sm:$0xff]  ;;  %v2205_v24 = vld [vmem:[%s2835_s1 + $0xb0] sm:$0xff]  ;;  %v2204_v28 = vld [vmem:[%s2835_s1 + $0xa8] sm:$0xff] }
   0xf   : > { %v1703_v8 = vld [vmem:[%s2411_s5 + $0xa0] sm:$0xf]  ;;  %v2125_v9 = vld [vmem:[%s2411_s5 + $0xb0] sm:$0xf0]  ;;  %v2198_v22 = vld [vmem:[%s2835_s1 + $0x78] sm:$0xff] }
  0x10   : > { %2317 = vmatpush.bf16.msra.mxu1 %v2189_v1  ;;  %2318 = vmatpush.bf16.msra.mxu2 %v2189_v1  ;;  %v1783_v10 = vld [vmem:[%s2411_s5 + $0x140] sm:$0xf]  ;;  %v2145_v11 = vld [vmem:[%s2411_s5 + $0x150] sm:$0xf0]  ;;  %v1704_v18 = vor.u32 %v2125_v9, %v1703_v8  ;;  %v2218_v23 = vld [vmem:[%s2835_s1 + $0x118] sm:$0xff] }
  0x11   : > { %2319 = vmatpush.bf16.msra.mxu3 %v2189_v1  ;;  %1016 = vmatpush.bf16.msra.mxu0 %v2189_v1  ;;  %v1863_v12 = vld [vmem:[%s2411_s5 + $0x1e0] sm:$0xf]  ;;  %v2165_v13 = vld [vmem:[%s2411_s5 + $0x1f0] sm:$0xf0]  ;;  %v1784_v19 = vor.u32 %v2145_v11, %v1783_v10  ;;  %v2212_v29 = vld [vmem:[%s2835_s1 + $0xe8] sm:$0xff] }
  0x12   : > { %v1623_v14 = vld [vmem:[%s2411_s5] sm:$0xf]  ;;  %v2105_v15 = vld [vmem:[%s2411_s5 + $0x10] sm:$0xf0]  ;;  %v1864_v20 = vor.u32 %v2165_v13, %v1863_v12  ;;  %v2196_v30 = vld [vmem:[%s2835_s1 + $0x68] sm:$0xff] }
  0x13   : > { %v1624_v21 = vor.u32 %v2105_v15, %v1623_v14  ;;  %v2213_v25 = vld [vmem:[%s2835_s1 + $0xf0] sm:$0xff]  ;;  %v2216_v31 = vld [vmem:[%s2835_s1 + $0x108] sm:$0xff]  ;;  %v2203_v32 = vld [vmem:[%s2835_s1 + $0xa0] sm:$0xff] }
  0x14   : > { %2320 = vmatpush.bf16.msra.mxu1 %v2188_v2  ;;  %2321 = vmatpush.bf16.msra.mxu2 %v2188_v2  ;;  %v2197_v26 = vld [vmem:[%s2835_s1 + $0x70] sm:$0xff]  ;;  %v2211_v33 = vld [vmem:[%s2835_s1 + $0xe0] sm:$0xff]  ;;  %v1723_v34 = vld [vmem:[%s2411_s5 + $0xc8] sm:$0xf] }
  0x15   : > { %2322 = vmatpush.bf16.msra.mxu3 %v2188_v2  ;;  %1017 = vmatpush.bf16.msra.mxu0 %v2188_v2  ;;  %v2217_v27 = vld [vmem:[%s2835_s1 + $0x110] sm:$0xff]  ;;  %v2130_v35 = vld [vmem:[%s2411_s5 + $0xd8] sm:$0xf0]  ;;  %v1803_v36 = vld [vmem:[%s2411_s5 + $0x168] sm:$0xf] }
  0x16   : > { %v2150_v37 = vld [vmem:[%s2411_s5 + $0x178] sm:$0xf0]  ;;  %v1883_v38 = vld [vmem:[%s2411_s5 + $0x208] sm:$0xf]  ;;  %v2195_v42 = vld [vmem:[%s2835_s1 + $0x60] sm:$0xff]  ;;  %v1724_v45 = vor.u32 %v2130_v35, %v1723_v34 }
  0x17   : > { %v2170_v39 = vld [vmem:[%s2411_s5 + $0x218] sm:$0xf0]  ;;  %v1643_v40 = vld [vmem:[%s2411_s5 + $0x28] sm:$0xf]  ;;  %v1804_v46 = vor.u32 %v2150_v37, %v1803_v36  ;;  %v2201_v50 = vld [vmem:[%s2835_s1 + $0x90] sm:$0xff] }
  0x18   : > { %2323 = vmatpush.bf16.msra.mxu1 %v2187_v3  ;;  %2324 = vmatpush.bf16.msra.mxu2 %v2187_v3  ;;  %v2110_v41 = vld [vmem:[%s2411_s5 + $0x38] sm:$0xf0]  ;;  %v1884_v47 = vor.u32 %v2170_v39, %v1883_v38  ;;  %v2209_v51 = vld [vmem:[%s2835_s1 + $0xd0] sm:$0xff]  ;;  %v2215_v53 = vld [vmem:[%s2835_s1 + $0x100] sm:$0xff] }
  0x19   : > { %2325 = vmatpush.bf16.msra.mxu3 %v2187_v3  ;;  %1018 = vmatpush.bf16.msra.mxu0 %v2187_v3  ;;  %v2202_v43 = vld [vmem:[%s2835_s1 + $0x98] sm:$0xff]  ;;  %v1644_v48 = vor.u32 %v2110_v41, %v1643_v40  ;;  %v2193_v52 = vld [vmem:[%s2835_s1 + $0x50] sm:$0xff]  ;;  %v2200_v54 = vld [vmem:[%s2835_s1 + $0x88] sm:$0xff] }
  0x1a   : > { %v2210_v44 = vld [vmem:[%s2835_s1 + $0xd8] sm:$0xff]  ;;  %v2208_v55 = vld [vmem:[%s2835_s1 + $0xc8] sm:$0xff]  ;;  %v2199_v57 = vld [vmem:[%s2835_s1 + $0x80] sm:$0xff] }
  0x1b   : > { %v2194_v49 = vld [vmem:[%s2835_s1 + $0x58] sm:$0xff]  ;;  %v2192_v56 = vld [vmem:[%s2835_s1 + $0x48] sm:$0xff]  ;;  %v2207_v58 = vld [vmem:[%s2835_s1 + $0xc0] sm:$0xff] }
  0x1c   : > { %2326 = vmatpush.bf16.msra.mxu1 %v2186_v4  ;;  %2327 = vmatpush.bf16.msra.mxu2 %v2186_v4  ;;  %v1743_v59 = vld [vmem:[%s2411_s5 + $0xf0] sm:$0xf]  ;;  %v2135_v60 = vld [vmem:[%s2411_s5 + $0x100] sm:$0xf0]  ;;  %v1763_v8 = vld [vmem:[%s2411_s5 + $0x118] sm:$0xf] }
  0x1d   : > { %2328 = vmatpush.bf16.msra.mxu3 %v2186_v4  ;;  %1019 = vmatpush.bf16.msra.mxu0 %v2186_v4  ;;  %v1823_v61 = vld [vmem:[%s2411_s5 + $0x190] sm:$0xf]  ;;  %v2155_v62 = vld [vmem:[%s2411_s5 + $0x1a0] sm:$0xf0]  ;;  %v1744_v4 = vor.u32 %v2135_v60, %v1743_v59  ;;  %v2140_v9 = vld [vmem:[%s2411_s5 + $0x128] sm:$0xf0] }
  0x1e   : > { %v1903_v63 = vld [vmem:[%s2411_s5 + $0x230] sm:$0xf]  ;;  %v2175_v0 = vld [vmem:[%s2411_s5 + $0x240] sm:$0xf0]  ;;  %v1843_v10 = vld [vmem:[%s2411_s5 + $0x1b8] sm:$0xf] }
  0x1f   : > { %v1663_v1 = vld [vmem:[%s2411_s5 + $0x50] sm:$0xf]  ;;  %v2115_v2 = vld [vmem:[%s2411_s5 + $0x60] sm:$0xf0]  ;;  %v2160_v11 = vld [vmem:[%s2411_s5 + $0x1c8] sm:$0xf0] }
  0x20   : > { %2329 = vmatpush.bf16.msra.mxu1 %v2185_v5  ;;  %2330 = vmatpush.bf16.msra.mxu2 %v2185_v5  ;;  %v2191_v3 = vld [vmem:[%s2835_s1 + $0x40] sm:$0xff]  ;;  %v1923_v12 = vld [vmem:[%s2411_s5 + $0x258] sm:$0xf]  ;;  %v2180_v13 = vld [vmem:[%s2411_s5 + $0x268] sm:$0xf0] }
  0x21   : > { %2331 = vmatpush.bf16.msra.mxu3 %v2185_v5  ;;  %1020 = vmatpush.bf16.msra.mxu0 %v2185_v5  ;;  %v1824_v5 = vor.u32 %v2155_v62, %v1823_v61  ;;  %v1683_v14 = vld [vmem:[%s2411_s5 + $0x78] sm:$0xf]  ;;  %v2120_v15 = vld [vmem:[%s2411_s5 + $0x88] sm:$0xf0]  ;;  %v1651_v34 = vld [vmem:[%s2411_s5 + $0x30] sm:$0xf] }
  0x22   : > { %v2111_v35 = vld [vmem:[%s2411_s5 + $0x40] sm:$0xf0]  ;;  %v2109_v36 = vld [vmem:[%s2411_s5 + $0x34] sm:$0xf]  ;;  %v1653_v37 = vld [vmem:[%s2411_s5 + $0x44] sm:$0xf0] }
  0x23   : > { %v1659_v38 = vld [vmem:[%s2411_s5 + $0x38] sm:$0xf]  ;;  %v2112_v39 = vld [vmem:[%s2411_s5 + $0x48] sm:$0xf0]  ;;  %v1652_v41 = vor.u32 %v2111_v35, %v1651_v34  ;;  %v2121_v59 = vld [vmem:[%s2411_s5 + $0x90] sm:$0xf0] }
  0x24   : > { %2332 = vmatpush.bf16.msra.mxu1 %v2184_v6  ;;  %2333 = vmatpush.bf16.msra.mxu2 %v2184_v6  ;;  %v2119_v60 = vld [vmem:[%s2411_s5 + $0x84] sm:$0xf]  ;;  %v1693_v61 = vld [vmem:[%s2411_s5 + $0x94] sm:$0xf0]  ;;  %v1699_v62 = vld [vmem:[%s2411_s5 + $0x88] sm:$0xf] }
  0x25   : > { %2334 = vmatpush.bf16.msra.mxu3 %v2184_v6  ;;  %1021 = vmatpush.bf16.msra.mxu0 %v2184_v6  ;;  %v1904_v6 = vor.u32 %v2175_v0, %v1903_v63  ;;  %v2122_v63 = vld [vmem:[%s2411_s5 + $0x98] sm:$0xf0]  ;;  %v2132_v34 = vld [vmem:[%s2411_s5 + $0xe8] sm:$0xf0] }
  0x28   : > { %2335 = vmatpush.bf16.msra.mxu1 %v2183_v7  ;;  %2336 = vmatpush.bf16.msra.mxu2 %v2183_v7 }
  0x29   : > { %2337 = vmatpush.bf16.msra.mxu3 %v2183_v7  ;;  %1022 = vmatpush.bf16.msra.mxu0 %v2183_v7  ;;  %v1664_v7 = vor.u32 %v2115_v2, %v1663_v1  ;;  %v1696_v2 = vor.u32 %v2119_v60, %v1693_v61  ;;  %v2137_v60 = vld [vmem:[%s2411_s5 + $0x110] sm:$0xf0] }
  0x2b   : > { %1043 = vmatmul.bf16.vlgmr.msra.gmra.mxu1 %v1704_v18  ;;  %1063 = vmatmul.bf16.vlgmr.msra.gmra.mxu2 %v1784_v19  ;;  %v1924_v18 = vor.u32 %v2180_v13, %v1923_v12  ;;  %v1684_v19 = vor.u32 %v2120_v15, %v1683_v14  ;;  %v2127_v12 = vld [vmem:[%s2411_s5 + $0xc0] sm:$0xf0] }
  0x2c   : > { %1193 = vmatpush.bf16.msrb.mxu2 %v2206_v16  ;;  %1083 = vmatmul.bf16.vlgmr.msra.gmra.mxu3 %v1864_v20  ;;  %v1764_v16 = vor.u32 %v2140_v9, %v1763_v8  ;;  %v2103_v20 = vld [vmem:[%s2411_s5 + $0x4] sm:$0xf]  ;;  %v2126_v8 = vld [vmem:[%s2411_s5 + $0xb8] sm:$0xf0]  ;;  %v2124_v9 = vld [vmem:[%s2411_s5 + $0xac] sm:$0xf] }
  0x2d   : > { %1282 = vmatpush.bf16.msrb.mxu3 %v2214_v17  ;;  %1023 = vmatmul.bf16.vlgmr.msra.gmra.mxu0 %v1624_v21  ;;  %v1844_v17 = vor.u32 %v2160_v11, %v1843_v10  ;;  %v1625_v21 = vld [vmem:[%s2411_s5 + $0x14] sm:$0xf0]  ;;  %v1713_v10 = vld [vmem:[%s2411_s5 + $0xbc] sm:$0xf0]  ;;  %v1719_v11 = vld [vmem:[%s2411_s5 + $0xb0] sm:$0xf] }
  0x2e   : > { %1104 = vmatpush.bf16.msrb.mxu1 %v2198_v22  ;;  %1375 = vmatpush.bf16.msrb.mxu0 %v2218_v23  ;;  %v1631_v22 = vld [vmem:[%s2411_s5 + $0x8] sm:$0xf]  ;;  %v2106_v23 = vld [vmem:[%s2411_s5 + $0x18] sm:$0xf0] }
  0x30   : > { %1194 = vmatpush.bf16.msrb.mxu2 %v2205_v24  ;;  %v2104_v24 = vld [vmem:[%s2411_s5 + $0xc] sm:$0xf] }
  0x31   : > { %1283 = vmatpush.bf16.msrb.mxu3 %v2213_v25  ;;  %v1633_v25 = vld [vmem:[%s2411_s5 + $0x1c] sm:$0xf0] }
  0x32   : > { %1105 = vmatpush.bf16.msrb.mxu1 %v2197_v26  ;;  %1376 = vmatpush.bf16.msrb.mxu0 %v2217_v27  ;;  %v1639_v26 = vld [vmem:[%s2411_s5 + $0x10] sm:$0xf]  ;;  %v2107_v27 = vld [vmem:[%s2411_s5 + $0x20] sm:$0xf0] }
  0x34   : > { %1195 = vmatpush.bf16.msrb.mxu2 %v2204_v28  ;;  %v1628_v28 = vor.u32 %v2103_v20, %v1625_v21 }
  0x35   : > { %1284 = vmatpush.bf16.msrb.mxu3 %v2212_v29  ;;  %v1632_v29 = vor.u32 %v2106_v23, %v1631_v22 }
  0x36   : > { %1106 = vmatpush.bf16.msrb.mxu1 %v2196_v30  ;;  %1377 = vmatpush.bf16.msrb.mxu0 %v2216_v31  ;;  %v1636_v30 = vor.u32 %v2104_v24, %v1633_v25  ;;  %v1640_v31 = vor.u32 %v2107_v27, %v1639_v26  ;;  %v2128_v27 = vld [vmem:[%s2411_s5 + $0xcc] sm:$0xf] }
  0x38   : > { %1196 = vmatpush.bf16.msrb.mxu2 %v2203_v32  ;;  %v2108_v32 = vld [vmem:[%s2411_s5 + $0x2c] sm:$0xf] }
  0x39   : > { %1285 = vmatpush.bf16.msrb.mxu3 %v2211_v33  ;;  %v1645_v33 = vld [vmem:[%s2411_s5 + $0x3c] sm:$0xf0] }
  0x3a   : > { %1107 = vmatpush.bf16.msrb.mxu1 %v2195_v42  ;;  %1378 = vmatpush.bf16.msrb.mxu0 %v2215_v53  ;;  %v1648_v40 = vor.u32 %v2108_v32, %v1645_v33  ;;  %v1656_v42 = vor.u32 %v2109_v36, %v1653_v37  ;;  %v1733_v32 = vld [vmem:[%s2411_s5 + $0xe4] sm:$0xf0]  ;;  %v1739_v33 = vld [vmem:[%s2411_s5 + $0xd8] sm:$0xf] }
  0x3b   : > { %1048 = vmatmul.bf16.gmra.mxu1 %v1724_v45  ;;  %1068 = vmatmul.bf16.gmra.mxu2 %v1804_v46  ;;  %v1665_v45 = vld [vmem:[%s2411_s5 + $0x64] sm:$0xf0]  ;;  %v1671_v46 = vld [vmem:[%s2411_s5 + $0x58] sm:$0xf] }
  0x3c   : > { %1197 = vmatpush.bf16.msrb.mxu2 %v2202_v43  ;;  %1088 = vmatmul.bf16.gmra.mxu3 %v1884_v47  ;;  %v1660_v43 = vor.u32 %v2112_v39, %v1659_v38  ;;  %v2116_v47 = vld [vmem:[%s2411_s5 + $0x68] sm:$0xf0] }
  0x3d   : > { %1286 = vmatpush.bf16.msrb.mxu3 %v2210_v44  ;;  %1028 = vmatmul.bf16.gmra.mxu0 %v1644_v48  ;;  %v2113_v44 = vld [vmem:[%s2411_s5 + $0x54] sm:$0xf]  ;;  %v2114_v48 = vld [vmem:[%s2411_s5 + $0x5c] sm:$0xf]  ;;  %v1672_v53 = vor.u32 %v2116_v47, %v1671_v46 }
  0x3e   : > { %1108 = vmatpush.bf16.msrb.mxu1 %v2194_v49  ;;  %v1673_v49 = vld [vmem:[%s2411_s5 + $0x6c] sm:$0xf0] }
  0x40   : > { %1198 = vmatpush.bf16.msrb.mxu2 %v2201_v50  ;;  %v1679_v50 = vld [vmem:[%s2411_s5 + $0x60] sm:$0xf] }
  0x41   : > { %1287 = vmatpush.bf16.msrb.mxu3 %v2209_v51  ;;  %v2117_v51 = vld [vmem:[%s2411_s5 + $0x70] sm:$0xf0] }
  0x42   : > { %1109 = vmatpush.bf16.msrb.mxu1 %v2193_v52  ;;  %v1668_v52 = vor.u32 %v2113_v44, %v1665_v45 }
  0x44   : > { %1199 = vmatpush.bf16.msrb.mxu2 %v2200_v54  ;;  %v1676_v54 = vor.u32 %v2114_v48, %v1673_v49 }
  0x45   : > { %1288 = vmatpush.bf16.msrb.mxu3 %v2208_v55  ;;  %v1680_v55 = vor.u32 %v2117_v51, %v1679_v50 }
  0x46   : > { %1110 = vmatpush.bf16.msrb.mxu1 %v2192_v56  ;;  %v2118_v56 = vld [vmem:[%s2411_s5 + $0x7c] sm:$0xf] }
  0x48   : > { %1200 = vmatpush.bf16.msrb.mxu2 %v2199_v57  ;;  %v1685_v57 = vld [vmem:[%s2411_s5 + $0x8c] sm:$0xf0] }
  0x49   : > { %1289 = vmatpush.bf16.msrb.mxu3 %v2207_v58  ;;  %v1691_v58 = vld [vmem:[%s2411_s5 + $0x80] sm:$0xf]  ;;  %v1688_v0 = vor.u32 %v2118_v56, %v1685_v57  ;;  %v2136_v56 = vld [vmem:[%s2411_s5 + $0x108] sm:$0xf0]  ;;  %v2134_v57 = vld [vmem:[%s2411_s5 + $0xfc] sm:$0xf] }
  0x4a   : > { %1111 = vmatpush.bf16.msrb.mxu1 %v2191_v3  ;;  %v1692_v1 = vor.u32 %v2121_v59, %v1691_v58  ;;  %v1700_v3 = vor.u32 %v2122_v63, %v1699_v62  ;;  %v1753_v58 = vld [vmem:[%s2411_s5 + $0x10c] sm:$0xf0]  ;;  %v1759_v59 = vld [vmem:[%s2411_s5 + $0x100] sm:$0xf] }
  0x4b   : > { %1053 = vmatmul.bf16.gmra.mxu1 %v1744_v4  ;;  %1073 = vmatmul.bf16.gmra.mxu2 %v1824_v5  ;;  %v2571_v4 = vld [vmem:[%s2836_s2] ss:$0 sm:$0xff]  ;;  %v2123_v5 = vld [vmem:[%s2411_s5 + $0xa4] sm:$0xf] }
  0x4c   : > { %1093 = vmatmul.bf16.gmra.mxu3 %v1904_v6  ;;  %v1705_v6 = vld [vmem:[%s2411_s5 + $0xb4] sm:$0xf0] }
  0x4d   : > { %1033 = vmatmul.bf16.gmra.mxu0 %v1664_v7  ;;  %v1711_v7 = vld [vmem:[%s2411_s5 + $0xa8] sm:$0xf]  ;;  %v1708_v13 = vor.u32 %v2123_v5, %v1705_v6  ;;  %v1756_v5 = vor.u32 %v2134_v57, %v1753_v58  ;;  %v1760_v6 = vor.u32 %v2137_v60, %v1759_v59  ;;  %v1785_v57 = vld [vmem:[%s2411_s5 + $0x154] sm:$0xf0]  ;;  %v2146_v59 = vld [vmem:[%s2411_s5 + $0x158] sm:$0xf0] }
  0x4e   : > { %v1712_v14 = vor.u32 %v2126_v8, %v1711_v7  ;;  %v1791_v58 = vld [vmem:[%s2411_s5 + $0x148] sm:$0xf]  ;;  %v2144_v60 = vld [vmem:[%s2411_s5 + $0x14c] sm:$0xf] }
  0x5b   : > { %1058 = vmatmul.bf16.gmra.mxu1 %v1764_v16  ;;  %1078 = vmatmul.bf16.gmra.mxu2 %v1844_v17  ;;  %v1716_v16 = vor.u32 %v2124_v9, %v1713_v10  ;;  %v1720_v17 = vor.u32 %v2127_v12, %v1719_v11 }
  0x5c   : > { %1098 = vmatmul.bf16.gmra.mxu3 %v1924_v18 }
  0x5d   : > { %1038 = vmatmul.bf16.gmra.mxu0 %v1684_v19 }
  0x6b   : > { %1112 = vmatmul.bf16.vlgmr.msrb.gmra.mxu1 %v1628_v28  ;;  %1201 = vmatmul.bf16.vlgmr.msrb.gmra.mxu2 %v1632_v29  ;;  %v1725_v28 = vld [vmem:[%s2411_s5 + $0xdc] sm:$0xf0]  ;;  %v1731_v29 = vld [vmem:[%s2411_s5 + $0xd0] sm:$0xf] }
  0x6c   : > { %1290 = vmatmul.bf16.vlgmr.msrb.gmra.mxu3 %v1636_v30  ;;  %v2131_v30 = vld [vmem:[%s2411_s5 + $0xe0] sm:$0xf0]  ;;  %v1728_v38 = vor.u32 %v2128_v27, %v1725_v28  ;;  %v1773_v27 = vld [vmem:[%s2411_s5 + $0x134] sm:$0xf0]  ;;  %v1779_v28 = vld [vmem:[%s2411_s5 + $0x128] sm:$0xf] }
  0x6d   : > { %2085 = vmatmul.msk.bf16.vlgmr.msrb.gmra.mxu0 %vm966_vm0, %v1640_v31  ;;  %v2129_v31 = vld [vmem:[%s2411_s5 + $0xd4] sm:$0xf]  ;;  %v1732_v39 = vor.u32 %v2131_v30, %v1731_v29  ;;  %v2142_v29 = vld [vmem:[%s2411_s5 + $0x138] sm:$0xf0] }
  0x7b   : > { %1117 = vmatmul.bf16.gmra.mxu1 %v1648_v40  ;;  %1206 = vmatmul.bf16.gmra.mxu2 %v1652_v41 }
  0x7c   : > { %1295 = vmatmul.bf16.gmra.mxu3 %v1656_v42  ;;  %v1736_v42 = vor.u32 %v2129_v31, %v1733_v32 }
  0x7d   : > { %2086 = vmatmul.msk.bf16.gmra.mxu0 %vm966_vm0, %v1660_v43  ;;  %v1740_v43 = vor.u32 %v2132_v34, %v1739_v33 }
  0x8b   : > { %1122 = vmatmul.bf16.gmra.mxu1 %v1668_v52  ;;  %1211 = vmatmul.bf16.gmra.mxu2 %v1672_v53  ;;  %v2133_v53 = vld [vmem:[%s2411_s5 + $0xf4] sm:$0xf] }
  0x8c   : > { %1300 = vmatmul.bf16.gmra.mxu3 %v1676_v54  ;;  %v1745_v54 = vld [vmem:[%s2411_s5 + $0x104] sm:$0xf0] }
  0x8d   : > { %2087 = vmatmul.msk.bf16.gmra.mxu0 %vm966_vm0, %v1680_v55  ;;  %v1751_v55 = vld [vmem:[%s2411_s5 + $0xf8] sm:$0xf] }
  0x9b   : > { %1127 = vmatmul.bf16.gmra.mxu1 %v1688_v0  ;;  %1216 = vmatmul.bf16.gmra.mxu2 %v1692_v1  ;;  %v1748_v0 = vor.u32 %v2133_v53, %v1745_v54  ;;  %v1752_v1 = vor.u32 %v2136_v56, %v1751_v55  ;;  %v2143_v56 = vld [vmem:[%s2411_s5 + $0x144] sm:$0xf] }
  0x9c   : > { %1305 = vmatmul.bf16.gmra.mxu3 %v1696_v2 }
  0x9d   : > { %2088 = vmatmul.msk.bf16.gmra.mxu0 %vm966_vm0, %v1700_v3 }
  0xa8   : > { %v1044_v15 = vpop.f32.mrf.mxu1 }
  0xa9   : > { %v2582_v18 = vadd.f32 %v2571_v4, %v1044_v15 }
  0xaa   : > { %v2584_v19 = vpop.f32.mrf.mxu0 }
  0xab   : > { %1132 = vmatmul.bf16.gmra.mxu1 %v1708_v13  ;;  %1221 = vmatmul.bf16.gmra.mxu2 %v1712_v14 }
  0xac   : > { %1310 = vmatmul.bf16.gmra.mxu3 %v1716_v16  ;;  %v2138_v16 = vld [vmem:[%s2411_s5 + $0x11c] sm:$0xf] }
  0xad   : > { %2089 = vmatmul.msk.bf16.gmra.mxu0 %vm966_vm0, %v1720_v17  ;;  %v1765_v17 = vld [vmem:[%s2411_s5 + $0x12c] sm:$0xf0] }
  0xae   : > { %v1064_v20 = vpop.f32.mrf.mxu2  ;;  %v1768_v33 = vor.u32 %v2138_v16, %v1765_v17 }
  0xaf   : > { %v2588_v21 = vadd.f32 %v2571_v4, %v1064_v20  ;;  %v1084_v22 = vpop.f32.mrf.mxu3  ;;  %v1771_v20 = vld [vmem:[%s2411_s5 + $0x120] sm:$0xf] }
  0xb0   : > { %v2591_v23 = vadd.f32 %v2571_v4, %v1084_v22  ;;  %v1046_v24 = vpop.f32.mrf.mxu1  ;;  %v2141_v22 = vld [vmem:[%s2411_s5 + $0x130] sm:$0xf0] }
  0xb1   : > { %v2594_v25 = vadd.f32 %v2571_v4, %v1046_v24  ;;  %v2139_v24 = vld [vmem:[%s2411_s5 + $0x124] sm:$0xf]  ;;  %v1772_v34 = vor.u32 %v2141_v22, %v1771_v20  ;;  %v1025_v22 = vadd.f32 %v2571_v4, %v2584_v19  ;;  %v1813_v19 = vld [vmem:[%s2411_s5 + $0x184] sm:$0xf0] }
  0xb2   : > { %v2596_v26 = vpop.f32.mrf.mxu0 }
  0xb6   : > { %v1066_v35 = vpop.f32.mrf.mxu2 }
  0xb7   : > { %v2607_v36 = vadd.f32 %v2571_v4, %v1066_v35  ;;  %v1086_v37 = vpop.f32.mrf.mxu3 }
  0xb8   : > { %v2610_v40 = vadd.f32 %v2571_v4, %v1086_v37  ;;  %v1049_v41 = vpop.f32.mrf.mxu1 }
  0xb9   : > { %v2613_v44 = vadd.f32 %v2571_v4, %v1049_v41 }
  0xba   : > { %v2615_v45 = vpop.f32.mrf.mxu0 }
  0xbb   : > { %1137 = vmatmul.bf16.gmra.mxu1 %v1728_v38  ;;  %1226 = vmatmul.bf16.gmra.mxu2 %v1732_v39  ;;  %v1776_v38 = vor.u32 %v2139_v24, %v1773_v27  ;;  %v1780_v39 = vor.u32 %v2142_v29, %v1779_v28 }
  0xbc   : > { %1315 = vmatmul.bf16.gmra.mxu3 %v1736_v42 }
  0xbd   : > { %2090 = vmatmul.msk.bf16.gmra.mxu0 %vm966_vm0, %v1740_v43 }
  0xbe   : > { %v1069_v46 = vpop.f32.mrf.mxu2 }
  0xbf   : > { %v2619_v47 = vadd.f32 %v2571_v4, %v1069_v46  ;;  %v1089_v48 = vpop.f32.mrf.mxu3 }
  0xc0   : > { %v2622_v49 = vadd.f32 %v2571_v4, %v1089_v48  ;;  %v1051_v50 = vpop.f32.mrf.mxu1 }
  0xc1   : > { %v2625_v51 = vadd.f32 %v2571_v4, %v1051_v50 }
  0xc2   : > { %v2627_v52 = vpop.f32.mrf.mxu0 }
  0xc6   : > { %v1071_v61 = vpop.f32.mrf.mxu2 }
  0xc7   : > { %v2638_v62 = vadd.f32 %v2571_v4, %v1071_v61  ;;  %v1091_v63 = vpop.f32.mrf.mxu3  ;;  %v1793_v61 = vld [vmem:[%s2411_s5 + $0x15c] sm:$0xf0] }
  0xc8   : > { %v2641_v2 = vadd.f32 %v2571_v4, %v1091_v63  ;;  %v1054_v3 = vpop.f32.mrf.mxu1  ;;  %v1799_v63 = vld [vmem:[%s2411_s5 + $0x150] sm:$0xf]  ;;  %v1796_v16 = vor.u32 %v2144_v60, %v1793_v61 }
  0xc9   : > { %v2644_v7 = vadd.f32 %v2571_v4, %v1054_v3 }
  0xca   : > { %v2646_v8 = vpop.f32.mrf.mxu0 }
  0xcb   : > { %1142 = vmatmul.bf16.gmra.mxu1 %v1748_v0  ;;  %1231 = vmatmul.bf16.gmra.mxu2 %v1752_v1  ;;  %v2147_v0 = vld [vmem:[%s2411_s5 + $0x160] sm:$0xf0] }
  0xcc   : > { %1320 = vmatmul.bf16.gmra.mxu3 %v1756_v5  ;;  %v1800_v17 = vor.u32 %v2147_v0, %v1799_v63 }
  0xcd   : > { %2091 = vmatmul.msk.bf16.gmra.mxu0 %vm966_vm0, %v1760_v6  ;;  %v1788_v6 = vor.u32 %v2143_v56, %v1785_v57  ;;  %v1819_v56 = vld [vmem:[%s2411_s5 + $0x178] sm:$0xf]  ;;  %v2152_v57 = vld [vmem:[%s2411_s5 + $0x188] sm:$0xf0] }
  0xce   : > { %v1074_v9 = vpop.f32.mrf.mxu2 }
  0xcf   : > { %v2650_v10 = vadd.f32 %v2571_v4, %v1074_v9  ;;  %v1094_v11 = vpop.f32.mrf.mxu3  ;;  %v1792_v9 = vor.u32 %v2146_v59, %v1791_v58 }
  0xd0   : > { %v2653_v12 = vadd.f32 %v2571_v4, %v1094_v11  ;;  %v1056_v13 = vpop.f32.mrf.mxu1 }
  0xd1   : > { %v2656_v14 = vadd.f32 %v2571_v4, %v1056_v13 }
  0xd2   : > { %v2658_v15 = vpop.f32.mrf.mxu0 }
  0xd6   : > { %v1076_v30 = vpop.f32.mrf.mxu2 }
  0xd7   : > { %v2669_v31 = vadd.f32 %v2571_v4, %v1076_v30  ;;  %v1096_v32 = vpop.f32.mrf.mxu3 }
  0xd8   : > { %v2672_v35 = vadd.f32 %v2571_v4, %v1096_v32  ;;  %v1059_v37 = vpop.f32.mrf.mxu1 }
  0xd9   : > { %v2675_v41 = vadd.f32 %v2571_v4, %v1059_v37  ;;  %v1805_v37 = vld [vmem:[%s2411_s5 + $0x17c] sm:$0xf0] }
  0xda   : > { %v2677_v42 = vpop.f32.mrf.mxu0 }
  0xdb   : > { %1147 = vmatmul.bf16.gmra.mxu1 %v1768_v33  ;;  %1236 = vmatmul.bf16.gmra.mxu2 %v1772_v34  ;;  %v1027_v33 = vadd.f32 %v2571_v4, %v2596_v26  ;;  %v2148_v34 = vld [vmem:[%s2411_s5 + $0x16c] sm:$0xf] }
  0xdc   : > { %1325 = vmatmul.bf16.gmra.mxu3 %v1776_v38  ;;  %v1811_v38 = vld [vmem:[%s2411_s5 + $0x170] sm:$0xf]  ;;  %v1808_v61 = vor.u32 %v2148_v34, %v1805_v37  ;;  %v1825_v34 = vld [vmem:[%s2411_s5 + $0x1a4] sm:$0xf0]  ;;  %v1831_v37 = vld [vmem:[%s2411_s5 + $0x198] sm:$0xf] }
  0xdd   : > { %2092 = vmatmul.msk.bf16.gmra.mxu0 %vm966_vm0, %v1780_v39  ;;  %v2151_v39 = vld [vmem:[%s2411_s5 + $0x180] sm:$0xf0] }
  0xde   : > { %v1079_v43 = vpop.f32.mrf.mxu2  ;;  %v1812_v63 = vor.u32 %v2151_v39, %v1811_v38  ;;  %v2156_v38 = vld [vmem:[%s2411_s5 + $0x1a8] sm:$0xf0]  ;;  %v2154_v39 = vld [vmem:[%s2411_s5 + $0x19c] sm:$0xf] }
  0xdf   : > { %v2681_v46 = vadd.f32 %v2571_v4, %v1079_v43  ;;  %v1099_v48 = vpop.f32.mrf.mxu3  ;;  %v2149_v43 = vld [vmem:[%s2411_s5 + $0x174] sm:$0xf] }
  0xe0   : > { %v2684_v50 = vadd.f32 %v2571_v4, %v1099_v48  ;;  %v1061_v53 = vpop.f32.mrf.mxu1 }
  0xe1   : > { %v2687_v54 = vadd.f32 %v2571_v4, %v1061_v53 }
  0xe2   : > { %v2689_v55 = vpop.f32.mrf.mxu0 }
  0xe6   : > { %v1081_v1 = vpop.f32.mrf.mxu2 }
  0xe7   : > { %v2700_v3 = vadd.f32 %v2571_v4, %v1081_v1  ;;  %v1101_v5 = vpop.f32.mrf.mxu3  ;;  %v1816_v1 = vor.u32 %v2149_v43, %v1813_v19  ;;  %v1839_v19 = vld [vmem:[%s2411_s5 + $0x1a0] sm:$0xf] }
  0xe8   : > { %v2703_v11 = vadd.f32 %v2571_v4, %v1101_v5  ;;  %v1113_v13 = vpop.f32.mrf.mxu1  ;;  %v1820_v5 = vor.u32 %v2152_v57, %v1819_v56  ;;  %v2157_v56 = vld [vmem:[%s2411_s5 + $0x1b0] sm:$0xf0] }
  0xe9   : > { %v1114_v27 = vadd.f32 %v1113_v13, %v1025_v22 }
  0xea   : > { %v1380_v20 = vpop.f32.mrf.mxu0 }
  0xeb   : > { %1152 = vmatmul.bf16.gmra.mxu1 %v1788_v6  ;;  %1241 = vmatmul.bf16.gmra.mxu2 %v1792_v9 }
  0xec   : > { %1330 = vmatmul.bf16.gmra.mxu3 %v1796_v16  ;;  %v1030_v16 = vadd.f32 %v2571_v4, %v2615_v45 }
  0xed   : > { %2093 = vmatmul.msk.bf16.gmra.mxu0 %vm966_vm0, %v1800_v17 }
  0xee   : > { %v1202_v24 = vpop.f32.mrf.mxu2 }
  0xef   : > { %v1291_v28 = vpop.f32.mrf.mxu3  ;;  %v1203_v30 = vadd.f32 %v1202_v24, %v1114_v27 }
  0xf0   : > { %v1115_v29 = vpop.f32.mrf.mxu1 }
  0xf1   : > { %v1292_v48 = vadd.f32 %v1291_v28, %v1203_v30  ;;  %v1116_v53 = vadd.f32 %v1115_v29, %v1027_v33  ;;  %v2153_v33 = vld [vmem:[%s2411_s5 + $0x194] sm:$0xf] }
  0xf2   : > { %v1382_v32 = vpop.f32.mrf.mxu0 }
  0xf3   : > { %v1381_v26 = vadd.f32 %v1380_v20, %v1292_v48 }
  0xf5   : > { %v1460_v17 = vmax.f32 %v1381_v26, 0.0 }
  0xf6   : > { %v1204_v58 = vpop.f32.mrf.mxu2 }
  0xf7   : > { %v1205_v59 = vadd.f32 %v1204_v58, %v1116_v53  ;;  %v1293_v60 = vpop.f32.mrf.mxu3  ;;  %v1833_v53 = vld [vmem:[%s2411_s5 + $0x1ac] sm:$0xf0] }
  0xf8   : > { %v1118_v0 = vpop.f32.mrf.mxu1 }
  0xf9   : > { %v1294_v6 = vadd.f32 %v1293_v60, %v1205_v59  ;;  %v1119_v27 = vadd.f32 %v1118_v0, %v1030_v16  ;;  %v1828_v60 = vor.u32 %v2153_v33, %v1825_v34  ;;  %v1836_v0 = vor.u32 %v2154_v39, %v1833_v53  ;;  %v2161_v33 = vld [vmem:[%s2411_s5 + $0x1d0] sm:$0xf0]  ;;  %v2159_v34 = vld [vmem:[%s2411_s5 + $0x1c4] sm:$0xf]  ;;  %v1853_v39 = vld [vmem:[%s2411_s5 + $0x1d4] sm:$0xf0] }
  0xfa   : > { %v1385_v9 = vpop.f32.mrf.mxu0 }
  0xfb   : > { %v1383_v13 = vadd.f32 %v1382_v32, %v1294_v6  ;;  %1157 = vmatmul.bf16.gmra.mxu1 %v1808_v61  ;;  %1246 = vmatmul.bf16.gmra.mxu2 %v1812_v63  ;;  %v1032_v32 = vadd.f32 %v2571_v4, %v2627_v52  ;;  %v1832_v61 = vor.u32 %v2156_v38, %v1831_v37 }
  0xfc   : > { %1335 = vmatmul.bf16.gmra.mxu3 %v1816_v1  ;;  %v1840_v1 = vor.u32 %v2157_v56, %v1839_v19 }
  0xfd   : > { %2094 = vmatmul.msk.bf16.gmra.mxu0 %vm966_vm0, %v1820_v5  ;;  %v1461_v22 = vmax.f32 %v1383_v13, 0.0  ;;  %v1035_v13 = vadd.f32 %v2571_v4, %v2646_v8  ;;  %v1851_v8 = vld [vmem:[%s2411_s5 + $0x1c0] sm:$0xf] }
  0xfe   : > { %v1207_v20 = vpop.f32.mrf.mxu2 }
  0xff   : > { %v2222_v24 = vpack.c.bf16 %v1461_v22, %v1460_v17  ;;  %v1296_v28 = vpop.f32.mrf.mxu3  ;;  %v1208_v45 = vadd.f32 %v1207_v20, %v1119_v27 }
 0x100   : > { %v1120_v29 = vpop.f32.mrf.mxu1 }
 0x101   : > { %2223 = vst [vmem:[%s2725_s20] sm:$0xff] %v2222_v24   ;;  %v1297_v43 = vadd.f32 %v1296_v28, %v1208_v45  ;;  %v1121_v48 = vadd.f32 %v1120_v29, %v1032_v32  ;;  %v1037_v45 = vadd.f32 %v2571_v4, %v2658_v15  ;;  %v1845_v32 = vld [vmem:[%s2411_s5 + $0x1cc] sm:$0xf0] }
 0x102   : > { %v1387_v30 = vpop.f32.mrf.mxu0 }
 0x103   : > { %v1386_v5 = vadd.f32 %v1385_v9, %v1297_v43  ;;  %v1859_v43 = vld [vmem:[%s2411_s5 + $0x1c8] sm:$0xf] }
 0x105   : > { %v1462_v16 = vmax.f32 %v1386_v5, 0.0  ;;  %v1040_v5 = vadd.f32 %v2571_v4, %v2677_v42  ;;  %v1871_v42 = vld [vmem:[%s2411_s5 + $0x1e8] sm:$0xf] }
 0x106   : > { %v1209_v57 = vpop.f32.mrf.mxu2 }
 0x107   : > { %v1210_v58 = vadd.f32 %v1209_v57, %v1121_v48  ;;  %v1298_v59 = vpop.f32.mrf.mxu3  ;;  %v2162_v48 = vld [vmem:[%s2411_s5 + $0x1d8] sm:$0xf0] }
 0x108   : > { %v1123_v63 = vpop.f32.mrf.mxu1 }
 0x109   : > { %v1299_v52 = vadd.f32 %v1298_v59, %v1210_v58  ;;  %v1124_v20 = vadd.f32 %v1123_v63, %v1035_v13  ;;  %v1852_v58 = vor.u32 %v2161_v33, %v1851_v8  ;;  %v1873_v8 = vld [vmem:[%s2411_s5 + $0x1fc] sm:$0xf0]  ;;  %v1879_v33 = vld [vmem:[%s2411_s5 + $0x1f0] sm:$0xf] }
 0x10a   : > { %v1390_v26 = vpop.f32.mrf.mxu0 }
 0x10b   : > { %v1388_v6 = vadd.f32 %v1387_v30, %v1299_v52  ;;  %1162 = vmatmul.bf16.gmra.mxu1 %v1828_v60  ;;  %1251 = vmatmul.bf16.gmra.mxu2 %v1832_v61  ;;  %v2158_v30 = vld [vmem:[%s2411_s5 + $0x1bc] sm:$0xf]  ;;  %v1856_v60 = vor.u32 %v2159_v34, %v1853_v39  ;;  %v1860_v61 = vor.u32 %v2162_v48, %v1859_v43  ;;  %v2167_v34 = vld [vmem:[%s2411_s5 + $0x200] sm:$0xf0] }
 0x10c   : > { %1340 = vmatmul.bf16.gmra.mxu3 %v1836_v0  ;;  %v1848_v57 = vor.u32 %v2158_v30, %v1845_v32 }
 0x10d   : > { %2095 = vmatmul.msk.bf16.gmra.mxu0 %vm966_vm0, %v1840_v1  ;;  %v1463_v17 = vmax.f32 %v1388_v6, 0.0 }
 0x10e   : > { %v1212_v9 = vpop.f32.mrf.mxu2 }
 0x10f   : > { %v2227_v22 = vpack.c.bf16 %v1463_v17, %v1462_v16  ;;  %v1301_v24 = vpop.f32.mrf.mxu3  ;;  %v1213_v28 = vadd.f32 %v1212_v9, %v1124_v20 }
 0x110   : > { %v1125_v27 = vpop.f32.mrf.mxu1 }
 0x111   : > { %2299 = vst [vmem:[%s2725_s20 + $0x8] sm:$0xff] %v2227_v22   ;;  %v1302_v37 = vadd.f32 %v1301_v24, %v1213_v28  ;;  %v1126_v38 = vadd.f32 %v1125_v27, %v1037_v45  ;;  %v1042_v24 = vadd.f32 %v2571_v4, %v2689_v55  ;;  %v2163_v27 = vld [vmem:[%s2411_s5 + $0x1e4] sm:$0xf]  ;;  %v1865_v28 = vld [vmem:[%s2411_s5 + $0x1f4] sm:$0xf0] }
 0x112   : > { %v1392_v29 = vpop.f32.mrf.mxu0  ;;  %v2164_v45 = vld [vmem:[%s2411_s5 + $0x1ec] sm:$0xf]  ;;  %v1868_v43 = vor.u32 %v2163_v27, %v1865_v28 }
 0x113   : > { %v1391_v63 = vadd.f32 %v1390_v26, %v1302_v37  ;;  %v2172_v27 = vld [vmem:[%s2411_s5 + $0x228] sm:$0xf0] }
 0x115   : > { %v1464_v52 = vmax.f32 %v1391_v63, 0.0 }
 0x116   : > { %v1214_v53 = vpop.f32.mrf.mxu2 }
 0x117   : > { %v1215_v19 = vadd.f32 %v1214_v53, %v1126_v38  ;;  %v1303_v56 = vpop.f32.mrf.mxu3 }
 0x118   : > { %v1128_v59 = vpop.f32.mrf.mxu1 }
 0x119   : > { %v1304_v15 = vadd.f32 %v1303_v56, %v1215_v19  ;;  %v1129_v16 = vadd.f32 %v1128_v59, %v1040_v5  ;;  %v1876_v19 = vor.u32 %v2164_v45, %v1873_v8  ;;  %v1880_v56 = vor.u32 %v2167_v34, %v1879_v33 }
 0x11a   : > { %v1395_v0 = vpop.f32.mrf.mxu0 }
 0x11b   : > { %v1393_v1 = vadd.f32 %v1392_v29, %v1304_v15  ;;  %1167 = vmatmul.bf16.gmra.mxu1 %v1848_v57  ;;  %1256 = vmatmul.bf16.gmra.mxu2 %v1852_v58  ;;  %v2166_v29 = vld [vmem:[%s2411_s5 + $0x1f8] sm:$0xf0] }
 0x11c   : > { %1345 = vmatmul.bf16.gmra.mxu3 %v1856_v60  ;;  %v1872_v48 = vor.u32 %v2166_v29, %v1871_v42 }
 0x11d   : > { %2096 = vmatmul.msk.bf16.gmra.mxu0 %vm966_vm0, %v1860_v61  ;;  %v1465_v6 = vmax.f32 %v1393_v1, 0.0 }
 0x11e   : > { %v1217_v26 = vpop.f32.mrf.mxu2 }
 0x11f   : > { %v2232_v13 = vpack.c.bf16 %v1465_v6, %v1464_v52  ;;  %v1306_v17 = vpop.f32.mrf.mxu3  ;;  %v1218_v22 = vadd.f32 %v1217_v26, %v1129_v16  ;;  %v2168_v6 = vld [vmem:[%s2411_s5 + $0x20c] sm:$0xf]  ;;  %v1885_v26 = vld [vmem:[%s2411_s5 + $0x21c] sm:$0xf0]  ;;  %v2171_v16 = vld [vmem:[%s2411_s5 + $0x220] sm:$0xf0] }
 0x120   : > { %v1130_v9 = vpop.f32.mrf.mxu1 }
 0x121   : > { %2300 = vst [vmem:[%s2725_s20 + $0x10] sm:$0xff] %v2232_v13   ;;  %v1307_v30 = vadd.f32 %v1306_v17, %v1218_v22  ;;  %v1131_v32 = vadd.f32 %v1130_v9, %v1042_v24  ;;  %v1891_v13 = vld [vmem:[%s2411_s5 + $0x210] sm:$0xf]  ;;  %v2169_v17 = vld [vmem:[%s2411_s5 + $0x214] sm:$0xf] }
 0x122   : > { %v1397_v20 = vpop.f32.mrf.mxu0  ;;  %v1899_v24 = vld [vmem:[%s2411_s5 + $0x218] sm:$0xf]  ;;  %v1892_v45 = vor.u32 %v2171_v16, %v1891_v13 }
 0x123   : > { %v1396_v4 = vadd.f32 %v1395_v0, %v1307_v30  ;;  %v1900_v8 = vor.u32 %v2172_v27, %v1899_v24 }
 0x125   : > { %v1466_v59 = vmax.f32 %v1396_v4, 0.0 }
 0x126   : > { %v1219_v37 = vpop.f32.mrf.mxu2 }
 0x127   : > { %v1220_v38 = vadd.f32 %v1219_v37, %v1131_v32  ;;  %v1308_v39 = vpop.f32.mrf.mxu3 }
 0x128   : > { %v1133_v53 = vpop.f32.mrf.mxu1 }
 0x129   : > { %v1309_v55 = vadd.f32 %v1308_v39, %v1220_v38  ;;  %v1134_v15 = vadd.f32 %v1133_v53, %v2582_v18  ;;  %v1888_v18 = vor.u32 %v2168_v6, %v1885_v26 }
 0x12a   : > { %v1400_v57 = vpop.f32.mrf.mxu0 }
 0x12b   : > { %v1398_v58 = vadd.f32 %v1397_v20, %v1309_v55  ;;  %1172 = vmatmul.bf16.gmra.mxu1 %v1868_v43  ;;  %1261 = vmatmul.bf16.gmra.mxu2 %v1872_v48  ;;  %v1893_v20 = vld [vmem:[%s2411_s5 + $0x224] sm:$0xf0] }
 0x12c   : > { %1350 = vmatmul.bf16.gmra.mxu3 %v1876_v19  ;;  %v1896_v32 = vor.u32 %v2169_v17, %v1893_v20 }
 0x12d   : > { %2097 = vmatmul.msk.bf16.gmra.mxu0 %vm966_vm0, %v1880_v56  ;;  %v1467_v60 = vmax.f32 %v1398_v58, 0.0  ;;  %v1905_v58 = vld [vmem:[%s2411_s5 + $0x244] sm:$0xf0] }
 0x12e   : > { %v1222_v61 = vpop.f32.mrf.mxu2 }
 0x12f   : > { %v2237_v63 = vpack.c.bf16 %v1467_v60, %v1466_v59  ;;  %v1311_v0 = vpop.f32.mrf.mxu3  ;;  %v1223_v5 = vadd.f32 %v1222_v61, %v1134_v15  ;;  %v1911_v59 = vld [vmem:[%s2411_s5 + $0x238] sm:$0xf]  ;;  %v2176_v60 = vld [vmem:[%s2411_s5 + $0x248] sm:$0xf0]  ;;  %v2174_v61 = vld [vmem:[%s2411_s5 + $0x23c] sm:$0xf] }
 0x130   : > { %v1135_v1 = vpop.f32.mrf.mxu1  ;;  %v1912_v13 = vor.u32 %v2176_v60, %v1911_v59 }
 0x131   : > { %2301 = vst [vmem:[%s2725_s20 + $0x18] sm:$0xff] %v2237_v63   ;;  %v1312_v9 = vadd.f32 %v1311_v0, %v1223_v5  ;;  %v1136_v22 = vadd.f32 %v1135_v1, %v2594_v25  ;;  %v1913_v0 = vld [vmem:[%s2411_s5 + $0x24c] sm:$0xf0]  ;;  %v1919_v1 = vld [vmem:[%s2411_s5 + $0x240] sm:$0xf] }
 0x132   : > { %v1402_v52 = vpop.f32.mrf.mxu0  ;;  %v2177_v5 = vld [vmem:[%s2411_s5 + $0x250] sm:$0xf0]  ;;  %v1916_v17 = vor.u32 %v2174_v61, %v1913_v0 }
 0x133   : > { %v1401_v33 = vadd.f32 %v1400_v57, %v1312_v9  ;;  %v2173_v57 = vld [vmem:[%s2411_s5 + $0x234] sm:$0xf]  ;;  %v1920_v9 = vor.u32 %v2177_v5, %v1919_v1 }
 0x135   : > { %v1468_v25 = vmax.f32 %v1401_v33, 0.0  ;;  %v2178_v33 = vld [vmem:[%s2411_s5 + $0x25c] sm:$0xf] }
 0x136   : > { %v1224_v28 = vpop.f32.mrf.mxu2 }
 0x137   : > { %v1225_v42 = vadd.f32 %v1224_v28, %v1136_v22  ;;  %v1313_v29 = vpop.f32.mrf.mxu3 }
 0x138   : > { %v1138_v30 = vpop.f32.mrf.mxu1 }
 0x139   : > { %v1314_v34 = vadd.f32 %v1313_v29, %v1225_v42  ;;  %v1139_v53 = vadd.f32 %v1138_v30, %v2613_v44  ;;  %v1908_v44 = vor.u32 %v2173_v57, %v1905_v58 }
 0x13a   : > { %v1405_v37 = vpop.f32.mrf.mxu0 }
 0x13b   : > { %v1403_v38 = vadd.f32 %v1402_v52, %v1314_v34  ;;  %1177 = vmatmul.bf16.gmra.mxu1 %v1888_v18  ;;  %1266 = vmatmul.bf16.gmra.mxu2 %v1892_v45  ;;  %v1925_v34 = vld [vmem:[%s2411_s5 + $0x26c] sm:$0xf0] }
 0x13c   : > { %1355 = vmatmul.bf16.gmra.mxu3 %v1896_v32 }
 0x13d   : > { %2098 = vmatmul.msk.bf16.gmra.mxu0 %vm966_vm0, %v1900_v8  ;;  %v1469_v39 = vmax.f32 %v1403_v38, 0.0  ;;  %v2181_v38 = vld [vmem:[%s2411_s5 + $0x270] sm:$0xf0] }
 0x13e   : > { %v1227_v43 = vpop.f32.mrf.mxu2 }
 0x13f   : > { %v2242_v48 = vpack.c.bf16 %v1469_v39, %v1468_v25  ;;  %v1316_v19 = vpop.f32.mrf.mxu3  ;;  %v1228_v4 = vadd.f32 %v1227_v43, %v1139_v53  ;;  %v2179_v25 = vld [vmem:[%s2411_s5 + $0x264] sm:$0xf]  ;;  %v1939_v53 = vld [vmem:[%s2411_s5 + $0x268] sm:$0xf] }
 0x140   : > { %v1140_v56 = vpop.f32.mrf.mxu1 }
 0x141   : > { %2302 = vst [vmem:[%s2725_s20 + $0x20] sm:$0xff] %v2242_v48   ;;  %v1317_v63 = vadd.f32 %v1316_v19, %v1228_v4  ;;  %v1141_v15 = vadd.f32 %v1140_v56, %v2625_v51  ;;  %v1933_v48 = vld [vmem:[%s2411_s5 + $0x274] sm:$0xf0]  ;;  %v2182_v19 = vld [vmem:[%s2411_s5 + $0x278] sm:$0xf0] }
 0x142   : > { %v1407_v55 = vpop.f32.mrf.mxu0  ;;  %v1936_v59 = vor.u32 %v2179_v25, %v1933_v48  ;;  %v1940_v60 = vor.u32 %v2182_v19, %v1939_v53 }
 0x143   : > { %v1406_v22 = vadd.f32 %v1405_v37, %v1317_v63  ;;  %v1931_v37 = vld [vmem:[%s2411_s5 + $0x260] sm:$0xf] }
 0x144   : > { %v1932_v57 = vor.u32 %v2181_v38, %v1931_v37 }
 0x145   : > { %v1470_v51 = vmax.f32 %v1406_v22, 0.0 }
 0x146   : > { %v1229_v52 = vpop.f32.mrf.mxu2 }
 0x147   : > { %v1230_v6 = vadd.f32 %v1229_v52, %v1141_v15  ;;  %v1318_v26 = vpop.f32.mrf.mxu3 }
 0x148   : > { %v1143_v16 = vpop.f32.mrf.mxu1 }
 0x149   : > { %v1319_v20 = vadd.f32 %v1318_v26, %v1230_v6  ;;  %v1144_v18 = vadd.f32 %v1143_v16, %v2644_v7  ;;  %v1928_v7 = vor.u32 %v2178_v33, %v1925_v34 }
 0x14a   : > { %v1410_v24 = vpop.f32.mrf.mxu0 }
 0x14b   : > { %v1408_v27 = vadd.f32 %v1407_v55, %v1319_v20  ;;  %1182 = vmatmul.bf16.gmra.mxu1 %v1908_v44  ;;  %1271 = vmatmul.bf16.gmra.mxu2 %v1912_v13 }
 0x14c   : > { %1360 = vmatmul.bf16.gmra.mxu3 %v1916_v17 }
 0x14d   : > { %2099 = vmatmul.msk.bf16.gmra.mxu0 %vm966_vm0, %v1920_v9  ;;  %v1471_v28 = vmax.f32 %v1408_v27, 0.0 }
 0x14e   : > { %v1232_v42 = vpop.f32.mrf.mxu2 }
 0x14f   : > { %v2247_v29 = vpack.c.bf16 %v1471_v28, %v1470_v51  ;;  %v1321_v45 = vpop.f32.mrf.mxu3  ;;  %v1233_v32 = vadd.f32 %v1232_v42, %v1144_v18 }
 0x150   : > { %v1145_v30 = vpop.f32.mrf.mxu1 }
 0x151   : > { %2303 = vst [vmem:[%s2725_s20 + $0x28] sm:$0xff] %v2247_v29   ;;  %v1322_v39 = vadd.f32 %v1321_v45, %v1233_v32  ;;  %v1146_v43 = vadd.f32 %v1145_v30, %v2656_v14 }
 0x152   : > { %v1412_v8 = vpop.f32.mrf.mxu0 }
 0x153   : > { %v1411_v61 = vadd.f32 %v1410_v24, %v1322_v39 }
 0x155   : > { %v1472_v14 = vmax.f32 %v1411_v61, 0.0 }
 0x156   : > { %v1234_v56 = vpop.f32.mrf.mxu2 }
 0x157   : > { %v1235_v4 = vadd.f32 %v1234_v56, %v1146_v43  ;;  %v1323_v55 = vpop.f32.mrf.mxu3 }
 0x158   : > { %v1148_v58 = vpop.f32.mrf.mxu1 }
 0x159   : > { %v1324_v63 = vadd.f32 %v1323_v55, %v1235_v4  ;;  %v1149_v6 = vadd.f32 %v1148_v58, %v2675_v41 }
 0x15a   : > { %v1415_v15 = vpop.f32.mrf.mxu0 }
 0x15b   : > { %v1413_v0 = vadd.f32 %v1412_v8, %v1324_v63  ;;  %1187 = vmatmul.bf16.gmra.mxu1 %v1928_v7  ;;  %1276 = vmatmul.bf16.gmra.mxu2 %v1932_v57 }
 0x15c   : > { %1365 = vmatmul.bf16.gmra.mxu3 %v1936_v59 }
 0x15d   : > { %2100 = vmatmul.msk.bf16.gmra.mxu0 %vm966_vm0, %v1940_v60  ;;  %v1473_v1 = vmax.f32 %v1413_v0, 0.0 }
 0x15e   : > { %v1237_v5 = vpop.f32.mrf.mxu2 }
 0x15f   : > { %v2252_v52 = vpack.c.bf16 %v1473_v1, %v1472_v14  ;;  %v1326_v26 = vpop.f32.mrf.mxu3  ;;  %v1238_v13 = vadd.f32 %v1237_v5, %v1149_v6 }
 0x160   : > { %v1150_v44 = vpop.f32.mrf.mxu1 }
 0x161   : > { %2304 = vst [vmem:[%s2725_s20 + $0x30] sm:$0xff] %v2252_v52   ;;  %v1327_v17 = vadd.f32 %v1326_v26, %v1238_v13  ;;  %v1151_v9 = vadd.f32 %v1150_v44, %v2687_v54 }
 0x162   : > { %v1417_v16 = vpop.f32.mrf.mxu0 }
 0x163   : > { %v1416_v51 = vadd.f32 %v1415_v15, %v1327_v17 }
 0x165   : > { %v1474_v18 = vmax.f32 %v1416_v51, 0.0 }
 0x166   : > { %v1239_v22 = vpop.f32.mrf.mxu2 }
 0x167   : > { %v1240_v20 = vadd.f32 %v1239_v22, %v1151_v9  ;;  %v1328_v24 = vpop.f32.mrf.mxu3 }
 0x168   : > { %v1153_v27 = vpop.f32.mrf.mxu1 }
 0x169   : > { %v1329_v28 = vadd.f32 %v1328_v24, %v1240_v20  ;;  %v1154_v32 = vadd.f32 %v1153_v27, %v2588_v21 }
 0x16a   : > { %v1420_v42 = vpop.f32.mrf.mxu0 }
 0x16b   : > { %v1418_v29 = vadd.f32 %v1417_v16, %v1329_v28 }
 0x16d   : > { %v1475_v45 = vmax.f32 %v1418_v29, 0.0 }
 0x16e   : > { %v1242_v41 = vpop.f32.mrf.mxu2 }
 0x16f   : > { %v2257_v30 = vpack.c.bf16 %v1475_v45, %v1474_v18  ;;  %v1331_v8 = vpop.f32.mrf.mxu3  ;;  %v1243_v34 = vadd.f32 %v1242_v41, %v1154_v32 }
 0x170   : > { %v1155_v33 = vpop.f32.mrf.mxu1 }
 0x171   : > { %2305 = vst [vmem:[%s2725_s20 + $0x38] sm:$0xff] %v2257_v30   ;;  %v1332_v37 = vadd.f32 %v1331_v8, %v1243_v34  ;;  %v1156_v38 = vadd.f32 %v1155_v33, %v2607_v36 }
 0x172   : > { %v1422_v54 = vpop.f32.mrf.mxu0 }
 0x173   : > { %v1421_v53 = vadd.f32 %v1420_v42, %v1332_v37 }
 0x175   : > { %v1476_v55 = vmax.f32 %v1421_v53, 0.0 }
 0x176   : > { %v1244_v25 = vpop.f32.mrf.mxu2 }
 0x177   : > { %v1245_v39 = vadd.f32 %v1244_v25, %v1156_v38  ;;  %v1333_v43 = vpop.f32.mrf.mxu3 }
 0x178   : > { %v1158_v48 = vpop.f32.mrf.mxu1 }
 0x179   : > { %v1334_v19 = vadd.f32 %v1333_v43, %v1245_v39  ;;  %v1159_v58 = vadd.f32 %v1158_v48, %v2619_v47 }
 0x17a   : > { %v1425_v56 = vpop.f32.mrf.mxu0 }
 0x17b   : > { %v1423_v4 = vadd.f32 %v1422_v54, %v1334_v19 }
 0x17d   : > { %v1477_v7 = vmax.f32 %v1423_v4, 0.0 }
 0x17e   : > { %v1247_v21 = vpop.f32.mrf.mxu2 }
 0x17f   : > { %v2262_v57 = vpack.c.bf16 %v1477_v7, %v1476_v55  ;;  %v1336_v59 = vpop.f32.mrf.mxu3  ;;  %v1248_v61 = vadd.f32 %v1247_v21, %v1159_v58 }
 0x180   : > { %v1160_v60 = vpop.f32.mrf.mxu1 }
 0x181   : > { %2306 = vst [vmem:[%s2725_s20 + $0x40] sm:$0xff] %v2262_v57   ;;  %v1337_v63 = vadd.f32 %v1336_v59, %v1248_v61  ;;  %v1161_v15 = vadd.f32 %v1160_v60, %v2638_v62 }
 0x182   : > { %v1427_v36 = vpop.f32.mrf.mxu0 }
 0x183   : > { %v1426_v52 = vadd.f32 %v1425_v56, %v1337_v63 }
 0x185   : > { %v1478_v13 = vmax.f32 %v1426_v52, 0.0 }
 0x186   : > { %v1249_v0 = vpop.f32.mrf.mxu2 }
 0x187   : > { %v1250_v14 = vadd.f32 %v1249_v0, %v1161_v15  ;;  %v1338_v1 = vpop.f32.mrf.mxu3 }
 0x188   : > { %v1163_v5 = vpop.f32.mrf.mxu1 }
 0x189   : > { %v1339_v6 = vadd.f32 %v1338_v1, %v1250_v14  ;;  %v1164_v9 = vadd.f32 %v1163_v5, %v2650_v10 }
 0x18a   : > { %v1430_v26 = vpop.f32.mrf.mxu0 }
 0x18b   : > { %v1428_v44 = vadd.f32 %v1427_v36, %v1339_v6 }
 0x18d   : > { %v1479_v16 = vmax.f32 %v1428_v44, 0.0 }
 0x18e   : > { %v1252_v47 = vpop.f32.mrf.mxu2 }
 0x18f   : > { %v2267_v17 = vpack.c.bf16 %v1479_v16, %v1478_v13  ;;  %v1341_v22 = vpop.f32.mrf.mxu3  ;;  %v1253_v24 = vadd.f32 %v1252_v47, %v1164_v9 }
 0x190   : > { %v1165_v20 = vpop.f32.mrf.mxu1 }
 0x191   : > { %2307 = vst [vmem:[%s2725_s20 + $0x48] sm:$0xff] %v2267_v17   ;;  %v1342_v27 = vadd.f32 %v1341_v22, %v1253_v24  ;;  %v1166_v51 = vadd.f32 %v1165_v20, %v2669_v31 }
 0x192   : > { %v1432_v62 = vpop.f32.mrf.mxu0 }
 0x193   : > { %v1431_v45 = vadd.f32 %v1430_v26, %v1342_v27 }
 0x195   : > { %v1480_v8 = vmax.f32 %v1431_v45, 0.0 }
 0x196   : > { %v1254_v28 = vpop.f32.mrf.mxu2 }
 0x197   : > { %v1255_v42 = vadd.f32 %v1254_v28, %v1166_v51  ;;  %v1343_v29 = vpop.f32.mrf.mxu3 }
 0x198   : > { %v1168_v18 = vpop.f32.mrf.mxu1 }
 0x199   : > { %v1344_v41 = vadd.f32 %v1343_v29, %v1255_v42  ;;  %v1169_v54 = vadd.f32 %v1168_v18, %v2681_v46 }
 0x19a   : > { %v1435_v30 = vpop.f32.mrf.mxu0 }
 0x19b   : > { %v1433_v32 = vadd.f32 %v1432_v62, %v1344_v41 }
 0x19d   : > { %v1481_v33 = vmax.f32 %v1433_v32, 0.0 }
 0x19e   : > { %v1257_v10 = vpop.f32.mrf.mxu2 }
 0x19f   : > { %v2272_v34 = vpack.c.bf16 %v1481_v33, %v1480_v8  ;;  %v1346_v37 = vpop.f32.mrf.mxu3  ;;  %v1258_v25 = vadd.f32 %v1257_v10, %v1169_v54 }
 0x1a0   : > { %v1170_v38 = vpop.f32.mrf.mxu1 }
 0x1a1   : > { %2308 = vst [vmem:[%s2725_s20 + $0x50] sm:$0xff] %v2272_v34   ;;  %v1347_v39 = vadd.f32 %v1346_v37, %v1258_v25  ;;  %v1171_v43 = vadd.f32 %v1170_v38, %v2700_v3 }
 0x1a2   : > { %v1437_v31 = vpop.f32.mrf.mxu0 }
 0x1a3   : > { %v1436_v4 = vadd.f32 %v1435_v30, %v1347_v39 }
 0x1a5   : > { %v1482_v57 = vmax.f32 %v1436_v4, 0.0 }
 0x1a6   : > { %v1259_v48 = vpop.f32.mrf.mxu2 }
 0x1a7   : > { %v1260_v53 = vadd.f32 %v1259_v48, %v1171_v43  ;;  %v1348_v19 = vpop.f32.mrf.mxu3 }
 0x1a8   : > { %v1173_v56 = vpop.f32.mrf.mxu1 }
 0x1a9   : > { %v1349_v55 = vadd.f32 %v1348_v19, %v1260_v53  ;;  %v1174_v60 = vadd.f32 %v1173_v56, %v2591_v23 }
 0x1aa   : > { %v1440_v7 = vpop.f32.mrf.mxu0 }
 0x1ab   : > { %v1438_v21 = vadd.f32 %v1437_v31, %v1349_v55 }
 0x1ad   : > { %v1483_v58 = vmax.f32 %v1438_v21, 0.0 }
 0x1ae   : > { %v1262_v46 = vpop.f32.mrf.mxu2 }
 0x1af   : > { %v2277_v59 = vpack.c.bf16 %v1483_v58, %v1482_v57  ;;  %v1351_v61 = vpop.f32.mrf.mxu3  ;;  %v1263_v63 = vadd.f32 %v1262_v46, %v1174_v60 }
 0x1b0   : > { %v1175_v36 = vpop.f32.mrf.mxu1 }
 0x1b1   : > { %2309 = vst [vmem:[%s2725_s20 + $0x58] sm:$0xff] %v2277_v59   ;;  %v1352_v15 = vadd.f32 %v1351_v61, %v1263_v63  ;;  %v1176_v0 = vadd.f32 %v1175_v36, %v2610_v40 }
 0x1b2   : > { %v1442_v3 = vpop.f32.mrf.mxu0 }
 0x1b3   : > { %v1441_v6 = vadd.f32 %v1440_v7, %v1352_v15 }
 0x1b5   : > { %v1484_v16 = vmax.f32 %v1441_v6, 0.0 }
 0x1b6   : > { %v1264_v14 = vpop.f32.mrf.mxu2 }
 0x1b7   : > { %v1265_v1 = vadd.f32 %v1264_v14, %v1176_v0  ;;  %v1353_v5 = vpop.f32.mrf.mxu3 }
 0x1b8   : > { %v1178_v52 = vpop.f32.mrf.mxu1 }
 0x1b9   : > { %v1354_v26 = vadd.f32 %v1353_v5, %v1265_v1  ;;  %v1179_v9 = vadd.f32 %v1178_v52, %v2622_v49 }
 0x1ba   : > { %v1445_v44 = vpop.f32.mrf.mxu0 }
 0x1bb   : > { %v1443_v13 = vadd.f32 %v1442_v3, %v1354_v26 }
 0x1bd   : > { %v1485_v47 = vmax.f32 %v1443_v13, 0.0 }
 0x1be   : > { %v1267_v23 = vpop.f32.mrf.mxu2 }
 0x1bf   : > { %v2282_v17 = vpack.c.bf16 %v1485_v47, %v1484_v16  ;;  %v1356_v22 = vpop.f32.mrf.mxu3  ;;  %v1268_v24 = vadd.f32 %v1267_v23, %v1179_v9 }
 0x1c0   : > { %v1180_v20 = vpop.f32.mrf.mxu1 }
 0x1c1   : > { %2310 = vst [vmem:[%s2725_s20 + $0x60] sm:$0xff] %v2282_v17   ;;  %v1357_v62 = vadd.f32 %v1356_v22, %v1268_v24  ;;  %v1181_v27 = vadd.f32 %v1180_v20, %v2641_v2 }
 0x1c2   : > { %v1447_v40 = vpop.f32.mrf.mxu0 }
 0x1c3   : > { %v1446_v18 = vadd.f32 %v1445_v44, %v1357_v62 }
 0x1c5   : > { %v1486_v32 = vmax.f32 %v1446_v18, 0.0 }
 0x1c6   : > { %v1269_v51 = vpop.f32.mrf.mxu2 }
 0x1c7   : > { %v1270_v28 = vadd.f32 %v1269_v51, %v1181_v27  ;;  %v1358_v42 = vpop.f32.mrf.mxu3 }
 0x1c8   : > { %v1183_v29 = vpop.f32.mrf.mxu1 }
 0x1c9   : > { %v1359_v45 = vadd.f32 %v1358_v42, %v1270_v28  ;;  %v1184_v10 = vadd.f32 %v1183_v29, %v2653_v12 }
 0x1ca   : > { %v1450_v30 = vpop.f32.mrf.mxu0 }
 0x1cb   : > { %v1448_v41 = vadd.f32 %v1447_v40, %v1359_v45 }
 0x1cd   : > { %v1487_v8 = vmax.f32 %v1448_v41, 0.0 }
 0x1ce   : > { %v1272_v49 = vpop.f32.mrf.mxu2 }
 0x1cf   : > { %v2287_v33 = vpack.c.bf16 %v1487_v8, %v1486_v32  ;;  %v1361_v34 = vpop.f32.mrf.mxu3  ;;  %v1273_v37 = vadd.f32 %v1272_v49, %v1184_v10 }
 0x1d0   : > { %v1185_v54 = vpop.f32.mrf.mxu1 }
 0x1d1   : > { %2311 = vst [vmem:[%s2725_s20 + $0x68] sm:$0xff] %v2287_v33   ;;  %v1362_v2 = vadd.f32 %v1361_v34, %v1273_v37  ;;  %v1186_v38 = vadd.f32 %v1185_v54, %v2672_v35 }
 0x1d2   : > { %v1452_v25 = vpop.f32.mrf.mxu0 }
 0x1d3   : > { %v1451_v53 = vadd.f32 %v1450_v30, %v1362_v2 }
 0x1d5   : > { %v1488_v4 = vmax.f32 %v1451_v53, 0.0 }
 0x1d6   : > { %v1274_v31 = vpop.f32.mrf.mxu2 }
 0x1d7   : > { %v1275_v39 = vadd.f32 %v1274_v31, %v1186_v38  ;;  %v1363_v43 = vpop.f32.mrf.mxu3 }
 0x1d8   : > { %v1188_v48 = vpop.f32.mrf.mxu1 }
 0x1d9   : > { %v1364_v19 = vadd.f32 %v1363_v43, %v1275_v39  ;;  %v1189_v21 = vadd.f32 %v1188_v48, %v2684_v50 }
 0x1da   : > { %v1455_v58 = vpop.f32.mrf.mxu0 }
 0x1db   : > { %v1453_v56 = vadd.f32 %v1452_v25, %v1364_v19 }
 0x1dd   : > { %v1489_v55 = vmax.f32 %v1453_v56, 0.0 }
 0x1de   : > { %v1277_v7 = vpop.f32.mrf.mxu2 }
 0x1df   : > { %v2292_v12 = vpack.c.bf16 %v1489_v55, %v1488_v4  ;;  %v1366_v57 = vpop.f32.mrf.mxu3  ;;  %v1278_v35 = vadd.f32 %v1277_v7, %v1189_v21 }
 0x1e0   : > { %v1190_v46 = vpop.f32.mrf.mxu1 }
 0x1e1   : > { %2312 = vst [vmem:[%s2725_s20 + $0x70] sm:$0xff] %v2292_v12   ;;  %v1367_v59 = vadd.f32 %v1366_v57, %v1278_v35  ;;  %v1191_v60 = vadd.f32 %v1190_v46, %v2703_v11 }
 0x1e2   : > { %v1457_v0 = vpop.f32.mrf.mxu0 }
 0x1e3   : > { %v1456_v3 = vadd.f32 %v1455_v58, %v1367_v59 }
 0x1e5   : > { %v1490_v1 = vmax.f32 %v1456_v3, 0.0 }
 0x1e6   : > { %v1279_v61 = vpop.f32.mrf.mxu2 }
 0x1e7   : > { %v1280_v36 = vadd.f32 %v1279_v61, %v1191_v60  ;;  %v1368_v63 = vpop.f32.mrf.mxu3 }
 0x1e9   : > { %v1369_v15 = vadd.f32 %v1368_v63, %v1280_v36 }
 0x1eb   : > { %v1458_v14 = vadd.f32 %v1457_v0, %v1369_v15 }
 0x1ed   : > { %v1491_v5 = vmax.f32 %v1458_v14, 0.0 }
 0x1ef   : > { %v2297_v52 = vpack.c.bf16 %v1491_v5, %v1490_v1 }
 0x1f1   : > { %2313 = vst [vmem:[%s2725_s20 + $0x78] sm:$0xff] %v2297_v52  }
 0x1f2 PF: > { %s13_s12 = sadd.s32 1, %s2354_s12  }
 0x1f3   : > { %p10_p4 = scmp.ge.s32.totalorder %s13_s12, 4  }
 0x1f5   :  { %12 = sbr.rel (!%p10_p4) target bundleno = 1 (0x1), region = 62 }

// kernel: afssd_forward.5
= control target key start
LH: loop header
LB: loop body
LE: loop exit
PB: predicated region body
PF: predicated region fallthrough
CT: control target
= control target key end

     0   :  { %s3854_s12 = smov 0   ;;  %s4628_s0 = inlined_call_operand.vmem [shape: bf16[512,1152], index: 0, kind: input, shape index: {}]   ;;  %s4629_s1 = inlined_call_operand.vmem [shape: bf16[1152,128], index: 1, kind: input, shape index: {}]   ;;  %s4630_s2 = inlined_call_operand.vmem [shape: f32[1,128], index: 2, kind: input, shape index: {}]   ;;  %s4631_s3 = inlined_call_operand.vmem [shape: bf16[512,128], index: 3, kind: output, shape index: {}]  }
   0x1 LB: > { %s2606_s13 = sadd.s32 4294967295, %s3832_s12   ;;  %p2610_p0 = scmp.ge.s32.totalorder %s3832_s12, 1  ;;  %s3832_s12 = sphi %s3854_s12, %s13_s12  }
   0x2   : > { %p139_p1 = scmp.lt.s32.totalorder %s3832_s12, 3 }
   0x4   : > { %p140_p2 = pnand %p2610_p0, %p139_p1 }
   0x5   : > { %s2611_s20 = sshll.u32 (!%p140_p2), %s2606_s13, 5 }
   0x6   : > { %143 = sbr.rel (%p140_p2) target bundleno = 754 (0x2f2), region = 32  ;;  %p165_p3 = scmp.lt.s32.totalorder (!%p140_p2), %s2611_s20, 63 }
   0xb   : > { %v3632_v0 = vld [vmem:[%s4629_s1 + $0x38] sm:$0xff]  ;;  %v3631_v1 = vld [vmem:[%s4629_s1 + $0x30] sm:$0xff]  ;;  %v3630_v2 = vld [vmem:[%s4629_s1 + $0x28] sm:$0xff]  ;;  %s4633_s20 = smov (!%p165_p3, %s2611_s20), 63 }
   0xc   : > { %3792 = vmatpush.bf16.msra.mxu1 %v3632_v0  ;;  %3793 = vmatpush.bf16.msra.mxu2 %v3632_v0  ;;  %v3629_v3 = vld [vmem:[%s4629_s1 + $0x20] sm:$0xff]  ;;  %v3628_v4 = vld [vmem:[%s4629_s1 + $0x18] sm:$0xff]  ;;  %v3627_v5 = vld [vmem:[%s4629_s1 + $0x10] sm:$0xff]  ;;  %s3816_s27 = smul.u32 36, %s4633_s20  ;;  %s2614_s19 = sshll.u32 %s4633_s20, 2 }
   0xd   : > { %3794 = vmatpush.bf16.msra.mxu3 %v3632_v0  ;;  %1653 = vmatpush.bf16.msra.mxu0 %v3632_v0  ;;  %v3626_v6 = vld [vmem:[%s4629_s1 + $0x8] sm:$0xff]  ;;  %v3625_v7 = vld [vmem:[%s4629_s1] sm:$0xff]  ;;  %v3648_v16 = vld [vmem:[%s4629_s1 + $0xb8] sm:$0xff]  ;;  %s4529_s23 = scalar_lea.vmem %s4631_s3, %s2614_s19 }
   0xe   : > { %s3889_s5 = scalar_lea.vmem %s4628_s0, %s3816_s27  ;;  %v3656_v17 = vld [vmem:[%s4629_s1 + $0xf8] sm:$0xff]  ;;  %v3647_v24 = vld [vmem:[%s4629_s1 + $0xb0] sm:$0xff]  ;;  %v3646_v28 = vld [vmem:[%s4629_s1 + $0xa8] sm:$0xff] }
   0xf   : > { %v2761_v8 = vld [vmem:[%s3889_s5 + $0x120] sm:$0xf]  ;;  %v3521_v9 = vld [vmem:[%s3889_s5 + $0x140] sm:$0xf0]  ;;  %v3640_v22 = vld [vmem:[%s4629_s1 + $0x78] sm:$0xff] }
  0x10   : > { %3795 = vmatpush.bf16.msra.mxu1 %v3631_v1  ;;  %3796 = vmatpush.bf16.msra.mxu2 %v3631_v1  ;;  %v2905_v10 = vld [vmem:[%s3889_s5 + $0x240] sm:$0xf]  ;;  %v3557_v11 = vld [vmem:[%s3889_s5 + $0x260] sm:$0xf0]  ;;  %v2762_v18 = vor.u32 %v3521_v9, %v2761_v8  ;;  %v3664_v23 = vld [vmem:[%s4629_s1 + $0x138] sm:$0xff] }
  0x11   : > { %3797 = vmatpush.bf16.msra.mxu3 %v3631_v1  ;;  %1654 = vmatpush.bf16.msra.mxu0 %v3631_v1  ;;  %v3049_v12 = vld [vmem:[%s3889_s5 + $0x360] sm:$0xf]  ;;  %v3593_v13 = vld [vmem:[%s3889_s5 + $0x380] sm:$0xf0]  ;;  %v2906_v19 = vor.u32 %v3557_v11, %v2905_v10  ;;  %v3655_v25 = vld [vmem:[%s4629_s1 + $0xf0] sm:$0xff] }
  0x12   : > { %v2617_v14 = vld [vmem:[%s3889_s5] sm:$0xf]  ;;  %v3485_v15 = vld [vmem:[%s3889_s5 + $0x20] sm:$0xf0]  ;;  %v3050_v20 = vor.u32 %v3593_v13, %v3049_v12  ;;  %v3639_v26 = vld [vmem:[%s4629_s1 + $0x70] sm:$0xff] }
  0x13   : > { %v2618_v21 = vor.u32 %v3485_v15, %v2617_v14  ;;  %v3663_v27 = vld [vmem:[%s4629_s1 + $0x130] sm:$0xff]  ;;  %v3654_v29 = vld [vmem:[%s4629_s1 + $0xe8] sm:$0xff]  ;;  %v3645_v33 = vld [vmem:[%s4629_s1 + $0xa0] sm:$0xff] }
  0x14   : > { %3798 = vmatpush.bf16.msra.mxu1 %v3630_v2  ;;  %3799 = vmatpush.bf16.msra.mxu2 %v3630_v2  ;;  %v3638_v30 = vld [vmem:[%s4629_s1 + $0x68] sm:$0xff]  ;;  %v3653_v34 = vld [vmem:[%s4629_s1 + $0xe0] sm:$0xff]  ;;  %v3644_v44 = vld [vmem:[%s4629_s1 + $0x98] sm:$0xff] }
  0x15   : > { %3800 = vmatpush.bf16.msra.mxu3 %v3630_v2  ;;  %1655 = vmatpush.bf16.msra.mxu0 %v3630_v2  ;;  %v3662_v31 = vld [vmem:[%s4629_s1 + $0x128] sm:$0xff]  ;;  %v3637_v42 = vld [vmem:[%s4629_s1 + $0x60] sm:$0xff]  ;;  %v3652_v45 = vld [vmem:[%s4629_s1 + $0xd8] sm:$0xff] }
  0x16   : > { %v2797_v32 = vld [vmem:[%s3889_s5 + $0x168] sm:$0xf]  ;;  %v3530_v35 = vld [vmem:[%s3889_s5 + $0x188] sm:$0xf0]  ;;  %v3661_v43 = vld [vmem:[%s4629_s1 + $0x120] sm:$0xff] }
  0x17   : > { %v2941_v36 = vld [vmem:[%s3889_s5 + $0x288] sm:$0xf]  ;;  %v3566_v37 = vld [vmem:[%s3889_s5 + $0x2a8] sm:$0xf0]  ;;  %v2798_v46 = vor.u32 %v3530_v35, %v2797_v32  ;;  %v3636_v50 = vld [vmem:[%s4629_s1 + $0x58] sm:$0xff] }
  0x18   : > { %3801 = vmatpush.bf16.msra.mxu1 %v3629_v3  ;;  %3802 = vmatpush.bf16.msra.mxu2 %v3629_v3  ;;  %v3085_v38 = vld [vmem:[%s3889_s5 + $0x3a8] sm:$0xf]  ;;  %v3602_v39 = vld [vmem:[%s3889_s5 + $0x3c8] sm:$0xf0]  ;;  %v2942_v47 = vor.u32 %v3566_v37, %v2941_v36  ;;  %v3660_v51 = vld [vmem:[%s4629_s1 + $0x118] sm:$0xff] }
  0x19   : > { %3803 = vmatpush.bf16.msra.mxu3 %v3629_v3  ;;  %1656 = vmatpush.bf16.msra.mxu0 %v3629_v3  ;;  %v2653_v40 = vld [vmem:[%s3889_s5 + $0x48] sm:$0xf]  ;;  %v3494_v41 = vld [vmem:[%s3889_s5 + $0x68] sm:$0xf0]  ;;  %v3086_v48 = vor.u32 %v3602_v39, %v3085_v38  ;;  %v3643_v52 = vld [vmem:[%s4629_s1 + $0x90] sm:$0xff] }
  0x1a   : > { %v2654_v49 = vor.u32 %v3494_v41, %v2653_v40  ;;  %v3651_v53 = vld [vmem:[%s4629_s1 + $0xd0] sm:$0xff]  ;;  %v3642_v56 = vld [vmem:[%s4629_s1 + $0x88] sm:$0xff]  ;;  %v3641_v61 = vld [vmem:[%s4629_s1 + $0x80] sm:$0xff] }
  0x1b   : > { %v3635_v54 = vld [vmem:[%s4629_s1 + $0x50] sm:$0xff]  ;;  %v3650_v57 = vld [vmem:[%s4629_s1 + $0xc8] sm:$0xff]  ;;  %v3649_v62 = vld [vmem:[%s4629_s1 + $0xc0] sm:$0xff] }
  0x1c   : > { %3804 = vmatpush.bf16.msra.mxu1 %v3628_v4  ;;  %3805 = vmatpush.bf16.msra.mxu2 %v3628_v4  ;;  %v3659_v55 = vld [vmem:[%s4629_s1 + $0x110] sm:$0xff]  ;;  %v3634_v58 = vld [vmem:[%s4629_s1 + $0x48] sm:$0xff]  ;;  %v3680_v12 = vld [vmem:[%s4629_s1 + $0x1b8] sm:$0xff] }
  0x1d   : > { %3806 = vmatpush.bf16.msra.mxu3 %v3628_v4  ;;  %1657 = vmatpush.bf16.msra.mxu0 %v3628_v4  ;;  %v3658_v59 = vld [vmem:[%s4629_s1 + $0x108] sm:$0xff]  ;;  %v2833_v60 = vld [vmem:[%s3889_s5 + $0x1b0] sm:$0xf]  ;;  %v3539_v63 = vld [vmem:[%s3889_s5 + $0x1d0] sm:$0xf0] }
  0x1e   : > { %v2977_v0 = vld [vmem:[%s3889_s5 + $0x2d0] sm:$0xf]  ;;  %v3575_v1 = vld [vmem:[%s3889_s5 + $0x2f0] sm:$0xf0]  ;;  %v2834_v8 = vor.u32 %v3539_v63, %v2833_v60  ;;  %v3688_v13 = vld [vmem:[%s4629_s1 + $0x1f8] sm:$0xff] }
  0x1f   : > { %v3121_v2 = vld [vmem:[%s3889_s5 + $0x3f0] sm:$0xf]  ;;  %v3611_v3 = vld [vmem:[%s3889_s5 + $0x410] sm:$0xf0]  ;;  %v2978_v9 = vor.u32 %v3575_v1, %v2977_v0  ;;  %v3672_v14 = vld [vmem:[%s4629_s1 + $0x178] sm:$0xff] }
  0x20   : > { %3807 = vmatpush.bf16.msra.mxu1 %v3627_v5  ;;  %3808 = vmatpush.bf16.msra.mxu2 %v3627_v5  ;;  %v2689_v4 = vld [vmem:[%s3889_s5 + $0x90] sm:$0xf]  ;;  %v3122_v10 = vor.u32 %v3611_v3, %v3121_v2  ;;  %v3696_v15 = vld [vmem:[%s4629_s1 + $0x238] sm:$0xff]  ;;  %v3482_v32 = vld [vmem:[%s3889_s5 + $0xc] sm:$0xf] }
  0x21   : > { %3809 = vmatpush.bf16.msra.mxu3 %v3627_v5  ;;  %1658 = vmatpush.bf16.msra.mxu0 %v3627_v5  ;;  %v3503_v5 = vld [vmem:[%s3889_s5 + $0xb0] sm:$0xf0]  ;;  %v3500_v60 = vld [vmem:[%s3889_s5 + $0x9c] sm:$0xf]  ;;  %v3505_v63 = vld [vmem:[%s3889_s5 + $0xc0] sm:$0xf0] }
  0x22   : > { %v2690_v11 = vor.u32 %v3503_v5, %v2689_v4  ;;  %v3487_v35 = vld [vmem:[%s3889_s5 + $0x30] sm:$0xf0]  ;;  %v3678_v4 = vld [vmem:[%s4629_s1 + $0x1a8] sm:$0xff] }
  0x23   : > { %v3679_v40 = vld [vmem:[%s4629_s1 + $0x1b0] sm:$0xff]  ;;  %v3686_v5 = vld [vmem:[%s4629_s1 + $0x1e8] sm:$0xff] }
  0x24   : > { %3810 = vmatpush.bf16.msra.mxu1 %v3626_v6  ;;  %3811 = vmatpush.bf16.msra.mxu2 %v3626_v6  ;;  %v3687_v41 = vld [vmem:[%s4629_s1 + $0x1f0] sm:$0xff] }
  0x25   : > { %3812 = vmatpush.bf16.msra.mxu3 %v3626_v6  ;;  %1659 = vmatpush.bf16.msra.mxu0 %v3626_v6  ;;  %v3633_v6 = vld [vmem:[%s4629_s1 + $0x40] sm:$0xff] }
  0x28   : > { %3813 = vmatpush.bf16.msra.mxu1 %v3625_v7  ;;  %3814 = vmatpush.bf16.msra.mxu2 %v3625_v7 }
  0x29   : > { %3815 = vmatpush.bf16.msra.mxu3 %v3625_v7  ;;  %1660 = vmatpush.bf16.msra.mxu0 %v3625_v7  ;;  %v3657_v7 = vld [vmem:[%s4629_s1 + $0x100] sm:$0xff] }
  0x2b   : > { %1681 = vmatmul.bf16.vlgmr.msra.gmra.mxu1 %v2762_v18  ;;  %1701 = vmatmul.bf16.vlgmr.msra.gmra.mxu2 %v2906_v19  ;;  %v3013_v18 = vld [vmem:[%s3889_s5 + $0x318] sm:$0xf]  ;;  %v3584_v19 = vld [vmem:[%s3889_s5 + $0x338] sm:$0xf0] }
  0x2c   : > { %1831 = vmatpush.bf16.msrb.mxu2 %v3648_v16  ;;  %1721 = vmatmul.bf16.vlgmr.msra.gmra.mxu3 %v3050_v20  ;;  %v2869_v16 = vld [vmem:[%s3889_s5 + $0x1f8] sm:$0xf] }
  0x2d   : > { %1920 = vmatpush.bf16.msrb.mxu3 %v3656_v17  ;;  %1661 = vmatmul.bf16.vlgmr.msra.gmra.mxu0 %v2618_v21  ;;  %v3548_v17 = vld [vmem:[%s3889_s5 + $0x218] sm:$0xf0]  ;;  %v3157_v20 = vld [vmem:[%s3889_s5 + $0x438] sm:$0xf] }
  0x2e   : > { %1742 = vmatpush.bf16.msrb.mxu1 %v3640_v22  ;;  %2009 = vmatpush.bf16.msrb.mxu0 %v3664_v23  ;;  %v3620_v21 = vld [vmem:[%s3889_s5 + $0x458] sm:$0xf0]  ;;  %v2725_v22 = vld [vmem:[%s3889_s5 + $0xd8] sm:$0xf] }
  0x2f   : > { %v3512_v23 = vld [vmem:[%s3889_s5 + $0xf8] sm:$0xf0] }
  0x30   : > { %1832 = vmatpush.bf16.msrb.mxu2 %v3647_v24  ;;  %v2870_v24 = vor.u32 %v3548_v17, %v2869_v16 }
  0x31   : > { %1921 = vmatpush.bf16.msrb.mxu3 %v3655_v25  ;;  %v3014_v25 = vor.u32 %v3584_v19, %v3013_v18 }
  0x32   : > { %1743 = vmatpush.bf16.msrb.mxu1 %v3639_v26  ;;  %2010 = vmatpush.bf16.msrb.mxu0 %v3663_v27  ;;  %v3158_v26 = vor.u32 %v3620_v21, %v3157_v20  ;;  %v2726_v27 = vor.u32 %v3512_v23, %v2725_v22  ;;  %v4093_v20 = vld [vmem:[%s4630_s2] ss:$0 sm:$0xff]  ;;  %v3517_v21 = vld [vmem:[%s3889_s5 + $0x124] sm:$0xf]  ;;  %v2763_v22 = vld [vmem:[%s3889_s5 + $0x144] sm:$0xf0] }
  0x33   : > { %v2769_v23 = vld [vmem:[%s3889_s5 + $0x128] sm:$0xf] }
  0x34   : > { %1833 = vmatpush.bf16.msrb.mxu2 %v3646_v28  ;;  %v3481_v28 = vld [vmem:[%s3889_s5 + $0x4] sm:$0xf] }
  0x35   : > { %1922 = vmatpush.bf16.msrb.mxu3 %v3654_v29  ;;  %v2619_v29 = vld [vmem:[%s3889_s5 + $0x24] sm:$0xf0] }
  0x36   : > { %1744 = vmatpush.bf16.msrb.mxu1 %v3638_v30  ;;  %2011 = vmatpush.bf16.msrb.mxu0 %v3662_v31  ;;  %v2625_v30 = vld [vmem:[%s3889_s5 + $0x8] sm:$0xf]  ;;  %v3486_v31 = vld [vmem:[%s3889_s5 + $0x28] sm:$0xf0]  ;;  %v2622_v36 = vor.u32 %v3481_v28, %v2619_v29  ;;  %v3523_v28 = vld [vmem:[%s3889_s5 + $0x150] sm:$0xf0]  ;;  %v2766_v29 = vor.u32 %v3517_v21, %v2763_v22 }
  0x37   : > { %v2626_v37 = vor.u32 %v3486_v31, %v2625_v30 }
  0x38   : > { %1834 = vmatpush.bf16.msrb.mxu2 %v3645_v33  ;;  %v2627_v33 = vld [vmem:[%s3889_s5 + $0x2c] sm:$0xf0] }
  0x39   : > { %1923 = vmatpush.bf16.msrb.mxu3 %v3653_v34  ;;  %v2633_v34 = vld [vmem:[%s3889_s5 + $0x10] sm:$0xf]  ;;  %v2630_v38 = vor.u32 %v3482_v32, %v2627_v33 }
  0x3a   : > { %1745 = vmatpush.bf16.msrb.mxu1 %v3637_v42  ;;  %2012 = vmatpush.bf16.msrb.mxu0 %v3661_v43  ;;  %v2634_v39 = vor.u32 %v3487_v35, %v2633_v34  ;;  %v3671_v42 = vld [vmem:[%s4629_s1 + $0x170] sm:$0xff] }
  0x3b   : > { %1686 = vmatmul.bf16.gmra.mxu1 %v2798_v46  ;;  %1706 = vmatmul.bf16.gmra.mxu2 %v2942_v47  ;;  %v3695_v43 = vld [vmem:[%s4629_s1 + $0x230] sm:$0xff] }
  0x3c   : > { %1835 = vmatpush.bf16.msrb.mxu2 %v3644_v44  ;;  %1726 = vmatmul.bf16.gmra.mxu3 %v3086_v48  ;;  %v3490_v44 = vld [vmem:[%s3889_s5 + $0x4c] sm:$0xf]  ;;  %v2661_v46 = vld [vmem:[%s3889_s5 + $0x50] sm:$0xf]  ;;  %v3495_v47 = vld [vmem:[%s3889_s5 + $0x70] sm:$0xf0] }
  0x3d   : > { %1924 = vmatpush.bf16.msrb.mxu3 %v3652_v45  ;;  %1666 = vmatmul.bf16.gmra.mxu0 %v2654_v49  ;;  %v2655_v45 = vld [vmem:[%s3889_s5 + $0x6c] sm:$0xf0]  ;;  %v3491_v48 = vld [vmem:[%s3889_s5 + $0x54] sm:$0xf]  ;;  %v2663_v49 = vld [vmem:[%s3889_s5 + $0x74] sm:$0xf0] }
  0x3e   : > { %1746 = vmatpush.bf16.msrb.mxu1 %v3636_v50  ;;  %2013 = vmatpush.bf16.msrb.mxu0 %v3660_v51  ;;  %v2669_v50 = vld [vmem:[%s3889_s5 + $0x58] sm:$0xf]  ;;  %v3496_v51 = vld [vmem:[%s3889_s5 + $0x78] sm:$0xf0] }
  0x40   : > { %1836 = vmatpush.bf16.msrb.mxu2 %v3643_v52  ;;  %v2658_v52 = vor.u32 %v3490_v44, %v2655_v45 }
  0x41   : > { %1925 = vmatpush.bf16.msrb.mxu3 %v3651_v53  ;;  %v2662_v53 = vor.u32 %v3495_v47, %v2661_v46  ;;  %v3693_v46 = vld [vmem:[%s4629_s1 + $0x220] sm:$0xff]  ;;  %v3526_v47 = vld [vmem:[%s3889_s5 + $0x16c] sm:$0xf] }
  0x42   : > { %1747 = vmatpush.bf16.msrb.mxu1 %v3635_v54  ;;  %2014 = vmatpush.bf16.msrb.mxu0 %v3659_v55  ;;  %v2666_v54 = vor.u32 %v3491_v48, %v2663_v49  ;;  %v2670_v55 = vor.u32 %v3496_v51, %v2669_v50  ;;  %v2799_v48 = vld [vmem:[%s3889_s5 + $0x18c] sm:$0xf0]  ;;  %v3531_v50 = vld [vmem:[%s3889_s5 + $0x190] sm:$0xf0] }
  0x43   : > { %v2805_v49 = vld [vmem:[%s3889_s5 + $0x170] sm:$0xf]  ;;  %v3527_v51 = vld [vmem:[%s3889_s5 + $0x174] sm:$0xf] }
  0x44   : > { %1837 = vmatpush.bf16.msrb.mxu2 %v3642_v56  ;;  %v3499_v56 = vld [vmem:[%s3889_s5 + $0x94] sm:$0xf] }
  0x45   : > { %1926 = vmatpush.bf16.msrb.mxu3 %v3650_v57  ;;  %v2691_v57 = vld [vmem:[%s3889_s5 + $0xb4] sm:$0xf0] }
  0x46   : > { %1748 = vmatpush.bf16.msrb.mxu1 %v3634_v58  ;;  %2015 = vmatpush.bf16.msrb.mxu0 %v3658_v59  ;;  %v2697_v58 = vld [vmem:[%s3889_s5 + $0x98] sm:$0xf]  ;;  %v3504_v59 = vld [vmem:[%s3889_s5 + $0xb8] sm:$0xf0]  ;;  %v2694_v0 = vor.u32 %v3499_v56, %v2691_v57 }
  0x47   : > { %v2698_v1 = vor.u32 %v3504_v59, %v2697_v58  ;;  %v2802_v58 = vor.u32 %v3526_v47, %v2799_v48  ;;  %v2806_v59 = vor.u32 %v3531_v50, %v2805_v49  ;;  %v2871_v47 = vld [vmem:[%s3889_s5 + $0x21c] sm:$0xf0]  ;;  %v3549_v49 = vld [vmem:[%s3889_s5 + $0x220] sm:$0xf0] }
  0x48   : > { %1838 = vmatpush.bf16.msrb.mxu2 %v3641_v61  ;;  %v2699_v61 = vld [vmem:[%s3889_s5 + $0xbc] sm:$0xf0]  ;;  %v3545_v50 = vld [vmem:[%s3889_s5 + $0x204] sm:$0xf] }
  0x49   : > { %1927 = vmatpush.bf16.msrb.mxu3 %v3649_v62  ;;  %v2705_v62 = vld [vmem:[%s3889_s5 + $0xa0] sm:$0xf]  ;;  %v2702_v2 = vor.u32 %v3500_v60, %v2699_v61 }
  0x4a   : > { %1749 = vmatpush.bf16.msrb.mxu1 %v3633_v6  ;;  %2016 = vmatpush.bf16.msrb.mxu0 %v3657_v7  ;;  %v2706_v3 = vor.u32 %v3505_v63, %v2705_v62  ;;  %v3670_v6 = vld [vmem:[%s4629_s1 + $0x168] sm:$0xff]  ;;  %v2877_v48 = vld [vmem:[%s3889_s5 + $0x200] sm:$0xf] }
  0x4b   : > { %1691 = vmatmul.bf16.gmra.mxu1 %v2834_v8  ;;  %1711 = vmatmul.bf16.gmra.mxu2 %v2978_v9  ;;  %v3694_v7 = vld [vmem:[%s4629_s1 + $0x228] sm:$0xff]  ;;  %v3508_v8 = vld [vmem:[%s3889_s5 + $0xdc] sm:$0xf]  ;;  %v2727_v9 = vld [vmem:[%s3889_s5 + $0xfc] sm:$0xf0] }
  0x4c   : > { %1731 = vmatmul.bf16.gmra.mxu3 %v3122_v10  ;;  %2187 = vmatpush.bf16.msra.mxu2 %v3680_v12  ;;  %v2733_v10 = vld [vmem:[%s3889_s5 + $0xe0] sm:$0xf]  ;;  %v3509_v12 = vld [vmem:[%s3889_s5 + $0xe4] sm:$0xf]  ;;  %v2730_v16 = vor.u32 %v3508_v8, %v2727_v9  ;;  %v3535_v9 = vld [vmem:[%s3889_s5 + $0x1b4] sm:$0xf] }
  0x4d   : > { %1671 = vmatmul.bf16.gmra.mxu0 %v2690_v11  ;;  %2276 = vmatpush.bf16.msra.mxu3 %v3688_v13  ;;  %v3513_v11 = vld [vmem:[%s3889_s5 + $0x100] sm:$0xf0]  ;;  %v2735_v13 = vld [vmem:[%s3889_s5 + $0x104] sm:$0xf0] }
  0x4e   : > { %2098 = vmatpush.bf16.msra.mxu1 %v3672_v14  ;;  %2365 = vmatpush.bf16.msra.mxu0 %v3696_v15  ;;  %v2741_v14 = vld [vmem:[%s3889_s5 + $0xe8] sm:$0xf]  ;;  %v3514_v15 = vld [vmem:[%s3889_s5 + $0x108] sm:$0xf0]  ;;  %v2734_v17 = vor.u32 %v3513_v11, %v2733_v10  ;;  %v2738_v18 = vor.u32 %v3509_v12, %v2735_v13  ;;  %v2835_v10 = vld [vmem:[%s3889_s5 + $0x1d4] sm:$0xf0] }
  0x4f   : > { %v2742_v19 = vor.u32 %v3514_v15, %v2741_v14  ;;  %v2841_v11 = vld [vmem:[%s3889_s5 + $0x1b8] sm:$0xf]  ;;  %v3540_v12 = vld [vmem:[%s3889_s5 + $0x1d8] sm:$0xf0]  ;;  %v2843_v14 = vld [vmem:[%s3889_s5 + $0x1dc] sm:$0xf0]  ;;  %v2838_v21 = vor.u32 %v3535_v9, %v2835_v10 }
  0x50   : > { %2188 = vmatpush.bf16.msra.mxu2 %v3679_v40  ;;  %v3536_v13 = vld [vmem:[%s3889_s5 + $0x1bc] sm:$0xf]  ;;  %v2849_v15 = vld [vmem:[%s3889_s5 + $0x1c0] sm:$0xf]  ;;  %v2842_v22 = vor.u32 %v3540_v12, %v2841_v11 }
  0x51   : > { %2277 = vmatpush.bf16.msra.mxu3 %v3687_v41 }
  0x52   : > { %2099 = vmatpush.bf16.msra.mxu1 %v3671_v42  ;;  %2366 = vmatpush.bf16.msra.mxu0 %v3695_v43  ;;  %v3669_v43 = vld [vmem:[%s4629_s1 + $0x160] sm:$0xff] }
  0x54   : > { %2189 = vmatpush.bf16.msra.mxu2 %v3678_v4 }
  0x55   : > { %2278 = vmatpush.bf16.msra.mxu3 %v3686_v5 }
  0x56   : > { %2100 = vmatpush.bf16.msra.mxu1 %v3670_v6  ;;  %2367 = vmatpush.bf16.msra.mxu0 %v3694_v7 }
  0x5a   : > { %2101 = vmatpush.bf16.msra.mxu1 %v3669_v43  ;;  %2368 = vmatpush.bf16.msra.mxu0 %v3693_v46  ;;  %v3692_v43 = vld [vmem:[%s4629_s1 + $0x218] sm:$0xff] }
  0x5b   : > { %1696 = vmatmul.bf16.gmra.mxu1 %v2870_v24  ;;  %1716 = vmatmul.bf16.gmra.mxu2 %v3014_v25  ;;  %v3522_v24 = vld [vmem:[%s3889_s5 + $0x148] sm:$0xf0]  ;;  %v3544_v46 = vld [vmem:[%s3889_s5 + $0x1fc] sm:$0xf] }
  0x5c   : > { %1736 = vmatmul.bf16.gmra.mxu3 %v3158_v26  ;;  %v3518_v25 = vld [vmem:[%s3889_s5 + $0x12c] sm:$0xf]  ;;  %v2771_v26 = vld [vmem:[%s3889_s5 + $0x14c] sm:$0xf0]  ;;  %v2770_v30 = vor.u32 %v3522_v24, %v2769_v23 }
  0x5d   : > { %1676 = vmatmul.bf16.gmra.mxu0 %v2726_v27  ;;  %v2777_v27 = vld [vmem:[%s3889_s5 + $0x130] sm:$0xf]  ;;  %v2774_v32 = vor.u32 %v3518_v25, %v2771_v26  ;;  %v2846_v25 = vor.u32 %v3536_v13, %v2843_v14 }
  0x5e   : > { %v2778_v33 = vor.u32 %v3523_v28, %v2777_v27  ;;  %2369 = vmatpush.bf16.msra.mxu0 %v3692_v43 }
  0x6b   : > { %1750 = vmatmul.bf16.vlgmr.msrb.gmra.mxu1 %v2622_v36  ;;  %1839 = vmatmul.bf16.vlgmr.msrb.gmra.mxu2 %v2626_v37  ;;  %v3677_v36 = vld [vmem:[%s4629_s1 + $0x1a0] sm:$0xff] }
  0x6c   : > { %1928 = vmatmul.bf16.vlgmr.msrb.gmra.mxu3 %v2630_v38  ;;  %v3685_v37 = vld [vmem:[%s4629_s1 + $0x1e0] sm:$0xff]  ;;  %2190 = vmatpush.bf16.msra.mxu2 %v3677_v36 }
  0x6d   : > { %2017 = vmatmul.bf16.vlgmr.msrb.gmra.mxu0 %v2634_v39  ;;  %2279 = vmatpush.bf16.msra.mxu3 %v3685_v37 }
  0x7b   : > { %1755 = vmatmul.bf16.gmra.mxu1 %v2658_v52  ;;  %1844 = vmatmul.bf16.gmra.mxu2 %v2662_v53  ;;  %v2807_v52 = vld [vmem:[%s3889_s5 + $0x194] sm:$0xf0] }
  0x7c   : > { %1933 = vmatmul.bf16.gmra.mxu3 %v2666_v54  ;;  %v2813_v53 = vld [vmem:[%s3889_s5 + $0x178] sm:$0xf]  ;;  %v3532_v54 = vld [vmem:[%s3889_s5 + $0x198] sm:$0xf0]  ;;  %v2810_v62 = vor.u32 %v3527_v51, %v2807_v52  ;;  %v2879_v51 = vld [vmem:[%s3889_s5 + $0x224] sm:$0xf0] }
  0x7d   : > { %2022 = vmatmul.bf16.gmra.mxu0 %v2670_v55  ;;  %v2814_v63 = vor.u32 %v3532_v54, %v2813_v53  ;;  %v2885_v52 = vld [vmem:[%s3889_s5 + $0x208] sm:$0xf]  ;;  %v3550_v53 = vld [vmem:[%s3889_s5 + $0x228] sm:$0xf0] }
  0x8b   : > { %1760 = vmatmul.bf16.gmra.mxu1 %v2694_v0  ;;  %1849 = vmatmul.bf16.gmra.mxu2 %v2698_v1 }
  0x8c   : > { %1938 = vmatmul.bf16.gmra.mxu3 %v2702_v2 }
  0x8d   : > { %2027 = vmatmul.bf16.gmra.mxu0 %v2706_v3 }
  0x9b   : > { %1765 = vmatmul.bf16.gmra.mxu1 %v2730_v16  ;;  %1854 = vmatmul.bf16.gmra.mxu2 %v2734_v17  ;;  %v3541_v16 = vld [vmem:[%s3889_s5 + $0x1e0] sm:$0xf0] }
  0x9c   : > { %1943 = vmatmul.bf16.gmra.mxu3 %v2738_v18  ;;  %v2850_v26 = vor.u32 %v3541_v16, %v2849_v15  ;;  %v3553_v16 = vld [vmem:[%s3889_s5 + $0x244] sm:$0xf] }
  0x9d   : > { %2032 = vmatmul.bf16.gmra.mxu0 %v2742_v19 }
  0xa8   : > { %v1682_v31 = vpop.f32.mrf.mxu1 }
  0xa9   : > { %v4104_v34 = vadd.f32 %v4093_v20, %v1682_v31 }
  0xaa   : > { %v4106_v35 = vpop.f32.mrf.mxu0 }
  0xab   : > { %1770 = vmatmul.bf16.gmra.mxu1 %v2766_v29  ;;  %1859 = vmatmul.bf16.gmra.mxu2 %v2770_v30  ;;  %v3676_v29 = vld [vmem:[%s4629_s1 + $0x198] sm:$0xff] }
  0xac   : > { %1948 = vmatmul.bf16.gmra.mxu3 %v2774_v32  ;;  %v3684_v30 = vld [vmem:[%s4629_s1 + $0x1d8] sm:$0xff]  ;;  %2191 = vmatpush.bf16.msra.mxu2 %v3676_v29 }
  0xad   : > { %2037 = vmatmul.bf16.gmra.mxu0 %v2778_v33  ;;  %2280 = vmatpush.bf16.msra.mxu3 %v3684_v30  ;;  %v1663_v30 = vadd.f32 %v4093_v20, %v4106_v35  ;;  %v3675_v35 = vld [vmem:[%s4629_s1 + $0x190] sm:$0xff] }
  0xae   : > { %v1702_v38 = vpop.f32.mrf.mxu2 }
  0xaf   : > { %v4115_v39 = vadd.f32 %v4093_v20, %v1702_v38  ;;  %v1722_v40 = vpop.f32.mrf.mxu3 }
  0xb0   : > { %v4118_v41 = vadd.f32 %v4093_v20, %v1722_v40  ;;  %v1684_v42 = vpop.f32.mrf.mxu1  ;;  %2192 = vmatpush.bf16.msra.mxu2 %v3675_v35 }
  0xb1   : > { %v4124_v44 = vadd.f32 %v4093_v20, %v1684_v42  ;;  %v3668_v42 = vld [vmem:[%s4629_s1 + $0x158] sm:$0xff] }
  0xb2   : > { %v4126_v45 = vpop.f32.mrf.mxu0  ;;  %2102 = vmatpush.bf16.msra.mxu1 %v3668_v42 }
  0xb6   : > { %v1704_v55 = vpop.f32.mrf.mxu2 }
  0xb7   : > { %v4140_v56 = vadd.f32 %v4093_v20, %v1704_v55  ;;  %v1724_v57 = vpop.f32.mrf.mxu3 }
  0xb8   : > { %v4143_v60 = vadd.f32 %v4093_v20, %v1724_v57  ;;  %v1687_v61 = vpop.f32.mrf.mxu1 }
  0xb9   : > { %v4146_v0 = vadd.f32 %v4093_v20, %v1687_v61 }
  0xba   : > { %v4148_v1 = vpop.f32.mrf.mxu0 }
  0xbb   : > { %1775 = vmatmul.bf16.gmra.mxu1 %v2802_v58  ;;  %1864 = vmatmul.bf16.gmra.mxu2 %v2806_v59  ;;  %v2874_v58 = vor.u32 %v3544_v46, %v2871_v47  ;;  %v2878_v59 = vor.u32 %v3549_v49, %v2877_v48 }
  0xbc   : > { %1953 = vmatmul.bf16.gmra.mxu3 %v2810_v62 }
  0xbd   : > { %2042 = vmatmul.bf16.gmra.mxu0 %v2814_v63  ;;  %v2882_v63 = vor.u32 %v3545_v50, %v2879_v51  ;;  %v3683_v51 = vld [vmem:[%s4629_s1 + $0x1d0] sm:$0xff] }
  0xbe   : > { %v1707_v2 = vpop.f32.mrf.mxu2  ;;  %2281 = vmatpush.bf16.msra.mxu3 %v3683_v51 }
  0xbf   : > { %v4151_v3 = vadd.f32 %v4093_v20, %v1707_v2  ;;  %v1727_v4 = vpop.f32.mrf.mxu3  ;;  %v2886_v2 = vor.u32 %v3550_v53, %v2885_v52  ;;  %v1665_v53 = vadd.f32 %v4093_v20, %v4126_v45  ;;  %v2943_v45 = vld [vmem:[%s3889_s5 + $0x2ac] sm:$0xf0] }
  0xc0   : > { %v4154_v5 = vadd.f32 %v4093_v20, %v1727_v4  ;;  %v1689_v6 = vpop.f32.mrf.mxu1 }
  0xc1   : > { %v4157_v7 = vadd.f32 %v4093_v20, %v1689_v6 }
  0xc2   : > { %v4159_v8 = vpop.f32.mrf.mxu0 }
  0xc3   : > { %v1670_v51 = vadd.f32 %v4093_v20, %v4159_v8 }
  0xc6   : > { %v1709_v17 = vpop.f32.mrf.mxu2 }
  0xc7   : > { %v4170_v18 = vadd.f32 %v4093_v20, %v1709_v17  ;;  %v1729_v19 = vpop.f32.mrf.mxu3  ;;  %v2907_v17 = vld [vmem:[%s3889_s5 + $0x264] sm:$0xf0] }
  0xc8   : > { %v4173_v23 = vadd.f32 %v4093_v20, %v1729_v19  ;;  %v1692_v24 = vpop.f32.mrf.mxu1  ;;  %v2913_v19 = vld [vmem:[%s3889_s5 + $0x248] sm:$0xf] }
  0xc9   : > { %v4176_v27 = vadd.f32 %v4093_v20, %v1692_v24  ;;  %v2915_v24 = vld [vmem:[%s3889_s5 + $0x26c] sm:$0xf0] }
  0xca   : > { %v4178_v28 = vpop.f32.mrf.mxu0 }
  0xcb   : > { %1780 = vmatmul.bf16.gmra.mxu1 %v2838_v21  ;;  %1869 = vmatmul.bf16.gmra.mxu2 %v2842_v22  ;;  %v3558_v21 = vld [vmem:[%s3889_s5 + $0x268] sm:$0xf0]  ;;  %v1673_v8 = vadd.f32 %v4093_v20, %v4178_v28 }
  0xcc   : > { %1958 = vmatmul.bf16.gmra.mxu3 %v2846_v25  ;;  %v3554_v22 = vld [vmem:[%s3889_s5 + $0x24c] sm:$0xf]  ;;  %v2921_v25 = vld [vmem:[%s3889_s5 + $0x250] sm:$0xf]  ;;  %v2914_v42 = vor.u32 %v3558_v21, %v2913_v19  ;;  %v3563_v19 = vld [vmem:[%s3889_s5 + $0x294] sm:$0xf] }
  0xcd   : > { %2047 = vmatmul.bf16.gmra.mxu0 %v2850_v26  ;;  %v3559_v26 = vld [vmem:[%s3889_s5 + $0x270] sm:$0xf0]  ;;  %v2918_v47 = vor.u32 %v3554_v22, %v2915_v24  ;;  %v2951_v21 = vld [vmem:[%s3889_s5 + $0x2b4] sm:$0xf0]  ;;  %v3568_v24 = vld [vmem:[%s3889_s5 + $0x2b8] sm:$0xf0] }
  0xce   : > { %v1712_v31 = vpop.f32.mrf.mxu2  ;;  %v2922_v48 = vor.u32 %v3559_v26, %v2921_v25  ;;  %v2957_v22 = vld [vmem:[%s3889_s5 + $0x298] sm:$0xf]  ;;  %v1668_v26 = vadd.f32 %v4093_v20, %v4148_v1  ;;  %v3674_v28 = vld [vmem:[%s4629_s1 + $0x188] sm:$0xff] }
  0xcf   : > { %v4187_v32 = vadd.f32 %v4093_v20, %v1712_v31  ;;  %v1732_v33 = vpop.f32.mrf.mxu3  ;;  %2193 = vmatpush.bf16.msra.mxu2 %v3674_v28 }
  0xd0   : > { %v4190_v36 = vadd.f32 %v4093_v20, %v1732_v33  ;;  %v1694_v37 = vpop.f32.mrf.mxu1 }
  0xd1   : > { %v4193_v38 = vadd.f32 %v4093_v20, %v1694_v37  ;;  %v2910_v37 = vor.u32 %v3553_v16, %v2907_v17  ;;  %v2949_v16 = vld [vmem:[%s3889_s5 + $0x290] sm:$0xf]  ;;  %v3567_v17 = vld [vmem:[%s3889_s5 + $0x2b0] sm:$0xf0] }
  0xd2   : > { %v4195_v40 = vpop.f32.mrf.mxu0 }
  0xd6   : > { %v1714_v54 = vpop.f32.mrf.mxu2 }
  0xd7   : > { %v4212_v55 = vadd.f32 %v4093_v20, %v1714_v54  ;;  %v1734_v57 = vpop.f32.mrf.mxu3 }
  0xd8   : > { %v4215_v61 = vadd.f32 %v4093_v20, %v1734_v57  ;;  %v1697_v62 = vpop.f32.mrf.mxu1 }
  0xd9   : > { %v4218_v4 = vadd.f32 %v4093_v20, %v1697_v62 }
  0xda   : > { %v4220_v6 = vpop.f32.mrf.mxu0 }
  0xdb   : > { %1785 = vmatmul.bf16.gmra.mxu1 %v2874_v58  ;;  %1874 = vmatmul.bf16.gmra.mxu2 %v2878_v59 }
  0xdc   : > { %1963 = vmatmul.bf16.gmra.mxu3 %v2882_v63 }
  0xdd   : > { %2052 = vmatmul.bf16.gmra.mxu0 %v2886_v2  ;;  %v3667_v2 = vld [vmem:[%s4629_s1 + $0x150] sm:$0xff] }
  0xde   : > { %v1717_v9 = vpop.f32.mrf.mxu2  ;;  %2103 = vmatpush.bf16.msra.mxu1 %v3667_v2  ;;  %v2979_v2 = vld [vmem:[%s3889_s5 + $0x2f4] sm:$0xf0] }
  0xdf   : > { %v4223_v10 = vadd.f32 %v4093_v20, %v1717_v9  ;;  %v1737_v11 = vpop.f32.mrf.mxu3  ;;  %v3691_v9 = vld [vmem:[%s4629_s1 + $0x210] sm:$0xff] }
  0xe0   : > { %v4226_v12 = vadd.f32 %v4093_v20, %v1737_v11  ;;  %v1699_v13 = vpop.f32.mrf.mxu1  ;;  %v3562_v11 = vld [vmem:[%s3889_s5 + $0x28c] sm:$0xf]  ;;  %2370 = vmatpush.bf16.msra.mxu0 %v3691_v9  ;;  %v2985_v9 = vld [vmem:[%s3889_s5 + $0x2d8] sm:$0xf] }
  0xe1   : > { %v4229_v14 = vadd.f32 %v4093_v20, %v1699_v13 }
  0xe2   : > { %v4231_v15 = vpop.f32.mrf.mxu0 }
  0xe6   : > { %v1719_v29 = vpop.f32.mrf.mxu2 }
  0xe7   : > { %v4244_v31 = vadd.f32 %v4093_v20, %v1719_v29  ;;  %v1739_v33 = vpop.f32.mrf.mxu3 }
  0xe8   : > { %v4247_v43 = vadd.f32 %v4093_v20, %v1739_v33  ;;  %v1751_v46 = vpop.f32.mrf.mxu1  ;;  %v2946_v33 = vor.u32 %v3562_v11, %v2943_v45  ;;  %v3576_v11 = vld [vmem:[%s3889_s5 + $0x2f8] sm:$0xf0] }
  0xe9   : > { %v1752_v49 = vadd.f32 %v1751_v46, %v1663_v30  ;;  %v2954_v46 = vor.u32 %v3563_v19, %v2951_v21  ;;  %v3572_v45 = vld [vmem:[%s3889_s5 + $0x2dc] sm:$0xf]  ;;  %v3577_v19 = vld [vmem:[%s3889_s5 + $0x300] sm:$0xf0] }
  0xea   : > { %v2018_v50 = vpop.f32.mrf.mxu0 }
  0xeb   : > { %1790 = vmatmul.bf16.gmra.mxu1 %v2910_v37  ;;  %1879 = vmatmul.bf16.gmra.mxu2 %v2914_v42  ;;  %v2950_v37 = vor.u32 %v3567_v17, %v2949_v16  ;;  %v2987_v16 = vld [vmem:[%s3889_s5 + $0x2fc] sm:$0xf0] }
  0xec   : > { %1968 = vmatmul.bf16.gmra.mxu3 %v2918_v47  ;;  %v2958_v47 = vor.u32 %v3568_v24, %v2957_v22  ;;  %v2993_v17 = vld [vmem:[%s3889_s5 + $0x2e0] sm:$0xf] }
  0xed   : > { %2057 = vmatmul.bf16.gmra.mxu0 %v2922_v48 }
  0xee   : > { %v1840_v52 = vpop.f32.mrf.mxu2 }
  0xef   : > { %v1841_v54 = vadd.f32 %v1840_v52, %v1752_v49  ;;  %v1929_v57 = vpop.f32.mrf.mxu3 }
  0xf0   : > { %v1753_v58 = vpop.f32.mrf.mxu1 }
  0xf1   : > { %v1930_v59 = vadd.f32 %v1929_v57, %v1841_v54  ;;  %v1754_v62 = vadd.f32 %v1753_v58, %v1665_v53 }
  0xf2   : > { %v2020_v63 = vpop.f32.mrf.mxu0 }
  0xf3   : > { %v4265_v13 = vadd.f32 %v2018_v50, %v1930_v59 }
  0xf6   : > { %v1842_v25 = vpop.f32.mrf.mxu2 }
  0xf7   : > { %v1843_v29 = vadd.f32 %v1842_v25, %v1754_v62  ;;  %v1931_v30 = vpop.f32.mrf.mxu3  ;;  %v3571_v62 = vld [vmem:[%s3889_s5 + $0x2d4] sm:$0xf] }
  0xf8   : > { %v1756_v42 = vpop.f32.mrf.mxu1  ;;  %v2982_v25 = vor.u32 %v3571_v62, %v2979_v2  ;;  %v3580_v62 = vld [vmem:[%s3889_s5 + $0x31c] sm:$0xf] }
  0xf9   : > { %v1932_v48 = vadd.f32 %v1931_v30, %v1843_v29  ;;  %v1757_v49 = vadd.f32 %v1756_v42, %v1668_v26  ;;  %v2986_v26 = vor.u32 %v3576_v11, %v2985_v9  ;;  %v2990_v30 = vor.u32 %v3572_v45, %v2987_v16  ;;  %v3021_v9 = vld [vmem:[%s3889_s5 + $0x320] sm:$0xf]  ;;  %v3585_v11 = vld [vmem:[%s3889_s5 + $0x340] sm:$0xf0]  ;;  %v3023_v16 = vld [vmem:[%s3889_s5 + $0x344] sm:$0xf0] }
  0xfa   : > { %v2023_v50 = vpop.f32.mrf.mxu0  ;;  %v3581_v45 = vld [vmem:[%s3889_s5 + $0x324] sm:$0xf] }
  0xfb   : > { %1795 = vmatmul.bf16.gmra.mxu1 %v2946_v33  ;;  %1884 = vmatmul.bf16.gmra.mxu2 %v2950_v37  ;;  %v4275_v35 = vadd.f32 %v2020_v63, %v1932_v48  ;;  %v2994_v33 = vor.u32 %v3577_v19, %v2993_v17  ;;  %v3682_v48 = vld [vmem:[%s4629_s1 + $0x1c8] sm:$0xff] }
  0xfc   : > { %1973 = vmatmul.bf16.gmra.mxu3 %v2954_v46  ;;  %v3029_v17 = vld [vmem:[%s3889_s5 + $0x328] sm:$0xf]  ;;  %v3586_v19 = vld [vmem:[%s3889_s5 + $0x348] sm:$0xf0] }
  0xfd   : > { %2062 = vmatmul.bf16.gmra.mxu0 %v2958_v47  ;;  %2282 = vmatpush.bf16.msra.mxu3 %v3682_v48  ;;  %v1680_v48 = vadd.f32 %v4093_v20, %v4231_v15 }
  0xfe   : > { %v1845_v1 = vpop.f32.mrf.mxu2 }
  0xff   : > { %v1846_v52 = vadd.f32 %v1845_v1, %v1757_v49  ;;  %v1934_v53 = vpop.f32.mrf.mxu3 }
 0x100   : > { %v1758_v54 = vpop.f32.mrf.mxu1 }
 0x101   : > { %v1935_v57 = vadd.f32 %v1934_v53, %v1846_v52  ;;  %v1759_v58 = vadd.f32 %v1758_v54, %v1670_v51 }
 0x102   : > { %v2025_v59 = vpop.f32.mrf.mxu0 }
 0x103   : > { %v4281_v63 = vadd.f32 %v2023_v50, %v1935_v57  ;;  %v1675_v50 = vadd.f32 %v4093_v20, %v4195_v40  ;;  %v3015_v40 = vld [vmem:[%s3889_s5 + $0x33c] sm:$0xf0] }
 0x106   : > { %v1847_v21 = vpop.f32.mrf.mxu2 }
 0x107   : > { %v1848_v22 = vadd.f32 %v1847_v21, %v1759_v58  ;;  %v1936_v24 = vpop.f32.mrf.mxu3  ;;  %v3666_v58 = vld [vmem:[%s4629_s1 + $0x148] sm:$0xff] }
 0x108   : > { %v1761_v29 = vpop.f32.mrf.mxu1  ;;  %2104 = vmatpush.bf16.msra.mxu1 %v3666_v58  ;;  %v3051_v58 = vld [vmem:[%s3889_s5 + $0x384] sm:$0xf0] }
 0x109   : > { %v1937_v37 = vadd.f32 %v1936_v24, %v1848_v22  ;;  %v1762_v42 = vadd.f32 %v1761_v29, %v1673_v8  ;;  %v1678_v8 = vadd.f32 %v4093_v20, %v4220_v6 }
 0x10a   : > { %v2028_v46 = vpop.f32.mrf.mxu0 }
 0x10b   : > { %1800 = vmatmul.bf16.gmra.mxu1 %v2982_v25  ;;  %1889 = vmatmul.bf16.gmra.mxu2 %v2986_v26  ;;  %v4291_v47 = vadd.f32 %v2025_v59, %v1937_v37  ;;  %v3690_v59 = vld [vmem:[%s4629_s1 + $0x208] sm:$0xff]  ;;  %v3018_v25 = vor.u32 %v3580_v62, %v3015_v40  ;;  %v3022_v26 = vor.u32 %v3585_v11, %v3021_v9  ;;  %v3059_v9 = vld [vmem:[%s3889_s5 + $0x38c] sm:$0xf0] }
 0x10c   : > { %1978 = vmatmul.bf16.gmra.mxu3 %v2990_v30  ;;  %2371 = vmatpush.bf16.msra.mxu0 %v3690_v59  ;;  %v3026_v30 = vor.u32 %v3581_v45, %v3023_v16  ;;  %v3057_v59 = vld [vmem:[%s3889_s5 + $0x368] sm:$0xf]  ;;  %v3594_v62 = vld [vmem:[%s3889_s5 + $0x388] sm:$0xf0]  ;;  %v3065_v11 = vld [vmem:[%s3889_s5 + $0x370] sm:$0xf] }
 0x10d   : > { %2067 = vmatmul.bf16.gmra.mxu0 %v2994_v33  ;;  %v3030_v33 = vor.u32 %v3586_v19, %v3029_v17  ;;  %v3590_v40 = vld [vmem:[%s3889_s5 + $0x36c] sm:$0xf]  ;;  %v3595_v45 = vld [vmem:[%s3889_s5 + $0x390] sm:$0xf0]  ;;  %v3058_v15 = vor.u32 %v3594_v62, %v3057_v59  ;;  %v3095_v62 = vld [vmem:[%s3889_s5 + $0x3d4] sm:$0xf0] }
 0x10e   : > { %v1850_v49 = vpop.f32.mrf.mxu2  ;;  %v3599_v59 = vld [vmem:[%s3889_s5 + $0x3b4] sm:$0xf] }
 0x10f   : > { %v1851_v1 = vadd.f32 %v1850_v49, %v1762_v42  ;;  %v1939_v51 = vpop.f32.mrf.mxu3 }
 0x110   : > { %v1763_v52 = vpop.f32.mrf.mxu1 }
 0x111   : > { %v1940_v53 = vadd.f32 %v1939_v51, %v1851_v1  ;;  %v1764_v54 = vadd.f32 %v1763_v52, %v1675_v50 }
 0x112   : > { %v2030_v57 = vpop.f32.mrf.mxu0 }
 0x113   : > { %v4309_v2 = vadd.f32 %v2028_v46, %v1940_v53 }
 0x116   : > { %v1852_v21 = vpop.f32.mrf.mxu2 }
 0x117   : > { %v1853_v22 = vadd.f32 %v1852_v21, %v1764_v54  ;;  %v1941_v24 = vpop.f32.mrf.mxu3  ;;  %v3589_v54 = vld [vmem:[%s3889_s5 + $0x364] sm:$0xf] }
 0x118   : > { %v1766_v29 = vpop.f32.mrf.mxu1  ;;  %v3054_v20 = vor.u32 %v3589_v54, %v3051_v58  ;;  %v3093_v54 = vld [vmem:[%s3889_s5 + $0x3b0] sm:$0xf]  ;;  %v3603_v58 = vld [vmem:[%s3889_s5 + $0x3d0] sm:$0xf0] }
 0x119   : > { %v1942_v37 = vadd.f32 %v1941_v24, %v1853_v22  ;;  %v1767_v42 = vadd.f32 %v1766_v29, %v1678_v8  ;;  %v3062_v8 = vor.u32 %v3590_v40, %v3059_v9  ;;  %v3066_v22 = vor.u32 %v3595_v45, %v3065_v11  ;;  %v3604_v40 = vld [vmem:[%s3889_s5 + $0x3d8] sm:$0xf0] }
 0x11a   : > { %v2033_v46 = vpop.f32.mrf.mxu0 }
 0x11b   : > { %1805 = vmatmul.bf16.gmra.mxu1 %v3018_v25  ;;  %1894 = vmatmul.bf16.gmra.mxu2 %v3022_v26  ;;  %v4319_v28 = vadd.f32 %v2030_v57, %v1942_v37 }
 0x11c   : > { %1983 = vmatmul.bf16.gmra.mxu3 %v3026_v30  ;;  %v3673_v30 = vld [vmem:[%s4629_s1 + $0x180] sm:$0xff] }
 0x11d   : > { %2072 = vmatmul.bf16.gmra.mxu0 %v3030_v33  ;;  %v3681_v33 = vld [vmem:[%s4629_s1 + $0x1c0] sm:$0xff]  ;;  %2194 = vmatpush.bf16.msra.mxu2 %v3673_v30 }
 0x11e   : > { %v1855_v6 = vpop.f32.mrf.mxu2  ;;  %2283 = vmatpush.bf16.msra.mxu3 %v3681_v33 }
 0x11f   : > { %v1856_v49 = vadd.f32 %v1855_v6, %v1767_v42  ;;  %v1944_v50 = vpop.f32.mrf.mxu3 }
 0x120   : > { %v1768_v1 = vpop.f32.mrf.mxu1 }
 0x121   : > { %v1945_v51 = vadd.f32 %v1944_v50, %v1856_v49  ;;  %v1769_v52 = vadd.f32 %v1768_v1, %v1680_v48  ;;  %v3665_v50 = vld [vmem:[%s4629_s1 + $0x140] sm:$0xff] }
 0x122   : > { %v2035_v53 = vpop.f32.mrf.mxu0  ;;  %v3689_v1 = vld [vmem:[%s4629_s1 + $0x200] sm:$0xff]  ;;  %2105 = vmatpush.bf16.msra.mxu1 %v3665_v50  ;;  %v3608_v50 = vld [vmem:[%s3889_s5 + $0x3fc] sm:$0xf] }
 0x123   : > { %v4325_v57 = vadd.f32 %v2033_v46, %v1945_v51  ;;  %v3598_v51 = vld [vmem:[%s3889_s5 + $0x3ac] sm:$0xf]  ;;  %2372 = vmatpush.bf16.msra.mxu0 %v3689_v1  ;;  %v3131_v1 = vld [vmem:[%s3889_s5 + $0x41c] sm:$0xf0] }
 0x126   : > { %v1857_v16 = vpop.f32.mrf.mxu2 }
 0x127   : > { %v1858_v17 = vadd.f32 %v1857_v16, %v1769_v52  ;;  %v1946_v19 = vpop.f32.mrf.mxu3  ;;  %v3087_v52 = vld [vmem:[%s3889_s5 + $0x3cc] sm:$0xf0] }
 0x128   : > { %v1771_v21 = vpop.f32.mrf.mxu1  ;;  %v3090_v16 = vor.u32 %v3598_v51, %v3087_v52  ;;  %v3137_v51 = vld [vmem:[%s3889_s5 + $0x400] sm:$0xf]  ;;  %v3613_v52 = vld [vmem:[%s3889_s5 + $0x420] sm:$0xf0] }
 0x129   : > { %v1947_v24 = vadd.f32 %v1946_v19, %v1858_v17  ;;  %v1772_v25 = vadd.f32 %v1771_v21, %v4104_v34  ;;  %v3094_v17 = vor.u32 %v3603_v58, %v3093_v54 }
 0x12a   : > { %v2038_v26 = vpop.f32.mrf.mxu0 }
 0x12b   : > { %1810 = vmatmul.bf16.gmra.mxu1 %v3054_v20  ;;  %1899 = vmatmul.bf16.gmra.mxu2 %v3058_v15  ;;  %v4334_v29 = vadd.f32 %v2035_v53, %v1947_v24  ;;  %v3098_v20 = vor.u32 %v3599_v59, %v3095_v62 }
 0x12c   : > { %1988 = vmatmul.bf16.gmra.mxu3 %v3062_v8 }
 0x12d   : > { %2077 = vmatmul.bf16.gmra.mxu0 %v3066_v22 }
 0x12e   : > { %v1860_v37 = vpop.f32.mrf.mxu2 }
 0x12f   : > { %v1861_v34 = vadd.f32 %v1860_v37, %v1772_v25  ;;  %v1949_v42 = vpop.f32.mrf.mxu3 }
 0x130   : > { %v1773_v46 = vpop.f32.mrf.mxu1 }
 0x131   : > { %v1950_v6 = vadd.f32 %v1949_v42, %v1861_v34  ;;  %v1774_v48 = vadd.f32 %v1773_v46, %v4124_v44  ;;  %v3101_v44 = vld [vmem:[%s3889_s5 + $0x3b8] sm:$0xf]  ;;  %v3607_v42 = vld [vmem:[%s3889_s5 + $0x3f4] sm:$0xf] }
 0x132   : > { %v2040_v49 = vpop.f32.mrf.mxu0  ;;  %v3102_v15 = vor.u32 %v3604_v40, %v3101_v44  ;;  %v3123_v46 = vld [vmem:[%s3889_s5 + $0x414] sm:$0xf0] }
 0x133   : > { %v4351_v53 = vadd.f32 %v2038_v26, %v1950_v6  ;;  %v3126_v62 = vor.u32 %v3607_v42, %v3123_v46  ;;  %v3173_v42 = vld [vmem:[%s3889_s5 + $0x448] sm:$0xf]  ;;  %v3622_v46 = vld [vmem:[%s3889_s5 + $0x468] sm:$0xf0] }
 0x136   : > { %v1862_v9 = vpop.f32.mrf.mxu2 }
 0x137   : > { %v1863_v11 = vadd.f32 %v1862_v9, %v1774_v48  ;;  %v1951_v45 = vpop.f32.mrf.mxu3  ;;  %v3129_v48 = vld [vmem:[%s3889_s5 + $0x3f8] sm:$0xf]  ;;  %v3134_v9 = vor.u32 %v3608_v50, %v3131_v1 }
 0x138   : > { %v1776_v19 = vpop.f32.mrf.mxu1 }
 0x139   : > { %v1952_v21 = vadd.f32 %v1951_v45, %v1863_v11  ;;  %v1777_v8 = vadd.f32 %v1776_v19, %v4146_v0  ;;  %v3138_v11 = vor.u32 %v3613_v52, %v3137_v51 }
 0x13a   : > { %v2043_v22 = vpop.f32.mrf.mxu0 }
 0x13b   : > { %1815 = vmatmul.bf16.gmra.mxu1 %v3090_v16  ;;  %1904 = vmatmul.bf16.gmra.mxu2 %v3094_v17  ;;  %v4360_v24 = vadd.f32 %v2040_v49, %v1952_v21  ;;  %v3612_v49 = vld [vmem:[%s3889_s5 + $0x418] sm:$0xf0] }
 0x13c   : > { %1993 = vmatmul.bf16.gmra.mxu3 %v3098_v20  ;;  %v3130_v44 = vor.u32 %v3612_v49, %v3129_v48 }
 0x13d   : > { %2082 = vmatmul.bf16.gmra.mxu0 %v3102_v15 }
 0x13e   : > { %v1865_v25 = vpop.f32.mrf.mxu2 }
 0x13f   : > { %v1866_v26 = vadd.f32 %v1865_v25, %v1777_v8  ;;  %v1954_v30 = vpop.f32.mrf.mxu3  ;;  %v3616_v25 = vld [vmem:[%s3889_s5 + $0x43c] sm:$0xf] }
 0x140   : > { %v1778_v33 = vpop.f32.mrf.mxu1 }
 0x141   : > { %v1955_v37 = vadd.f32 %v1954_v30, %v1866_v26  ;;  %v1779_v0 = vadd.f32 %v1778_v33, %v4157_v7  ;;  %v3159_v26 = vld [vmem:[%s3889_s5 + $0x45c] sm:$0xf0] }
 0x142   : > { %v2045_v34 = vpop.f32.mrf.mxu0  ;;  %v3165_v33 = vld [vmem:[%s3889_s5 + $0x440] sm:$0xf]  ;;  %v3162_v1 = vor.u32 %v3616_v25, %v3159_v26  ;;  %v3489_v26 = vld [vmem:[%s3889_s5 + $0x40] sm:$0xf0] }
 0x143   : > { %v4365_v6 = vadd.f32 %v2043_v22, %v1955_v37  ;;  %v3621_v37 = vld [vmem:[%s3889_s5 + $0x460] sm:$0xf0]  ;;  %v2649_v25 = vld [vmem:[%s3889_s5 + $0x20] sm:$0xf] }
 0x144   : > { %v3166_v51 = vor.u32 %v3621_v37, %v3165_v33 }
 0x146   : > { %v1867_v54 = vpop.f32.mrf.mxu2 }
 0x147   : > { %v1868_v58 = vadd.f32 %v1867_v54, %v1779_v0  ;;  %v1956_v59 = vpop.f32.mrf.mxu3  ;;  %v3617_v0 = vld [vmem:[%s3889_s5 + $0x444] sm:$0xf] }
 0x148   : > { %v1781_v40 = vpop.f32.mrf.mxu1 }
 0x149   : > { %v1957_v7 = vadd.f32 %v1956_v59, %v1868_v58  ;;  %v1782_v45 = vadd.f32 %v1781_v40, %v4176_v27  ;;  %v3174_v58 = vor.u32 %v3622_v46, %v3173_v42 }
 0x14a   : > { %v2048_v16 = vpop.f32.mrf.mxu0 }
 0x14b   : > { %1820 = vmatmul.bf16.gmra.mxu1 %v3126_v62  ;;  %1909 = vmatmul.bf16.gmra.mxu2 %v3130_v44  ;;  %v4374_v17 = vadd.f32 %v2045_v34, %v1957_v7  ;;  %v3167_v34 = vld [vmem:[%s3889_s5 + $0x464] sm:$0xf0] }
 0x14c   : > { %1998 = vmatmul.bf16.gmra.mxu3 %v3134_v9  ;;  %v3170_v54 = vor.u32 %v3617_v0, %v3167_v34 }
 0x14d   : > { %2087 = vmatmul.bf16.gmra.mxu0 %v3138_v11 }
 0x14e   : > { %v1870_v19 = vpop.f32.mrf.mxu2 }
 0x14f   : > { %v1871_v20 = vadd.f32 %v1870_v19, %v1782_v45  ;;  %v1959_v15 = vpop.f32.mrf.mxu3  ;;  %v3483_v19 = vld [vmem:[%s3889_s5 + $0x14] sm:$0xf] }
 0x150   : > { %v1783_v21 = vpop.f32.mrf.mxu1 }
 0x151   : > { %v1960_v8 = vadd.f32 %v1959_v15, %v1871_v20  ;;  %v1784_v27 = vadd.f32 %v1783_v21, %v4193_v38  ;;  %v2635_v20 = vld [vmem:[%s3889_s5 + $0x34] sm:$0xf0] }
 0x152   : > { %v2050_v22 = vpop.f32.mrf.mxu0  ;;  %v2641_v21 = vld [vmem:[%s3889_s5 + $0x18] sm:$0xf]  ;;  %v2638_v34 = vor.u32 %v3483_v19, %v2635_v20  ;;  %v2685_v19 = vld [vmem:[%s3889_s5 + $0x68] sm:$0xf]  ;;  %v3498_v20 = vld [vmem:[%s3889_s5 + $0x88] sm:$0xf0] }
 0x153   : > { %v4379_v30 = vadd.f32 %v2048_v16, %v1960_v8  ;;  %v3488_v8 = vld [vmem:[%s3889_s5 + $0x38] sm:$0xf0] }
 0x154   : > { %v2642_v42 = vor.u32 %v3488_v8, %v2641_v21 }
 0x156   : > { %v1872_v48 = vpop.f32.mrf.mxu2 }
 0x157   : > { %v1873_v49 = vadd.f32 %v1872_v48, %v1784_v27  ;;  %v1961_v50 = vpop.f32.mrf.mxu3  ;;  %v3484_v27 = vld [vmem:[%s3889_s5 + $0x1c] sm:$0xf] }
 0x158   : > { %v1786_v52 = vpop.f32.mrf.mxu1 }
 0x159   : > { %v1962_v38 = vadd.f32 %v1961_v50, %v1873_v49  ;;  %v1787_v59 = vadd.f32 %v1786_v52, %v4218_v4  ;;  %v2650_v49 = vor.u32 %v3489_v26, %v2649_v25 }
 0x15a   : > { %v2053_v62 = vpop.f32.mrf.mxu0 }
 0x15b   : > { %1825 = vmatmul.bf16.gmra.mxu1 %v3162_v1  ;;  %1914 = vmatmul.bf16.gmra.mxu2 %v3166_v51  ;;  %v4388_v44 = vadd.f32 %v2050_v22, %v1962_v38  ;;  %v2643_v22 = vld [vmem:[%s3889_s5 + $0x3c] sm:$0xf0] }
 0x15c   : > { %2003 = vmatmul.bf16.gmra.mxu3 %v3170_v54  ;;  %v2646_v48 = vor.u32 %v3484_v27, %v2643_v22 }
 0x15d   : > { %2092 = vmatmul.bf16.gmra.mxu0 %v3174_v58 }
 0x15e   : > { %v1875_v40 = vpop.f32.mrf.mxu2 }
 0x15f   : > { %v1876_v9 = vadd.f32 %v1875_v40, %v1787_v59  ;;  %v1964_v11 = vpop.f32.mrf.mxu3  ;;  %v3492_v40 = vld [vmem:[%s3889_s5 + $0x5c] sm:$0xf] }
 0x160   : > { %v1788_v7 = vpop.f32.mrf.mxu1 }
 0x161   : > { %v1965_v45 = vadd.f32 %v1964_v11, %v1876_v9  ;;  %v1789_v4 = vadd.f32 %v1788_v7, %v4229_v14  ;;  %v2671_v9 = vld [vmem:[%s3889_s5 + $0x7c] sm:$0xf0] }
 0x162   : > { %v2055_v16 = vpop.f32.mrf.mxu0  ;;  %v2677_v7 = vld [vmem:[%s3889_s5 + $0x60] sm:$0xf]  ;;  %v2674_v22 = vor.u32 %v3492_v40, %v2671_v9  ;;  %v2721_v40 = vld [vmem:[%s3889_s5 + $0xb0] sm:$0xf]  ;;  %v3507_v9 = vld [vmem:[%s3889_s5 + $0xd0] sm:$0xf0] }
 0x163   : > { %v4393_v15 = vadd.f32 %v2053_v62, %v1965_v45  ;;  %v3497_v45 = vld [vmem:[%s3889_s5 + $0x80] sm:$0xf0] }
 0x164   : > { %v2678_v25 = vor.u32 %v3497_v45, %v2677_v7 }
 0x166   : > { %v1877_v33 = vpop.f32.mrf.mxu2 }
 0x167   : > { %v1878_v37 = vadd.f32 %v1877_v33, %v1789_v4  ;;  %v1966_v0 = vpop.f32.mrf.mxu3  ;;  %v3493_v4 = vld [vmem:[%s3889_s5 + $0x64] sm:$0xf] }
 0x168   : > { %v1791_v46 = vpop.f32.mrf.mxu1 }
 0x169   : > { %v1967_v14 = vadd.f32 %v1966_v0, %v1878_v37  ;;  %v1792_v50 = vadd.f32 %v1791_v46, %v4115_v39  ;;  %v2686_v37 = vor.u32 %v3498_v20, %v2685_v19 }
 0x16a   : > { %v2058_v1 = vpop.f32.mrf.mxu0 }
 0x16b   : > { %2106 = vmatmul.bf16.vlgmr.msra.gmra.mxu1 %v2638_v34  ;;  %2195 = vmatmul.bf16.vlgmr.msra.gmra.mxu2 %v2642_v42  ;;  %v4402_v51 = vadd.f32 %v2055_v16, %v1967_v14  ;;  %v2679_v16 = vld [vmem:[%s3889_s5 + $0x84] sm:$0xf0] }
 0x16c   : > { %2284 = vmatmul.bf16.vlgmr.msra.gmra.mxu3 %v2646_v48  ;;  %v2682_v33 = vor.u32 %v3493_v4, %v2679_v16 }
 0x16d   : > { %2373 = vmatmul.bf16.vlgmr.msra.gmra.mxu0 %v2650_v49 }
 0x16e   : > { %v1880_v52 = vpop.f32.mrf.mxu2 }
 0x16f   : > { %v1881_v54 = vadd.f32 %v1880_v52, %v1792_v50  ;;  %v1969_v58 = vpop.f32.mrf.mxu3  ;;  %v3501_v52 = vld [vmem:[%s3889_s5 + $0xa4] sm:$0xf] }
 0x170   : > { %v1793_v38 = vpop.f32.mrf.mxu1 }
 0x171   : > { %v1970_v59 = vadd.f32 %v1969_v58, %v1881_v54  ;;  %v1794_v39 = vadd.f32 %v1793_v38, %v4140_v56  ;;  %v2707_v54 = vld [vmem:[%s3889_s5 + $0xc4] sm:$0xf0] }
 0x172   : > { %v2060_v62 = vpop.f32.mrf.mxu0  ;;  %v2713_v38 = vld [vmem:[%s3889_s5 + $0xa8] sm:$0xf]  ;;  %v2710_v16 = vor.u32 %v3501_v52, %v2707_v54  ;;  %v2757_v52 = vld [vmem:[%s3889_s5 + $0xf8] sm:$0xf]  ;;  %v3516_v54 = vld [vmem:[%s3889_s5 + $0x118] sm:$0xf0] }
 0x173   : > { %v4407_v11 = vadd.f32 %v2058_v1, %v1970_v59  ;;  %v3506_v59 = vld [vmem:[%s3889_s5 + $0xc8] sm:$0xf0] }
 0x174   : > { %v2714_v19 = vor.u32 %v3506_v59, %v2713_v38 }
 0x176   : > { %v1882_v21 = vpop.f32.mrf.mxu2 }
 0x177   : > { %v1883_v8 = vadd.f32 %v1882_v21, %v1794_v39  ;;  %v1971_v27 = vpop.f32.mrf.mxu3  ;;  %v3502_v39 = vld [vmem:[%s3889_s5 + $0xac] sm:$0xf] }
 0x178   : > { %v1796_v26 = vpop.f32.mrf.mxu1 }
 0x179   : > { %v1972_v56 = vadd.f32 %v1971_v27, %v1883_v8  ;;  %v1797_v0 = vadd.f32 %v1796_v26, %v4151_v3  ;;  %v2722_v8 = vor.u32 %v3507_v9, %v2721_v40 }
 0x17a   : > { %v2063_v34 = vpop.f32.mrf.mxu0 }
 0x17b   : > { %2111 = vmatmul.bf16.gmra.mxu1 %v2674_v22  ;;  %2200 = vmatmul.bf16.gmra.mxu2 %v2678_v25  ;;  %v4416_v42 = vadd.f32 %v2060_v62, %v1972_v56  ;;  %v2715_v62 = vld [vmem:[%s3889_s5 + $0xcc] sm:$0xf0] }
 0x17c   : > { %2289 = vmatmul.bf16.gmra.mxu3 %v2682_v33  ;;  %v2718_v21 = vor.u32 %v3502_v39, %v2715_v62 }
 0x17d   : > { %2378 = vmatmul.bf16.gmra.mxu0 %v2686_v37 }
 0x17e   : > { %v1885_v46 = vpop.f32.mrf.mxu2 }
 0x17f   : > { %v1886_v48 = vadd.f32 %v1885_v46, %v1797_v0  ;;  %v1974_v49 = vpop.f32.mrf.mxu3  ;;  %v3510_v46 = vld [vmem:[%s3889_s5 + $0xec] sm:$0xf] }
 0x180   : > { %v1798_v14 = vpop.f32.mrf.mxu1 }
 0x181   : > { %v1975_v50 = vadd.f32 %v1974_v49, %v1886_v48  ;;  %v1799_v3 = vadd.f32 %v1798_v14, %v4170_v18  ;;  %v2743_v48 = vld [vmem:[%s3889_s5 + $0x10c] sm:$0xf0] }
 0x182   : > { %v2065_v1 = vpop.f32.mrf.mxu0  ;;  %v2749_v14 = vld [vmem:[%s3889_s5 + $0xf0] sm:$0xf]  ;;  %v2746_v62 = vor.u32 %v3510_v46, %v2743_v48  ;;  %v2793_v46 = vld [vmem:[%s3889_s5 + $0x140] sm:$0xf]  ;;  %v3525_v48 = vld [vmem:[%s3889_s5 + $0x160] sm:$0xf0] }
 0x183   : > { %v4421_v58 = vadd.f32 %v2063_v34, %v1975_v50  ;;  %v3515_v50 = vld [vmem:[%s3889_s5 + $0x110] sm:$0xf0] }
 0x184   : > { %v2750_v40 = vor.u32 %v3515_v50, %v2749_v14 }
 0x186   : > { %v1887_v7 = vpop.f32.mrf.mxu2 }
 0x187   : > { %v1888_v45 = vadd.f32 %v1887_v7, %v1799_v3  ;;  %v1976_v4 = vpop.f32.mrf.mxu3  ;;  %v3511_v3 = vld [vmem:[%s3889_s5 + $0xf4] sm:$0xf] }
 0x188   : > { %v1801_v20 = vpop.f32.mrf.mxu1 }
 0x189   : > { %v1977_v18 = vadd.f32 %v1976_v4, %v1888_v45  ;;  %v1802_v27 = vadd.f32 %v1801_v20, %v4187_v32  ;;  %v2758_v45 = vor.u32 %v3516_v54, %v2757_v52 }
 0x18a   : > { %v2068_v22 = vpop.f32.mrf.mxu0 }
 0x18b   : > { %2116 = vmatmul.bf16.gmra.mxu1 %v2710_v16  ;;  %2205 = vmatmul.bf16.gmra.mxu2 %v2714_v19  ;;  %v4430_v25 = vadd.f32 %v2065_v1, %v1977_v18  ;;  %v2751_v1 = vld [vmem:[%s3889_s5 + $0x114] sm:$0xf0] }
 0x18c   : > { %2294 = vmatmul.bf16.gmra.mxu3 %v2718_v21  ;;  %v2754_v7 = vor.u32 %v3511_v3, %v2751_v1 }
 0x18d   : > { %2383 = vmatmul.bf16.gmra.mxu0 %v2722_v8 }
 0x18e   : > { %v1890_v26 = vpop.f32.mrf.mxu2 }
 0x18f   : > { %v1891_v33 = vadd.f32 %v1890_v26, %v1802_v27  ;;  %v1979_v37 = vpop.f32.mrf.mxu3  ;;  %v3519_v26 = vld [vmem:[%s3889_s5 + $0x134] sm:$0xf] }
 0x190   : > { %v1803_v56 = vpop.f32.mrf.mxu1 }
 0x191   : > { %v1980_v0 = vadd.f32 %v1979_v37, %v1891_v33  ;;  %v1804_v32 = vadd.f32 %v1803_v56, %v4212_v55  ;;  %v2779_v33 = vld [vmem:[%s3889_s5 + $0x154] sm:$0xf0] }
 0x192   : > { %v2070_v34 = vpop.f32.mrf.mxu0  ;;  %v2785_v56 = vld [vmem:[%s3889_s5 + $0x138] sm:$0xf]  ;;  %v2782_v1 = vor.u32 %v3519_v26, %v2779_v33  ;;  %v2829_v26 = vld [vmem:[%s3889_s5 + $0x188] sm:$0xf]  ;;  %v3534_v33 = vld [vmem:[%s3889_s5 + $0x1a8] sm:$0xf0] }
 0x193   : > { %v4435_v49 = vadd.f32 %v2068_v22, %v1980_v0  ;;  %v3524_v0 = vld [vmem:[%s3889_s5 + $0x158] sm:$0xf0] }
 0x194   : > { %v2786_v52 = vor.u32 %v3524_v0, %v2785_v56 }
 0x196   : > { %v1892_v38 = vpop.f32.mrf.mxu2 }
 0x197   : > { %v1893_v59 = vadd.f32 %v1892_v38, %v1804_v32  ;;  %v1981_v39 = vpop.f32.mrf.mxu3  ;;  %v3520_v32 = vld [vmem:[%s3889_s5 + $0x13c] sm:$0xf] }
 0x198   : > { %v1806_v9 = vpop.f32.mrf.mxu1 }
 0x199   : > { %v1982_v55 = vadd.f32 %v1981_v39, %v1893_v59  ;;  %v1807_v4 = vadd.f32 %v1806_v9, %v4223_v10  ;;  %v2794_v59 = vor.u32 %v3525_v48, %v2793_v46 }
 0x19a   : > { %v2073_v16 = vpop.f32.mrf.mxu0 }
 0x19b   : > { %2121 = vmatmul.bf16.gmra.mxu1 %v2746_v62  ;;  %2210 = vmatmul.bf16.gmra.mxu2 %v2750_v40  ;;  %v4444_v19 = vadd.f32 %v2070_v34, %v1982_v55  ;;  %v2787_v34 = vld [vmem:[%s3889_s5 + $0x15c] sm:$0xf0] }
 0x19c   : > { %2299 = vmatmul.bf16.gmra.mxu3 %v2754_v7  ;;  %v2790_v38 = vor.u32 %v3520_v32, %v2787_v34 }
 0x19d   : > { %2388 = vmatmul.bf16.gmra.mxu0 %v2758_v45 }
 0x19e   : > { %v1895_v20 = vpop.f32.mrf.mxu2 }
 0x19f   : > { %v1896_v21 = vadd.f32 %v1895_v20, %v1807_v4  ;;  %v1984_v8 = vpop.f32.mrf.mxu3  ;;  %v3528_v20 = vld [vmem:[%s3889_s5 + $0x17c] sm:$0xf] }
 0x1a0   : > { %v1808_v18 = vpop.f32.mrf.mxu1 }
 0x1a1   : > { %v1985_v27 = vadd.f32 %v1984_v8, %v1896_v21  ;;  %v1809_v10 = vadd.f32 %v1808_v18, %v4244_v31  ;;  %v2815_v21 = vld [vmem:[%s3889_s5 + $0x19c] sm:$0xf0] }
 0x1a2   : > { %v2075_v22 = vpop.f32.mrf.mxu0  ;;  %v2821_v18 = vld [vmem:[%s3889_s5 + $0x180] sm:$0xf]  ;;  %v2818_v34 = vor.u32 %v3528_v20, %v2815_v21  ;;  %v2865_v20 = vld [vmem:[%s3889_s5 + $0x1d0] sm:$0xf]  ;;  %v3543_v21 = vld [vmem:[%s3889_s5 + $0x1f0] sm:$0xf0] }
 0x1a3   : > { %v4449_v37 = vadd.f32 %v2073_v16, %v1985_v27  ;;  %v3533_v27 = vld [vmem:[%s3889_s5 + $0x1a0] sm:$0xf0] }
 0x1a4   : > { %v2822_v46 = vor.u32 %v3533_v27, %v2821_v18 }
 0x1a6   : > { %v1897_v14 = vpop.f32.mrf.mxu2 }
 0x1a7   : > { %v1898_v50 = vadd.f32 %v1897_v14, %v1809_v10  ;;  %v1986_v3 = vpop.f32.mrf.mxu3  ;;  %v3529_v10 = vld [vmem:[%s3889_s5 + $0x184] sm:$0xf] }
 0x1a8   : > { %v1811_v54 = vpop.f32.mrf.mxu1 }
 0x1a9   : > { %v1987_v31 = vadd.f32 %v1986_v3, %v1898_v50  ;;  %v1812_v39 = vadd.f32 %v1811_v54, %v4118_v41  ;;  %v2830_v50 = vor.u32 %v3534_v33, %v2829_v26 }
 0x1aa   : > { %v2078_v62 = vpop.f32.mrf.mxu0 }
 0x1ab   : > { %2126 = vmatmul.bf16.gmra.mxu1 %v2782_v1  ;;  %2215 = vmatmul.bf16.gmra.mxu2 %v2786_v52  ;;  %v4458_v40 = vadd.f32 %v2075_v22, %v1987_v31  ;;  %v2823_v22 = vld [vmem:[%s3889_s5 + $0x1a4] sm:$0xf0] }
 0x1ac   : > { %2304 = vmatmul.bf16.gmra.mxu3 %v2790_v38  ;;  %v2826_v14 = vor.u32 %v3529_v10, %v2823_v22 }
 0x1ad   : > { %2393 = vmatmul.bf16.gmra.mxu0 %v2794_v59 }
 0x1ae   : > { %v1900_v9 = vpop.f32.mrf.mxu2 }
 0x1af   : > { %v1901_v7 = vadd.f32 %v1900_v9, %v1812_v39  ;;  %v1989_v45 = vpop.f32.mrf.mxu3  ;;  %v3537_v9 = vld [vmem:[%s3889_s5 + $0x1c4] sm:$0xf] }
 0x1b0   : > { %v1813_v55 = vpop.f32.mrf.mxu1 }
 0x1b1   : > { %v1990_v4 = vadd.f32 %v1989_v45, %v1901_v7  ;;  %v1814_v41 = vadd.f32 %v1813_v55, %v4143_v60  ;;  %v2851_v7 = vld [vmem:[%s3889_s5 + $0x1e4] sm:$0xf0] }
 0x1b2   : > { %v2080_v16 = vpop.f32.mrf.mxu0  ;;  %v2857_v55 = vld [vmem:[%s3889_s5 + $0x1c8] sm:$0xf]  ;;  %v2854_v22 = vor.u32 %v3537_v9, %v2851_v7  ;;  %v2901_v9 = vld [vmem:[%s3889_s5 + $0x218] sm:$0xf]  ;;  %v3552_v7 = vld [vmem:[%s3889_s5 + $0x238] sm:$0xf0] }
 0x1b3   : > { %v4463_v8 = vadd.f32 %v2078_v62, %v1990_v4  ;;  %v3542_v4 = vld [vmem:[%s3889_s5 + $0x1e8] sm:$0xf0] }
 0x1b4   : > { %v2858_v26 = vor.u32 %v3542_v4, %v2857_v55 }
 0x1b6   : > { %v1902_v56 = vpop.f32.mrf.mxu2 }
 0x1b7   : > { %v1903_v0 = vadd.f32 %v1902_v56, %v1814_v41  ;;  %v1991_v32 = vpop.f32.mrf.mxu3  ;;  %v3538_v41 = vld [vmem:[%s3889_s5 + $0x1cc] sm:$0xf] }
 0x1b8   : > { %v1816_v48 = vpop.f32.mrf.mxu1 }
 0x1b9   : > { %v1992_v60 = vadd.f32 %v1991_v32, %v1903_v0  ;;  %v1817_v3 = vadd.f32 %v1816_v48, %v4154_v5  ;;  %v2866_v0 = vor.u32 %v3543_v21, %v2865_v20 }
 0x1ba   : > { %v2083_v1 = vpop.f32.mrf.mxu0 }
 0x1bb   : > { %2131 = vmatmul.bf16.gmra.mxu1 %v2818_v34  ;;  %2220 = vmatmul.bf16.gmra.mxu2 %v2822_v46  ;;  %v4472_v52 = vadd.f32 %v2080_v16, %v1992_v60  ;;  %v2859_v16 = vld [vmem:[%s3889_s5 + $0x1ec] sm:$0xf0] }
 0x1bc   : > { %2309 = vmatmul.bf16.gmra.mxu3 %v2826_v14  ;;  %v2862_v56 = vor.u32 %v3538_v41, %v2859_v16 }
 0x1bd   : > { %2398 = vmatmul.bf16.gmra.mxu0 %v2830_v50 }
 0x1be   : > { %v1905_v54 = vpop.f32.mrf.mxu2 }
 0x1bf   : > { %v1906_v38 = vadd.f32 %v1905_v54, %v1817_v3  ;;  %v1994_v59 = vpop.f32.mrf.mxu3  ;;  %v3546_v54 = vld [vmem:[%s3889_s5 + $0x20c] sm:$0xf] }
 0x1c0   : > { %v1818_v31 = vpop.f32.mrf.mxu1 }
 0x1c1   : > { %v1995_v39 = vadd.f32 %v1994_v59, %v1906_v38  ;;  %v1819_v5 = vadd.f32 %v1818_v31, %v4173_v23  ;;  %v2887_v38 = vld [vmem:[%s3889_s5 + $0x22c] sm:$0xf0] }
 0x1c2   : > { %v2085_v62 = vpop.f32.mrf.mxu0  ;;  %v2893_v31 = vld [vmem:[%s3889_s5 + $0x210] sm:$0xf]  ;;  %v2890_v16 = vor.u32 %v3546_v54, %v2887_v38  ;;  %v2937_v54 = vld [vmem:[%s3889_s5 + $0x260] sm:$0xf]  ;;  %v3561_v38 = vld [vmem:[%s3889_s5 + $0x280] sm:$0xf0] }
 0x1c3   : > { %v4477_v45 = vadd.f32 %v2083_v1, %v1995_v39  ;;  %v3551_v39 = vld [vmem:[%s3889_s5 + $0x230] sm:$0xf0] }
 0x1c4   : > { %v2894_v20 = vor.u32 %v3551_v39, %v2893_v31 }
 0x1c6   : > { %v1907_v18 = vpop.f32.mrf.mxu2 }
 0x1c7   : > { %v1908_v27 = vadd.f32 %v1907_v18, %v1819_v5  ;;  %v1996_v10 = vpop.f32.mrf.mxu3  ;;  %v3547_v5 = vld [vmem:[%s3889_s5 + $0x214] sm:$0xf] }
 0x1c8   : > { %v1821_v33 = vpop.f32.mrf.mxu1 }
 0x1c9   : > { %v1997_v23 = vadd.f32 %v1996_v10, %v1908_v27  ;;  %v1822_v32 = vadd.f32 %v1821_v33, %v4190_v36  ;;  %v2902_v27 = vor.u32 %v3552_v7, %v2901_v9 }
 0x1ca   : > { %v2088_v34 = vpop.f32.mrf.mxu0 }
 0x1cb   : > { %2136 = vmatmul.bf16.gmra.mxu1 %v2854_v22  ;;  %2225 = vmatmul.bf16.gmra.mxu2 %v2858_v26  ;;  %v4486_v46 = vadd.f32 %v2085_v62, %v1997_v23  ;;  %v2895_v62 = vld [vmem:[%s3889_s5 + $0x234] sm:$0xf0] }
 0x1cc   : > { %2314 = vmatmul.bf16.gmra.mxu3 %v2862_v56  ;;  %v2898_v18 = vor.u32 %v3547_v5, %v2895_v62 }
 0x1cd   : > { %2403 = vmatmul.bf16.gmra.mxu0 %v2866_v0 }
 0x1ce   : > { %v1910_v48 = vpop.f32.mrf.mxu2 }
 0x1cf   : > { %v1911_v14 = vadd.f32 %v1910_v48, %v1822_v32  ;;  %v1999_v50 = vpop.f32.mrf.mxu3  ;;  %v3555_v48 = vld [vmem:[%s3889_s5 + $0x254] sm:$0xf] }
 0x1d0   : > { %v1823_v60 = vpop.f32.mrf.mxu1 }
 0x1d1   : > { %v2000_v3 = vadd.f32 %v1999_v50, %v1911_v14  ;;  %v1824_v36 = vadd.f32 %v1823_v60, %v4215_v61  ;;  %v2923_v14 = vld [vmem:[%s3889_s5 + $0x274] sm:$0xf0] }
 0x1d2   : > { %v2090_v1 = vpop.f32.mrf.mxu0  ;;  %v2929_v60 = vld [vmem:[%s3889_s5 + $0x258] sm:$0xf]  ;;  %v2926_v62 = vor.u32 %v3555_v48, %v2923_v14  ;;  %v2973_v48 = vld [vmem:[%s3889_s5 + $0x2a8] sm:$0xf]  ;;  %v3570_v14 = vld [vmem:[%s3889_s5 + $0x2c8] sm:$0xf0] }
 0x1d3   : > { %v4491_v59 = vadd.f32 %v2088_v34, %v2000_v3  ;;  %v3560_v3 = vld [vmem:[%s3889_s5 + $0x278] sm:$0xf0] }
 0x1d4   : > { %v2930_v9 = vor.u32 %v3560_v3, %v2929_v60 }
 0x1d6   : > { %v1912_v55 = vpop.f32.mrf.mxu2 }
 0x1d7   : > { %v1913_v4 = vadd.f32 %v1912_v55, %v1824_v36  ;;  %v2001_v41 = vpop.f32.mrf.mxu3  ;;  %v3556_v36 = vld [vmem:[%s3889_s5 + $0x25c] sm:$0xf] }
 0x1d8   : > { %v1826_v21 = vpop.f32.mrf.mxu1 }
 0x1d9   : > { %v2002_v61 = vadd.f32 %v2001_v41, %v1913_v4  ;;  %v1827_v10 = vadd.f32 %v1826_v21, %v4226_v12 }
 0x1da   : > { %v2093_v22 = vpop.f32.mrf.mxu0 }
 0x1db   : > { %2141 = vmatmul.bf16.gmra.mxu1 %v2890_v16  ;;  %2230 = vmatmul.bf16.gmra.mxu2 %v2894_v20  ;;  %v4500_v26 = vadd.f32 %v2090_v1, %v2002_v61  ;;  %v2931_v1 = vld [vmem:[%s3889_s5 + $0x27c] sm:$0xf0] }
 0x1dc   : > { %2319 = vmatmul.bf16.gmra.mxu3 %v2898_v18  ;;  %v2934_v55 = vor.u32 %v3556_v36, %v2931_v1 }
 0x1dd   : > { %2408 = vmatmul.bf16.gmra.mxu0 %v2902_v27 }
 0x1de   : > { %v1915_v33 = vpop.f32.mrf.mxu2 }
 0x1df   : > { %v1916_v56 = vadd.f32 %v1915_v33, %v1827_v10  ;;  %v2004_v0 = vpop.f32.mrf.mxu3  ;;  %v2959_v33 = vld [vmem:[%s3889_s5 + $0x2bc] sm:$0xf0] }
 0x1e0   : > { %v1828_v23 = vpop.f32.mrf.mxu1 }
 0x1e1   : > { %v2005_v32 = vadd.f32 %v2004_v0, %v1916_v56  ;;  %v1829_v12 = vadd.f32 %v1828_v23, %v4247_v43  ;;  %v2938_v43 = vor.u32 %v3561_v38, %v2937_v54  ;;  %v2965_v56 = vld [vmem:[%s3889_s5 + $0x2a0] sm:$0xf]  ;;  %v3569_v0 = vld [vmem:[%s3889_s5 + $0x2c0] sm:$0xf0] }
 0x1e2   : > { %v2095_v34 = vpop.f32.mrf.mxu0  ;;  %v3565_v23 = vld [vmem:[%s3889_s5 + $0x2a4] sm:$0xf]  ;;  %v2966_v1 = vor.u32 %v3569_v0, %v2965_v56 }
 0x1e3   : > { %v4505_v50 = vadd.f32 %v2093_v22, %v2005_v32  ;;  %v3564_v22 = vld [vmem:[%s3889_s5 + $0x29c] sm:$0xf] }
 0x1e6   : > { %v1917_v31 = vpop.f32.mrf.mxu2 }
 0x1e7   : > { %v1918_v39 = vadd.f32 %v1917_v31, %v1829_v12  ;;  %v2006_v5 = vpop.f32.mrf.mxu3  ;;  %v2974_v31 = vor.u32 %v3570_v14, %v2973_v48 }
 0x1e8   : > { %v2107_v7 = vpop.f32.mrf.mxu1 }
 0x1e9   : > { %v2007_v4 = vadd.f32 %v2006_v5, %v1918_v39  ;;  %v2108_v21 = vadd.f32 %v2107_v7, %v4265_v13  ;;  %v2962_v13 = vor.u32 %v3564_v22, %v2959_v33  ;;  %v3578_v22 = vld [vmem:[%s3889_s5 + $0x308] sm:$0xf0] }
 0x1ea   : > { %v2374_v41 = vpop.f32.mrf.mxu0  ;;  %v3574_v33 = vld [vmem:[%s3889_s5 + $0x2ec] sm:$0xf] }
 0x1eb   : > { %2146 = vmatmul.bf16.gmra.mxu1 %v2926_v62  ;;  %2235 = vmatmul.bf16.gmra.mxu2 %v2930_v9  ;;  %v4513_v16 = vadd.f32 %v2095_v34, %v2007_v4  ;;  %v2967_v34 = vld [vmem:[%s3889_s5 + $0x2c4] sm:$0xf0] }
 0x1ec   : > { %2324 = vmatmul.bf16.gmra.mxu3 %v2934_v55  ;;  %v2970_v38 = vor.u32 %v3565_v23, %v2967_v34  ;;  %v3003_v23 = vld [vmem:[%s3889_s5 + $0x30c] sm:$0xf0] }
 0x1ed   : > { %2413 = vmatmul.bf16.gmra.mxu0 %v2938_v43 }
 0x1ee   : > { %v2196_v20 = vpop.f32.mrf.mxu2 }
 0x1ef   : > { %v2285_v18 = vpop.f32.mrf.mxu3  ;;  %v2197_v61 = vadd.f32 %v2196_v20, %v2108_v21 }
 0x1f0   : > { %v2109_v27 = vpop.f32.mrf.mxu1 }
 0x1f1   : > { %v2286_v32 = vadd.f32 %v2285_v18, %v2197_v61  ;;  %v2110_v12 = vadd.f32 %v2109_v27, %v4275_v35  ;;  %v3573_v27 = vld [vmem:[%s3889_s5 + $0x2e4] sm:$0xf]  ;;  %v2995_v61 = vld [vmem:[%s3889_s5 + $0x304] sm:$0xf0] }
 0x1f2   : > { %v2376_v10 = vpop.f32.mrf.mxu0 }
 0x1f3   : > { %v2375_v39 = vadd.f32 %v2374_v41, %v2286_v32  ;;  %v3009_v32 = vld [vmem:[%s3889_s5 + $0x2f0] sm:$0xf] }
 0x1f5   : > { %v2454_v35 = vmax.f32 %v2375_v39, 0.0 }
 0x1f6   : > { %v2198_v60 = vpop.f32.mrf.mxu2 }
 0x1f7   : > { %v2199_v3 = vadd.f32 %v2198_v60, %v2110_v12  ;;  %v2287_v36 = vpop.f32.mrf.mxu3  ;;  %v3579_v12 = vld [vmem:[%s3889_s5 + $0x310] sm:$0xf0] }
 0x1f8   : > { %v2112_v54 = vpop.f32.mrf.mxu1 }
 0x1f9   : > { %v2288_v5 = vadd.f32 %v2287_v36, %v2199_v3  ;;  %v2113_v4 = vadd.f32 %v2112_v54, %v4281_v63  ;;  %v2998_v63 = vor.u32 %v3573_v27, %v2995_v61  ;;  %v3006_v36 = vor.u32 %v3574_v33, %v3003_v23  ;;  %v3588_v33 = vld [vmem:[%s3889_s5 + $0x358] sm:$0xf0] }
 0x1fa   : > { %v2379_v62 = vpop.f32.mrf.mxu0 }
 0x1fb   : > { %v2377_v9 = vadd.f32 %v2376_v10, %v2288_v5  ;;  %2151 = vmatmul.bf16.gmra.mxu1 %v2962_v13  ;;  %2240 = vmatmul.bf16.gmra.mxu2 %v2966_v1  ;;  %v3001_v10 = vld [vmem:[%s3889_s5 + $0x2e8] sm:$0xf]  ;;  %v3010_v13 = vor.u32 %v3579_v12, %v3009_v32 }
 0x1fc   : > { %2329 = vmatmul.bf16.gmra.mxu3 %v2970_v38  ;;  %v3002_v60 = vor.u32 %v3578_v22, %v3001_v10  ;;  %v3039_v10 = vld [vmem:[%s3889_s5 + $0x354] sm:$0xf0] }
 0x1fd   : > { %2418 = vmatmul.bf16.gmra.mxu0 %v2974_v31  ;;  %v2455_v7 = vmax.f32 %v2377_v9, 0.0  ;;  %v3045_v22 = vld [vmem:[%s3889_s5 + $0x338] sm:$0xf] }
 0x1fe   : > { %v2201_v55 = vpop.f32.mrf.mxu2 }
 0x1ff   : > { %v3700_v43 = vpack.c.bf16 %v2455_v7, %v2454_v35  ;;  %v2290_v41 = vpop.f32.mrf.mxu3  ;;  %v2202_v21 = vadd.f32 %v2201_v55, %v2113_v4  ;;  %v3582_v4 = vld [vmem:[%s3889_s5 + $0x32c] sm:$0xf] }
 0x200   : > { %v2114_v20 = vpop.f32.mrf.mxu1 }
 0x201   : > { %3701 = vst [vmem:[%s4529_s23] sm:$0xff] %v3700_v43   ;;  %v2291_v56 = vadd.f32 %v2290_v41, %v2202_v21  ;;  %v2115_v0 = vadd.f32 %v2114_v20, %v4291_v47  ;;  %v3031_v41 = vld [vmem:[%s3889_s5 + $0x34c] sm:$0xf0]  ;;  %v3587_v21 = vld [vmem:[%s3889_s5 + $0x350] sm:$0xf0] }
 0x202   : > { %v2381_v18 = vpop.f32.mrf.mxu0  ;;  %v3037_v20 = vld [vmem:[%s3889_s5 + $0x330] sm:$0xf] }
 0x203   : > { %v2380_v1 = vadd.f32 %v2379_v62, %v2291_v56  ;;  %v3038_v32 = vor.u32 %v3587_v21, %v3037_v20  ;;  %v3597_v20 = vld [vmem:[%s3889_s5 + $0x3a0] sm:$0xf0] }
 0x205   : > { %v2456_v47 = vmax.f32 %v2380_v1, 0.0 }
 0x206   : > { %v2203_v34 = vpop.f32.mrf.mxu2 }
 0x207   : > { %v2204_v48 = vadd.f32 %v2203_v34, %v2115_v0  ;;  %v2292_v14 = vpop.f32.mrf.mxu3 }
 0x208   : > { %v2117_v3 = vpop.f32.mrf.mxu1 }
 0x209   : > { %v2293_v54 = vadd.f32 %v2292_v14, %v2204_v48  ;;  %v2118_v62 = vadd.f32 %v2117_v3, %v4309_v2  ;;  %v3034_v2 = vor.u32 %v3582_v4, %v3031_v41  ;;  %v3046_v48 = vor.u32 %v3588_v33, %v3045_v22  ;;  %v3075_v4 = vld [vmem:[%s3889_s5 + $0x39c] sm:$0xf0] }
 0x20a   : > { %v2384_v38 = vpop.f32.mrf.mxu0  ;;  %v3081_v41 = vld [vmem:[%s3889_s5 + $0x380] sm:$0xf] }
 0x20b   : > { %v2382_v31 = vadd.f32 %v2381_v18, %v2293_v54  ;;  %2156 = vmatmul.bf16.gmra.mxu1 %v2998_v63  ;;  %2245 = vmatmul.bf16.gmra.mxu2 %v3002_v60  ;;  %v3583_v18 = vld [vmem:[%s3889_s5 + $0x334] sm:$0xf]  ;;  %v3082_v33 = vor.u32 %v3597_v20, %v3081_v41 }
 0x20c   : > { %2334 = vmatmul.bf16.gmra.mxu3 %v3006_v36  ;;  %v3042_v34 = vor.u32 %v3583_v18, %v3039_v10 }
 0x20d   : > { %2423 = vmatmul.bf16.gmra.mxu0 %v3010_v13  ;;  %v2457_v39 = vmax.f32 %v2382_v31, 0.0 }
 0x20e   : > { %v2206_v5 = vpop.f32.mrf.mxu2 }
 0x20f   : > { %v3705_v9 = vpack.c.bf16 %v2457_v39, %v2456_v47  ;;  %v2295_v35 = vpop.f32.mrf.mxu3  ;;  %v2207_v55 = vadd.f32 %v2206_v5, %v2118_v62  ;;  %v3591_v5 = vld [vmem:[%s3889_s5 + $0x374] sm:$0xf]  ;;  %v3073_v62 = vld [vmem:[%s3889_s5 + $0x378] sm:$0xf] }
 0x210   : > { %v2119_v7 = vpop.f32.mrf.mxu1 }
 0x211   : > { %3777 = vst [vmem:[%s4529_s23 + $0x8] sm:$0xff] %v3705_v9   ;;  %v2296_v27 = vadd.f32 %v2295_v35, %v2207_v55  ;;  %v2120_v61 = vadd.f32 %v2119_v7, %v4319_v28  ;;  %v3067_v9 = vld [vmem:[%s3889_s5 + $0x394] sm:$0xf0]  ;;  %v3596_v35 = vld [vmem:[%s3889_s5 + $0x398] sm:$0xf0] }
 0x212   : > { %v2386_v43 = vpop.f32.mrf.mxu0  ;;  %v3592_v7 = vld [vmem:[%s3889_s5 + $0x37c] sm:$0xf] }
 0x213   : > { %v2385_v14 = vadd.f32 %v2384_v38, %v2296_v27  ;;  %v3078_v22 = vor.u32 %v3592_v7, %v3075_v4 }
 0x215   : > { %v2458_v28 = vmax.f32 %v2385_v14, 0.0 }
 0x216   : > { %v2208_v56 = vpop.f32.mrf.mxu2 }
 0x217   : > { %v2209_v0 = vadd.f32 %v2208_v56, %v2120_v61  ;;  %v2297_v23 = vpop.f32.mrf.mxu3  ;;  %v3074_v61 = vor.u32 %v3596_v35, %v3073_v62 }
 0x218   : > { %v2122_v12 = vpop.f32.mrf.mxu1 }
 0x219   : > { %v2298_v63 = vadd.f32 %v2297_v23, %v2209_v0  ;;  %v2123_v54 = vadd.f32 %v2122_v12, %v4325_v57  ;;  %v3070_v57 = vor.u32 %v3591_v5, %v3067_v9  ;;  %v3606_v5 = vld [vmem:[%s3889_s5 + $0x3e8] sm:$0xf0] }
 0x21a   : > { %v2389_v60 = vpop.f32.mrf.mxu0 }
 0x21b   : > { %v2387_v3 = vadd.f32 %v2386_v43, %v2298_v63  ;;  %2161 = vmatmul.bf16.gmra.mxu1 %v3034_v2  ;;  %2250 = vmatmul.bf16.gmra.mxu2 %v3038_v32 }
 0x21c   : > { %2339 = vmatmul.bf16.gmra.mxu3 %v3042_v34 }
 0x21d   : > { %2428 = vmatmul.bf16.gmra.mxu0 %v3046_v48  ;;  %v2459_v36 = vmax.f32 %v2387_v3, 0.0 }
 0x21e   : > { %v2211_v13 = vpop.f32.mrf.mxu2 }
 0x21f   : > { %v3710_v1 = vpack.c.bf16 %v2459_v36, %v2458_v28  ;;  %v2300_v38 = vpop.f32.mrf.mxu3  ;;  %v2212_v47 = vadd.f32 %v2211_v13, %v2123_v54  ;;  %v3600_v28 = vld [vmem:[%s3889_s5 + $0x3bc] sm:$0xf]  ;;  %v3103_v36 = vld [vmem:[%s3889_s5 + $0x3dc] sm:$0xf0]  ;;  %v3601_v54 = vld [vmem:[%s3889_s5 + $0x3c4] sm:$0xf] }
 0x220   : > { %v2124_v31 = vpop.f32.mrf.mxu1  ;;  %v3109_v13 = vld [vmem:[%s3889_s5 + $0x3c0] sm:$0xf] }
 0x221   : > { %3778 = vst [vmem:[%s4529_s23 + $0x10] sm:$0xff] %v3710_v1   ;;  %v2301_v55 = vadd.f32 %v2300_v38, %v2212_v47  ;;  %v2125_v43 = vadd.f32 %v2124_v31, %v4334_v29  ;;  %v3605_v1 = vld [vmem:[%s3889_s5 + $0x3e0] sm:$0xf0]  ;;  %v3111_v47 = vld [vmem:[%s3889_s5 + $0x3e4] sm:$0xf0] }
 0x222   : > { %v2391_v39 = vpop.f32.mrf.mxu0  ;;  %v3110_v7 = vor.u32 %v3605_v1, %v3109_v13 }
 0x223   : > { %v2390_v56 = vadd.f32 %v2389_v60, %v2301_v55 }
 0x225   : > { %v2460_v29 = vmax.f32 %v2390_v56, 0.0 }
 0x226   : > { %v2213_v21 = vpop.f32.mrf.mxu2 }
 0x227   : > { %v2214_v18 = vadd.f32 %v2213_v21, %v2125_v43  ;;  %v2302_v27 = vpop.f32.mrf.mxu3  ;;  %v3114_v43 = vor.u32 %v3601_v54, %v3111_v47 }
 0x228   : > { %v2127_v10 = vpop.f32.mrf.mxu1 }
 0x229   : > { %v2303_v0 = vadd.f32 %v2302_v27, %v2214_v18  ;;  %v2128_v48 = vadd.f32 %v2127_v10, %v4351_v53  ;;  %v3106_v53 = vor.u32 %v3600_v28, %v3103_v36 }
 0x22a   : > { %v2394_v23 = vpop.f32.mrf.mxu0 }
 0x22b   : > { %v2392_v2 = vadd.f32 %v2391_v39, %v2303_v0  ;;  %2166 = vmatmul.bf16.gmra.mxu1 %v3070_v57  ;;  %2255 = vmatmul.bf16.gmra.mxu2 %v3074_v61  ;;  %v3117_v39 = vld [vmem:[%s3889_s5 + $0x3c8] sm:$0xf] }
 0x22c   : > { %2344 = vmatmul.bf16.gmra.mxu3 %v3078_v22  ;;  %v3118_v4 = vor.u32 %v3606_v5, %v3117_v39 }
 0x22d   : > { %2433 = vmatmul.bf16.gmra.mxu0 %v3082_v33  ;;  %v2461_v32 = vmax.f32 %v2392_v2, 0.0  ;;  %v3139_v2 = vld [vmem:[%s3889_s5 + $0x424] sm:$0xf0] }
 0x22e   : > { %v2216_v12 = vpop.f32.mrf.mxu2 }
 0x22f   : > { %v3715_v34 = vpack.c.bf16 %v2461_v32, %v2460_v29  ;;  %v2305_v14 = vpop.f32.mrf.mxu3  ;;  %v2217_v60 = vadd.f32 %v2216_v12, %v2128_v48  ;;  %v3145_v29 = vld [vmem:[%s3889_s5 + $0x408] sm:$0xf]  ;;  %v3614_v32 = vld [vmem:[%s3889_s5 + $0x428] sm:$0xf0] }
 0x230   : > { %v2129_v63 = vpop.f32.mrf.mxu1  ;;  %v3610_v12 = vld [vmem:[%s3889_s5 + $0x40c] sm:$0xf]  ;;  %v3146_v13 = vor.u32 %v3614_v32, %v3145_v29 }
 0x231   : > { %3779 = vst [vmem:[%s4529_s23 + $0x18] sm:$0xff] %v3715_v34   ;;  %v2306_v38 = vadd.f32 %v2305_v14, %v2217_v60  ;;  %v2130_v31 = vadd.f32 %v2129_v63, %v4360_v24  ;;  %v3147_v14 = vld [vmem:[%s3889_s5 + $0x42c] sm:$0xf0]  ;;  %v3615_v60 = vld [vmem:[%s3889_s5 + $0x430] sm:$0xf0] }
 0x232   : > { %v2396_v3 = vpop.f32.mrf.mxu0  ;;  %v3153_v63 = vld [vmem:[%s3889_s5 + $0x410] sm:$0xf]  ;;  %v3150_v54 = vor.u32 %v3610_v12, %v3147_v14 }
 0x233   : > { %v2395_v41 = vadd.f32 %v2394_v23, %v2306_v38  ;;  %v3609_v23 = vld [vmem:[%s3889_s5 + $0x404] sm:$0xf]  ;;  %v3154_v38 = vor.u32 %v3615_v60, %v3153_v63 }
 0x235   : > { %v2462_v24 = vmax.f32 %v2395_v41, 0.0  ;;  %v3618_v41 = vld [vmem:[%s3889_s5 + $0x44c] sm:$0xf] }
 0x236   : > { %v2218_v9 = vpop.f32.mrf.mxu2 }
 0x237   : > { %v2219_v62 = vadd.f32 %v2218_v9, %v2130_v31  ;;  %v2307_v35 = vpop.f32.mrf.mxu3 }
 0x238   : > { %v2132_v55 = vpop.f32.mrf.mxu1 }
 0x239   : > { %v2308_v20 = vadd.f32 %v2307_v35, %v2219_v62  ;;  %v2133_v10 = vadd.f32 %v2132_v55, %v4365_v6  ;;  %v3142_v6 = vor.u32 %v3609_v23, %v3139_v2 }
 0x23a   : > { %v2399_v21 = vpop.f32.mrf.mxu0 }
 0x23b   : > { %v2397_v18 = vadd.f32 %v2396_v3, %v2308_v20  ;;  %2171 = vmatmul.bf16.gmra.mxu1 %v3106_v53  ;;  %2260 = vmatmul.bf16.gmra.mxu2 %v3110_v7  ;;  %v3175_v20 = vld [vmem:[%s3889_s5 + $0x46c] sm:$0xf0] }
 0x23c   : > { %2349 = vmatmul.bf16.gmra.mxu3 %v3114_v43 }
 0x23d   : > { %2438 = vmatmul.bf16.gmra.mxu0 %v3118_v4  ;;  %v2463_v27 = vmax.f32 %v2397_v18, 0.0  ;;  %v3623_v18 = vld [vmem:[%s3889_s5 + $0x470] sm:$0xf0] }
 0x23e   : > { %v2221_v57 = vpop.f32.mrf.mxu2 }
 0x23f   : > { %v3720_v61 = vpack.c.bf16 %v2463_v27, %v2462_v24  ;;  %v2310_v22 = vpop.f32.mrf.mxu3  ;;  %v2222_v56 = vadd.f32 %v2221_v57, %v2133_v10  ;;  %v3619_v24 = vld [vmem:[%s3889_s5 + $0x454] sm:$0xf]  ;;  %v3189_v10 = vld [vmem:[%s3889_s5 + $0x458] sm:$0xf] }
 0x240   : > { %v2134_v33 = vpop.f32.mrf.mxu1 }
 0x241   : > { %3780 = vst [vmem:[%s4529_s23 + $0x20] sm:$0xff] %v3720_v61   ;;  %v2311_v34 = vadd.f32 %v2310_v22, %v2222_v56  ;;  %v2135_v48 = vadd.f32 %v2134_v33, %v4374_v17  ;;  %v3183_v61 = vld [vmem:[%s3889_s5 + $0x474] sm:$0xf0]  ;;  %v3624_v22 = vld [vmem:[%s3889_s5 + $0x478] sm:$0xf0] }
 0x242   : > { %v2401_v0 = vpop.f32.mrf.mxu0  ;;  %v3186_v29 = vor.u32 %v3619_v24, %v3183_v61  ;;  %v3190_v32 = vor.u32 %v3624_v22, %v3189_v10 }
 0x243   : > { %v2400_v31 = vadd.f32 %v2399_v21, %v2311_v34  ;;  %v3181_v21 = vld [vmem:[%s3889_s5 + $0x450] sm:$0xf] }
 0x244   : > { %v3182_v23 = vor.u32 %v3623_v18, %v3181_v21 }
 0x245   : > { %v2464_v17 = vmax.f32 %v2400_v31, 0.0 }
 0x246   : > { %v2223_v3 = vpop.f32.mrf.mxu2 }
 0x247   : > { %v2224_v28 = vadd.f32 %v2223_v3, %v2135_v48  ;;  %v2312_v36 = vpop.f32.mrf.mxu3 }
 0x248   : > { %v2137_v1 = vpop.f32.mrf.mxu1 }
 0x249   : > { %v2313_v47 = vadd.f32 %v2312_v36, %v2224_v28  ;;  %v2138_v53 = vadd.f32 %v2137_v1, %v4379_v30  ;;  %v3178_v30 = vor.u32 %v3618_v41, %v3175_v20 }
 0x24a   : > { %v2404_v39 = vpop.f32.mrf.mxu0 }
 0x24b   : > { %v2402_v5 = vadd.f32 %v2401_v0, %v2313_v47  ;;  %2176 = vmatmul.bf16.gmra.mxu1 %v3142_v6  ;;  %2265 = vmatmul.bf16.gmra.mxu2 %v3146_v13 }
 0x24c   : > { %2354 = vmatmul.bf16.gmra.mxu3 %v3150_v54 }
 0x24d   : > { %2443 = vmatmul.bf16.gmra.mxu0 %v3154_v38  ;;  %v2465_v9 = vmax.f32 %v2402_v5, 0.0 }
 0x24e   : > { %v2226_v62 = vpop.f32.mrf.mxu2 }
 0x24f   : > { %v3725_v35 = vpack.c.bf16 %v2465_v9, %v2464_v17  ;;  %v2315_v7 = vpop.f32.mrf.mxu3  ;;  %v2227_v43 = vadd.f32 %v2226_v62, %v2138_v53 }
 0x250   : > { %v2139_v55 = vpop.f32.mrf.mxu1 }
 0x251   : > { %3781 = vst [vmem:[%s4529_s23 + $0x28] sm:$0xff] %v3725_v35   ;;  %v2316_v27 = vadd.f32 %v2315_v7, %v2227_v43  ;;  %v2140_v57 = vadd.f32 %v2139_v55, %v4388_v44 }
 0x252   : > { %v2406_v4 = vpop.f32.mrf.mxu0 }
 0x253   : > { %v2405_v12 = vadd.f32 %v2404_v39, %v2316_v27 }
 0x255   : > { %v2466_v44 = vmax.f32 %v2405_v12, 0.0 }
 0x256   : > { %v2228_v33 = vpop.f32.mrf.mxu2 }
 0x257   : > { %v2229_v56 = vadd.f32 %v2228_v33, %v2140_v57  ;;  %v2317_v0 = vpop.f32.mrf.mxu3 }
 0x258   : > { %v2142_v2 = vpop.f32.mrf.mxu1 }
 0x259   : > { %v2318_v34 = vadd.f32 %v2317_v0, %v2229_v56  ;;  %v2143_v28 = vadd.f32 %v2142_v2, %v4393_v15 }
 0x25a   : > { %v2409_v48 = vpop.f32.mrf.mxu0 }
 0x25b   : > { %v2407_v14 = vadd.f32 %v2406_v4, %v2318_v34  ;;  %2181 = vmatmul.bf16.gmra.mxu1 %v3178_v30  ;;  %2270 = vmatmul.bf16.gmra.mxu2 %v3182_v23 }
 0x25c   : > { %2359 = vmatmul.bf16.gmra.mxu3 %v3186_v29 }
 0x25d   : > { %2448 = vmatmul.bf16.gmra.mxu0 %v3190_v32  ;;  %v2467_v63 = vmax.f32 %v2407_v14, 0.0 }
 0x25e   : > { %v2231_v60 = vpop.f32.mrf.mxu2 }
 0x25f   : > { %v3730_v3 = vpack.c.bf16 %v2467_v63, %v2466_v44  ;;  %v2320_v36 = vpop.f32.mrf.mxu3  ;;  %v2232_v13 = vadd.f32 %v2231_v60, %v2143_v28 }
 0x260   : > { %v2144_v6 = vpop.f32.mrf.mxu1 }
 0x261   : > { %3782 = vst [vmem:[%s4529_s23 + $0x30] sm:$0xff] %v3730_v3   ;;  %v2321_v54 = vadd.f32 %v2320_v36, %v2232_v13  ;;  %v2145_v38 = vadd.f32 %v2144_v6, %v4402_v51 }
 0x262   : > { %v2411_v1 = vpop.f32.mrf.mxu0 }
 0x263   : > { %v2410_v17 = vadd.f32 %v2409_v48, %v2321_v54 }
 0x265   : > { %v2468_v53 = vmax.f32 %v2410_v17, 0.0 }
 0x266   : > { %v2233_v31 = vpop.f32.mrf.mxu2 }
 0x267   : > { %v2234_v47 = vadd.f32 %v2233_v31, %v2145_v38  ;;  %v2322_v39 = vpop.f32.mrf.mxu3 }
 0x268   : > { %v2147_v5 = vpop.f32.mrf.mxu1 }
 0x269   : > { %v2323_v9 = vadd.f32 %v2322_v39, %v2234_v47  ;;  %v2148_v43 = vadd.f32 %v2147_v5, %v4407_v11 }
 0x26a   : > { %v2414_v62 = vpop.f32.mrf.mxu0 }
 0x26b   : > { %v2412_v35 = vadd.f32 %v2411_v1, %v2323_v9 }
 0x26d   : > { %v2469_v7 = vmax.f32 %v2412_v35, 0.0 }
 0x26e   : > { %v2236_v15 = vpop.f32.mrf.mxu2 }
 0x26f   : > { %v3735_v55 = vpack.c.bf16 %v2469_v7, %v2468_v53  ;;  %v2325_v4 = vpop.f32.mrf.mxu3  ;;  %v2237_v20 = vadd.f32 %v2236_v15, %v2148_v43 }
 0x270   : > { %v2149_v41 = vpop.f32.mrf.mxu1 }
 0x271   : > { %3783 = vst [vmem:[%s4529_s23 + $0x38] sm:$0xff] %v3735_v55   ;;  %v2326_v21 = vadd.f32 %v2325_v4, %v2237_v20  ;;  %v2150_v18 = vadd.f32 %v2149_v41, %v4416_v42 }
 0x272   : > { %v2416_v51 = vpop.f32.mrf.mxu0 }
 0x273   : > { %v2415_v10 = vadd.f32 %v2414_v62, %v2326_v21 }
 0x275   : > { %v2470_v0 = vmax.f32 %v2415_v10, 0.0 }
 0x276   : > { %v2238_v24 = vpop.f32.mrf.mxu2 }
 0x277   : > { %v2239_v27 = vadd.f32 %v2238_v24, %v2150_v18  ;;  %v2327_v57 = vpop.f32.mrf.mxu3 }
 0x278   : > { %v2152_v61 = vpop.f32.mrf.mxu1 }
 0x279   : > { %v2328_v22 = vadd.f32 %v2327_v57, %v2239_v27  ;;  %v2153_v2 = vadd.f32 %v2152_v61, %v4421_v58 }
 0x27a   : > { %v2419_v33 = vpop.f32.mrf.mxu0 }
 0x27b   : > { %v2417_v56 = vadd.f32 %v2416_v51, %v2328_v22 }
 0x27d   : > { %v2471_v30 = vmax.f32 %v2417_v56, 0.0 }
 0x27e   : > { %v2241_v11 = vpop.f32.mrf.mxu2 }
 0x27f   : > { %v3740_v23 = vpack.c.bf16 %v2471_v30, %v2470_v0  ;;  %v2330_v29 = vpop.f32.mrf.mxu3  ;;  %v2242_v12 = vadd.f32 %v2241_v11, %v2153_v2 }
 0x280   : > { %v2154_v32 = vpop.f32.mrf.mxu1 }
 0x281   : > { %3784 = vst [vmem:[%s4529_s23 + $0x40] sm:$0xff] %v3740_v23   ;;  %v2331_v34 = vadd.f32 %v2330_v29, %v2242_v12  ;;  %v2155_v48 = vadd.f32 %v2154_v32, %v4430_v25 }
 0x282   : > { %v2421_v42 = vpop.f32.mrf.mxu0 }
 0x283   : > { %v2420_v3 = vadd.f32 %v2419_v33, %v2331_v34 }
 0x285   : > { %v2472_v13 = vmax.f32 %v2420_v3, 0.0 }
 0x286   : > { %v2243_v14 = vpop.f32.mrf.mxu2 }
 0x287   : > { %v2244_v44 = vadd.f32 %v2243_v14, %v2155_v48  ;;  %v2332_v63 = vpop.f32.mrf.mxu3 }
 0x288   : > { %v2157_v60 = vpop.f32.mrf.mxu1 }
 0x289   : > { %v2333_v28 = vadd.f32 %v2332_v63, %v2244_v44  ;;  %v2158_v38 = vadd.f32 %v2157_v60, %v4435_v49 }
 0x28a   : > { %v2424_v36 = vpop.f32.mrf.mxu0 }
 0x28b   : > { %v2422_v6 = vadd.f32 %v2421_v42, %v2333_v28 }
 0x28d   : > { %v2473_v1 = vmax.f32 %v2422_v6, 0.0 }
 0x28e   : > { %v2246_v58 = vpop.f32.mrf.mxu2 }
 0x28f   : > { %v3745_v54 = vpack.c.bf16 %v2473_v1, %v2472_v13  ;;  %v2335_v31 = vpop.f32.mrf.mxu3  ;;  %v2247_v39 = vadd.f32 %v2246_v58, %v2158_v38 }
 0x290   : > { %v2159_v47 = vpop.f32.mrf.mxu1 }
 0x291   : > { %3785 = vst [vmem:[%s4529_s23 + $0x48] sm:$0xff] %v3745_v54   ;;  %v2336_v5 = vadd.f32 %v2335_v31, %v2247_v39  ;;  %v2160_v17 = vadd.f32 %v2159_v47, %v4444_v19 }
 0x292   : > { %v2426_v25 = vpop.f32.mrf.mxu0 }
 0x293   : > { %v2425_v7 = vadd.f32 %v2424_v36, %v2336_v5 }
 0x295   : > { %v2474_v4 = vmax.f32 %v2425_v7, 0.0 }
 0x296   : > { %v2248_v9 = vpop.f32.mrf.mxu2 }
 0x297   : > { %v2249_v62 = vadd.f32 %v2248_v9, %v2160_v17  ;;  %v2337_v35 = vpop.f32.mrf.mxu3 }
 0x298   : > { %v2162_v53 = vpop.f32.mrf.mxu1 }
 0x299   : > { %v2338_v15 = vadd.f32 %v2337_v35, %v2249_v62  ;;  %v2163_v51 = vadd.f32 %v2162_v53, %v4449_v37 }
 0x29a   : > { %v2429_v55 = vpop.f32.mrf.mxu0 }
 0x29b   : > { %v2427_v43 = vadd.f32 %v2426_v25, %v2338_v15 }
 0x29d   : > { %v2475_v41 = vmax.f32 %v2427_v43, 0.0 }
 0x29e   : > { %v2251_v49 = vpop.f32.mrf.mxu2 }
 0x29f   : > { %v3750_v20 = vpack.c.bf16 %v2475_v41, %v2474_v4  ;;  %v2340_v21 = vpop.f32.mrf.mxu3  ;;  %v2252_v24 = vadd.f32 %v2251_v49, %v2163_v51 }
 0x2a0   : > { %v2164_v18 = vpop.f32.mrf.mxu1 }
 0x2a1   : > { %3786 = vst [vmem:[%s4529_s23 + $0x50] sm:$0xff] %v3750_v20   ;;  %v2341_v27 = vadd.f32 %v2340_v21, %v2252_v24  ;;  %v2165_v57 = vadd.f32 %v2164_v18, %v4458_v40 }
 0x2a2   : > { %v2431_v19 = vpop.f32.mrf.mxu0 }
 0x2a3   : > { %v2430_v56 = vadd.f32 %v2429_v55, %v2341_v27 }
 0x2a5   : > { %v2476_v23 = vmax.f32 %v2430_v56, 0.0 }
 0x2a6   : > { %v2253_v61 = vpop.f32.mrf.mxu2 }
 0x2a7   : > { %v2254_v10 = vadd.f32 %v2253_v61, %v2165_v57  ;;  %v2342_v22 = vpop.f32.mrf.mxu3 }
 0x2a8   : > { %v2167_v33 = vpop.f32.mrf.mxu1 }
 0x2a9   : > { %v2343_v0 = vadd.f32 %v2342_v22, %v2254_v10  ;;  %v2168_v32 = vadd.f32 %v2167_v33, %v4463_v8 }
 0x2aa   : > { %v2434_v30 = vpop.f32.mrf.mxu0 }
 0x2ab   : > { %v2432_v11 = vadd.f32 %v2431_v19, %v2343_v0 }
 0x2ad   : > { %v2477_v2 = vmax.f32 %v2432_v11, 0.0 }
 0x2ae   : > { %v2256_v37 = vpop.f32.mrf.mxu2 }
 0x2af   : > { %v3755_v29 = vpack.c.bf16 %v2477_v2, %v2476_v23  ;;  %v2345_v12 = vpop.f32.mrf.mxu3  ;;  %v2257_v34 = vadd.f32 %v2256_v37, %v2168_v32 }
 0x2b0   : > { %v2169_v42 = vpop.f32.mrf.mxu1 }
 0x2b1   : > { %3787 = vst [vmem:[%s4529_s23 + $0x58] sm:$0xff] %v3755_v29   ;;  %v2346_v48 = vadd.f32 %v2345_v12, %v2257_v34  ;;  %v2170_v14 = vadd.f32 %v2169_v42, %v4472_v52 }
 0x2b2   : > { %v2436_v40 = vpop.f32.mrf.mxu0 }
 0x2b3   : > { %v2435_v28 = vadd.f32 %v2434_v30, %v2346_v48 }
 0x2b5   : > { %v2478_v1 = vmax.f32 %v2435_v28, 0.0 }
 0x2b6   : > { %v2258_v44 = vpop.f32.mrf.mxu2 }
 0x2b7   : > { %v2259_v63 = vadd.f32 %v2258_v44, %v2170_v14  ;;  %v2347_v60 = vpop.f32.mrf.mxu3 }
 0x2b8   : > { %v2172_v3 = vpop.f32.mrf.mxu1 }
 0x2b9   : > { %v2348_v36 = vadd.f32 %v2347_v60, %v2259_v63  ;;  %v2173_v38 = vadd.f32 %v2172_v3, %v4477_v45 }
 0x2ba   : > { %v2439_v6 = vpop.f32.mrf.mxu0 }
 0x2bb   : > { %v2437_v13 = vadd.f32 %v2436_v40, %v2348_v36 }
 0x2bd   : > { %v2479_v58 = vmax.f32 %v2437_v13, 0.0 }
 0x2be   : > { %v2261_v8 = vpop.f32.mrf.mxu2 }
 0x2bf   : > { %v3760_v54 = vpack.c.bf16 %v2479_v58, %v2478_v1  ;;  %v2350_v31 = vpop.f32.mrf.mxu3  ;;  %v2262_v39 = vadd.f32 %v2261_v8, %v2173_v38 }
 0x2c0   : > { %v2174_v47 = vpop.f32.mrf.mxu1 }
 0x2c1   : > { %3788 = vst [vmem:[%s4529_s23 + $0x60] sm:$0xff] %v3760_v54   ;;  %v2351_v25 = vadd.f32 %v2350_v31, %v2262_v39  ;;  %v2175_v5 = vadd.f32 %v2174_v47, %v4486_v46 }
 0x2c2   : > { %v2441_v52 = vpop.f32.mrf.mxu0 }
 0x2c3   : > { %v2440_v53 = vadd.f32 %v2439_v6, %v2351_v25 }
 0x2c5   : > { %v2480_v43 = vmax.f32 %v2440_v53, 0.0 }
 0x2c6   : > { %v2263_v17 = vpop.f32.mrf.mxu2 }
 0x2c7   : > { %v2264_v9 = vadd.f32 %v2263_v17, %v2175_v5  ;;  %v2352_v62 = vpop.f32.mrf.mxu3 }
 0x2c8   : > { %v2177_v35 = vpop.f32.mrf.mxu1 }
 0x2c9   : > { %v2353_v7 = vadd.f32 %v2352_v62, %v2264_v9  ;;  %v2178_v49 = vadd.f32 %v2177_v35, %v4491_v59 }
 0x2ca   : > { %v2444_v55 = vpop.f32.mrf.mxu0 }
 0x2cb   : > { %v2442_v15 = vadd.f32 %v2441_v52, %v2353_v7 }
 0x2cd   : > { %v2481_v4 = vmax.f32 %v2442_v15, 0.0 }
 0x2ce   : > { %v2266_v45 = vpop.f32.mrf.mxu2 }
 0x2cf   : > { %v3765_v41 = vpack.c.bf16 %v2481_v4, %v2480_v43  ;;  %v2355_v20 = vpop.f32.mrf.mxu3  ;;  %v2267_v21 = vadd.f32 %v2266_v45, %v2178_v49 }
 0x2d0   : > { %v2179_v51 = vpop.f32.mrf.mxu1 }
 0x2d1   : > { %3789 = vst [vmem:[%s4529_s23 + $0x68] sm:$0xff] %v3765_v41   ;;  %v2356_v46 = vadd.f32 %v2355_v20, %v2267_v21  ;;  %v2180_v18 = vadd.f32 %v2179_v51, %v4500_v26 }
 0x2d2   : > { %v2446_v24 = vpop.f32.mrf.mxu0 }
 0x2d3   : > { %v2445_v10 = vadd.f32 %v2444_v55, %v2356_v46 }
 0x2d5   : > { %v2482_v56 = vmax.f32 %v2445_v10, 0.0 }
 0x2d6   : > { %v2268_v19 = vpop.f32.mrf.mxu2 }
 0x2d7   : > { %v2269_v27 = vadd.f32 %v2268_v19, %v2180_v18  ;;  %v2357_v57 = vpop.f32.mrf.mxu3 }
 0x2d8   : > { %v2182_v61 = vpop.f32.mrf.mxu1 }
 0x2d9   : > { %v2358_v22 = vadd.f32 %v2357_v57, %v2269_v27  ;;  %v2183_v11 = vadd.f32 %v2182_v61, %v4505_v50 }
 0x2da   : > { %v2449_v2 = vpop.f32.mrf.mxu0 }
 0x2db   : > { %v2447_v33 = vadd.f32 %v2446_v24, %v2358_v22 }
 0x2dd   : > { %v2483_v0 = vmax.f32 %v2447_v33, 0.0 }
 0x2de   : > { %v2271_v30 = vpop.f32.mrf.mxu2 }
 0x2df   : > { %v3770_v59 = vpack.c.bf16 %v2483_v0, %v2482_v56  ;;  %v2360_v23 = vpop.f32.mrf.mxu3  ;;  %v2272_v26 = vadd.f32 %v2271_v30, %v2183_v11 }
 0x2e0   : > { %v2184_v37 = vpop.f32.mrf.mxu1 }
 0x2e1   : > { %3790 = vst [vmem:[%s4529_s23 + $0x70] sm:$0xff] %v3770_v59   ;;  %v2361_v29 = vadd.f32 %v2360_v23, %v2272_v26  ;;  %v2185_v32 = vadd.f32 %v2184_v37, %v4513_v16 }
 0x2e2   : > { %v2451_v14 = vpop.f32.mrf.mxu0 }
 0x2e3   : > { %v2450_v40 = vadd.f32 %v2449_v2, %v2361_v29 }
 0x2e5   : > { %v2484_v63 = vmax.f32 %v2450_v40, 0.0 }
 0x2e6   : > { %v2273_v12 = vpop.f32.mrf.mxu2 }
 0x2e7   : > { %v2274_v42 = vadd.f32 %v2273_v12, %v2185_v32  ;;  %v2362_v34 = vpop.f32.mrf.mxu3 }
 0x2e9   : > { %v2363_v48 = vadd.f32 %v2362_v34, %v2274_v42 }
 0x2eb   : > { %v2452_v44 = vadd.f32 %v2451_v14, %v2363_v48 }
 0x2ed   : > { %v2485_v60 = vmax.f32 %v2452_v44, 0.0 }
 0x2ef   : > { %v3775_v3 = vpack.c.bf16 %v2485_v60, %v2484_v63 }
 0x2f1   : > { %3791 = vst [vmem:[%s4529_s23 + $0x78] sm:$0xff] %v3775_v3  }
 0x2f2 PF: > { %s13_s12 = sadd.s32 1, %s3832_s12  }
 0x2f3   : > { %p10_p4 = scmp.ge.s32.totalorder %s13_s12, 4  }
 0x2f5   :  { %12 = sbr.rel (!%p10_p4) target bundleno = 1 (0x1), region = 62 }

// kernel: reverse
= control target key start
LH: loop header
LB: loop body
LE: loop exit
PB: predicated region body
PF: predicated region fallthrough
CT: control target
= control target key end

     0   :  { %s2110_s6 = smov 0   ;;  %s2112_s7 = smov 0   ;;  %s2426_s0 = inlined_call_operand.vmem [shape: bf16[3,3,512,512], index: 0, kind: input, shape index: {}]   ;;  %s2427_s1 = inlined_call_operand.vmem [shape: bf16[3,3,512,512], index: 1, kind: output, shape index: {}]  }
   0x1   :  { %s2114_s8 = smov 0   ;;  %s2116_s9 = smov 0  }
   0x2   :  { %s2118_s10 = smov 0   ;;  %s2120_s11 = smov 0  }
   0x3   :  { %s2122_s12 = smov 0   ;;  %s2124_s13 = smov 0  }
   0x4   :  { %s2126_s14 = smov 0   ;;  %s2128_s15 = smov 0  }
   0x5   :  { %s2130_s16 = smov 0   ;;  %s2132_s17 = smov 0  }
   0x6   :  { %s2134_s18 = smov 0   ;;  %s2136_s19 = smov 0  }
   0x7   :  { %s2138_s20 = smov 0   ;;  %s2140_s21 = smov 0  }
   0x8   :  { %s2142_s22 = smov 0   ;;  %s2144_s23 = smov 0  }
   0x9   :  { %s2146_s24 = smov 0  }
   0xa LB: > { %s65_s25 = sadd.s32 1, %s2086_s21  ;;  %s69_s26 = sadd.s32 1, %s2090_s22  ;;  %s2098_s24 = sphi %s2146_s24, %s7_s24   ;;  %s2094_s23 = sphi %s2144_s23, %s2446_s23   ;;  %s2090_s22 = sphi %s2142_s22, %s2445_s22   ;;  %s2086_s21 = sphi %s2140_s21, %s2444_s21   ;;  %s2082_s20 = sphi %s2138_s20, %s2443_s20   ;;  %s2078_s19 = sphi %s2136_s19, %s2442_s19   ;;  %s2074_s18 = sphi %s2134_s18, %s2441_s18   ;;  %s2070_s17 = sphi %s2132_s17, %s2440_s17   ;;  %s2066_s16 = sphi %s2130_s16, %s2439_s16   ;;  %s2062_s15 = sphi %s2128_s15, %s2438_s15   ;;  %s2058_s14 = sphi %s2126_s14, %s2437_s14   ;;  %s2054_s13 = sphi %s2124_s13, %s2436_s13   ;;  %s2050_s12 = sphi %s2122_s12, %s2435_s12   ;;  %s2046_s11 = sphi %s2120_s11, %s2434_s11   ;;  %s2042_s10 = sphi %s2118_s10, %s2433_s10   ;;  %s2038_s9 = sphi %s2116_s9, %s2432_s9   ;;  %s2034_s8 = sphi %s2114_s8, %s2431_s8   ;;  %s2030_s7 = sphi %s2112_s7, %s2430_s7   ;;  %s2026_s6 = sphi %s2110_s6, %s2429_s6  }
   0xb   : > { %p67_p0 = scmp.ge.s32.totalorder %s65_s25, 2  ;;  %p1271_p1 = scmp.ge.s32.totalorder %s2098_s24, 5 }
   0xc   : > { %p113_p2 = scmp.lt.s32.totalorder %s2098_s24, 23  ;;  %s73_s27 = sadd.s32 1, %s2094_s23 }
   0xd   : > { %s2448_s25 = smov (%p67_p0, %s65_s25), 0  ;;  %s2450_s26 = smov (!%p67_p0, %s69_s26), %s2090_s22 }
   0xe   : > { %p114_p3 = pnand %p1271_p1, %p113_p2  ;;  %p71_p4 = scmp.ge.s32.totalorder %s2450_s26, 3 }
   0xf   : > { %s159_s28 = ssub.s32 (!%p114_p3), 2, %s2034_s8  ;;  %s160_s29 = ssub.s32 (!%p114_p3), 2, %s2030_s7 }
  0x10   : > { %s2452_s26 = smov (%p71_p4, %s2450_s26), 0  ;;  %s2454_s27 = smov (!%p71_p4, %s73_s27), %s2094_s23 }
  0x11   : > { %p75_p5 = scmp.ge.s32.totalorder %s2454_s27, 3  ;;  %117 = sbr.rel (%p114_p3) target bundleno = 97 (0x61), region = 20 }
  0x12   : > { %s1272_s30 = sshll.u32 (!%p114_p3), %s2026_s6, 5  ;;  %p163_p6 = scmp.lt.s32.totalorder (!%p114_p3), %s159_s28, 2 }
  0x13   : > { %s2456_s27 = smov (%p75_p5, %s2454_s27), 0  ;;  %p165_p7 = scmp.lt.s32.totalorder (!%p114_p3), %s160_s29, 2 }
  0x14   : > { %p167_p8 = scmp.lt.s32.totalorder (!%p114_p3), %s1272_s30, 63  ;;  %p185_p9 = scmp.lt.s32.totalorder (!%p114_p3), %s2034_s8, 2 }
  0x15   : > { %p187_p10 = scmp.lt.s32.totalorder (!%p114_p3), %s2030_s7, 2 }
  0x16   : > { %s2458_s28 = smov (!%p163_p6, %s159_s28), 2  ;;  %s2460_s29 = smov (!%p165_p7, %s160_s29), 2 }
  0x17   : > { %s2462_s30 = smov (!%p167_p8, %s1272_s30), 63  ;;  %s1274_s2 = sshll.u32 %s2460_s29, 8 }
  0x18   : > { %s1794_s3 = smul.u32 768, %s2458_s28  ;;  %s1273_s4 = sshll.u32 %s2462_s30, 2 }
  0x19   : > { %s174_s5 = sadd.s32 %s1274_s2, %s1273_s4  ;;  %s2464_s8 = smov (!%p185_p9, %s2034_s8), 2 }
  0x1a   : > { %s176_s6 = sadd.s32 %s1794_s3, %s174_s5  ;;  %s2466_s7 = smov (!%p187_p10, %s2030_s7), 2 }
  0x1b   : > { %s1275_s28 = sshll.u32 %s176_s6, 2  ;;  %s1795_s8 = smul.u32 768, %s2464_s8 }
  0x1c   : > { %s2226_s2 = scalar_lea.vmem %s2426_s0, %s1275_s28  ;;  %s1278_s7 = sshll.u32 %s2466_s7, 8 }
  0x1d   : > { %s196_s3 = sadd.s32 %s1278_s7, %s1273_s4  ;;  %v1730_v0 = vld [vmem:[%s2226_s2] sm:$0xff]  ;;  %v1731_v1 = vld [vmem:[%s2226_s2 + $0x10] sm:$0xff]  ;;  %v1762_v32 = vld [vmem:[%s2226_s2 + $0x8] sm:$0xff] }
  0x1e   : > { %s198_s4 = sadd.s32 %s1795_s8, %s196_s3  ;;  %v1732_v2 = vld [vmem:[%s2226_s2 + $0x20] sm:$0xff]  ;;  %v1733_v3 = vld [vmem:[%s2226_s2 + $0x30] sm:$0xff]  ;;  %v1763_v33 = vld [vmem:[%s2226_s2 + $0x18] sm:$0xff] }
  0x1f   : > { %s1279_s5 = sshll.u32 %s198_s4, 2  ;;  %v1734_v4 = vld [vmem:[%s2226_s2 + $0x40] sm:$0xff]  ;;  %v1735_v5 = vld [vmem:[%s2226_s2 + $0x50] sm:$0xff]  ;;  %v1764_v34 = vld [vmem:[%s2226_s2 + $0x28] sm:$0xff] }
  0x20   : > { %s2236_s29 = scalar_lea.vmem %s2427_s1, %s1279_s5  ;;  %v1736_v6 = vld [vmem:[%s2226_s2 + $0x60] sm:$0xff]  ;;  %v1737_v7 = vld [vmem:[%s2226_s2 + $0x70] sm:$0xff]  ;;  %v1765_v35 = vld [vmem:[%s2226_s2 + $0x38] sm:$0xff] }
  0x21   : > { %1317 = vst [vmem:[%s2236_s29] sm:$0xff] %v1730_v0  ;;  %v1738_v8 = vld [vmem:[%s2226_s2 + $0x80] sm:$0xff]  ;;  %v1739_v9 = vld [vmem:[%s2226_s2 + $0x90] sm:$0xff]  ;;  %v1766_v36 = vld [vmem:[%s2226_s2 + $0x48] sm:$0xff] }
  0x22   : > { %1323 = vst [vmem:[%s2236_s29 + $0x10] sm:$0xff] %v1731_v1  ;;  %v1740_v10 = vld [vmem:[%s2226_s2 + $0xa0] sm:$0xff]  ;;  %v1741_v11 = vld [vmem:[%s2226_s2 + $0xb0] sm:$0xff]  ;;  %v1767_v37 = vld [vmem:[%s2226_s2 + $0x58] sm:$0xff] }
  0x23   : > { %1329 = vst [vmem:[%s2236_s29 + $0x20] sm:$0xff] %v1732_v2  ;;  %v1742_v12 = vld [vmem:[%s2226_s2 + $0xc0] sm:$0xff]  ;;  %v1743_v13 = vld [vmem:[%s2226_s2 + $0xd0] sm:$0xff]  ;;  %v1768_v38 = vld [vmem:[%s2226_s2 + $0x68] sm:$0xff] }
  0x24   : > { %1335 = vst [vmem:[%s2236_s29 + $0x30] sm:$0xff] %v1733_v3  ;;  %v1744_v14 = vld [vmem:[%s2226_s2 + $0xe0] sm:$0xff]  ;;  %v1745_v15 = vld [vmem:[%s2226_s2 + $0xf0] sm:$0xff]  ;;  %v1769_v39 = vld [vmem:[%s2226_s2 + $0x78] sm:$0xff] }
  0x25   : > { %1341 = vst [vmem:[%s2236_s29 + $0x40] sm:$0xff] %v1734_v4  ;;  %v1746_v16 = vld [vmem:[%s2226_s2 + $0x100] sm:$0xff]  ;;  %v1747_v17 = vld [vmem:[%s2226_s2 + $0x110] sm:$0xff]  ;;  %v1770_v40 = vld [vmem:[%s2226_s2 + $0x88] sm:$0xff] }
  0x26   : > { %1347 = vst [vmem:[%s2236_s29 + $0x50] sm:$0xff] %v1735_v5  ;;  %v1748_v18 = vld [vmem:[%s2226_s2 + $0x120] sm:$0xff]  ;;  %v1749_v19 = vld [vmem:[%s2226_s2 + $0x130] sm:$0xff]  ;;  %v1771_v41 = vld [vmem:[%s2226_s2 + $0x98] sm:$0xff] }
  0x27   : > { %1353 = vst [vmem:[%s2236_s29 + $0x60] sm:$0xff] %v1736_v6  ;;  %v1750_v20 = vld [vmem:[%s2226_s2 + $0x140] sm:$0xff]  ;;  %v1751_v21 = vld [vmem:[%s2226_s2 + $0x150] sm:$0xff]  ;;  %v1772_v42 = vld [vmem:[%s2226_s2 + $0xa8] sm:$0xff] }
  0x28   : > { %1359 = vst [vmem:[%s2236_s29 + $0x70] sm:$0xff] %v1737_v7  ;;  %v1752_v22 = vld [vmem:[%s2226_s2 + $0x160] sm:$0xff]  ;;  %v1753_v23 = vld [vmem:[%s2226_s2 + $0x170] sm:$0xff]  ;;  %v1773_v43 = vld [vmem:[%s2226_s2 + $0xb8] sm:$0xff] }
  0x29   : > { %1365 = vst [vmem:[%s2236_s29 + $0x80] sm:$0xff] %v1738_v8  ;;  %v1754_v24 = vld [vmem:[%s2226_s2 + $0x180] sm:$0xff]  ;;  %v1755_v25 = vld [vmem:[%s2226_s2 + $0x190] sm:$0xff]  ;;  %v1774_v44 = vld [vmem:[%s2226_s2 + $0xc8] sm:$0xff] }
  0x2a   : > { %1371 = vst [vmem:[%s2236_s29 + $0x90] sm:$0xff] %v1739_v9  ;;  %v1756_v26 = vld [vmem:[%s2226_s2 + $0x1a0] sm:$0xff]  ;;  %v1757_v27 = vld [vmem:[%s2226_s2 + $0x1b0] sm:$0xff]  ;;  %v1775_v45 = vld [vmem:[%s2226_s2 + $0xd8] sm:$0xff] }
  0x2b   : > { %1377 = vst [vmem:[%s2236_s29 + $0xa0] sm:$0xff] %v1740_v10  ;;  %v1758_v28 = vld [vmem:[%s2226_s2 + $0x1c0] sm:$0xff]  ;;  %v1759_v29 = vld [vmem:[%s2226_s2 + $0x1d0] sm:$0xff]  ;;  %v1776_v46 = vld [vmem:[%s2226_s2 + $0xe8] sm:$0xff] }
  0x2c   : > { %1383 = vst [vmem:[%s2236_s29 + $0xb0] sm:$0xff] %v1741_v11  ;;  %v1760_v30 = vld [vmem:[%s2226_s2 + $0x1e0] sm:$0xff]  ;;  %v1761_v31 = vld [vmem:[%s2226_s2 + $0x1f0] sm:$0xff]  ;;  %v1777_v47 = vld [vmem:[%s2226_s2 + $0xf8] sm:$0xff] }
  0x2d   : > { %1389 = vst [vmem:[%s2236_s29 + $0xc0] sm:$0xff] %v1742_v12  ;;  %v1778_v48 = vld [vmem:[%s2226_s2 + $0x108] sm:$0xff]  ;;  %v1779_v49 = vld [vmem:[%s2226_s2 + $0x118] sm:$0xff] }
  0x2e   : > { %1395 = vst [vmem:[%s2236_s29 + $0xd0] sm:$0xff] %v1743_v13  ;;  %v1780_v50 = vld [vmem:[%s2226_s2 + $0x128] sm:$0xff]  ;;  %v1781_v51 = vld [vmem:[%s2226_s2 + $0x138] sm:$0xff] }
  0x2f   : > { %1401 = vst [vmem:[%s2236_s29 + $0xe0] sm:$0xff] %v1744_v14  ;;  %v1782_v52 = vld [vmem:[%s2226_s2 + $0x148] sm:$0xff]  ;;  %v1783_v53 = vld [vmem:[%s2226_s2 + $0x158] sm:$0xff] }
  0x30   : > { %1407 = vst [vmem:[%s2236_s29 + $0xf0] sm:$0xff] %v1745_v15  ;;  %v1784_v54 = vld [vmem:[%s2226_s2 + $0x168] sm:$0xff]  ;;  %v1785_v55 = vld [vmem:[%s2226_s2 + $0x178] sm:$0xff] }
  0x31   : > { %1413 = vst [vmem:[%s2236_s29 + $0x100] sm:$0xff] %v1746_v16  ;;  %v1786_v56 = vld [vmem:[%s2226_s2 + $0x188] sm:$0xff]  ;;  %v1787_v57 = vld [vmem:[%s2226_s2 + $0x198] sm:$0xff] }
  0x32   : > { %1419 = vst [vmem:[%s2236_s29 + $0x110] sm:$0xff] %v1747_v17  ;;  %v1788_v58 = vld [vmem:[%s2226_s2 + $0x1a8] sm:$0xff]  ;;  %v1789_v59 = vld [vmem:[%s2226_s2 + $0x1b8] sm:$0xff] }
  0x33   : > { %1425 = vst [vmem:[%s2236_s29 + $0x120] sm:$0xff] %v1748_v18  ;;  %v1790_v60 = vld [vmem:[%s2226_s2 + $0x1c8] sm:$0xff]  ;;  %v1791_v61 = vld [vmem:[%s2226_s2 + $0x1d8] sm:$0xff] }
  0x34   : > { %1431 = vst [vmem:[%s2236_s29 + $0x130] sm:$0xff] %v1749_v19  ;;  %v1792_v62 = vld [vmem:[%s2226_s2 + $0x1e8] sm:$0xff]  ;;  %v1793_v63 = vld [vmem:[%s2226_s2 + $0x1f8] sm:$0xff] }
  0x35   : > { %1437 = vst [vmem:[%s2236_s29 + $0x140] sm:$0xff] %v1750_v20 }
  0x36   : > { %1443 = vst [vmem:[%s2236_s29 + $0x150] sm:$0xff] %v1751_v21 }
  0x37   : > { %1449 = vst [vmem:[%s2236_s29 + $0x160] sm:$0xff] %v1752_v22 }
  0x38   : > { %1455 = vst [vmem:[%s2236_s29 + $0x170] sm:$0xff] %v1753_v23 }
  0x39   : > { %1461 = vst [vmem:[%s2236_s29 + $0x180] sm:$0xff] %v1754_v24 }
  0x3a   : > { %1467 = vst [vmem:[%s2236_s29 + $0x190] sm:$0xff] %v1755_v25 }
  0x3b   : > { %1473 = vst [vmem:[%s2236_s29 + $0x1a0] sm:$0xff] %v1756_v26 }
  0x3c   : > { %1479 = vst [vmem:[%s2236_s29 + $0x1b0] sm:$0xff] %v1757_v27 }
  0x3d   : > { %1485 = vst [vmem:[%s2236_s29 + $0x1c0] sm:$0xff] %v1758_v28 }
  0x3e   : > { %1491 = vst [vmem:[%s2236_s29 + $0x1d0] sm:$0xff] %v1759_v29 }
  0x3f   : > { %1497 = vst [vmem:[%s2236_s29 + $0x1e0] sm:$0xff] %v1760_v30 }
  0x40   : > { %1503 = vst [vmem:[%s2236_s29 + $0x1f0] sm:$0xff] %v1761_v31 }
  0x41   : > { %1541 = vst [vmem:[%s2236_s29 + $0x8] sm:$0xff] %v1762_v32 }
  0x42   : > { %1547 = vst [vmem:[%s2236_s29 + $0x18] sm:$0xff] %v1763_v33 }
  0x43   : > { %1553 = vst [vmem:[%s2236_s29 + $0x28] sm:$0xff] %v1764_v34 }
  0x44   : > { %1559 = vst [vmem:[%s2236_s29 + $0x38] sm:$0xff] %v1765_v35 }
  0x45   : > { %1565 = vst [vmem:[%s2236_s29 + $0x48] sm:$0xff] %v1766_v36 }
  0x46   : > { %1571 = vst [vmem:[%s2236_s29 + $0x58] sm:$0xff] %v1767_v37 }
  0x47   : > { %1577 = vst [vmem:[%s2236_s29 + $0x68] sm:$0xff] %v1768_v38 }
  0x48   : > { %1583 = vst [vmem:[%s2236_s29 + $0x78] sm:$0xff] %v1769_v39 }
  0x49   : > { %1589 = vst [vmem:[%s2236_s29 + $0x88] sm:$0xff] %v1770_v40 }
  0x4a   : > { %1595 = vst [vmem:[%s2236_s29 + $0x98] sm:$0xff] %v1771_v41 }
  0x4b   : > { %1601 = vst [vmem:[%s2236_s29 + $0xa8] sm:$0xff] %v1772_v42 }
  0x4c   : > { %1607 = vst [vmem:[%s2236_s29 + $0xb8] sm:$0xff] %v1773_v43 }
  0x4d   : > { %1613 = vst [vmem:[%s2236_s29 + $0xc8] sm:$0xff] %v1774_v44 }
  0x4e   : > { %1619 = vst [vmem:[%s2236_s29 + $0xd8] sm:$0xff] %v1775_v45 }
  0x4f   : > { %1625 = vst [vmem:[%s2236_s29 + $0xe8] sm:$0xff] %v1776_v46 }
  0x50   : > { %1631 = vst [vmem:[%s2236_s29 + $0xf8] sm:$0xff] %v1777_v47 }
  0x51   : > { %1637 = vst [vmem:[%s2236_s29 + $0x108] sm:$0xff] %v1778_v48 }
  0x52   : > { %1643 = vst [vmem:[%s2236_s29 + $0x118] sm:$0xff] %v1779_v49 }
  0x53   : > { %1649 = vst [vmem:[%s2236_s29 + $0x128] sm:$0xff] %v1780_v50 }
  0x54   : > { %1655 = vst [vmem:[%s2236_s29 + $0x138] sm:$0xff] %v1781_v51 }
  0x55   : > { %1661 = vst [vmem:[%s2236_s29 + $0x148] sm:$0xff] %v1782_v52 }
  0x56   : > { %1667 = vst [vmem:[%s2236_s29 + $0x158] sm:$0xff] %v1783_v53 }
  0x57   : > { %1673 = vst [vmem:[%s2236_s29 + $0x168] sm:$0xff] %v1784_v54 }
  0x58   : > { %1679 = vst [vmem:[%s2236_s29 + $0x178] sm:$0xff] %v1785_v55 }
  0x59   : > { %1685 = vst [vmem:[%s2236_s29 + $0x188] sm:$0xff] %v1786_v56 }
  0x5a   : > { %1691 = vst [vmem:[%s2236_s29 + $0x198] sm:$0xff] %v1787_v57 }
  0x5b   : > { %1697 = vst [vmem:[%s2236_s29 + $0x1a8] sm:$0xff] %v1788_v58 }
  0x5c   : > { %1703 = vst [vmem:[%s2236_s29 + $0x1b8] sm:$0xff] %v1789_v59 }
  0x5d   : > { %1709 = vst [vmem:[%s2236_s29 + $0x1c8] sm:$0xff] %v1790_v60 }
  0x5e   : > { %1715 = vst [vmem:[%s2236_s29 + $0x1d8] sm:$0xff] %v1791_v61 }
  0x5f   : > { %1721 = vst [vmem:[%s2236_s29 + $0x1e8] sm:$0xff] %v1792_v62 }
  0x60   : > { %1727 = vst [vmem:[%s2236_s29 + $0x1f8] sm:$0xff] %v1793_v63 }
  0x61 PF: > { %s7_s24 = sadd.s32 1, %s2098_s24   ;;  %s2429_s6 = smov %s2038_s9 }
  0x62   : > { %p2364_p11 = scmp.ge.s32.totalorder %s7_s24, 28   ;;  %s2430_s7 = smov %s2042_s10 }
  0x63   : > { %s2431_s8 = smov %s2046_s11  ;;  %s2432_s9 = smov %s2050_s12 }
  0x64   : > { %s2433_s10 = smov %s2054_s13  ;;  %s2434_s11 = smov %s2058_s14 }
  0x65   : > { %s2435_s12 = smov %s2062_s15  ;;  %s2436_s13 = smov %s2066_s16 }
  0x66   : > { %s2437_s14 = smov %s2070_s17  ;;  %s2438_s15 = smov %s2074_s18 }
  0x67   : > { %s2439_s16 = smov %s2078_s19  ;;  %s2440_s17 = smov %s2082_s20 }
  0x68   : > { %s2441_s18 = smov %s2086_s21  ;;  %s2442_s19 = smov %s2090_s22 }
  0x69   : > { %s2443_s20 = smov %s2094_s23  ;;  %s2444_s21 = smov %s2448_s25 }
  0x6a   : > { %s2445_s22 = smov %s2452_s26  ;;  %s2446_s23 = smov %s2456_s27 }
  0x6b   :  { %6 = sbr.rel (!%p2364_p11) target bundleno = 10 (0xa), region = 359 }

// kernel: reverse.3
= control target key start
LH: loop header
LB: loop body
LE: loop exit
PB: predicated region body
PF: predicated region fallthrough
CT: control target
= control target key end

     0   :  { %s2110_s6 = smov 0   ;;  %s2112_s7 = smov 0   ;;  %s2426_s0 = inlined_call_operand.vmem [shape: bf16[3,3,512,1024], index: 0, kind: input, shape index: {}]   ;;  %s2427_s1 = inlined_call_operand.vmem [shape: bf16[3,3,512,1024], index: 1, kind: output, shape index: {}]  }
   0x1   :  { %s2114_s8 = smov 0   ;;  %s2116_s9 = smov 0  }
   0x2   :  { %s2118_s10 = smov 0   ;;  %s2120_s11 = smov 0  }
   0x3   :  { %s2122_s12 = smov 0   ;;  %s2124_s13 = smov 0  }
   0x4   :  { %s2126_s14 = smov 0   ;;  %s2128_s15 = smov 0  }
   0x5   :  { %s2130_s16 = smov 0   ;;  %s2132_s17 = smov 0  }
   0x6   :  { %s2134_s18 = smov 0   ;;  %s2136_s19 = smov 0  }
   0x7   :  { %s2138_s20 = smov 0   ;;  %s2140_s21 = smov 0  }
   0x8   :  { %s2142_s22 = smov 0   ;;  %s2144_s23 = smov 0  }
   0x9   :  { %s2146_s24 = smov 0  }
   0xa LB: > { %s65_s25 = sadd.s32 1, %s2086_s21  ;;  %s69_s26 = sadd.s32 1, %s2090_s22  ;;  %s2098_s24 = sphi %s2146_s24, %s7_s24   ;;  %s2094_s23 = sphi %s2144_s23, %s2446_s23   ;;  %s2090_s22 = sphi %s2142_s22, %s2445_s22   ;;  %s2086_s21 = sphi %s2140_s21, %s2444_s21   ;;  %s2082_s20 = sphi %s2138_s20, %s2443_s20   ;;  %s2078_s19 = sphi %s2136_s19, %s2442_s19   ;;  %s2074_s18 = sphi %s2134_s18, %s2441_s18   ;;  %s2070_s17 = sphi %s2132_s17, %s2440_s17   ;;  %s2066_s16 = sphi %s2130_s16, %s2439_s16   ;;  %s2062_s15 = sphi %s2128_s15, %s2438_s15   ;;  %s2058_s14 = sphi %s2126_s14, %s2437_s14   ;;  %s2054_s13 = sphi %s2124_s13, %s2436_s13   ;;  %s2050_s12 = sphi %s2122_s12, %s2435_s12   ;;  %s2046_s11 = sphi %s2120_s11, %s2434_s11   ;;  %s2042_s10 = sphi %s2118_s10, %s2433_s10   ;;  %s2038_s9 = sphi %s2116_s9, %s2432_s9   ;;  %s2034_s8 = sphi %s2114_s8, %s2431_s8   ;;  %s2030_s7 = sphi %s2112_s7, %s2430_s7   ;;  %s2026_s6 = sphi %s2110_s6, %s2429_s6  }
   0xb   : > { %p67_p0 = scmp.ge.s32.totalorder %s65_s25, 4  ;;  %p1271_p1 = scmp.ge.s32.totalorder %s2098_s24, 5 }
   0xc   : > { %p113_p2 = scmp.lt.s32.totalorder %s2098_s24, 41  ;;  %s73_s27 = sadd.s32 1, %s2094_s23 }
   0xd   : > { %s2448_s25 = smov (%p67_p0, %s65_s25), 0  ;;  %s2450_s26 = smov (!%p67_p0, %s69_s26), %s2090_s22 }
   0xe   : > { %p114_p3 = pnand %p1271_p1, %p113_p2  ;;  %p71_p4 = scmp.ge.s32.totalorder %s2450_s26, 3 }
   0xf   : > { %s159_s28 = ssub.s32 (!%p114_p3), 2, %s2034_s8  ;;  %s160_s29 = ssub.s32 (!%p114_p3), 2, %s2030_s7 }
  0x10   : > { %s2452_s26 = smov (%p71_p4, %s2450_s26), 0  ;;  %s2454_s27 = smov (!%p71_p4, %s73_s27), %s2094_s23 }
  0x11   : > { %p75_p5 = scmp.ge.s32.totalorder %s2454_s27, 3  ;;  %117 = sbr.rel (%p114_p3) target bundleno = 97 (0x61), region = 20 }
  0x12   : > { %s1272_s30 = sshll.u32 (!%p114_p3), %s2026_s6, 4  ;;  %p163_p6 = scmp.lt.s32.totalorder (!%p114_p3), %s159_s28, 2 }
  0x13   : > { %s2456_s27 = smov (%p75_p5, %s2454_s27), 0  ;;  %p165_p7 = scmp.lt.s32.totalorder (!%p114_p3), %s160_s29, 2 }
  0x14   : > { %p167_p8 = scmp.lt.s32.totalorder (!%p114_p3), %s1272_s30, 63  ;;  %p185_p9 = scmp.lt.s32.totalorder (!%p114_p3), %s2034_s8, 2 }
  0x15   : > { %p187_p10 = scmp.lt.s32.totalorder (!%p114_p3), %s2030_s7, 2 }
  0x16   : > { %s2458_s28 = smov (!%p163_p6, %s159_s28), 2  ;;  %s2460_s29 = smov (!%p165_p7, %s160_s29), 2 }
  0x17   : > { %s2462_s30 = smov (!%p167_p8, %s1272_s30), 63  ;;  %s1274_s2 = sshll.u32 %s2460_s29, 9 }
  0x18   : > { %s1794_s3 = smul.u32 1536, %s2458_s28  ;;  %s1273_s4 = sshll.u32 %s2462_s30, 3 }
  0x19   : > { %s174_s5 = sadd.s32 %s1274_s2, %s1273_s4  ;;  %s2464_s8 = smov (!%p185_p9, %s2034_s8), 2 }
  0x1a   : > { %s176_s6 = sadd.s32 %s1794_s3, %s174_s5  ;;  %s2466_s7 = smov (!%p187_p10, %s2030_s7), 2 }
  0x1b   : > { %s1275_s28 = sshll.u32 %s176_s6, 2  ;;  %s1795_s8 = smul.u32 1536, %s2464_s8 }
  0x1c   : > { %s2226_s2 = scalar_lea.vmem %s2426_s0, %s1275_s28  ;;  %s1278_s7 = sshll.u32 %s2466_s7, 9 }
  0x1d   : > { %s196_s3 = sadd.s32 %s1278_s7, %s1273_s4  ;;  %v1730_v0 = vld [vmem:[%s2226_s2] sm:$0xff]  ;;  %v1746_v16 = vld [vmem:[%s2226_s2 + $0x8] sm:$0xff]  ;;  %v1762_v32 = vld [vmem:[%s2226_s2 + $0x10] sm:$0xff] }
  0x1e   : > { %s198_s4 = sadd.s32 %s1795_s8, %s196_s3  ;;  %v1731_v1 = vld [vmem:[%s2226_s2 + $0x20] sm:$0xff]  ;;  %v1747_v17 = vld [vmem:[%s2226_s2 + $0x28] sm:$0xff]  ;;  %v1763_v33 = vld [vmem:[%s2226_s2 + $0x30] sm:$0xff] }
  0x1f   : > { %s1279_s5 = sshll.u32 %s198_s4, 2  ;;  %v1732_v2 = vld [vmem:[%s2226_s2 + $0x40] sm:$0xff]  ;;  %v1748_v18 = vld [vmem:[%s2226_s2 + $0x48] sm:$0xff]  ;;  %v1764_v34 = vld [vmem:[%s2226_s2 + $0x50] sm:$0xff] }
  0x20   : > { %s2236_s29 = scalar_lea.vmem %s2427_s1, %s1279_s5  ;;  %v1733_v3 = vld [vmem:[%s2226_s2 + $0x60] sm:$0xff]  ;;  %v1749_v19 = vld [vmem:[%s2226_s2 + $0x68] sm:$0xff]  ;;  %v1765_v35 = vld [vmem:[%s2226_s2 + $0x70] sm:$0xff] }
  0x21   : > { %1301 = vst [vmem:[%s2236_s29] sm:$0xff] %v1730_v0  ;;  %v1734_v4 = vld [vmem:[%s2226_s2 + $0x80] sm:$0xff]  ;;  %v1750_v20 = vld [vmem:[%s2226_s2 + $0x88] sm:$0xff]  ;;  %v1766_v36 = vld [vmem:[%s2226_s2 + $0x90] sm:$0xff] }
  0x22   : > { %1307 = vst [vmem:[%s2236_s29 + $0x20] sm:$0xff] %v1731_v1  ;;  %v1735_v5 = vld [vmem:[%s2226_s2 + $0xa0] sm:$0xff]  ;;  %v1751_v21 = vld [vmem:[%s2226_s2 + $0xa8] sm:$0xff]  ;;  %v1767_v37 = vld [vmem:[%s2226_s2 + $0xb0] sm:$0xff] }
  0x23   : > { %1313 = vst [vmem:[%s2236_s29 + $0x40] sm:$0xff] %v1732_v2  ;;  %v1736_v6 = vld [vmem:[%s2226_s2 + $0xc0] sm:$0xff]  ;;  %v1752_v22 = vld [vmem:[%s2226_s2 + $0xc8] sm:$0xff]  ;;  %v1768_v38 = vld [vmem:[%s2226_s2 + $0xd0] sm:$0xff] }
  0x24   : > { %1319 = vst [vmem:[%s2236_s29 + $0x60] sm:$0xff] %v1733_v3  ;;  %v1737_v7 = vld [vmem:[%s2226_s2 + $0xe0] sm:$0xff]  ;;  %v1753_v23 = vld [vmem:[%s2226_s2 + $0xe8] sm:$0xff]  ;;  %v1769_v39 = vld [vmem:[%s2226_s2 + $0xf0] sm:$0xff] }
  0x25   : > { %1325 = vst [vmem:[%s2236_s29 + $0x80] sm:$0xff] %v1734_v4  ;;  %v1738_v8 = vld [vmem:[%s2226_s2 + $0x100] sm:$0xff]  ;;  %v1754_v24 = vld [vmem:[%s2226_s2 + $0x108] sm:$0xff]  ;;  %v1770_v40 = vld [vmem:[%s2226_s2 + $0x110] sm:$0xff] }
  0x26   : > { %1331 = vst [vmem:[%s2236_s29 + $0xa0] sm:$0xff] %v1735_v5  ;;  %v1739_v9 = vld [vmem:[%s2226_s2 + $0x120] sm:$0xff]  ;;  %v1755_v25 = vld [vmem:[%s2226_s2 + $0x128] sm:$0xff]  ;;  %v1771_v41 = vld [vmem:[%s2226_s2 + $0x130] sm:$0xff] }
  0x27   : > { %1337 = vst [vmem:[%s2236_s29 + $0xc0] sm:$0xff] %v1736_v6  ;;  %v1740_v10 = vld [vmem:[%s2226_s2 + $0x140] sm:$0xff]  ;;  %v1756_v26 = vld [vmem:[%s2226_s2 + $0x148] sm:$0xff]  ;;  %v1772_v42 = vld [vmem:[%s2226_s2 + $0x150] sm:$0xff] }
  0x28   : > { %1343 = vst [vmem:[%s2236_s29 + $0xe0] sm:$0xff] %v1737_v7  ;;  %v1741_v11 = vld [vmem:[%s2226_s2 + $0x160] sm:$0xff]  ;;  %v1757_v27 = vld [vmem:[%s2226_s2 + $0x168] sm:$0xff]  ;;  %v1773_v43 = vld [vmem:[%s2226_s2 + $0x170] sm:$0xff] }
  0x29   : > { %1349 = vst [vmem:[%s2236_s29 + $0x100] sm:$0xff] %v1738_v8  ;;  %v1742_v12 = vld [vmem:[%s2226_s2 + $0x180] sm:$0xff]  ;;  %v1758_v28 = vld [vmem:[%s2226_s2 + $0x188] sm:$0xff]  ;;  %v1774_v44 = vld [vmem:[%s2226_s2 + $0x190] sm:$0xff] }
  0x2a   : > { %1355 = vst [vmem:[%s2236_s29 + $0x120] sm:$0xff] %v1739_v9  ;;  %v1743_v13 = vld [vmem:[%s2226_s2 + $0x1a0] sm:$0xff]  ;;  %v1759_v29 = vld [vmem:[%s2226_s2 + $0x1a8] sm:$0xff]  ;;  %v1775_v45 = vld [vmem:[%s2226_s2 + $0x1b0] sm:$0xff] }
  0x2b   : > { %1361 = vst [vmem:[%s2236_s29 + $0x140] sm:$0xff] %v1740_v10  ;;  %v1744_v14 = vld [vmem:[%s2226_s2 + $0x1c0] sm:$0xff]  ;;  %v1760_v30 = vld [vmem:[%s2226_s2 + $0x1c8] sm:$0xff]  ;;  %v1776_v46 = vld [vmem:[%s2226_s2 + $0x1d0] sm:$0xff] }
  0x2c   : > { %1367 = vst [vmem:[%s2236_s29 + $0x160] sm:$0xff] %v1741_v11  ;;  %v1745_v15 = vld [vmem:[%s2226_s2 + $0x1e0] sm:$0xff]  ;;  %v1761_v31 = vld [vmem:[%s2226_s2 + $0x1e8] sm:$0xff]  ;;  %v1777_v47 = vld [vmem:[%s2226_s2 + $0x1f0] sm:$0xff] }
  0x2d   : > { %1373 = vst [vmem:[%s2236_s29 + $0x180] sm:$0xff] %v1742_v12  ;;  %v1778_v48 = vld [vmem:[%s2226_s2 + $0x18] sm:$0xff] }
  0x2e   : > { %1379 = vst [vmem:[%s2236_s29 + $0x1a0] sm:$0xff] %v1743_v13  ;;  %v1779_v49 = vld [vmem:[%s2226_s2 + $0x38] sm:$0xff] }
  0x2f   : > { %1385 = vst [vmem:[%s2236_s29 + $0x1c0] sm:$0xff] %v1744_v14  ;;  %v1780_v50 = vld [vmem:[%s2226_s2 + $0x58] sm:$0xff] }
  0x30   : > { %1391 = vst [vmem:[%s2236_s29 + $0x1e0] sm:$0xff] %v1745_v15  ;;  %v1781_v51 = vld [vmem:[%s2226_s2 + $0x78] sm:$0xff] }
  0x31   : > { %1413 = vst [vmem:[%s2236_s29 + $0x8] sm:$0xff] %v1746_v16  ;;  %v1782_v52 = vld [vmem:[%s2226_s2 + $0x98] sm:$0xff] }
  0x32   : > { %1419 = vst [vmem:[%s2236_s29 + $0x28] sm:$0xff] %v1747_v17  ;;  %v1783_v53 = vld [vmem:[%s2226_s2 + $0xb8] sm:$0xff] }
  0x33   : > { %1425 = vst [vmem:[%s2236_s29 + $0x48] sm:$0xff] %v1748_v18  ;;  %v1784_v54 = vld [vmem:[%s2226_s2 + $0xd8] sm:$0xff] }
  0x34   : > { %1431 = vst [vmem:[%s2236_s29 + $0x68] sm:$0xff] %v1749_v19  ;;  %v1785_v55 = vld [vmem:[%s2226_s2 + $0xf8] sm:$0xff] }
  0x35   : > { %1437 = vst [vmem:[%s2236_s29 + $0x88] sm:$0xff] %v1750_v20  ;;  %v1786_v56 = vld [vmem:[%s2226_s2 + $0x118] sm:$0xff] }
  0x36   : > { %1443 = vst [vmem:[%s2236_s29 + $0xa8] sm:$0xff] %v1751_v21  ;;  %v1787_v57 = vld [vmem:[%s2226_s2 + $0x138] sm:$0xff] }
  0x37   : > { %1449 = vst [vmem:[%s2236_s29 + $0xc8] sm:$0xff] %v1752_v22  ;;  %v1788_v58 = vld [vmem:[%s2226_s2 + $0x158] sm:$0xff] }
  0x38   : > { %1455 = vst [vmem:[%s2236_s29 + $0xe8] sm:$0xff] %v1753_v23  ;;  %v1789_v59 = vld [vmem:[%s2226_s2 + $0x178] sm:$0xff] }
  0x39   : > { %1461 = vst [vmem:[%s2236_s29 + $0x108] sm:$0xff] %v1754_v24  ;;  %v1790_v60 = vld [vmem:[%s2226_s2 + $0x198] sm:$0xff] }
  0x3a   : > { %1467 = vst [vmem:[%s2236_s29 + $0x128] sm:$0xff] %v1755_v25  ;;  %v1791_v61 = vld [vmem:[%s2226_s2 + $0x1b8] sm:$0xff] }
  0x3b   : > { %1473 = vst [vmem:[%s2236_s29 + $0x148] sm:$0xff] %v1756_v26  ;;  %v1792_v62 = vld [vmem:[%s2226_s2 + $0x1d8] sm:$0xff] }
  0x3c   : > { %1479 = vst [vmem:[%s2236_s29 + $0x168] sm:$0xff] %v1757_v27  ;;  %v1793_v63 = vld [vmem:[%s2226_s2 + $0x1f8] sm:$0xff] }
  0x3d   : > { %1485 = vst [vmem:[%s2236_s29 + $0x188] sm:$0xff] %v1758_v28 }
  0x3e   : > { %1491 = vst [vmem:[%s2236_s29 + $0x1a8] sm:$0xff] %v1759_v29 }
  0x3f   : > { %1497 = vst [vmem:[%s2236_s29 + $0x1c8] sm:$0xff] %v1760_v30 }
  0x40   : > { %1503 = vst [vmem:[%s2236_s29 + $0x1e8] sm:$0xff] %v1761_v31 }
  0x41   : > { %1525 = vst [vmem:[%s2236_s29 + $0x10] sm:$0xff] %v1762_v32 }
  0x42   : > { %1531 = vst [vmem:[%s2236_s29 + $0x30] sm:$0xff] %v1763_v33 }
  0x43   : > { %1537 = vst [vmem:[%s2236_s29 + $0x50] sm:$0xff] %v1764_v34 }
  0x44   : > { %1543 = vst [vmem:[%s2236_s29 + $0x70] sm:$0xff] %v1765_v35 }
  0x45   : > { %1549 = vst [vmem:[%s2236_s29 + $0x90] sm:$0xff] %v1766_v36 }
  0x46   : > { %1555 = vst [vmem:[%s2236_s29 + $0xb0] sm:$0xff] %v1767_v37 }
  0x47   : > { %1561 = vst [vmem:[%s2236_s29 + $0xd0] sm:$0xff] %v1768_v38 }
  0x48   : > { %1567 = vst [vmem:[%s2236_s29 + $0xf0] sm:$0xff] %v1769_v39 }
  0x49   : > { %1573 = vst [vmem:[%s2236_s29 + $0x110] sm:$0xff] %v1770_v40 }
  0x4a   : > { %1579 = vst [vmem:[%s2236_s29 + $0x130] sm:$0xff] %v1771_v41 }
  0x4b   : > { %1585 = vst [vmem:[%s2236_s29 + $0x150] sm:$0xff] %v1772_v42 }
  0x4c   : > { %1591 = vst [vmem:[%s2236_s29 + $0x170] sm:$0xff] %v1773_v43 }
  0x4d   : > { %1597 = vst [vmem:[%s2236_s29 + $0x190] sm:$0xff] %v1774_v44 }
  0x4e   : > { %1603 = vst [vmem:[%s2236_s29 + $0x1b0] sm:$0xff] %v1775_v45 }
  0x4f   : > { %1609 = vst [vmem:[%s2236_s29 + $0x1d0] sm:$0xff] %v1776_v46 }
  0x50   : > { %1615 = vst [vmem:[%s2236_s29 + $0x1f0] sm:$0xff] %v1777_v47 }
  0x51   : > { %1637 = vst [vmem:[%s2236_s29 + $0x18] sm:$0xff] %v1778_v48 }
  0x52   : > { %1643 = vst [vmem:[%s2236_s29 + $0x38] sm:$0xff] %v1779_v49 }
  0x53   : > { %1649 = vst [vmem:[%s2236_s29 + $0x58] sm:$0xff] %v1780_v50 }
  0x54   : > { %1655 = vst [vmem:[%s2236_s29 + $0x78] sm:$0xff] %v1781_v51 }
  0x55   : > { %1661 = vst [vmem:[%s2236_s29 + $0x98] sm:$0xff] %v1782_v52 }
  0x56   : > { %1667 = vst [vmem:[%s2236_s29 + $0xb8] sm:$0xff] %v1783_v53 }
  0x57   : > { %1673 = vst [vmem:[%s2236_s29 + $0xd8] sm:$0xff] %v1784_v54 }
  0x58   : > { %1679 = vst [vmem:[%s2236_s29 + $0xf8] sm:$0xff] %v1785_v55 }
  0x59   : > { %1685 = vst [vmem:[%s2236_s29 + $0x118] sm:$0xff] %v1786_v56 }
  0x5a   : > { %1691 = vst [vmem:[%s2236_s29 + $0x138] sm:$0xff] %v1787_v57 }
  0x5b   : > { %1697 = vst [vmem:[%s2236_s29 + $0x158] sm:$0xff] %v1788_v58 }
  0x5c   : > { %1703 = vst [vmem:[%s2236_s29 + $0x178] sm:$0xff] %v1789_v59 }
  0x5d   : > { %1709 = vst [vmem:[%s2236_s29 + $0x198] sm:$0xff] %v1790_v60 }
  0x5e   : > { %1715 = vst [vmem:[%s2236_s29 + $0x1b8] sm:$0xff] %v1791_v61 }
  0x5f   : > { %1721 = vst [vmem:[%s2236_s29 + $0x1d8] sm:$0xff] %v1792_v62 }
  0x60   : > { %1727 = vst [vmem:[%s2236_s29 + $0x1f8] sm:$0xff] %v1793_v63 }
  0x61 PF: > { %s7_s24 = sadd.s32 1, %s2098_s24   ;;  %s2429_s6 = smov %s2038_s9 }
  0x62   : > { %p2364_p11 = scmp.ge.s32.totalorder %s7_s24, 46   ;;  %s2430_s7 = smov %s2042_s10 }
  0x63   : > { %s2431_s8 = smov %s2046_s11  ;;  %s2432_s9 = smov %s2050_s12 }
  0x64   : > { %s2433_s10 = smov %s2054_s13  ;;  %s2434_s11 = smov %s2058_s14 }
  0x65   : > { %s2435_s12 = smov %s2062_s15  ;;  %s2436_s13 = smov %s2066_s16 }
  0x66   : > { %s2437_s14 = smov %s2070_s17  ;;  %s2438_s15 = smov %s2074_s18 }
  0x67   : > { %s2439_s16 = smov %s2078_s19  ;;  %s2440_s17 = smov %s2082_s20 }
  0x68   : > { %s2441_s18 = smov %s2086_s21  ;;  %s2442_s19 = smov %s2090_s22 }
  0x69   : > { %s2443_s20 = smov %s2094_s23  ;;  %s2444_s21 = smov %s2448_s25 }
  0x6a   : > { %s2445_s22 = smov %s2452_s26  ;;  %s2446_s23 = smov %s2456_s27 }
  0x6b   :  { %6 = sbr.rel (!%p2364_p11) target bundleno = 10 (0xa), region = 359 }

// kernel: reverse.5
= control target key start
LH: loop header
LB: loop body
LE: loop exit
PB: predicated region body
PF: predicated region fallthrough
CT: control target
= control target key end

     0   :  { %s3033_s0 = inlined_call_operand.vmem [shape: bf16[3,3,512,48], index: 0, kind: input, shape index: {}]   ;;  %s3034_s1 = inlined_call_operand.vmem [shape: bf16[3,3,512,48], index: 1, kind: output, shape index: {}]  }
   0x1   :  { %v2267_v0 = vld [vmem:[%s3033_s0 + $0x300] sm:$0xff]  ;;  %v2276_v9 = vld [vmem:[%s3033_s0 + $0x310] sm:$0xff]  ;;  %v2321_v54 = vld [vmem:[%s3033_s0 + $0x308] sm:$0xff] }
   0x2   :  { %v2268_v1 = vld [vmem:[%s3033_s0 + $0x1e0] sm:$0xff]  ;;  %1570 = vst [vmem:[%s3034_s1] sm:$0xff] %v2267_v0  ;;  %v2277_v10 = vld [vmem:[%s3033_s0 + $0x1f0] sm:$0xff]  ;;  %v2322_v55 = vld [vmem:[%s3033_s0 + $0x1e8] sm:$0xff] }
   0x3   :  { %v2269_v2 = vld [vmem:[%s3033_s0 + $0xc0] sm:$0xff]  ;;  %1576 = vst [vmem:[%s3034_s1 + $0x120] sm:$0xff] %v2268_v1  ;;  %v2278_v11 = vld [vmem:[%s3033_s0 + $0xd0] sm:$0xff]  ;;  %v2323_v56 = vld [vmem:[%s3033_s0 + $0xc8] sm:$0xff] }
   0x4   :  { %v2270_v3 = vld [vmem:[%s3033_s0 + $0x2a0] sm:$0xff]  ;;  %1582 = vst [vmem:[%s3034_s1 + $0x240] sm:$0xff] %v2269_v2  ;;  %v2279_v12 = vld [vmem:[%s3033_s0 + $0x2b0] sm:$0xff]  ;;  %v2324_v57 = vld [vmem:[%s3033_s0 + $0x2a8] sm:$0xff] }
   0x5   :  { %v2271_v4 = vld [vmem:[%s3033_s0 + $0x180] sm:$0xff]  ;;  %1588 = vst [vmem:[%s3034_s1 + $0x60] sm:$0xff] %v2270_v3  ;;  %v2280_v13 = vld [vmem:[%s3033_s0 + $0x190] sm:$0xff]  ;;  %v2325_v58 = vld [vmem:[%s3033_s0 + $0x188] sm:$0xff] }
   0x6   :  { %v2272_v5 = vld [vmem:[%s3033_s0 + $0x60] sm:$0xff]  ;;  %1594 = vst [vmem:[%s3034_s1 + $0x180] sm:$0xff] %v2271_v4  ;;  %v2281_v14 = vld [vmem:[%s3033_s0 + $0x70] sm:$0xff]  ;;  %v2326_v59 = vld [vmem:[%s3033_s0 + $0x68] sm:$0xff] }
   0x7   :  { %v2273_v6 = vld [vmem:[%s3033_s0 + $0x240] sm:$0xff]  ;;  %1600 = vst [vmem:[%s3034_s1 + $0x2a0] sm:$0xff] %v2272_v5  ;;  %v2282_v15 = vld [vmem:[%s3033_s0 + $0x250] sm:$0xff]  ;;  %v2327_v60 = vld [vmem:[%s3033_s0 + $0x248] sm:$0xff] }
   0x8   :  { %v2274_v7 = vld [vmem:[%s3033_s0 + $0x120] sm:$0xff]  ;;  %1606 = vst [vmem:[%s3034_s1 + $0xc0] sm:$0xff] %v2273_v6  ;;  %v2283_v16 = vld [vmem:[%s3033_s0 + $0x130] sm:$0xff]  ;;  %v2328_v61 = vld [vmem:[%s3033_s0 + $0x128] sm:$0xff] }
   0x9   :  { %v2275_v8 = vld [vmem:[%s3033_s0] sm:$0xff]  ;;  %1612 = vst [vmem:[%s3034_s1 + $0x1e0] sm:$0xff] %v2274_v7  ;;  %v2284_v17 = vld [vmem:[%s3033_s0 + $0x10] sm:$0xff]  ;;  %v2329_v62 = vld [vmem:[%s3033_s0 + $0x8] sm:$0xff] }
   0xa   :  { %1618 = vst [vmem:[%s3034_s1 + $0x300] sm:$0xff] %v2275_v8  ;;  %v2285_v18 = vld [vmem:[%s3033_s0 + $0x320] sm:$0xff]  ;;  %v2294_v27 = vld [vmem:[%s3033_s0 + $0x330] sm:$0xff]  ;;  %v2330_v63 = vld [vmem:[%s3033_s0 + $0x318] sm:$0xff] }
   0xb   :  { %1624 = vst [vmem:[%s3034_s1 + $0x10] sm:$0xff] %v2276_v9  ;;  %v2286_v19 = vld [vmem:[%s3033_s0 + $0x200] sm:$0xff]  ;;  %v2295_v28 = vld [vmem:[%s3033_s0 + $0x210] sm:$0xff]  ;;  %v2331_v0 = vld [vmem:[%s3033_s0 + $0x1f8] sm:$0xff] }
   0xc   :  { %1630 = vst [vmem:[%s3034_s1 + $0x130] sm:$0xff] %v2277_v10  ;;  %v2287_v20 = vld [vmem:[%s3033_s0 + $0xe0] sm:$0xff]  ;;  %v2296_v29 = vld [vmem:[%s3033_s0 + $0xf0] sm:$0xff]  ;;  %v2332_v1 = vld [vmem:[%s3033_s0 + $0xd8] sm:$0xff] }
   0xd   :  { %1636 = vst [vmem:[%s3034_s1 + $0x250] sm:$0xff] %v2278_v11  ;;  %v2288_v21 = vld [vmem:[%s3033_s0 + $0x2c0] sm:$0xff]  ;;  %v2297_v30 = vld [vmem:[%s3033_s0 + $0x2d0] sm:$0xff]  ;;  %v2333_v2 = vld [vmem:[%s3033_s0 + $0x2b8] sm:$0xff] }
   0xe   :  { %1642 = vst [vmem:[%s3034_s1 + $0x70] sm:$0xff] %v2279_v12  ;;  %v2289_v22 = vld [vmem:[%s3033_s0 + $0x1a0] sm:$0xff]  ;;  %v2298_v31 = vld [vmem:[%s3033_s0 + $0x1b0] sm:$0xff]  ;;  %v2334_v3 = vld [vmem:[%s3033_s0 + $0x198] sm:$0xff] }
   0xf   :  { %1648 = vst [vmem:[%s3034_s1 + $0x190] sm:$0xff] %v2280_v13  ;;  %v2290_v23 = vld [vmem:[%s3033_s0 + $0x80] sm:$0xff]  ;;  %v2299_v32 = vld [vmem:[%s3033_s0 + $0x90] sm:$0xff]  ;;  %v2335_v4 = vld [vmem:[%s3033_s0 + $0x78] sm:$0xff] }
  0x10   :  { %1654 = vst [vmem:[%s3034_s1 + $0x2b0] sm:$0xff] %v2281_v14  ;;  %v2291_v24 = vld [vmem:[%s3033_s0 + $0x260] sm:$0xff]  ;;  %v2300_v33 = vld [vmem:[%s3033_s0 + $0x270] sm:$0xff]  ;;  %v2336_v5 = vld [vmem:[%s3033_s0 + $0x258] sm:$0xff] }
  0x11   :  { %1660 = vst [vmem:[%s3034_s1 + $0xd0] sm:$0xff] %v2282_v15  ;;  %v2292_v25 = vld [vmem:[%s3033_s0 + $0x140] sm:$0xff]  ;;  %v2301_v34 = vld [vmem:[%s3033_s0 + $0x150] sm:$0xff]  ;;  %v2337_v6 = vld [vmem:[%s3033_s0 + $0x138] sm:$0xff] }
  0x12   :  { %1666 = vst [vmem:[%s3034_s1 + $0x1f0] sm:$0xff] %v2283_v16  ;;  %v2293_v26 = vld [vmem:[%s3033_s0 + $0x20] sm:$0xff]  ;;  %v2302_v35 = vld [vmem:[%s3033_s0 + $0x30] sm:$0xff]  ;;  %v2338_v7 = vld [vmem:[%s3033_s0 + $0x18] sm:$0xff] }
  0x13   :  { %1672 = vst [vmem:[%s3034_s1 + $0x310] sm:$0xff] %v2284_v17  ;;  %v2303_v36 = vld [vmem:[%s3033_s0 + $0x340] sm:$0xff]  ;;  %v2312_v45 = vld [vmem:[%s3033_s0 + $0x350] sm:$0xff]  ;;  %v2339_v8 = vld [vmem:[%s3033_s0 + $0x328] sm:$0xff] }
  0x14   :  { %1678 = vst [vmem:[%s3034_s1 + $0x20] sm:$0xff] %v2285_v18  ;;  %v2304_v37 = vld [vmem:[%s3033_s0 + $0x220] sm:$0xff]  ;;  %v2313_v46 = vld [vmem:[%s3033_s0 + $0x230] sm:$0xff]  ;;  %v2340_v9 = vld [vmem:[%s3033_s0 + $0x208] sm:$0xff] }
  0x15   :  { %1684 = vst [vmem:[%s3034_s1 + $0x140] sm:$0xff] %v2286_v19  ;;  %v2305_v38 = vld [vmem:[%s3033_s0 + $0x100] sm:$0xff]  ;;  %v2314_v47 = vld [vmem:[%s3033_s0 + $0x110] sm:$0xff]  ;;  %v2341_v10 = vld [vmem:[%s3033_s0 + $0xe8] sm:$0xff] }
  0x16   :  { %1690 = vst [vmem:[%s3034_s1 + $0x260] sm:$0xff] %v2287_v20  ;;  %v2306_v39 = vld [vmem:[%s3033_s0 + $0x2e0] sm:$0xff]  ;;  %v2315_v48 = vld [vmem:[%s3033_s0 + $0x2f0] sm:$0xff]  ;;  %v2342_v11 = vld [vmem:[%s3033_s0 + $0x2c8] sm:$0xff] }
  0x17   :  { %1696 = vst [vmem:[%s3034_s1 + $0x80] sm:$0xff] %v2288_v21  ;;  %v2307_v40 = vld [vmem:[%s3033_s0 + $0x1c0] sm:$0xff]  ;;  %v2316_v49 = vld [vmem:[%s3033_s0 + $0x1d0] sm:$0xff]  ;;  %v2343_v12 = vld [vmem:[%s3033_s0 + $0x1a8] sm:$0xff] }
  0x18   :  { %1702 = vst [vmem:[%s3034_s1 + $0x1a0] sm:$0xff] %v2289_v22  ;;  %v2308_v41 = vld [vmem:[%s3033_s0 + $0xa0] sm:$0xff]  ;;  %v2317_v50 = vld [vmem:[%s3033_s0 + $0xb0] sm:$0xff]  ;;  %v2344_v13 = vld [vmem:[%s3033_s0 + $0x88] sm:$0xff] }
  0x19   :  { %1708 = vst [vmem:[%s3034_s1 + $0x2c0] sm:$0xff] %v2290_v23  ;;  %v2309_v42 = vld [vmem:[%s3033_s0 + $0x280] sm:$0xff]  ;;  %v2318_v51 = vld [vmem:[%s3033_s0 + $0x290] sm:$0xff]  ;;  %v2345_v14 = vld [vmem:[%s3033_s0 + $0x268] sm:$0xff] }
  0x1a   :  { %1714 = vst [vmem:[%s3034_s1 + $0xe0] sm:$0xff] %v2291_v24  ;;  %v2310_v43 = vld [vmem:[%s3033_s0 + $0x160] sm:$0xff]  ;;  %v2319_v52 = vld [vmem:[%s3033_s0 + $0x170] sm:$0xff]  ;;  %v2346_v15 = vld [vmem:[%s3033_s0 + $0x148] sm:$0xff] }
  0x1b   :  { %1720 = vst [vmem:[%s3034_s1 + $0x200] sm:$0xff] %v2292_v25  ;;  %v2311_v44 = vld [vmem:[%s3033_s0 + $0x40] sm:$0xff]  ;;  %v2320_v53 = vld [vmem:[%s3033_s0 + $0x50] sm:$0xff]  ;;  %v2347_v16 = vld [vmem:[%s3033_s0 + $0x28] sm:$0xff] }
  0x1c   :  { %1726 = vst [vmem:[%s3034_s1 + $0x320] sm:$0xff] %v2293_v26  ;;  %v2348_v17 = vld [vmem:[%s3033_s0 + $0x338] sm:$0xff]  ;;  %v2357_v26 = vld [vmem:[%s3033_s0 + $0x348] sm:$0xff] }
  0x1d   :  { %1732 = vst [vmem:[%s3034_s1 + $0x30] sm:$0xff] %v2294_v27  ;;  %v2349_v18 = vld [vmem:[%s3033_s0 + $0x218] sm:$0xff]  ;;  %v2358_v27 = vld [vmem:[%s3033_s0 + $0x228] sm:$0xff] }
  0x1e   :  { %1738 = vst [vmem:[%s3034_s1 + $0x150] sm:$0xff] %v2295_v28  ;;  %v2350_v19 = vld [vmem:[%s3033_s0 + $0xf8] sm:$0xff]  ;;  %v2359_v28 = vld [vmem:[%s3033_s0 + $0x108] sm:$0xff] }
  0x1f   :  { %1744 = vst [vmem:[%s3034_s1 + $0x270] sm:$0xff] %v2296_v29  ;;  %v2351_v20 = vld [vmem:[%s3033_s0 + $0x2d8] sm:$0xff]  ;;  %v2360_v29 = vld [vmem:[%s3033_s0 + $0x2e8] sm:$0xff] }
  0x20   :  { %1750 = vst [vmem:[%s3034_s1 + $0x90] sm:$0xff] %v2297_v30  ;;  %v2352_v21 = vld [vmem:[%s3033_s0 + $0x1b8] sm:$0xff]  ;;  %v2361_v30 = vld [vmem:[%s3033_s0 + $0x1c8] sm:$0xff] }
  0x21   :  { %1756 = vst [vmem:[%s3034_s1 + $0x1b0] sm:$0xff] %v2298_v31  ;;  %v2353_v22 = vld [vmem:[%s3033_s0 + $0x98] sm:$0xff]  ;;  %v2362_v31 = vld [vmem:[%s3033_s0 + $0xa8] sm:$0xff] }
  0x22   :  { %1762 = vst [vmem:[%s3034_s1 + $0x2d0] sm:$0xff] %v2299_v32  ;;  %v2354_v23 = vld [vmem:[%s3033_s0 + $0x278] sm:$0xff]  ;;  %v2363_v32 = vld [vmem:[%s3033_s0 + $0x288] sm:$0xff] }
  0x23   :  { %1768 = vst [vmem:[%s3034_s1 + $0xf0] sm:$0xff] %v2300_v33  ;;  %v2355_v24 = vld [vmem:[%s3033_s0 + $0x158] sm:$0xff]  ;;  %v2364_v33 = vld [vmem:[%s3033_s0 + $0x168] sm:$0xff] }
  0x24   :  { %1774 = vst [vmem:[%s3034_s1 + $0x210] sm:$0xff] %v2301_v34  ;;  %v2356_v25 = vld [vmem:[%s3033_s0 + $0x38] sm:$0xff]  ;;  %v2365_v34 = vld [vmem:[%s3033_s0 + $0x48] sm:$0xff] }
  0x25   :  { %1780 = vst [vmem:[%s3034_s1 + $0x330] sm:$0xff] %v2302_v35  ;;  %v2366_v35 = vld [vmem:[%s3033_s0 + $0x358] sm:$0xff] }
  0x26   :  { %1786 = vst [vmem:[%s3034_s1 + $0x40] sm:$0xff] %v2303_v36  ;;  %v2367_v36 = vld [vmem:[%s3033_s0 + $0x238] sm:$0xff] }
  0x27   :  { %1792 = vst [vmem:[%s3034_s1 + $0x160] sm:$0xff] %v2304_v37  ;;  %v2368_v37 = vld [vmem:[%s3033_s0 + $0x118] sm:$0xff] }
  0x28   :  { %1798 = vst [vmem:[%s3034_s1 + $0x280] sm:$0xff] %v2305_v38  ;;  %v2369_v38 = vld [vmem:[%s3033_s0 + $0x2f8] sm:$0xff] }
  0x29   :  { %1804 = vst [vmem:[%s3034_s1 + $0xa0] sm:$0xff] %v2306_v39  ;;  %v2370_v39 = vld [vmem:[%s3033_s0 + $0x1d8] sm:$0xff] }
  0x2a   :  { %1810 = vst [vmem:[%s3034_s1 + $0x1c0] sm:$0xff] %v2307_v40  ;;  %v2371_v40 = vld [vmem:[%s3033_s0 + $0xb8] sm:$0xff] }
  0x2b   :  { %1816 = vst [vmem:[%s3034_s1 + $0x2e0] sm:$0xff] %v2308_v41  ;;  %v2372_v41 = vld [vmem:[%s3033_s0 + $0x298] sm:$0xff] }
  0x2c   :  { %1822 = vst [vmem:[%s3034_s1 + $0x100] sm:$0xff] %v2309_v42  ;;  %v2373_v42 = vld [vmem:[%s3033_s0 + $0x178] sm:$0xff] }
  0x2d   :  { %1828 = vst [vmem:[%s3034_s1 + $0x220] sm:$0xff] %v2310_v43  ;;  %v2374_v43 = vld [vmem:[%s3033_s0 + $0x58] sm:$0xff] }
  0x2e   :  { %1834 = vst [vmem:[%s3034_s1 + $0x340] sm:$0xff] %v2311_v44 }
  0x2f   :  { %1840 = vst [vmem:[%s3034_s1 + $0x50] sm:$0xff] %v2312_v45 }
  0x30   :  { %1846 = vst [vmem:[%s3034_s1 + $0x170] sm:$0xff] %v2313_v46 }
  0x31   :  { %1852 = vst [vmem:[%s3034_s1 + $0x290] sm:$0xff] %v2314_v47 }
  0x32   :  { %1858 = vst [vmem:[%s3034_s1 + $0xb0] sm:$0xff] %v2315_v48 }
  0x33   :  { %1864 = vst [vmem:[%s3034_s1 + $0x1d0] sm:$0xff] %v2316_v49 }
  0x34   :  { %1870 = vst [vmem:[%s3034_s1 + $0x2f0] sm:$0xff] %v2317_v50 }
  0x35   :  { %1876 = vst [vmem:[%s3034_s1 + $0x110] sm:$0xff] %v2318_v51 }
  0x36   :  { %1882 = vst [vmem:[%s3034_s1 + $0x230] sm:$0xff] %v2319_v52 }
  0x37   :  { %1888 = vst [vmem:[%s3034_s1 + $0x350] sm:$0xff] %v2320_v53 }
  0x38   :  { %1948 = vst [vmem:[%s3034_s1 + $0x8] sm:$0xff] %v2321_v54 }
  0x39   :  { %1954 = vst [vmem:[%s3034_s1 + $0x128] sm:$0xff] %v2322_v55 }
  0x3a   :  { %1960 = vst [vmem:[%s3034_s1 + $0x248] sm:$0xff] %v2323_v56 }
  0x3b   :  { %1966 = vst [vmem:[%s3034_s1 + $0x68] sm:$0xff] %v2324_v57 }
  0x3c   :  { %1972 = vst [vmem:[%s3034_s1 + $0x188] sm:$0xff] %v2325_v58 }
  0x3d   :  { %1978 = vst [vmem:[%s3034_s1 + $0x2a8] sm:$0xff] %v2326_v59 }
  0x3e   :  { %1984 = vst [vmem:[%s3034_s1 + $0xc8] sm:$0xff] %v2327_v60 }
  0x3f   :  { %1990 = vst [vmem:[%s3034_s1 + $0x1e8] sm:$0xff] %v2328_v61 }
  0x40   :  { %1996 = vst [vmem:[%s3034_s1 + $0x308] sm:$0xff] %v2329_v62 }
  0x41   :  { %2002 = vst [vmem:[%s3034_s1 + $0x18] sm:$0xff] %v2330_v63 }
  0x42   :  { %2008 = vst [vmem:[%s3034_s1 + $0x138] sm:$0xff] %v2331_v0 }
  0x43   :  { %2014 = vst [vmem:[%s3034_s1 + $0x258] sm:$0xff] %v2332_v1 }
  0x44   :  { %2020 = vst [vmem:[%s3034_s1 + $0x78] sm:$0xff] %v2333_v2 }
  0x45   :  { %2026 = vst [vmem:[%s3034_s1 + $0x198] sm:$0xff] %v2334_v3 }
  0x46   :  { %2032 = vst [vmem:[%s3034_s1 + $0x2b8] sm:$0xff] %v2335_v4 }
  0x47   :  { %2038 = vst [vmem:[%s3034_s1 + $0xd8] sm:$0xff] %v2336_v5 }
  0x48   :  { %2044 = vst [vmem:[%s3034_s1 + $0x1f8] sm:$0xff] %v2337_v6 }
  0x49   :  { %2050 = vst [vmem:[%s3034_s1 + $0x318] sm:$0xff] %v2338_v7 }
  0x4a   :  { %2056 = vst [vmem:[%s3034_s1 + $0x28] sm:$0xff] %v2339_v8 }
  0x4b   :  { %2062 = vst [vmem:[%s3034_s1 + $0x148] sm:$0xff] %v2340_v9 }
  0x4c   :  { %2068 = vst [vmem:[%s3034_s1 + $0x268] sm:$0xff] %v2341_v10 }
  0x4d   :  { %2074 = vst [vmem:[%s3034_s1 + $0x88] sm:$0xff] %v2342_v11 }
  0x4e   :  { %2080 = vst [vmem:[%s3034_s1 + $0x1a8] sm:$0xff] %v2343_v12 }
  0x4f   :  { %2086 = vst [vmem:[%s3034_s1 + $0x2c8] sm:$0xff] %v2344_v13 }
  0x50   :  { %2092 = vst [vmem:[%s3034_s1 + $0xe8] sm:$0xff] %v2345_v14 }
  0x51   :  { %2098 = vst [vmem:[%s3034_s1 + $0x208] sm:$0xff] %v2346_v15 }
  0x52   :  { %2104 = vst [vmem:[%s3034_s1 + $0x328] sm:$0xff] %v2347_v16 }
  0x53   :  { %2110 = vst [vmem:[%s3034_s1 + $0x38] sm:$0xff] %v2348_v17 }
  0x54   :  { %2116 = vst [vmem:[%s3034_s1 + $0x158] sm:$0xff] %v2349_v18 }
  0x55   :  { %2122 = vst [vmem:[%s3034_s1 + $0x278] sm:$0xff] %v2350_v19 }
  0x56   :  { %2128 = vst [vmem:[%s3034_s1 + $0x98] sm:$0xff] %v2351_v20 }
  0x57   :  { %2134 = vst [vmem:[%s3034_s1 + $0x1b8] sm:$0xff] %v2352_v21 }
  0x58   :  { %2140 = vst [vmem:[%s3034_s1 + $0x2d8] sm:$0xff] %v2353_v22 }
  0x59   :  { %2146 = vst [vmem:[%s3034_s1 + $0xf8] sm:$0xff] %v2354_v23 }
  0x5a   :  { %2152 = vst [vmem:[%s3034_s1 + $0x218] sm:$0xff] %v2355_v24 }
  0x5b   :  { %2158 = vst [vmem:[%s3034_s1 + $0x338] sm:$0xff] %v2356_v25 }
  0x5c   :  { %2164 = vst [vmem:[%s3034_s1 + $0x48] sm:$0xff] %v2357_v26 }
  0x5d   :  { %2170 = vst [vmem:[%s3034_s1 + $0x168] sm:$0xff] %v2358_v27 }
  0x5e   :  { %2176 = vst [vmem:[%s3034_s1 + $0x288] sm:$0xff] %v2359_v28 }
  0x5f   :  { %2182 = vst [vmem:[%s3034_s1 + $0xa8] sm:$0xff] %v2360_v29 }
  0x60   :  { %2188 = vst [vmem:[%s3034_s1 + $0x1c8] sm:$0xff] %v2361_v30 }
  0x61   :  { %2194 = vst [vmem:[%s3034_s1 + $0x2e8] sm:$0xff] %v2362_v31 }
  0x62   :  { %2200 = vst [vmem:[%s3034_s1 + $0x108] sm:$0xff] %v2363_v32 }
  0x63   :  { %2206 = vst [vmem:[%s3034_s1 + $0x228] sm:$0xff] %v2364_v33 }
  0x64   :  { %2212 = vst [vmem:[%s3034_s1 + $0x348] sm:$0xff] %v2365_v34 }
  0x65   :  { %2218 = vst [vmem:[%s3034_s1 + $0x58] sm:$0xff] %v2366_v35 }
  0x66   :  { %2224 = vst [vmem:[%s3034_s1 + $0x178] sm:$0xff] %v2367_v36 }
  0x67   :  { %2230 = vst [vmem:[%s3034_s1 + $0x298] sm:$0xff] %v2368_v37 }
  0x68   :  { %2236 = vst [vmem:[%s3034_s1 + $0xb8] sm:$0xff] %v2369_v38 }
  0x69   :  { %2242 = vst [vmem:[%s3034_s1 + $0x1d8] sm:$0xff] %v2370_v39 }
  0x6a   :  { %2248 = vst [vmem:[%s3034_s1 + $0x2f8] sm:$0xff] %v2371_v40 }
  0x6b   :  { %2254 = vst [vmem:[%s3034_s1 + $0x118] sm:$0xff] %v2372_v41 }
  0x6c   :  { %2260 = vst [vmem:[%s3034_s1 + $0x238] sm:$0xff] %v2373_v42 }
  0x6d   :  { %2266 = vst [vmem:[%s3034_s1 + $0x358] sm:$0xff] %v2374_v43 }

// kernel: reverse.6
= control target key start
LH: loop header
LB: loop body
LE: loop exit
PB: predicated region body
PF: predicated region fallthrough
CT: control target
= control target key end

     0   :  { %s4041_s0 = inlined_call_operand.vmem [shape: bf16[3,3,128,256], index: 0, kind: input, shape index: {}]   ;;  %s4042_s1 = inlined_call_operand.vmem [shape: bf16[3,3,128,256], index: 1, kind: output, shape index: {}]  }
   0x1   :  { %v3023_v0 = vld [vmem:[%s4041_s0 + $0x400] sm:$0xff]  ;;  %v3032_v9 = vld [vmem:[%s4041_s0 + $0x408] sm:$0xff]  ;;  %v3041_v18 = vld [vmem:[%s4041_s0 + $0x410] sm:$0xff] }
   0x2   :  { %v3024_v1 = vld [vmem:[%s4041_s0 + $0x280] sm:$0xff]  ;;  %2164 = vst [vmem:[%s4042_s1] sm:$0xff] %v3023_v0  ;;  %v3033_v10 = vld [vmem:[%s4041_s0 + $0x288] sm:$0xff]  ;;  %v3042_v19 = vld [vmem:[%s4041_s0 + $0x290] sm:$0xff] }
   0x3   :  { %v3025_v2 = vld [vmem:[%s4041_s0 + $0x100] sm:$0xff]  ;;  %2170 = vst [vmem:[%s4042_s1 + $0x180] sm:$0xff] %v3024_v1  ;;  %v3034_v11 = vld [vmem:[%s4041_s0 + $0x108] sm:$0xff]  ;;  %v3043_v20 = vld [vmem:[%s4041_s0 + $0x110] sm:$0xff] }
   0x4   :  { %v3026_v3 = vld [vmem:[%s4041_s0 + $0x380] sm:$0xff]  ;;  %2176 = vst [vmem:[%s4042_s1 + $0x300] sm:$0xff] %v3025_v2  ;;  %v3035_v12 = vld [vmem:[%s4041_s0 + $0x388] sm:$0xff]  ;;  %v3044_v21 = vld [vmem:[%s4041_s0 + $0x390] sm:$0xff] }
   0x5   :  { %v3027_v4 = vld [vmem:[%s4041_s0 + $0x200] sm:$0xff]  ;;  %2182 = vst [vmem:[%s4042_s1 + $0x80] sm:$0xff] %v3026_v3  ;;  %v3036_v13 = vld [vmem:[%s4041_s0 + $0x208] sm:$0xff]  ;;  %v3045_v22 = vld [vmem:[%s4041_s0 + $0x210] sm:$0xff] }
   0x6   :  { %v3028_v5 = vld [vmem:[%s4041_s0 + $0x80] sm:$0xff]  ;;  %2188 = vst [vmem:[%s4042_s1 + $0x200] sm:$0xff] %v3027_v4  ;;  %v3037_v14 = vld [vmem:[%s4041_s0 + $0x88] sm:$0xff]  ;;  %v3046_v23 = vld [vmem:[%s4041_s0 + $0x90] sm:$0xff] }
   0x7   :  { %v3029_v6 = vld [vmem:[%s4041_s0 + $0x300] sm:$0xff]  ;;  %2194 = vst [vmem:[%s4042_s1 + $0x380] sm:$0xff] %v3028_v5  ;;  %v3038_v15 = vld [vmem:[%s4041_s0 + $0x308] sm:$0xff]  ;;  %v3047_v24 = vld [vmem:[%s4041_s0 + $0x310] sm:$0xff] }
   0x8   :  { %v3030_v7 = vld [vmem:[%s4041_s0 + $0x180] sm:$0xff]  ;;  %2200 = vst [vmem:[%s4042_s1 + $0x100] sm:$0xff] %v3029_v6  ;;  %v3039_v16 = vld [vmem:[%s4041_s0 + $0x188] sm:$0xff]  ;;  %v3048_v25 = vld [vmem:[%s4041_s0 + $0x190] sm:$0xff] }
   0x9   :  { %v3031_v8 = vld [vmem:[%s4041_s0] sm:$0xff]  ;;  %2206 = vst [vmem:[%s4042_s1 + $0x280] sm:$0xff] %v3030_v7  ;;  %v3040_v17 = vld [vmem:[%s4041_s0 + $0x8] sm:$0xff]  ;;  %v3049_v26 = vld [vmem:[%s4041_s0 + $0x10] sm:$0xff] }
   0xa   :  { %2212 = vst [vmem:[%s4042_s1 + $0x400] sm:$0xff] %v3031_v8  ;;  %v3050_v27 = vld [vmem:[%s4041_s0 + $0x418] sm:$0xff]  ;;  %v3059_v36 = vld [vmem:[%s4041_s0 + $0x420] sm:$0xff]  ;;  %v3068_v45 = vld [vmem:[%s4041_s0 + $0x428] sm:$0xff] }
   0xb   :  { %2218 = vst [vmem:[%s4042_s1 + $0x8] sm:$0xff] %v3032_v9  ;;  %v3051_v28 = vld [vmem:[%s4041_s0 + $0x298] sm:$0xff]  ;;  %v3060_v37 = vld [vmem:[%s4041_s0 + $0x2a0] sm:$0xff]  ;;  %v3069_v46 = vld [vmem:[%s4041_s0 + $0x2a8] sm:$0xff] }
   0xc   :  { %2224 = vst [vmem:[%s4042_s1 + $0x188] sm:$0xff] %v3033_v10  ;;  %v3052_v29 = vld [vmem:[%s4041_s0 + $0x118] sm:$0xff]  ;;  %v3061_v38 = vld [vmem:[%s4041_s0 + $0x120] sm:$0xff]  ;;  %v3070_v47 = vld [vmem:[%s4041_s0 + $0x128] sm:$0xff] }
   0xd   :  { %2230 = vst [vmem:[%s4042_s1 + $0x308] sm:$0xff] %v3034_v11  ;;  %v3053_v30 = vld [vmem:[%s4041_s0 + $0x398] sm:$0xff]  ;;  %v3062_v39 = vld [vmem:[%s4041_s0 + $0x3a0] sm:$0xff]  ;;  %v3071_v48 = vld [vmem:[%s4041_s0 + $0x3a8] sm:$0xff] }
   0xe   :  { %2236 = vst [vmem:[%s4042_s1 + $0x88] sm:$0xff] %v3035_v12  ;;  %v3054_v31 = vld [vmem:[%s4041_s0 + $0x218] sm:$0xff]  ;;  %v3063_v40 = vld [vmem:[%s4041_s0 + $0x220] sm:$0xff]  ;;  %v3072_v49 = vld [vmem:[%s4041_s0 + $0x228] sm:$0xff] }
   0xf   :  { %2242 = vst [vmem:[%s4042_s1 + $0x208] sm:$0xff] %v3036_v13  ;;  %v3055_v32 = vld [vmem:[%s4041_s0 + $0x98] sm:$0xff]  ;;  %v3064_v41 = vld [vmem:[%s4041_s0 + $0xa0] sm:$0xff]  ;;  %v3073_v50 = vld [vmem:[%s4041_s0 + $0xa8] sm:$0xff] }
  0x10   :  { %2248 = vst [vmem:[%s4042_s1 + $0x388] sm:$0xff] %v3037_v14  ;;  %v3056_v33 = vld [vmem:[%s4041_s0 + $0x318] sm:$0xff]  ;;  %v3065_v42 = vld [vmem:[%s4041_s0 + $0x320] sm:$0xff]  ;;  %v3074_v51 = vld [vmem:[%s4041_s0 + $0x328] sm:$0xff] }
  0x11   :  { %2254 = vst [vmem:[%s4042_s1 + $0x108] sm:$0xff] %v3038_v15  ;;  %v3057_v34 = vld [vmem:[%s4041_s0 + $0x198] sm:$0xff]  ;;  %v3066_v43 = vld [vmem:[%s4041_s0 + $0x1a0] sm:$0xff]  ;;  %v3075_v52 = vld [vmem:[%s4041_s0 + $0x1a8] sm:$0xff] }
  0x12   :  { %2260 = vst [vmem:[%s4042_s1 + $0x288] sm:$0xff] %v3039_v16  ;;  %v3058_v35 = vld [vmem:[%s4041_s0 + $0x18] sm:$0xff]  ;;  %v3067_v44 = vld [vmem:[%s4041_s0 + $0x20] sm:$0xff]  ;;  %v3076_v53 = vld [vmem:[%s4041_s0 + $0x28] sm:$0xff] }
  0x13   :  { %2266 = vst [vmem:[%s4042_s1 + $0x408] sm:$0xff] %v3040_v17  ;;  %v3077_v54 = vld [vmem:[%s4041_s0 + $0x430] sm:$0xff]  ;;  %v3086_v63 = vld [vmem:[%s4041_s0 + $0x438] sm:$0xff]  ;;  %v3095_v8 = vld [vmem:[%s4041_s0 + $0x440] sm:$0xff] }
  0x14   :  { %2272 = vst [vmem:[%s4042_s1 + $0x10] sm:$0xff] %v3041_v18  ;;  %v3078_v55 = vld [vmem:[%s4041_s0 + $0x2b0] sm:$0xff]  ;;  %v3087_v0 = vld [vmem:[%s4041_s0 + $0x2b8] sm:$0xff]  ;;  %v3096_v9 = vld [vmem:[%s4041_s0 + $0x2c0] sm:$0xff] }
  0x15   :  { %2278 = vst [vmem:[%s4042_s1 + $0x190] sm:$0xff] %v3042_v19  ;;  %v3079_v56 = vld [vmem:[%s4041_s0 + $0x130] sm:$0xff]  ;;  %v3088_v1 = vld [vmem:[%s4041_s0 + $0x138] sm:$0xff]  ;;  %v3097_v10 = vld [vmem:[%s4041_s0 + $0x140] sm:$0xff] }
  0x16   :  { %2284 = vst [vmem:[%s4042_s1 + $0x310] sm:$0xff] %v3043_v20  ;;  %v3080_v57 = vld [vmem:[%s4041_s0 + $0x3b0] sm:$0xff]  ;;  %v3089_v2 = vld [vmem:[%s4041_s0 + $0x3b8] sm:$0xff]  ;;  %v3098_v11 = vld [vmem:[%s4041_s0 + $0x3c0] sm:$0xff] }
  0x17   :  { %2290 = vst [vmem:[%s4042_s1 + $0x90] sm:$0xff] %v3044_v21  ;;  %v3081_v58 = vld [vmem:[%s4041_s0 + $0x230] sm:$0xff]  ;;  %v3090_v3 = vld [vmem:[%s4041_s0 + $0x238] sm:$0xff]  ;;  %v3099_v12 = vld [vmem:[%s4041_s0 + $0x240] sm:$0xff] }
  0x18   :  { %2296 = vst [vmem:[%s4042_s1 + $0x210] sm:$0xff] %v3045_v22  ;;  %v3082_v59 = vld [vmem:[%s4041_s0 + $0xb0] sm:$0xff]  ;;  %v3091_v4 = vld [vmem:[%s4041_s0 + $0xb8] sm:$0xff]  ;;  %v3100_v13 = vld [vmem:[%s4041_s0 + $0xc0] sm:$0xff] }
  0x19   :  { %2302 = vst [vmem:[%s4042_s1 + $0x390] sm:$0xff] %v3046_v23  ;;  %v3083_v60 = vld [vmem:[%s4041_s0 + $0x330] sm:$0xff]  ;;  %v3092_v5 = vld [vmem:[%s4041_s0 + $0x338] sm:$0xff]  ;;  %v3101_v14 = vld [vmem:[%s4041_s0 + $0x340] sm:$0xff] }
  0x1a   :  { %2308 = vst [vmem:[%s4042_s1 + $0x110] sm:$0xff] %v3047_v24  ;;  %v3084_v61 = vld [vmem:[%s4041_s0 + $0x1b0] sm:$0xff]  ;;  %v3093_v6 = vld [vmem:[%s4041_s0 + $0x1b8] sm:$0xff]  ;;  %v3102_v15 = vld [vmem:[%s4041_s0 + $0x1c0] sm:$0xff] }
  0x1b   :  { %2314 = vst [vmem:[%s4042_s1 + $0x290] sm:$0xff] %v3048_v25  ;;  %v3085_v62 = vld [vmem:[%s4041_s0 + $0x30] sm:$0xff]  ;;  %v3094_v7 = vld [vmem:[%s4041_s0 + $0x38] sm:$0xff]  ;;  %v3103_v16 = vld [vmem:[%s4041_s0 + $0x40] sm:$0xff] }
  0x1c   :  { %2320 = vst [vmem:[%s4042_s1 + $0x410] sm:$0xff] %v3049_v26  ;;  %v3104_v17 = vld [vmem:[%s4041_s0 + $0x448] sm:$0xff]  ;;  %v3113_v26 = vld [vmem:[%s4041_s0 + $0x450] sm:$0xff] }
  0x1d   :  { %2326 = vst [vmem:[%s4042_s1 + $0x18] sm:$0xff] %v3050_v27  ;;  %v3105_v18 = vld [vmem:[%s4041_s0 + $0x2c8] sm:$0xff]  ;;  %v3114_v27 = vld [vmem:[%s4041_s0 + $0x2d0] sm:$0xff] }
  0x1e   :  { %2332 = vst [vmem:[%s4042_s1 + $0x198] sm:$0xff] %v3051_v28  ;;  %v3106_v19 = vld [vmem:[%s4041_s0 + $0x148] sm:$0xff]  ;;  %v3115_v28 = vld [vmem:[%s4041_s0 + $0x150] sm:$0xff] }
  0x1f   :  { %2338 = vst [vmem:[%s4042_s1 + $0x318] sm:$0xff] %v3052_v29  ;;  %v3107_v20 = vld [vmem:[%s4041_s0 + $0x3c8] sm:$0xff]  ;;  %v3116_v29 = vld [vmem:[%s4041_s0 + $0x3d0] sm:$0xff] }
  0x20   :  { %2344 = vst [vmem:[%s4042_s1 + $0x98] sm:$0xff] %v3053_v30  ;;  %v3108_v21 = vld [vmem:[%s4041_s0 + $0x248] sm:$0xff]  ;;  %v3117_v30 = vld [vmem:[%s4041_s0 + $0x250] sm:$0xff] }
  0x21   :  { %2350 = vst [vmem:[%s4042_s1 + $0x218] sm:$0xff] %v3054_v31  ;;  %v3109_v22 = vld [vmem:[%s4041_s0 + $0xc8] sm:$0xff]  ;;  %v3118_v31 = vld [vmem:[%s4041_s0 + $0xd0] sm:$0xff] }
  0x22   :  { %2356 = vst [vmem:[%s4042_s1 + $0x398] sm:$0xff] %v3055_v32  ;;  %v3110_v23 = vld [vmem:[%s4041_s0 + $0x348] sm:$0xff]  ;;  %v3119_v32 = vld [vmem:[%s4041_s0 + $0x350] sm:$0xff] }
  0x23   :  { %2362 = vst [vmem:[%s4042_s1 + $0x118] sm:$0xff] %v3056_v33  ;;  %v3111_v24 = vld [vmem:[%s4041_s0 + $0x1c8] sm:$0xff]  ;;  %v3120_v33 = vld [vmem:[%s4041_s0 + $0x1d0] sm:$0xff] }
  0x24   :  { %2368 = vst [vmem:[%s4042_s1 + $0x298] sm:$0xff] %v3057_v34  ;;  %v3112_v25 = vld [vmem:[%s4041_s0 + $0x48] sm:$0xff]  ;;  %v3121_v34 = vld [vmem:[%s4041_s0 + $0x50] sm:$0xff] }
  0x25   :  { %2374 = vst [vmem:[%s4042_s1 + $0x418] sm:$0xff] %v3058_v35  ;;  %v3122_v35 = vld [vmem:[%s4041_s0 + $0x458] sm:$0xff] }
  0x26   :  { %2380 = vst [vmem:[%s4042_s1 + $0x20] sm:$0xff] %v3059_v36  ;;  %v3123_v36 = vld [vmem:[%s4041_s0 + $0x2d8] sm:$0xff] }
  0x27   :  { %2386 = vst [vmem:[%s4042_s1 + $0x1a0] sm:$0xff] %v3060_v37  ;;  %v3124_v37 = vld [vmem:[%s4041_s0 + $0x158] sm:$0xff] }
  0x28   :  { %2392 = vst [vmem:[%s4042_s1 + $0x320] sm:$0xff] %v3061_v38  ;;  %v3125_v38 = vld [vmem:[%s4041_s0 + $0x3d8] sm:$0xff] }
  0x29   :  { %2398 = vst [vmem:[%s4042_s1 + $0xa0] sm:$0xff] %v3062_v39  ;;  %v3126_v39 = vld [vmem:[%s4041_s0 + $0x258] sm:$0xff] }
  0x2a   :  { %2404 = vst [vmem:[%s4042_s1 + $0x220] sm:$0xff] %v3063_v40  ;;  %v3127_v40 = vld [vmem:[%s4041_s0 + $0xd8] sm:$0xff] }
  0x2b   :  { %2410 = vst [vmem:[%s4042_s1 + $0x3a0] sm:$0xff] %v3064_v41  ;;  %v3128_v41 = vld [vmem:[%s4041_s0 + $0x358] sm:$0xff] }
  0x2c   :  { %2416 = vst [vmem:[%s4042_s1 + $0x120] sm:$0xff] %v3065_v42  ;;  %v3129_v42 = vld [vmem:[%s4041_s0 + $0x1d8] sm:$0xff] }
  0x2d   :  { %2422 = vst [vmem:[%s4042_s1 + $0x2a0] sm:$0xff] %v3066_v43  ;;  %v3130_v43 = vld [vmem:[%s4041_s0 + $0x58] sm:$0xff] }
  0x2e   :  { %2428 = vst [vmem:[%s4042_s1 + $0x420] sm:$0xff] %v3067_v44  ;;  %v3131_v44 = vld [vmem:[%s4041_s0 + $0x460] sm:$0xff] }
  0x2f   :  { %2434 = vst [vmem:[%s4042_s1 + $0x28] sm:$0xff] %v3068_v45  ;;  %v3132_v45 = vld [vmem:[%s4041_s0 + $0x2e0] sm:$0xff] }
  0x30   :  { %2440 = vst [vmem:[%s4042_s1 + $0x1a8] sm:$0xff] %v3069_v46  ;;  %v3133_v46 = vld [vmem:[%s4041_s0 + $0x160] sm:$0xff] }
  0x31   :  { %2446 = vst [vmem:[%s4042_s1 + $0x328] sm:$0xff] %v3070_v47  ;;  %v3134_v47 = vld [vmem:[%s4041_s0 + $0x3e0] sm:$0xff] }
  0x32   :  { %2452 = vst [vmem:[%s4042_s1 + $0xa8] sm:$0xff] %v3071_v48  ;;  %v3135_v48 = vld [vmem:[%s4041_s0 + $0x260] sm:$0xff] }
  0x33   :  { %2458 = vst [vmem:[%s4042_s1 + $0x228] sm:$0xff] %v3072_v49  ;;  %v3136_v49 = vld [vmem:[%s4041_s0 + $0xe0] sm:$0xff] }
  0x34   :  { %2464 = vst [vmem:[%s4042_s1 + $0x3a8] sm:$0xff] %v3073_v50  ;;  %v3137_v50 = vld [vmem:[%s4041_s0 + $0x360] sm:$0xff] }
  0x35   :  { %2470 = vst [vmem:[%s4042_s1 + $0x128] sm:$0xff] %v3074_v51  ;;  %v3138_v51 = vld [vmem:[%s4041_s0 + $0x1e0] sm:$0xff] }
  0x36   :  { %2476 = vst [vmem:[%s4042_s1 + $0x2a8] sm:$0xff] %v3075_v52  ;;  %v3139_v52 = vld [vmem:[%s4041_s0 + $0x60] sm:$0xff] }
  0x37   :  { %2482 = vst [vmem:[%s4042_s1 + $0x428] sm:$0xff] %v3076_v53  ;;  %v3140_v53 = vld [vmem:[%s4041_s0 + $0x468] sm:$0xff] }
  0x38   :  { %2488 = vst [vmem:[%s4042_s1 + $0x30] sm:$0xff] %v3077_v54  ;;  %v3141_v54 = vld [vmem:[%s4041_s0 + $0x2e8] sm:$0xff] }
  0x39   :  { %2494 = vst [vmem:[%s4042_s1 + $0x1b0] sm:$0xff] %v3078_v55  ;;  %v3142_v55 = vld [vmem:[%s4041_s0 + $0x168] sm:$0xff] }
  0x3a   :  { %2500 = vst [vmem:[%s4042_s1 + $0x330] sm:$0xff] %v3079_v56  ;;  %v3143_v56 = vld [vmem:[%s4041_s0 + $0x3e8] sm:$0xff] }
  0x3b   :  { %2506 = vst [vmem:[%s4042_s1 + $0xb0] sm:$0xff] %v3080_v57  ;;  %v3144_v57 = vld [vmem:[%s4041_s0 + $0x268] sm:$0xff] }
  0x3c   :  { %2512 = vst [vmem:[%s4042_s1 + $0x230] sm:$0xff] %v3081_v58  ;;  %v3145_v58 = vld [vmem:[%s4041_s0 + $0xe8] sm:$0xff] }
  0x3d   :  { %2518 = vst [vmem:[%s4042_s1 + $0x3b0] sm:$0xff] %v3082_v59  ;;  %v3146_v59 = vld [vmem:[%s4041_s0 + $0x368] sm:$0xff] }
  0x3e   :  { %2524 = vst [vmem:[%s4042_s1 + $0x130] sm:$0xff] %v3083_v60  ;;  %v3147_v60 = vld [vmem:[%s4041_s0 + $0x1e8] sm:$0xff] }
  0x3f   :  { %2530 = vst [vmem:[%s4042_s1 + $0x2b0] sm:$0xff] %v3084_v61  ;;  %v3148_v61 = vld [vmem:[%s4041_s0 + $0x68] sm:$0xff] }
  0x40   :  { %2536 = vst [vmem:[%s4042_s1 + $0x430] sm:$0xff] %v3085_v62  ;;  %v3149_v62 = vld [vmem:[%s4041_s0 + $0x470] sm:$0xff] }
  0x41   :  { %2542 = vst [vmem:[%s4042_s1 + $0x38] sm:$0xff] %v3086_v63  ;;  %v3150_v63 = vld [vmem:[%s4041_s0 + $0x2f0] sm:$0xff] }
  0x42   :  { %2548 = vst [vmem:[%s4042_s1 + $0x1b8] sm:$0xff] %v3087_v0  ;;  %v3151_v0 = vld [vmem:[%s4041_s0 + $0x170] sm:$0xff] }
  0x43   :  { %2554 = vst [vmem:[%s4042_s1 + $0x338] sm:$0xff] %v3088_v1  ;;  %v3152_v1 = vld [vmem:[%s4041_s0 + $0x3f0] sm:$0xff] }
  0x44   :  { %2560 = vst [vmem:[%s4042_s1 + $0xb8] sm:$0xff] %v3089_v2  ;;  %v3153_v2 = vld [vmem:[%s4041_s0 + $0x270] sm:$0xff] }
  0x45   :  { %2566 = vst [vmem:[%s4042_s1 + $0x238] sm:$0xff] %v3090_v3  ;;  %v3154_v3 = vld [vmem:[%s4041_s0 + $0xf0] sm:$0xff] }
  0x46   :  { %2572 = vst [vmem:[%s4042_s1 + $0x3b8] sm:$0xff] %v3091_v4  ;;  %v3155_v4 = vld [vmem:[%s4041_s0 + $0x370] sm:$0xff] }
  0x47   :  { %2578 = vst [vmem:[%s4042_s1 + $0x138] sm:$0xff] %v3092_v5  ;;  %v3156_v5 = vld [vmem:[%s4041_s0 + $0x1f0] sm:$0xff] }
  0x48   :  { %2584 = vst [vmem:[%s4042_s1 + $0x2b8] sm:$0xff] %v3093_v6  ;;  %v3157_v6 = vld [vmem:[%s4041_s0 + $0x70] sm:$0xff] }
  0x49   :  { %2590 = vst [vmem:[%s4042_s1 + $0x438] sm:$0xff] %v3094_v7  ;;  %v3158_v7 = vld [vmem:[%s4041_s0 + $0x478] sm:$0xff] }
  0x4a   :  { %2596 = vst [vmem:[%s4042_s1 + $0x40] sm:$0xff] %v3095_v8  ;;  %v3159_v8 = vld [vmem:[%s4041_s0 + $0x2f8] sm:$0xff] }
  0x4b   :  { %2602 = vst [vmem:[%s4042_s1 + $0x1c0] sm:$0xff] %v3096_v9  ;;  %v3160_v9 = vld [vmem:[%s4041_s0 + $0x178] sm:$0xff] }
  0x4c   :  { %2608 = vst [vmem:[%s4042_s1 + $0x340] sm:$0xff] %v3097_v10  ;;  %v3161_v10 = vld [vmem:[%s4041_s0 + $0x3f8] sm:$0xff] }
  0x4d   :  { %2614 = vst [vmem:[%s4042_s1 + $0xc0] sm:$0xff] %v3098_v11  ;;  %v3162_v11 = vld [vmem:[%s4041_s0 + $0x278] sm:$0xff] }
  0x4e   :  { %2620 = vst [vmem:[%s4042_s1 + $0x240] sm:$0xff] %v3099_v12  ;;  %v3163_v12 = vld [vmem:[%s4041_s0 + $0xf8] sm:$0xff] }
  0x4f   :  { %2626 = vst [vmem:[%s4042_s1 + $0x3c0] sm:$0xff] %v3100_v13  ;;  %v3164_v13 = vld [vmem:[%s4041_s0 + $0x378] sm:$0xff] }
  0x50   :  { %2632 = vst [vmem:[%s4042_s1 + $0x140] sm:$0xff] %v3101_v14  ;;  %v3165_v14 = vld [vmem:[%s4041_s0 + $0x1f8] sm:$0xff] }
  0x51   :  { %2638 = vst [vmem:[%s4042_s1 + $0x2c0] sm:$0xff] %v3102_v15  ;;  %v3166_v15 = vld [vmem:[%s4041_s0 + $0x78] sm:$0xff] }
  0x52   :  { %2644 = vst [vmem:[%s4042_s1 + $0x440] sm:$0xff] %v3103_v16 }
  0x53   :  { %2650 = vst [vmem:[%s4042_s1 + $0x48] sm:$0xff] %v3104_v17 }
  0x54   :  { %2656 = vst [vmem:[%s4042_s1 + $0x1c8] sm:$0xff] %v3105_v18 }
  0x55   :  { %2662 = vst [vmem:[%s4042_s1 + $0x348] sm:$0xff] %v3106_v19 }
  0x56   :  { %2668 = vst [vmem:[%s4042_s1 + $0xc8] sm:$0xff] %v3107_v20 }
  0x57   :  { %2674 = vst [vmem:[%s4042_s1 + $0x248] sm:$0xff] %v3108_v21 }
  0x58   :  { %2680 = vst [vmem:[%s4042_s1 + $0x3c8] sm:$0xff] %v3109_v22 }
  0x59   :  { %2686 = vst [vmem:[%s4042_s1 + $0x148] sm:$0xff] %v3110_v23 }
  0x5a   :  { %2692 = vst [vmem:[%s4042_s1 + $0x2c8] sm:$0xff] %v3111_v24 }
  0x5b   :  { %2698 = vst [vmem:[%s4042_s1 + $0x448] sm:$0xff] %v3112_v25 }
  0x5c   :  { %2704 = vst [vmem:[%s4042_s1 + $0x50] sm:$0xff] %v3113_v26 }
  0x5d   :  { %2710 = vst [vmem:[%s4042_s1 + $0x1d0] sm:$0xff] %v3114_v27 }
  0x5e   :  { %2716 = vst [vmem:[%s4042_s1 + $0x350] sm:$0xff] %v3115_v28 }
  0x5f   :  { %2722 = vst [vmem:[%s4042_s1 + $0xd0] sm:$0xff] %v3116_v29 }
  0x60   :  { %2728 = vst [vmem:[%s4042_s1 + $0x250] sm:$0xff] %v3117_v30 }
  0x61   :  { %2734 = vst [vmem:[%s4042_s1 + $0x3d0] sm:$0xff] %v3118_v31 }
  0x62   :  { %2740 = vst [vmem:[%s4042_s1 + $0x150] sm:$0xff] %v3119_v32 }
  0x63   :  { %2746 = vst [vmem:[%s4042_s1 + $0x2d0] sm:$0xff] %v3120_v33 }
  0x64   :  { %2752 = vst [vmem:[%s4042_s1 + $0x450] sm:$0xff] %v3121_v34 }
  0x65   :  { %2758 = vst [vmem:[%s4042_s1 + $0x58] sm:$0xff] %v3122_v35 }
  0x66   :  { %2764 = vst [vmem:[%s4042_s1 + $0x1d8] sm:$0xff] %v3123_v36 }
  0x67   :  { %2770 = vst [vmem:[%s4042_s1 + $0x358] sm:$0xff] %v3124_v37 }
  0x68   :  { %2776 = vst [vmem:[%s4042_s1 + $0xd8] sm:$0xff] %v3125_v38 }
  0x69   :  { %2782 = vst [vmem:[%s4042_s1 + $0x258] sm:$0xff] %v3126_v39 }
  0x6a   :  { %2788 = vst [vmem:[%s4042_s1 + $0x3d8] sm:$0xff] %v3127_v40 }
  0x6b   :  { %2794 = vst [vmem:[%s4042_s1 + $0x158] sm:$0xff] %v3128_v41 }
  0x6c   :  { %2800 = vst [vmem:[%s4042_s1 + $0x2d8] sm:$0xff] %v3129_v42 }
  0x6d   :  { %2806 = vst [vmem:[%s4042_s1 + $0x458] sm:$0xff] %v3130_v43 }
  0x6e   :  { %2812 = vst [vmem:[%s4042_s1 + $0x60] sm:$0xff] %v3131_v44 }
  0x6f   :  { %2818 = vst [vmem:[%s4042_s1 + $0x1e0] sm:$0xff] %v3132_v45 }
  0x70   :  { %2824 = vst [vmem:[%s4042_s1 + $0x360] sm:$0xff] %v3133_v46 }
  0x71   :  { %2830 = vst [vmem:[%s4042_s1 + $0xe0] sm:$0xff] %v3134_v47 }
  0x72   :  { %2836 = vst [vmem:[%s4042_s1 + $0x260] sm:$0xff] %v3135_v48 }
  0x73   :  { %2842 = vst [vmem:[%s4042_s1 + $0x3e0] sm:$0xff] %v3136_v49 }
  0x74   :  { %2848 = vst [vmem:[%s4042_s1 + $0x160] sm:$0xff] %v3137_v50 }
  0x75   :  { %2854 = vst [vmem:[%s4042_s1 + $0x2e0] sm:$0xff] %v3138_v51 }
  0x76   :  { %2860 = vst [vmem:[%s4042_s1 + $0x460] sm:$0xff] %v3139_v52 }
  0x77   :  { %2866 = vst [vmem:[%s4042_s1 + $0x68] sm:$0xff] %v3140_v53 }
  0x78   :  { %2872 = vst [vmem:[%s4042_s1 + $0x1e8] sm:$0xff] %v3141_v54 }
  0x79   :  { %2878 = vst [vmem:[%s4042_s1 + $0x368] sm:$0xff] %v3142_v55 }
  0x7a   :  { %2884 = vst [vmem:[%s4042_s1 + $0xe8] sm:$0xff] %v3143_v56 }
  0x7b   :  { %2890 = vst [vmem:[%s4042_s1 + $0x268] sm:$0xff] %v3144_v57 }
  0x7c   :  { %2896 = vst [vmem:[%s4042_s1 + $0x3e8] sm:$0xff] %v3145_v58 }
  0x7d   :  { %2902 = vst [vmem:[%s4042_s1 + $0x168] sm:$0xff] %v3146_v59 }
  0x7e   :  { %2908 = vst [vmem:[%s4042_s1 + $0x2e8] sm:$0xff] %v3147_v60 }
  0x7f   :  { %2914 = vst [vmem:[%s4042_s1 + $0x468] sm:$0xff] %v3148_v61 }
  0x80   :  { %2920 = vst [vmem:[%s4042_s1 + $0x70] sm:$0xff] %v3149_v62 }
  0x81   :  { %2926 = vst [vmem:[%s4042_s1 + $0x1f0] sm:$0xff] %v3150_v63 }
  0x82   :  { %2932 = vst [vmem:[%s4042_s1 + $0x370] sm:$0xff] %v3151_v0 }
  0x83   :  { %2938 = vst [vmem:[%s4042_s1 + $0xf0] sm:$0xff] %v3152_v1 }
  0x84   :  { %2944 = vst [vmem:[%s4042_s1 + $0x270] sm:$0xff] %v3153_v2 }
  0x85   :  { %2950 = vst [vmem:[%s4042_s1 + $0x3f0] sm:$0xff] %v3154_v3 }
  0x86   :  { %2956 = vst [vmem:[%s4042_s1 + $0x170] sm:$0xff] %v3155_v4 }
  0x87   :  { %2962 = vst [vmem:[%s4042_s1 + $0x2f0] sm:$0xff] %v3156_v5 }
  0x88   :  { %2968 = vst [vmem:[%s4042_s1 + $0x470] sm:$0xff] %v3157_v6 }
  0x89   :  { %2974 = vst [vmem:[%s4042_s1 + $0x78] sm:$0xff] %v3158_v7 }
  0x8a   :  { %2980 = vst [vmem:[%s4042_s1 + $0x1f8] sm:$0xff] %v3159_v8 }
  0x8b   :  { %2986 = vst [vmem:[%s4042_s1 + $0x378] sm:$0xff] %v3160_v9 }
  0x8c   :  { %2992 = vst [vmem:[%s4042_s1 + $0xf8] sm:$0xff] %v3161_v10 }
  0x8d   :  { %2998 = vst [vmem:[%s4042_s1 + $0x278] sm:$0xff] %v3162_v11 }
  0x8e   :  { %3004 = vst [vmem:[%s4042_s1 + $0x3f8] sm:$0xff] %v3163_v12 }
  0x8f   :  { %3010 = vst [vmem:[%s4042_s1 + $0x178] sm:$0xff] %v3164_v13 }
  0x90   :  { %3016 = vst [vmem:[%s4042_s1 + $0x2f8] sm:$0xff] %v3165_v14 }
  0x91   :  { %3022 = vst [vmem:[%s4042_s1 + $0x478] sm:$0xff] %v3166_v15 }

// kernel: reverse.7
= control target key start
LH: loop header
LB: loop body
LE: loop exit
PB: predicated region body
PF: predicated region fallthrough
CT: control target
= control target key end

     0   :  { %s1521_s0 = inlined_call_operand.vmem [shape: bf16[3,3,256,48], index: 0, kind: input, shape index: {}]   ;;  %s1522_s1 = inlined_call_operand.vmem [shape: bf16[3,3,256,48], index: 1, kind: output, shape index: {}]  }
   0x1   :  { %v1133_v0 = vld [vmem:[%s1521_s0 + $0x180] sm:$0xff]  ;;  %v1134_v1 = vld [vmem:[%s1521_s0 + $0xf0] sm:$0xff]  ;;  %v1142_v9 = vld [vmem:[%s1521_s0 + $0x188] sm:$0xff] }
   0x2   :  { %v1135_v2 = vld [vmem:[%s1521_s0 + $0x60] sm:$0xff]  ;;  %v1136_v3 = vld [vmem:[%s1521_s0 + $0x150] sm:$0xff]  ;;  %814 = vst [vmem:[%s1522_s1] sm:$0xff] %v1133_v0  ;;  %v1143_v10 = vld [vmem:[%s1521_s0 + $0xf8] sm:$0xff] }
   0x3   :  { %v1137_v4 = vld [vmem:[%s1521_s0 + $0xc0] sm:$0xff]  ;;  %820 = vst [vmem:[%s1522_s1 + $0x90] sm:$0xff] %v1134_v1  ;;  %v1138_v5 = vld [vmem:[%s1521_s0 + $0x30] sm:$0xff]  ;;  %v1144_v11 = vld [vmem:[%s1521_s0 + $0x68] sm:$0xff] }
   0x4   :  { %826 = vst [vmem:[%s1522_s1 + $0x120] sm:$0xff] %v1135_v2  ;;  %v1139_v6 = vld [vmem:[%s1521_s0 + $0x120] sm:$0xff]  ;;  %v1140_v7 = vld [vmem:[%s1521_s0 + $0x90] sm:$0xff]  ;;  %v1145_v12 = vld [vmem:[%s1521_s0 + $0x158] sm:$0xff] }
   0x5   :  { %832 = vst [vmem:[%s1522_s1 + $0x30] sm:$0xff] %v1136_v3  ;;  %v1141_v8 = vld [vmem:[%s1521_s0] sm:$0xff]  ;;  %v1146_v13 = vld [vmem:[%s1521_s0 + $0xc8] sm:$0xff]  ;;  %v1147_v14 = vld [vmem:[%s1521_s0 + $0x38] sm:$0xff] }
   0x6   :  { %838 = vst [vmem:[%s1522_s1 + $0xc0] sm:$0xff] %v1137_v4  ;;  %v1148_v15 = vld [vmem:[%s1521_s0 + $0x128] sm:$0xff]  ;;  %v1149_v16 = vld [vmem:[%s1521_s0 + $0x98] sm:$0xff]  ;;  %v1151_v18 = vld [vmem:[%s1521_s0 + $0x190] sm:$0xff] }
   0x7   :  { %844 = vst [vmem:[%s1522_s1 + $0x150] sm:$0xff] %v1138_v5  ;;  %v1150_v17 = vld [vmem:[%s1521_s0 + $0x8] sm:$0xff]  ;;  %v1152_v19 = vld [vmem:[%s1521_s0 + $0x100] sm:$0xff]  ;;  %v1153_v20 = vld [vmem:[%s1521_s0 + $0x70] sm:$0xff] }
   0x8   :  { %850 = vst [vmem:[%s1522_s1 + $0x60] sm:$0xff] %v1139_v6  ;;  %v1154_v21 = vld [vmem:[%s1521_s0 + $0x160] sm:$0xff]  ;;  %v1155_v22 = vld [vmem:[%s1521_s0 + $0xd0] sm:$0xff]  ;;  %v1160_v27 = vld [vmem:[%s1521_s0 + $0x198] sm:$0xff] }
   0x9   :  { %856 = vst [vmem:[%s1522_s1 + $0xf0] sm:$0xff] %v1140_v7  ;;  %v1156_v23 = vld [vmem:[%s1521_s0 + $0x40] sm:$0xff]  ;;  %v1157_v24 = vld [vmem:[%s1521_s0 + $0x130] sm:$0xff]  ;;  %v1161_v28 = vld [vmem:[%s1521_s0 + $0x108] sm:$0xff] }
   0xa   :  { %862 = vst [vmem:[%s1522_s1 + $0x180] sm:$0xff] %v1141_v8  ;;  %v1158_v25 = vld [vmem:[%s1521_s0 + $0xa0] sm:$0xff]  ;;  %v1159_v26 = vld [vmem:[%s1521_s0 + $0x10] sm:$0xff]  ;;  %v1162_v29 = vld [vmem:[%s1521_s0 + $0x78] sm:$0xff] }
   0xb   :  { %868 = vst [vmem:[%s1522_s1 + $0x8] sm:$0xff] %v1142_v9  ;;  %v1163_v30 = vld [vmem:[%s1521_s0 + $0x168] sm:$0xff]  ;;  %v1164_v31 = vld [vmem:[%s1521_s0 + $0xd8] sm:$0xff]  ;;  %v1169_v36 = vld [vmem:[%s1521_s0 + $0x1a0] sm:$0xff] }
   0xc   :  { %874 = vst [vmem:[%s1522_s1 + $0x98] sm:$0xff] %v1143_v10  ;;  %v1165_v32 = vld [vmem:[%s1521_s0 + $0x48] sm:$0xff]  ;;  %v1166_v33 = vld [vmem:[%s1521_s0 + $0x138] sm:$0xff]  ;;  %v1170_v37 = vld [vmem:[%s1521_s0 + $0x110] sm:$0xff] }
   0xd   :  { %880 = vst [vmem:[%s1522_s1 + $0x128] sm:$0xff] %v1144_v11  ;;  %v1167_v34 = vld [vmem:[%s1521_s0 + $0xa8] sm:$0xff]  ;;  %v1168_v35 = vld [vmem:[%s1521_s0 + $0x18] sm:$0xff]  ;;  %v1171_v38 = vld [vmem:[%s1521_s0 + $0x80] sm:$0xff] }
   0xe   :  { %886 = vst [vmem:[%s1522_s1 + $0x38] sm:$0xff] %v1145_v12  ;;  %v1172_v39 = vld [vmem:[%s1521_s0 + $0x170] sm:$0xff]  ;;  %v1173_v40 = vld [vmem:[%s1521_s0 + $0xe0] sm:$0xff]  ;;  %v1178_v45 = vld [vmem:[%s1521_s0 + $0x1a8] sm:$0xff] }
   0xf   :  { %892 = vst [vmem:[%s1522_s1 + $0xc8] sm:$0xff] %v1146_v13  ;;  %v1174_v41 = vld [vmem:[%s1521_s0 + $0x50] sm:$0xff]  ;;  %v1175_v42 = vld [vmem:[%s1521_s0 + $0x140] sm:$0xff]  ;;  %v1179_v46 = vld [vmem:[%s1521_s0 + $0x118] sm:$0xff] }
  0x10   :  { %898 = vst [vmem:[%s1522_s1 + $0x158] sm:$0xff] %v1147_v14  ;;  %v1176_v43 = vld [vmem:[%s1521_s0 + $0xb0] sm:$0xff]  ;;  %v1177_v44 = vld [vmem:[%s1521_s0 + $0x20] sm:$0xff]  ;;  %v1180_v47 = vld [vmem:[%s1521_s0 + $0x88] sm:$0xff] }
  0x11   :  { %904 = vst [vmem:[%s1522_s1 + $0x68] sm:$0xff] %v1148_v15  ;;  %v1181_v48 = vld [vmem:[%s1521_s0 + $0x178] sm:$0xff]  ;;  %v1182_v49 = vld [vmem:[%s1521_s0 + $0xe8] sm:$0xff] }
  0x12   :  { %910 = vst [vmem:[%s1522_s1 + $0xf8] sm:$0xff] %v1149_v16  ;;  %v1183_v50 = vld [vmem:[%s1521_s0 + $0x58] sm:$0xff]  ;;  %v1184_v51 = vld [vmem:[%s1521_s0 + $0x148] sm:$0xff] }
  0x13   :  { %916 = vst [vmem:[%s1522_s1 + $0x188] sm:$0xff] %v1150_v17  ;;  %v1185_v52 = vld [vmem:[%s1521_s0 + $0xb8] sm:$0xff]  ;;  %v1186_v53 = vld [vmem:[%s1521_s0 + $0x28] sm:$0xff] }
  0x14   :  { %922 = vst [vmem:[%s1522_s1 + $0x10] sm:$0xff] %v1151_v18 }
  0x15   :  { %928 = vst [vmem:[%s1522_s1 + $0xa0] sm:$0xff] %v1152_v19 }
  0x16   :  { %934 = vst [vmem:[%s1522_s1 + $0x130] sm:$0xff] %v1153_v20 }
  0x17   :  { %940 = vst [vmem:[%s1522_s1 + $0x40] sm:$0xff] %v1154_v21 }
  0x18   :  { %946 = vst [vmem:[%s1522_s1 + $0xd0] sm:$0xff] %v1155_v22 }
  0x19   :  { %952 = vst [vmem:[%s1522_s1 + $0x160] sm:$0xff] %v1156_v23 }
  0x1a   :  { %958 = vst [vmem:[%s1522_s1 + $0x70] sm:$0xff] %v1157_v24 }
  0x1b   :  { %964 = vst [vmem:[%s1522_s1 + $0x100] sm:$0xff] %v1158_v25 }
  0x1c   :  { %970 = vst [vmem:[%s1522_s1 + $0x190] sm:$0xff] %v1159_v26 }
  0x1d   :  { %976 = vst [vmem:[%s1522_s1 + $0x18] sm:$0xff] %v1160_v27 }
  0x1e   :  { %982 = vst [vmem:[%s1522_s1 + $0xa8] sm:$0xff] %v1161_v28 }
  0x1f   :  { %988 = vst [vmem:[%s1522_s1 + $0x138] sm:$0xff] %v1162_v29 }
  0x20   :  { %994 = vst [vmem:[%s1522_s1 + $0x48] sm:$0xff] %v1163_v30 }
  0x21   :  { %1000 = vst [vmem:[%s1522_s1 + $0xd8] sm:$0xff] %v1164_v31 }
  0x22   :  { %1006 = vst [vmem:[%s1522_s1 + $0x168] sm:$0xff] %v1165_v32 }
  0x23   :  { %1012 = vst [vmem:[%s1522_s1 + $0x78] sm:$0xff] %v1166_v33 }
  0x24   :  { %1018 = vst [vmem:[%s1522_s1 + $0x108] sm:$0xff] %v1167_v34 }
  0x25   :  { %1024 = vst [vmem:[%s1522_s1 + $0x198] sm:$0xff] %v1168_v35 }
  0x26   :  { %1030 = vst [vmem:[%s1522_s1 + $0x20] sm:$0xff] %v1169_v36 }
  0x27   :  { %1036 = vst [vmem:[%s1522_s1 + $0xb0] sm:$0xff] %v1170_v37 }
  0x28   :  { %1042 = vst [vmem:[%s1522_s1 + $0x140] sm:$0xff] %v1171_v38 }
  0x29   :  { %1048 = vst [vmem:[%s1522_s1 + $0x50] sm:$0xff] %v1172_v39 }
  0x2a   :  { %1054 = vst [vmem:[%s1522_s1 + $0xe0] sm:$0xff] %v1173_v40 }
  0x2b   :  { %1060 = vst [vmem:[%s1522_s1 + $0x170] sm:$0xff] %v1174_v41 }
  0x2c   :  { %1066 = vst [vmem:[%s1522_s1 + $0x80] sm:$0xff] %v1175_v42 }
  0x2d   :  { %1072 = vst [vmem:[%s1522_s1 + $0x110] sm:$0xff] %v1176_v43 }
  0x2e   :  { %1078 = vst [vmem:[%s1522_s1 + $0x1a0] sm:$0xff] %v1177_v44 }
  0x2f   :  { %1084 = vst [vmem:[%s1522_s1 + $0x28] sm:$0xff] %v1178_v45 }
  0x30   :  { %1090 = vst [vmem:[%s1522_s1 + $0xb8] sm:$0xff] %v1179_v46 }
  0x31   :  { %1096 = vst [vmem:[%s1522_s1 + $0x148] sm:$0xff] %v1180_v47 }
  0x32   :  { %1102 = vst [vmem:[%s1522_s1 + $0x58] sm:$0xff] %v1181_v48 }
  0x33   :  { %1108 = vst [vmem:[%s1522_s1 + $0xe8] sm:$0xff] %v1182_v49 }
  0x34   :  { %1114 = vst [vmem:[%s1522_s1 + $0x178] sm:$0xff] %v1183_v50 }
  0x35   :  { %1120 = vst [vmem:[%s1522_s1 + $0x88] sm:$0xff] %v1184_v51 }
  0x36   :  { %1126 = vst [vmem:[%s1522_s1 + $0x118] sm:$0xff] %v1185_v52 }
  0x37   :  { %1132 = vst [vmem:[%s1522_s1 + $0x1a8] sm:$0xff] %v1186_v53 }

</bundles_post_ra>
